<compile_context>
chip_gen: v7x
topology: tpu7x:2x2x1
jax: 0.10.0
libtpu: 0.0.40
codegen_flags: <defaults>
</compile_context>

<pallas_src>
import numpy as np
import jax
import jax.numpy as jnp
from jax.experimental import pallas as pl
from jax.experimental.pallas import tpu as pltpu

C_IN = 1024
_LAYER_DIMS = [(1024, 512), (512, 256), (256, 128), (128, 64)]


def _make_kernel(n_total, n_tile, acc_w):
    """Build the kernel closure for a given total point count / N tile / accumulator width."""
    n_steps = int(pl.cdiv(n_total, n_tile))
    last_valid = n_total - (n_steps - 1) * n_tile      # valid columns in the last tile

    def _fold(maxacc_ref, x, width):
        """Elementwise (VALU-only) fold of the first `width` (static) columns of x into the
        running-max accumulator.  No cross-lane XLU work on the streaming path."""
        num_full = width // acc_w
        rem = width - num_full * acc_w
        for s in range(num_full):
            lo = s * acc_w
            slab = x[:, :, lo:lo + acc_w].astype(jnp.float32)
            maxacc_ref[...] = jnp.maximum(maxacc_ref[...], slab)
        if rem:
            lo = num_full * acc_w
            tail = x[:, :, lo:lo + rem].astype(jnp.float32)
            maxacc_ref[:, :, :rem] = jnp.maximum(maxacc_ref[:, :, :rem], tail)

    def kernel(x_ref, w1_ref, b1_ref, w2_ref, b2_ref,
               w3_ref, b3_ref, w4_ref, b4_ref,
               wl_ref, bl_ref, o_ref, maxacc_ref):
        k = pl.program_id(1)

        # --- init running max on the first reduction step -------------------
        @pl.when(k == 0)
        def _init():
            maxacc_ref[...] = jnp.full_like(maxacc_ref, -jnp.inf)

        # --- streaming elementwise max over the point (lane) axis -----------
        x = x_ref[...]                                    # (b_tile, 1024, n_tile)

        if last_valid == n_tile:
            # All tiles full: single unconditional fast path.
            _fold(maxacc_ref, x, n_tile)
        else:
            @pl.when(k < n_steps - 1)
            def _fold_full():
                _fold(maxacc_ref, x, n_tile)

            @pl.when(k == n_steps - 1)
            def _fold_ragged():
                # Fold only the statically-known valid columns of the ragged tile; the
                # padded garbage columns are never read, so no -inf masking is needed.
                _fold(maxacc_ref, x, last_valid)

        # --- tiny matmul head: run exactly once per B tile -------------------
        @pl.when(k == n_steps - 1)
        def _finalize():
            # One cross-lane (XLU) reduce + relayout per B tile, amortized over the stream.
            h = jnp.max(maxacc_ref[...], axis=-1)         # (b_tile, 1024) f32

            def fused(h, w_ref, b_ref):
                # 1x1 Conv1d + folded eval-BatchNorm + ReLU on identical point columns
                # == a single matmul over channels.
                y = jnp.dot(h, w_ref[...], preferred_element_type=jnp.float32)
                return jnp.maximum(y + b_ref[...], 0.0)

            h = fused(h, w1_ref, b1_ref)                  # (b_tile, 512)
            h = fused(h, w2_ref, b2_ref)                  # (b_tile, 256)
            # max_pool1d over identical columns == identity
            h = fused(h, w3_ref, b3_ref)                  # (b_tile, 128)
            h = fused(h, w4_ref, b4_ref)                  # (b_tile, 64)
            # adaptive_avg_pool1d(., 1) over identical columns == identity
            logits = jnp.dot(h, wl_ref[...], preferred_element_type=jnp.float32) + bl_ref[...]
            o_ref[...] = jax.nn.sigmoid(logits)           # (b_tile, 1)

    return kernel


def _vmem_capacity_bytes():
    """Physical VMEM of the local TPU; v7x-safe 64 MiB fallback if the query fails."""
    try:
        info = pltpu.get_tpu_info()
        return int(getattr(info, "vmem_capacity_bytes", 64 * 1024 * 1024))
    except Exception:
        return 64 * 1024 * 1024


def instance_counter_forward(x_ncw, params, *, n_tile=None, b_tile=None):
    """x_ncw: (B, 1024, N) float32/bfloat16, native PyTorch NCW layout (no transpose!).

    Returns (B, 1) float32 == sigmoid(linear(...)).
    """
    B, C, N = x_ncw.shape
    assert C == C_IN, f"InstanceCounter expects {C_IN} input channels, got {C}"

    x_elt = jnp.dtype(x_ncw.dtype).itemsize
    vmem_cap = _vmem_capacity_bytes()

    # --- tile selection ------------------------------------------------------
    if b_tile is None:
        # NOTE: when B % b_tile != 0 the padded batch rows of the last tile stream
        # uninitialized block padding; any NaN there only reaches output rows that Pallas
        # discards, so it is harmless — do not "fix" it with per-row masking.
        b_tile = min(B, 8)
    if n_tile is None:
        # Generation-aware streaming tile (multiple of 128 lanes): 1024 columns on
        # 128 MiB-VMEM chips (v5e/v6e), 512 on 64 MiB (v7x).  Full N if it is small
        # (block dim == full array dim is always legal).
        n_tile_max = 1024 if vmem_cap >= 96 * 1024 * 1024 else 512
        n_tile = N if N <= n_tile_max else n_tile_max

    # Width of the wide elementwise running-max accumulator (one lane-tile, or full N
    # when N < 128).
    acc_w = 128 if n_tile >= 128 else n_tile

    grid = (pl.cdiv(B, b_tile), pl.cdiv(N, n_tile))

    # --- block specs ----------------------------------------------------------
    x_spec = pl.BlockSpec((b_tile, C, n_tile), lambda b, k: (b, 0, k))
    # Constant index maps: weights/biases are DMA'd into VMEM once and stay resident.
    param_specs = [pl.BlockSpec(p.shape, lambda b, k: (0, 0)) for p in params]
    out_spec = pl.BlockSpec((b_tile, 1), lambda b, k: (b, 0))

    # --- VMEM budget / cost estimate ------------------------------------------
    param_bytes = sum(int(np.prod(p.shape)) * jnp.dtype(p.dtype).itemsize for p in params)
    acc_bytes = b_tile * C * max(acc_w, 128) * 4          # scratch lanes pad to 128
    need = (2 * b_tile * C * n_tile * x_elt               # double-buffered x stream
            + 2 * param_bytes                             # resident params (default 2-buf)
            + acc_bytes                                   # wide f32 running-max accumulator
            + 4 * 1024 * 1024)                            # misc headroom (out blocks, temps)
    # Never request all of physical VMEM: leave >= 8 MiB for Mosaic internal scratch.
    vmem_limit = int(min(max(need, 32 * 1024 * 1024), vmem_cap - 8 * 1024 * 1024))

    matmul_flops = 2 * sum(ci * co for ci, co in _LAYER_DIMS) + 2 * 64
    cost = pl.CostEstimate(
        flops=int(B * (C * N + matmul_flops)),
        transcendentals=int(B),
        bytes_accessed=int(B * C * N * x_elt + param_bytes + B * 4),
    )

    return pl.pallas_call(
        _make_kernel(N, n_tile, acc_w),
        out_shape=jax.ShapeDtypeStruct((B, 1), jnp.float32),
        grid_spec=pltpu.PrefetchScalarGridSpec(
            num_scalar_prefetch=0,
            grid=grid,
            in_specs=[x_spec] + param_specs,
            out_specs=out_spec,
            scratch_shapes=[pltpu.VMEM((b_tile, C, acc_w), jnp.float32)],
        ),
        compiler_params=pltpu.CompilerParams(
            # B tiles are independent (sharded across TCs on v7x); N is the reduction.
            dimension_semantics=("parallel", "arbitrary"),
            vmem_limit_bytes=vmem_limit,
        ),
        cost_estimate=cost,
    )(x_ncw, *params)


# ----------------------------------------------------------------------------
# Parameter construction (plain JAX glue, outside the kernel)
# ----------------------------------------------------------------------------
def _fold_bn(w, b, gamma, beta, mean, var, eps=1e-5):
    """Fold conv bias + eval-mode BatchNorm into (C_in, C_out) weight and (1, C_out) bias."""
    s = gamma / jnp.sqrt(var + eps)                     # (C_out,)
    w_eff = (w * s[:, None]).T.astype(jnp.float32)      # (C_in, C_out)
    b_eff = ((b - mean) * s + beta).reshape(1, -1).astype(jnp.float32)
    return w_eff, b_eff


def make_params(key):
    """Deterministic synthetic parameters matching InstanceCounter.__init__ shapes."""
    params = []
    for cin, cout in _LAYER_DIMS:
        key, kw, kb, kg, kbe, km, kv = jax.random.split(key, 7)
        w = jax.random.normal(kw, (cout, cin), jnp.float32) / jnp.sqrt(cin)   # Conv1d (out,in,1)
        b = 0.01 * jax.random.normal(kb, (cout,), jnp.float32)
        gamma = 1.0 + 0.1 * jax.random.normal(kg, (cout,), jnp.float32)
        beta = 0.05 * jax.random.normal(kbe, (cout,), jnp.float32)
        mean = 0.1 * jax.random.normal(km, (cout,), jnp.float32)
        var = jnp.abs(jax.random.normal(kv, (cout,), jnp.float32)) + 0.5
        params.extend(_fold_bn(w, b, gamma, beta, mean, var))
    key, kwl, kbl = jax.random.split(key, 3)
    wl = (jax.random.normal(kwl, (1, 64), jnp.float32) / jnp.sqrt(64.0)).T    # (64, 1)
    bl = 0.01 * jax.random.normal(kbl, (1,), jnp.float32).reshape(1, 1)       # (1, 1)
    params.extend([wl.astype(jnp.float32), bl.astype(jnp.float32)])
    return tuple(params)


def reference_forward(x_ncw, params):
    """Pure-JAX reference following the literal PyTorch structure (repeat / pools / 1x1 convs)."""
    w1, b1, w2, b2, w3, b3, w4, b4, wl, bl = params
    B, C, N = x_ncw.shape

    def layer(h_bcn, w_cin_cout, b_1c):
        y = jnp.einsum('bcn,cd->bdn', h_bcn, w_cin_cout) + b_1c.reshape(1, -1, 1)
        return jnp.maximum(y, 0.0)

    h = jnp.max(x_ncw, axis=2)                               # max_pool1d + squeeze
    h = jnp.repeat(h[:, :, None], N, axis=2)                 # repeat(1,1,N)
    h = layer(h, w1, b1)
    h = layer(h, w2, b2)
    h = jnp.max(h, axis=2)
    h = jnp.repeat(h[:, :, None], N, axis=2)
    h = layer(h, w3, b3)
    h = layer(h, w4, b4)
    h = jnp.mean(h, axis=2)                                  # adaptive_avg_pool1d(., 1)
    logits = h @ wl + bl
    return jax.nn.sigmoid(logits)


if __name__ == "__main__":
    params = make_params(jax.random.PRNGKey(1))

    # Case 1: typical small shape, single N tile (C is fixed to 1024 by the module).
    B, C, N = 2, 1024, 8
    x = jax.random.normal(jax.random.PRNGKey(0), (B, C, N), jnp.float32)   # PyTorch NCW
    out = jax.block_until_ready(instance_counter_forward(x, params))
    assert out.shape == (B, 1) and out.dtype == jnp.float32
    ref = reference_forward(x, params)
    np.testing.assert_allclose(np.asarray(out), np.asarray(ref), rtol=1e-3, atol=1e-3)

    # Case 2: multi-step reduction grid with a ragged last N tile — exercises the wide
    # elementwise running-max accumulator, the static partial-width fold (no -inf mask),
    # and the last-step matmul guard.
    B2, N2 = 4, 200
    x2 = jax.random.normal(jax.random.PRNGKey(2), (B2, C, N2), jnp.float32)
    out2 = jax.block_until_ready(instance_counter_forward(x2, params, n_tile=128))
    ref2 = reference_forward(x2, params)
    np.testing.assert_allclose(np.asarray(out2), np.asarray(ref2), rtol=1e-3, atol=1e-3)

    print("KERNEL_OK")
</pallas_src>

<mosaic_0001>
module attributes {stable_mosaic.version = 11 : i64} {
  func.func @kernel(%arg0: i32, %arg1: i32, %arg2: memref<2x1024x8xf32, #tpu.memory_space<vmem>>, %arg3: memref<1024x512xf32, #tpu.memory_space<vmem>>, %arg4: memref<1x512xf32, #tpu.memory_space<vmem>>, %arg5: memref<512x256xf32, #tpu.memory_space<vmem>>, %arg6: memref<1x256xf32, #tpu.memory_space<vmem>>, %arg7: memref<256x128xf32, #tpu.memory_space<vmem>>, %arg8: memref<1x128xf32, #tpu.memory_space<vmem>>, %arg9: memref<128x64xf32, #tpu.memory_space<vmem>>, %arg10: memref<1x64xf32, #tpu.memory_space<vmem>>, %arg11: memref<64x1xf32, #tpu.memory_space<vmem>>, %arg12: memref<1x1xf32, #tpu.memory_space<vmem>>, %arg13: memref<2x1xf32, #tpu.memory_space<vmem>>, %arg14: memref<2x1024x8xf32, #tpu.memory_space<vmem>>) attributes {dimension_semantics = [#tpu.dimension_semantics<parallel>, #tpu.dimension_semantics<arbitrary>], iteration_bounds = array<i64: 1, 1>, scalar_prefetch = 0 : i64, scratch_operands = 1 : i64, tpu.core_type = #tpu.core_type<tc>, window_params = [{transform_indices = @transform_0, window_bounds = array<i64: 2, 1024, 8>}, {pipeline_mode = #tpu.pipeline_mode<synchronous>, transform_indices = @transform_1, window_bounds = array<i64: 1024, 512>}, {pipeline_mode = #tpu.pipeline_mode<synchronous>, transform_indices = @transform_2, window_bounds = array<i64: 1, 512>}, {pipeline_mode = #tpu.pipeline_mode<synchronous>, transform_indices = @transform_3, window_bounds = array<i64: 512, 256>}, {pipeline_mode = #tpu.pipeline_mode<synchronous>, transform_indices = @transform_4, window_bounds = array<i64: 1, 256>}, {pipeline_mode = #tpu.pipeline_mode<synchronous>, transform_indices = @transform_5, window_bounds = array<i64: 256, 128>}, {pipeline_mode = #tpu.pipeline_mode<synchronous>, transform_indices = @transform_6, window_bounds = array<i64: 1, 128>}, {pipeline_mode = #tpu.pipeline_mode<synchronous>, transform_indices = @transform_7, window_bounds = array<i64: 128, 64>}, {pipeline_mode = #tpu.pipeline_mode<synchronous>, transform_indices = @transform_8, window_bounds = array<i64: 1, 64>}, {pipeline_mode = #tpu.pipeline_mode<synchronous>, transform_indices = @transform_9, window_bounds = array<i64: 64, 1>}, {pipeline_mode = #tpu.pipeline_mode<synchronous>, transform_indices = @transform_10, window_bounds = array<i64: 1, 1>}, {transform_indices = @transform_11, window_bounds = array<i64: 2, 1>}]} {
    %c0_i32 = arith.constant 0 : i32
    %0 = arith.cmpi eq, %arg1, %c0_i32 : i32
    %1 = arith.extui %0 : i1 to i32
    %c0_i32_0 = arith.constant 0 : i32
    %2 = arith.cmpi ne, %1, %c0_i32_0 : i32
    scf.if %2 {
      %cst = arith.constant 0xFF800000 : f32
      %10 = vector.broadcast %cst : f32 to vector<2x1024x8xf32>
      %c0_11 = arith.constant 0 : index
      %c0_12 = arith.constant 0 : index
      %c0_13 = arith.constant 0 : index
      %11 = vector.load %arg14[%c0_11, %c0_12, %c0_13] : memref<2x1024x8xf32, #tpu.memory_space<vmem>>, vector<2x1024x8xf32>
      tpu.vector_store %arg14[%c0_11, %c0_12, %c0_13], %10 {strides = array<i32>} : memref<2x1024x8xf32, #tpu.memory_space<vmem>>, vector<2x1024x8xf32>,
    } else {
    }
    %c0 = arith.constant 0 : index
    %c0_1 = arith.constant 0 : index
    %c0_2 = arith.constant 0 : index
    %3 = vector.load %arg2[%c0, %c0_1, %c0_2] : memref<2x1024x8xf32, #tpu.memory_space<vmem>>, vector<2x1024x8xf32>
    %c0_3 = arith.constant 0 : index
    %c0_4 = arith.constant 0 : index
    %c0_5 = arith.constant 0 : index
    %4 = vector.load %arg14[%c0_3, %c0_4, %c0_5] : memref<2x1024x8xf32, #tpu.memory_space<vmem>>, vector<2x1024x8xf32>
    %5 = arith.maximumf %4, %3 : vector<2x1024x8xf32>
    %c0_6 = arith.constant 0 : index
    %c0_7 = arith.constant 0 : index
    %c0_8 = arith.constant 0 : index
    %6 = vector.load %arg14[%c0_6, %c0_7, %c0_8] : memref<2x1024x8xf32, #tpu.memory_space<vmem>>, vector<2x1024x8xf32>
    tpu.vector_store %arg14[%c0_6, %c0_7, %c0_8], %5 {strides = array<i32>} : memref<2x1024x8xf32, #tpu.memory_space<vmem>>, vector<2x1024x8xf32>,
    %c0_i32_9 = arith.constant 0 : i32
    %7 = arith.cmpi eq, %arg1, %c0_i32_9 : i32
    %8 = arith.extui %7 : i1 to i32
    %c0_i32_10 = arith.constant 0 : i32
    %9 = arith.cmpi ne, %8, %c0_i32_10 : i32
    scf.if %9 {
      %c0_11 = arith.constant 0 : index
      %c0_12 = arith.constant 0 : index
      %c0_13 = arith.constant 0 : index
      %10 = vector.load %arg14[%c0_11, %c0_12, %c0_13] : memref<2x1024x8xf32, #tpu.memory_space<vmem>>, vector<2x1024x8xf32>
      %cst = arith.constant dense<0xFF800000> : vector<2x1024xf32>
      %11 = vector.multi_reduction <maximumf>, %10, %cst [2] : vector<2x1024x8xf32> to vector<2x1024xf32>
      %c0_14 = arith.constant 0 : index
      %c0_15 = arith.constant 0 : index
      %12 = vector.load %arg3[%c0_14, %c0_15] : memref<1024x512xf32, #tpu.memory_space<vmem>>, vector<1024x512xf32>
      %cst_16 = arith.constant dense<0.000000e+00> : vector<2x512xf32>
      %13 = tpu.matmul %11, %12, %cst_16 {dimension_numbers = #tpu.dot_dimension_numbers<[1], [0], [0], [1], [0, 0, 1, 1], [], []>} : vector<2x1024xf32>, vector<1024x512xf32>, vector<2x512xf32> -> vector<2x512xf32>
      %c0_17 = arith.constant 0 : index
      %c0_18 = arith.constant 0 : index
      %14 = vector.load %arg4[%c0_17, %c0_18] : memref<1x512xf32, #tpu.memory_space<vmem>>, vector<1x512xf32>
      %15 = vector.broadcast %14 : vector<1x512xf32> to vector<2x512xf32>
      %16 = arith.addf %13, %15 : vector<2x512xf32>
      %cst_19 = arith.constant 0.000000e+00 : f32
      %17 = vector.broadcast %cst_19 : f32 to vector<2x512xf32>
      %18 = arith.maximumf %16, %17 : vector<2x512xf32>
      %c0_20 = arith.constant 0 : index
      %c0_21 = arith.constant 0 : index
      %19 = vector.load %arg5[%c0_20, %c0_21] : memref<512x256xf32, #tpu.memory_space<vmem>>, vector<512x256xf32>
      %cst_22 = arith.constant dense<0.000000e+00> : vector<2x256xf32>
      %20 = tpu.matmul %18, %19, %cst_22 {dimension_numbers = #tpu.dot_dimension_numbers<[1], [0], [0], [1], [0, 0, 1, 1], [], []>} : vector<2x512xf32>, vector<512x256xf32>, vector<2x256xf32> -> vector<2x256xf32>
      %c0_23 = arith.constant 0 : index
      %c0_24 = arith.constant 0 : index
      %21 = vector.load %arg6[%c0_23, %c0_24] : memref<1x256xf32, #tpu.memory_space<vmem>>, vector<1x256xf32>
      %22 = vector.broadcast %21 : vector<1x256xf32> to vector<2x256xf32>
      %23 = arith.addf %20, %22 : vector<2x256xf32>
      %cst_25 = arith.constant 0.000000e+00 : f32
      %24 = vector.broadcast %cst_25 : f32 to vector<2x256xf32>
      %25 = arith.maximumf %23, %24 : vector<2x256xf32>
      %c0_26 = arith.constant 0 : index
      %c0_27 = arith.constant 0 : index
      %26 = vector.load %arg7[%c0_26, %c0_27] : memref<256x128xf32, #tpu.memory_space<vmem>>, vector<256x128xf32>
      %cst_28 = arith.constant dense<0.000000e+00> : vector<2x128xf32>
      %27 = tpu.matmul %25, %26, %cst_28 {dimension_numbers = #tpu.dot_dimension_numbers<[1], [0], [0], [1], [0, 0, 1, 1], [], []>} : vector<2x256xf32>, vector<256x128xf32>, vector<2x128xf32> -> vector<2x128xf32>
      %c0_29 = arith.constant 0 : index
      %c0_30 = arith.constant 0 : index
      %28 = vector.load %arg8[%c0_29, %c0_30] : memref<1x128xf32, #tpu.memory_space<vmem>>, vector<1x128xf32>
      %29 = vector.broadcast %28 : vector<1x128xf32> to vector<2x128xf32>
      %30 = arith.addf %27, %29 : vector<2x128xf32>
      %cst_31 = arith.constant 0.000000e+00 : f32
      %31 = vector.broadcast %cst_31 : f32 to vector<2x128xf32>
      %32 = arith.maximumf %30, %31 : vector<2x128xf32>
      %c0_32 = arith.constant 0 : index
      %c0_33 = arith.constant 0 : index
      %33 = vector.load %arg9[%c0_32, %c0_33] : memref<128x64xf32, #tpu.memory_space<vmem>>, vector<128x64xf32>
      %cst_34 = arith.constant dense<0.000000e+00> : vector<2x64xf32>
      %34 = tpu.matmul %32, %33, %cst_34 {dimension_numbers = #tpu.dot_dimension_numbers<[1], [0], [0], [1], [0, 0, 1, 1], [], []>} : vector<2x128xf32>, vector<128x64xf32>, vector<2x64xf32> -> vector<2x64xf32>
      %c0_35 = arith.constant 0 : index
      %c0_36 = arith.constant 0 : index
      %35 = vector.load %arg10[%c0_35, %c0_36] : memref<1x64xf32, #tpu.memory_space<vmem>>, vector<1x64xf32>
      %36 = vector.broadcast %35 : vector<1x64xf32> to vector<2x64xf32>
      %37 = arith.addf %34, %36 : vector<2x64xf32>
      %cst_37 = arith.constant 0.000000e+00 : f32
      %38 = vector.broadcast %cst_37 : f32 to vector<2x64xf32>
      %39 = arith.maximumf %37, %38 : vector<2x64xf32>
      %c0_38 = arith.constant 0 : index
      %c0_39 = arith.constant 0 : index
      %40 = vector.load %arg11[%c0_38, %c0_39] : memref<64x1xf32, #tpu.memory_space<vmem>>, vector<64x1xf32>
      %cst_40 = arith.constant dense<0.000000e+00> : vector<2x1xf32>
      %41 = tpu.matmul %39, %40, %cst_40 {dimension_numbers = #tpu.dot_dimension_numbers<[1], [0], [0], [1], [0, 0, 1, 1], [], []>} : vector<2x64xf32>, vector<64x1xf32>, vector<2x1xf32> -> vector<2x1xf32>
      %c0_41 = arith.constant 0 : index
      %c0_42 = arith.constant 0 : index
      %42 = vector.load %arg12[%c0_41, %c0_42] : memref<1x1xf32, #tpu.memory_space<vmem>>, vector<1x1xf32>
      %43 = vector.broadcast %42 : vector<1x1xf32> to vector<2x1xf32>
      %44 = arith.addf %41, %43 : vector<2x1xf32>
      %45 = arith.negf %44 : vector<2x1xf32>
      %46 = math.exp %45 : vector<2x1xf32>
      %cst_43 = arith.constant 1.000000e+00 : f32
      %47 = vector.broadcast %cst_43 : f32 to vector<2x1xf32>
      %48 = arith.addf %47, %46 : vector<2x1xf32>
      %49 = arith.divf %47, %48 : vector<2x1xf32>
      %c0_44 = arith.constant 0 : index
      %c0_45 = arith.constant 0 : index
      %50 = vector.load %arg13[%c0_44, %c0_45] : memref<2x1xf32, #tpu.memory_space<vmem>>, vector<2x1xf32>
      tpu.vector_store %arg13[%c0_44, %c0_45], %49 {strides = array<i32>} : memref<2x1xf32, #tpu.memory_space<vmem>>, vector<2x1xf32>,
    } else {
    }
    return
  }
  func.func @transform_0(%arg0: i32, %arg1: i32) -> (i32, i32, i32) {
    %c0_i32 = arith.constant 0 : i32
    %c0_i32_0 = arith.constant 0 : i32
    return %arg0, %c0_i32, %arg1 : i32, i32, i32
  }
  func.func @transform_1(%arg0: i32, %arg1: i32) -> (i32, i32) {
    %c0_i32 = arith.constant 0 : i32
    %c0_i32_0 = arith.constant 0 : i32
    %c0_i32_1 = arith.constant 0 : i32
    return %c0_i32, %c0_i32_0 : i32, i32
  }
  func.func @transform_2(%arg0: i32, %arg1: i32) -> (i32, i32) {
    %c0_i32 = arith.constant 0 : i32
    %c0_i32_0 = arith.constant 0 : i32
    %c0_i32_1 = arith.constant 0 : i32
    return %c0_i32, %c0_i32_0 : i32, i32
  }
  func.func @transform_3(%arg0: i32, %arg1: i32) -> (i32, i32) {
    %c0_i32 = arith.constant 0 : i32
    %c0_i32_0 = arith.constant 0 : i32
    %c0_i32_1 = arith.constant 0 : i32
    return %c0_i32, %c0_i32_0 : i32, i32
  }
  func.func @transform_4(%arg0: i32, %arg1: i32) -> (i32, i32) {
    %c0_i32 = arith.constant 0 : i32
    %c0_i32_0 = arith.constant 0 : i32
    %c0_i32_1 = arith.constant 0 : i32
    return %c0_i32, %c0_i32_0 : i32, i32
  }
  func.func @transform_5(%arg0: i32, %arg1: i32) -> (i32, i32) {
    %c0_i32 = arith.constant 0 : i32
    %c0_i32_0 = arith.constant 0 : i32
    %c0_i32_1 = arith.constant 0 : i32
    return %c0_i32, %c0_i32_0 : i32, i32
  }
  func.func @transform_6(%arg0: i32, %arg1: i32) -> (i32, i32) {
    %c0_i32 = arith.constant 0 : i32
    %c0_i32_0 = arith.constant 0 : i32
    %c0_i32_1 = arith.constant 0 : i32
    return %c0_i32, %c0_i32_0 : i32, i32
  }
  func.func @transform_7(%arg0: i32, %arg1: i32) -> (i32, i32) {
    %c0_i32 = arith.constant 0 : i32
    %c0_i32_0 = arith.constant 0 : i32
    %c0_i32_1 = arith.constant 0 : i32
    return %c0_i32, %c0_i32_0 : i32, i32
  }
  func.func @transform_8(%arg0: i32, %arg1: i32) -> (i32, i32) {
    %c0_i32 = arith.constant 0 : i32
    %c0_i32_0 = arith.constant 0 : i32
    %c0_i32_1 = arith.constant 0 : i32
    return %c0_i32, %c0_i32_0 : i32, i32
  }
  func.func @transform_9(%arg0: i32, %arg1: i32) -> (i32, i32) {
    %c0_i32 = arith.constant 0 : i32
    %c0_i32_0 = arith.constant 0 : i32
    %c0_i32_1 = arith.constant 0 : i32
    return %c0_i32, %c0_i32_0 : i32, i32
  }
  func.func @transform_10(%arg0: i32, %arg1: i32) -> (i32, i32) {
    %c0_i32 = arith.constant 0 : i32
    %c0_i32_0 = arith.constant 0 : i32
    %c0_i32_1 = arith.constant 0 : i32
    return %c0_i32, %c0_i32_0 : i32, i32
  }
  func.func @transform_11(%arg0: i32, %arg1: i32) -> (i32, i32) {
    %c0_i32 = arith.constant 0 : i32
    %c0_i32_0 = arith.constant 0 : i32
    return %arg0, %c0_i32 : i32, i32
  }
}

</mosaic_0001>

<bundles_post_ra>
// kernel: tpu_custom_call.1
= control target key start
LH: loop header
LB: loop body
LE: loop exit
PB: predicated region body
PF: predicated region fallthrough
CT: control target
= control target key end

     0   :  { %s10179_s0 = inlined_call_operand.vmem [shape: f32[2,1024,8], index: 0, kind: input, shape index: {}]   ;;  %s10180_s1 = inlined_call_operand.hbm [shape: f32[1024,512], index: 1, kind: input, shape index: {}]   ;;  %s10181_s2 = inlined_call_operand.hbm [shape: f32[1,512], index: 2, kind: input, shape index: {}]   ;;  %s10182_s3 = inlined_call_operand.hbm [shape: f32[512,256], index: 3, kind: input, shape index: {}]   ;;  %s10183_s4 = inlined_call_operand.hbm [shape: f32[1,256], index: 4, kind: input, shape index: {}]   ;;  %s10184_s5 = inlined_call_operand.hbm [shape: f32[256,128], index: 5, kind: input, shape index: {}]   ;;  %s10185_s6 = inlined_call_operand.hbm [shape: f32[1,128], index: 6, kind: input, shape index: {}]   ;;  %s10186_s7 = inlined_call_operand.vmem [shape: f32[128,64], index: 7, kind: input, shape index: {}]   ;;  %s10187_s8 = inlined_call_operand.hbm [shape: f32[1,64], index: 8, kind: input, shape index: {}]   ;;  %s10188_s9 = inlined_call_operand.vmem [shape: f32[64,1], index: 9, kind: input, shape index: {}]   ;;  %s10189_s10 = inlined_call_operand.<no memory space> [shape: f32[1,1], index: 10, kind: input, shape index: {}]   ;;  %s10190_s11 = inlined_call_operand.vmem [shape: f32[2,1], index: 11, kind: output, shape index: {}]  }
   0x1   :  { %v16_v0 = vstv %s10189_s10 }
   0x2   :  { %17 = vst [vmem:[#allocation3] sm:$0x1] %v16_v0 }
   0x3   :  { %18 = vsyncpa [#allocation5], 0 }
   0x4   :  { %19 = vsyncpa [#allocation7], 0 }
   0x5   :  { %20 = vsyncpa [#allocation10], 0 }
   0x6   :  { %21 = vsyncpa [#allocation13], 0  ;;  %s6739_s19 = smov [#allocation6]   ;;  %s6740_s21 = smov [#allocation9]  }
   0x7   :  { %s42_s20 = sshll.u32 %s6739_s19, 4  ;;  %s64_s22 = sshll.u32 %s6740_s21, 4  ;;  %s43_s20 = int_to_ptr.vmem [resolvable:$true] %s42_s20  ;;  %s65_s22 = int_to_ptr.vmem [resolvable:$true] %s64_s22 }
   0x8   :  { %s6577_s25 = scalar_lea.hbm %s10181_s2, 64 }
   0x9   :  { %p6578_p0 = scmp.ne.s32.totalorder %s10181_s2, %s6577_s25  ;;  %p6581_p1 = scmp.lt.u32.totalorder %s6577_s25, %s10181_s2 }
   0xb   :  { %p6583_p2 = pnand %p6581_p1, %p6578_p0 }
   0xd   :  { %6586 = shalt.err (!%p6583_p2)
}
   0xe   :  { %s6587_s29 = scalar_lea.vmem %s43_s20, 64  ;;  %p6592_p4 = scmp.lt.s32.totalorder %s43_s20, %s43_s20 }
   0xf   :  { %p6588_p3 = scmp.ne.s32.totalorder %s43_s20, %s6587_s29  ;;  %p6593_p5 = scmp.lt.s32.totalorder %s6587_s29, %s6587_s29 }
  0x11   :  { %p6594_p6 = por %p6593_p5, %p6592_p4 }
  0x13   :  { %p6595_p7 = pnand %p6594_p6, %p6588_p3 }
  0x15   :  { %6598 = shalt.err (!%p6595_p7)
}
  0x16   :  { %45 = dma.hbm_to_vmem [thread:$0]  %s10181_s2, 64, %s43_s20, [#allocation7]  }
  0x17   :  { %s6599_s15 = scalar_lea.hbm %s10183_s4, 32 }
  0x18   :  { %p6600_p8 = scmp.ne.s32.totalorder %s10183_s4, %s6599_s15  ;;  %p6603_p9 = scmp.lt.u32.totalorder %s6599_s15, %s10183_s4 }
  0x1a   :  { %p6605_p10 = pnand %p6603_p9, %p6600_p8 }
  0x1c   :  { %6608 = shalt.err (!%p6605_p10)
}
  0x1d   :  { %s6609_s21 = scalar_lea.vmem %s65_s22, 32  ;;  %p6614_p12 = scmp.lt.s32.totalorder %s65_s22, %s65_s22 }
  0x1e   :  { %p6610_p11 = scmp.ne.s32.totalorder %s65_s22, %s6609_s21  ;;  %p6615_p13 = scmp.lt.s32.totalorder %s6609_s21, %s6609_s21 }
  0x20   :  { %p6616_p0 = por %p6615_p13, %p6614_p12 }
  0x22   :  { %p6617_p1 = pnand %p6616_p0, %p6610_p11 }
  0x24   :  { %6620 = shalt.err (!%p6617_p1)
}
  0x25   :  { %67 = dma.hbm_to_vmem [thread:$0]  %s10183_s4, 32, %s65_s22, [#allocation10]  }
  0x26   :  { %s6741_s23 = smov [#allocation12]   ;;  %s6742_s25 = smov [#allocation4]  }
  0x27   :  { %s86_s24 = sshll.u32 %s6741_s23, 4  ;;  %s29_s26 = sshll.u32 %s6742_s25, 4  ;;  %s87_s24 = int_to_ptr.vmem [resolvable:$true] %s86_s24  ;;  %s6843_s26 = int_to_ptr.vmem [resolvable:$true] %s29_s26 }
  0x28   :  { %s6621_s28 = scalar_lea.hbm %s10185_s6, 16 }
  0x29   :  { %p6622_p2 = scmp.ne.s32.totalorder %s10185_s6, %s6621_s28  ;;  %p6625_p3 = scmp.lt.u32.totalorder %s6621_s28, %s10185_s6 }
  0x2b   :  { %p6627_p4 = pnand %p6625_p3, %p6622_p2 }
  0x2d   :  { %6630 = shalt.err (!%p6627_p4)
}
  0x2e   :  { %s6631_s4 = scalar_lea.vmem %s87_s24, 16  ;;  %s6635_s22 = scalar_lea.vmem %s87_s24, 32 }
  0x2f   :  { %p6632_p5 = scmp.ne.s32.totalorder %s87_s24, %s6631_s4  ;;  %p6636_p6 = scmp.lt.s32.totalorder %s87_s24, %s87_s24 }
  0x30   :  { %p6637_p7 = scmp.lt.s32.totalorder %s6635_s22, %s6631_s4 }
  0x32   :  { %p6638_p8 = por %p6637_p7, %p6636_p6 }
  0x34   :  { %p6639_p9 = pnand %p6638_p8, %p6632_p5 }
  0x36   :  { %6642 = shalt.err (!%p6639_p9)
}
  0x37   :  { %89 = dma.hbm_to_vmem [thread:$0]  %s10185_s6, 16, %s87_s24, [#allocation13]  }
  0x38   :  { %s6643_s18 = scalar_lea.hbm %s10180_s1, 65536 }
  0x39   :  { %p6644_p10 = scmp.ne.s32.totalorder %s10180_s1, %s6643_s18  ;;  %p6647_p11 = scmp.lt.u32.totalorder %s6643_s18, %s10180_s1 }
  0x3b   :  { %p6649_p12 = pnand %p6647_p11, %p6644_p10 }
  0x3d   :  { %6652 = shalt.err (!%p6649_p12)
}
  0x3e   :  { %s6653_s23 = scalar_lea.vmem %s6843_s26, 65536  ;;  %p6658_p0 = scmp.lt.s32.totalorder %s6843_s26, %s6843_s26 }
  0x3f   :  { %p6654_p13 = scmp.ne.s32.totalorder %s6843_s26, %s6653_s23  ;;  %p6659_p1 = scmp.lt.s32.totalorder %s6653_s23, %s6653_s23 }
  0x41   :  { %p6660_p2 = por %p6659_p1, %p6658_p0 }
  0x43   :  { %p6661_p3 = pnand %p6660_p2, %p6654_p13 }
  0x45   :  { %6664 = shalt.err (!%p6661_p3)
}
  0x46   :  { %s6743_s6 = smov 512   ;;  %s6744_s24 = smov 32  }
  0x47   :  { %35 = dma.hbm_to_vmem [thread:$0]  %s10180_s1, 65536, %s6843_s26, [#allocation5], %s6743_s6, %s6743_s6, %s6744_s24  }
  0x48   :  { %s6745_s10 = smov [#allocation8]   ;;  %s6665_s12 = scalar_lea.hbm %s10182_s3, 16384 }
  0x49   :  { %s51_s28 = sshll.u32 %s6745_s10, 4  ;;  %p6666_p4 = scmp.ne.s32.totalorder %s10182_s3, %s6665_s12  ;;  %s52_s28 = int_to_ptr.vmem [resolvable:$true] %s51_s28 }
  0x4a   :  { %p6669_p5 = scmp.lt.u32.totalorder %s6665_s12, %s10182_s3 }
  0x4c   :  { %p6671_p6 = pnand %p6669_p5, %p6666_p4 }
  0x4e   :  { %6674 = shalt.err (!%p6671_p6)
}
  0x4f   :  { %s6675_s15 = scalar_lea.vmem %s52_s28, 16384  ;;  %p6680_p8 = scmp.lt.s32.totalorder %s52_s28, %s52_s28 }
  0x50   :  { %p6676_p7 = scmp.ne.s32.totalorder %s52_s28, %s6675_s15  ;;  %p6681_p9 = scmp.lt.s32.totalorder %s6675_s15, %s6675_s15 }
  0x52   :  { %p6682_p10 = por %p6681_p9, %p6680_p8 }
  0x54   :  { %p6683_p11 = pnand %p6682_p10, %p6676_p7 }
  0x56   :  { %6686 = shalt.err (!%p6683_p11)
}
  0x57   :  { %s6746_s1 = smov 256   ;;  %s6747_s26 = smov 16  }
  0x58   :  { %57 = dma.hbm_to_vmem [thread:$0]  %s10182_s3, 16384, %s52_s28, [#allocation7], %s6746_s1, %s6746_s1, %s6747_s26  }
  0x59   :  { %s6748_s18 = smov [#allocation11]   ;;  %s6687_s20 = scalar_lea.hbm %s10184_s5, 4096 }
  0x5a   :  { %s73_s19 = sshll.u32 %s6748_s18, 4  ;;  %p6688_p12 = scmp.ne.s32.totalorder %s10184_s5, %s6687_s20  ;;  %s74_s19 = int_to_ptr.vmem [resolvable:$true] %s73_s19 }
  0x5b   :  { %p6691_p13 = scmp.lt.u32.totalorder %s6687_s20, %s10184_s5 }
  0x5d   :  { %p6693_p0 = pnand %p6691_p13, %p6688_p12 }
  0x5f   :  { %6696 = shalt.err (!%p6693_p0)
}
  0x60   :  { %s6697_s27 = scalar_lea.vmem %s74_s19, 4096  ;;  %p6702_p2 = scmp.lt.s32.totalorder %s74_s19, %s74_s19 }
  0x61   :  { %p6698_p1 = scmp.ne.s32.totalorder %s74_s19, %s6697_s27  ;;  %p6703_p3 = scmp.lt.s32.totalorder %s6697_s27, %s6697_s27 }
  0x63   :  { %p6704_p4 = por %p6703_p3, %p6702_p2 }
  0x65   :  { %p6705_p5 = pnand %p6704_p4, %p6698_p1 }
  0x67   :  { %6708 = shalt.err (!%p6705_p5)
}
  0x68   :  { %s6749_s3 = smov 128   ;;  %s6750_s10 = smov 8  }
  0x69   :  { %79 = dma.hbm_to_vmem [thread:$0]  %s10184_s5, 4096, %s74_s19, [#allocation10], %s6749_s3, %s6749_s3, %s6750_s10  }
  0x6a   :  { %s6751_s30 = smov [#allocation14]   ;;  %s6709_s22 = scalar_lea.hbm %s10187_s8, 16 }
  0x6b   :  { %s98_s12 = sshll.u32 %s6751_s30, 4  ;;  %p6710_p6 = scmp.ne.s32.totalorder %s10187_s8, %s6709_s22  ;;  %s99_s12 = int_to_ptr.vmem [resolvable:$true] %s98_s12 }
  0x6c   :  { %p6713_p7 = scmp.lt.u32.totalorder %s6709_s22, %s10187_s8 }
  0x6e   :  { %p6715_p8 = pnand %p6713_p7, %p6710_p6 }
  0x70   :  { %6718 = shalt.err (!%p6715_p8)
}
  0x71   :  { %s6719_s16 = scalar_lea.vmem %s99_s12, 16  ;;  %s6723_s5 = scalar_lea.vmem %s99_s12, 32 }
  0x72   :  { %p6720_p9 = scmp.ne.s32.totalorder %s99_s12, %s6719_s16  ;;  %p6724_p10 = scmp.lt.s32.totalorder %s99_s12, %s99_s12 }
  0x73   :  { %p6725_p11 = scmp.lt.s32.totalorder %s6723_s5, %s6719_s16 }
  0x75   :  { %p6726_p12 = por %p6725_p11, %p6724_p10 }
  0x77   :  { %p6727_p13 = pnand %p6726_p12, %p6720_p9 }
  0x79   :  { %6730 = shalt.err (!%p6727_p13)
}
  0x7a   :  { %101 = dma.hbm_to_vmem [thread:$0]  %s10187_s8, 16, %s99_s12, [#allocation13]  }
  0x7b   :  { %6731 = dma.done.wait [#allocation5], 65536  }
  0x7c   :  { %6732 = vsyncadd [#allocation5], 4294901760 }
  0x7d   :  { %6733 = dma.done.wait [#allocation7], 16448  }
  0x7e   :  { %6734 = vsyncadd [#allocation7], 4294950848 }
  0x7f   :  { %6735 = dma.done.wait [#allocation10], 4128  }
  0x80   :  { %6736 = vsyncadd [#allocation10], 4294963168 }
  0x81   :  { %6737 = dma.done.wait [#allocation13], 32  }
  0x82   :  { %6738 = vsyncadd [#allocation13], 4294967264  ;;  %vm131_vm0 = vcmask 64512   ;;  %v6752_v1 = vmov -inf   ;;  %v532_v2 = vld [vmem:[%s10179_s0 + $0x480] sm:$0xff]  ;;  %v533_v4 = vld [vmem:[%s10179_s0 + $0x488] sm:$0xff] }
  0x83   :  { %276 = vst.msk [vmem:[#allocation2 + $0x480] sm:$0xff] %vm131_vm0, %v6752_v1  ;;  %132 = vst.msk [vmem:[#allocation2] sm:$0xff] %vm131_vm0, %v6752_v1  ;;  %v404_v3 = vld [vmem:[%s10179_s0 + $0x80] sm:$0xff]  ;;  %v405_v11 = vld [vmem:[%s10179_s0 + $0x88] sm:$0xff]  ;;  %vm3241_vm1 = vcmask 130112   ;;  %vm3248_vm2 = vcmask 195712  }
  0x84   :  { %133 = vst.msk [vmem:[#allocation2 + $0x8] sm:$0xff] %vm131_vm0, %v6752_v1  ;;  %134 = vst.msk [vmem:[#allocation2 + $0x10] sm:$0xff] %vm131_vm0, %v6752_v1  ;;  %v389_v13 = vld [vmem:[%s10179_s0 + $0x8] sm:$0xff]  ;;  %v388_v16 = vld [vmem:[%s10179_s0] sm:$0xff]  ;;  %vm3255_vm3 = vcmask 261312   ;;  %vm3262_vm4 = vcmask 326912  }
  0x85   :  { %135 = vst.msk [vmem:[#allocation2 + $0x18] sm:$0xff] %vm131_vm0, %v6752_v1  ;;  %136 = vst.msk [vmem:[#allocation2 + $0x20] sm:$0xff] %vm131_vm0, %v6752_v1  ;;  %v516_v20 = vld [vmem:[%s10179_s0 + $0x400] sm:$0xff]  ;;  %v406_v22 = vld [vmem:[%s10179_s0 + $0x90] sm:$0xff]  ;;  %vm10207_vm5 = vcmask 392512   ;;  %vm10208_vm6 = vcmask 458112  }
  0x86   :  { %137 = vst.msk [vmem:[#allocation2 + $0x28] sm:$0xff] %vm131_vm0, %v6752_v1  ;;  %138 = vst.msk [vmem:[#allocation2 + $0x30] sm:$0xff] %vm131_vm0, %v6752_v1  ;;  %v534_v25 = vld [vmem:[%s10179_s0 + $0x490] sm:$0xff]  ;;  %v517_v29 = vld [vmem:[%s10179_s0 + $0x408] sm:$0xff]  ;;  %vm3283_vm7 = vcmask 523712   ;;  %vm10201_vm8 = vcmask 589312  }
  0x87   :  { %139 = vst.msk [vmem:[#allocation2 + $0x38] sm:$0xff] %vm131_vm0, %v6752_v1  ;;  %140 = vst.msk [vmem:[#allocation2 + $0x40] sm:$0xff] %vm131_vm0, %v6752_v1  ;;  %v407_v31 = vld [vmem:[%s10179_s0 + $0x98] sm:$0xff]  ;;  %v390_v34 = vld [vmem:[%s10179_s0 + $0x10] sm:$0xff]  ;;  %vm3297_vm9 = vcmask 654912   ;;  %vm3304_vm10 = vcmask 720512  }
  0x88   :  { %141 = vst.msk [vmem:[#allocation2 + $0x48] sm:$0xff] %vm131_vm0, %v6752_v1  ;;  %142 = vst.msk [vmem:[#allocation2 + $0x50] sm:$0xff] %vm131_vm0, %v6752_v1  ;;  %v535_v38 = vld [vmem:[%s10179_s0 + $0x498] sm:$0xff]  ;;  %v518_v40 = vld [vmem:[%s10179_s0 + $0x410] sm:$0xff]  ;;  %vm3311_vm11 = vcmask 786112   ;;  %vm3318_vm12 = vcmask 851712  }
  0x89   :  { %143 = vst.msk [vmem:[#allocation2 + $0x58] sm:$0xff] %vm131_vm0, %v6752_v1  ;;  %144 = vst.msk [vmem:[#allocation2 + $0x60] sm:$0xff] %vm131_vm0, %v6752_v1  ;;  %v408_v43 = vld [vmem:[%s10179_s0 + $0xa0] sm:$0xff]  ;;  %v391_v47 = vld [vmem:[%s10179_s0 + $0x18] sm:$0xff]  ;;  %vm3325_vm13 = vcmask 917312   ;;  %vm3332_vm14 = vcmask 982912  }
  0x8a   :  { %145 = vst.msk [vmem:[#allocation2 + $0x68] sm:$0xff] %vm131_vm0, %v6752_v1  ;;  %146 = vst.msk [vmem:[#allocation2 + $0x70] sm:$0xff] %vm131_vm0, %v6752_v1  ;;  %v788_v5 = vld [vmem:[#allocation2 + $0x480] sm:$0xff]  ;;  %v519_v58 = vld [vmem:[%s10179_s0 + $0x418] sm:$0xff]  ;;  %vm3339_vm15 = vcmask 1048512  }
  0x8b   :  { %147 = vst.msk [vmem:[#allocation2 + $0x78] sm:$0xff] %vm131_vm0, %v6752_v1  ;;  %148 = vst.msk [vmem:[#allocation2 + $0x80] sm:$0xff] %vm131_vm0, %v6752_v1  ;;  %v1044_v8 = vmax.f32 %v788_v5, %v532_v2  ;;  %v645_v15 = vld [vmem:[#allocation2 + $0x8] sm:$0xff]  ;;  %v644_v17 = vld [vmem:[#allocation2] sm:$0xff] }
  0x8c   :  { %149 = vst.msk [vmem:[#allocation2 + $0x88] sm:$0xff] %vm131_vm0, %v6752_v1  ;;  %150 = vst.msk [vmem:[#allocation2 + $0x90] sm:$0xff] %vm131_vm0, %v6752_v1  ;;  %v901_v18 = vmax.f32 %v645_v15, %v389_v13  ;;  %v900_v19 = vmax.f32 %v644_v17, %v388_v16  ;;  %v646_v35 = vld [vmem:[#allocation2 + $0x10] sm:$0xff]  ;;  %v647_v48 = vld [vmem:[#allocation2 + $0x18] sm:$0xff] }
  0x8d   :  { %151 = vst.msk [vmem:[#allocation2 + $0x98] sm:$0xff] %vm131_vm0, %v6752_v1  ;;  %152 = vst.msk [vmem:[#allocation2 + $0xa0] sm:$0xff] %vm131_vm0, %v6752_v1  ;;  %v902_v37 = vmax.f32 %v646_v35, %v390_v34  ;;  %v536_v49 = vld [vmem:[%s10179_s0 + $0x4a0] sm:$0xff]  ;;  %v903_v53 = vmax.f32 %v647_v48, %v391_v47  ;;  %v409_v0 = vld [vmem:[%s10179_s0 + $0xa8] sm:$0xff] }
  0x8e   :  { %153 = vst.msk [vmem:[#allocation2 + $0xa8] sm:$0xff] %vm131_vm0, %v6752_v1  ;;  %154 = vst.msk [vmem:[#allocation2 + $0xb0] sm:$0xff] %vm131_vm0, %v6752_v1  ;;  %v392_v5 = vld [vmem:[%s10179_s0 + $0x20] sm:$0xff]  ;;  %v411_v34 = vld [vmem:[%s10179_s0 + $0xb8] sm:$0xff] }
  0x8f   :  { %155 = vst.msk [vmem:[#allocation2 + $0xb8] sm:$0xff] %vm131_vm0, %v6752_v1  ;;  %156 = vst.msk [vmem:[#allocation2 + $0xc0] sm:$0xff] %vm131_vm0, %v6752_v1  ;;  %v520_v13 = vld [vmem:[%s10179_s0 + $0x420] sm:$0xff] }
  0x90   :  { %157 = vst.msk [vmem:[#allocation2 + $0xc8] sm:$0xff] %vm131_vm0, %v6752_v1  ;;  %158 = vst.msk [vmem:[#allocation2 + $0xd0] sm:$0xff] %vm131_vm0, %v6752_v1  ;;  %v412_v48 = vld [vmem:[%s10179_s0 + $0xc0] sm:$0xff] }
  0x91   :  { %159 = vst.msk [vmem:[#allocation2 + $0xd8] sm:$0xff] %vm131_vm0, %v6752_v1  ;;  %160 = vst.msk [vmem:[#allocation2 + $0xe0] sm:$0xff] %vm131_vm0, %v6752_v1 }
  0x92   :  { %161 = vst.msk [vmem:[#allocation2 + $0xe8] sm:$0xff] %vm131_vm0, %v6752_v1  ;;  %162 = vst.msk [vmem:[#allocation2 + $0xf0] sm:$0xff] %vm131_vm0, %v6752_v1  ;;  %v660_v6 = vld [vmem:[#allocation2 + $0x80] sm:$0xff] }
  0x93   :  { %163 = vst.msk [vmem:[#allocation2 + $0xf8] sm:$0xff] %vm131_vm0, %v6752_v1  ;;  %164 = vst.msk [vmem:[#allocation2 + $0x100] sm:$0xff] %vm131_vm0, %v6752_v1  ;;  %v916_v9 = vmax.f32 %v660_v6, %v404_v3  ;;  %v661_v12 = vld [vmem:[#allocation2 + $0x88] sm:$0xff]  ;;  %v662_v24 = vld [vmem:[#allocation2 + $0x90] sm:$0xff] }
  0x94   :  { %165 = vst.msk [vmem:[#allocation2 + $0x108] sm:$0xff] %vm131_vm0, %v6752_v1  ;;  %166 = vst.msk [vmem:[#allocation2 + $0x110] sm:$0xff] %vm131_vm0, %v6752_v1  ;;  %v917_v14 = vmax.f32 %v661_v12, %v405_v11  ;;  %v918_v27 = vmax.f32 %v662_v24, %v406_v22  ;;  %v663_v33 = vld [vmem:[#allocation2 + $0x98] sm:$0xff]  ;;  %v664_v44 = vld [vmem:[#allocation2 + $0xa0] sm:$0xff] }
  0x95   :  { %167 = vst.msk [vmem:[#allocation2 + $0x118] sm:$0xff] %vm131_vm0, %v6752_v1  ;;  %168 = vst.msk [vmem:[#allocation2 + $0x120] sm:$0xff] %vm131_vm0, %v6752_v1  ;;  %v919_v36 = vmax.f32 %v663_v33, %v407_v31  ;;  %v920_v46 = vmax.f32 %v664_v44, %v408_v43  ;;  %v648_v6 = vld [vmem:[#allocation2 + $0x20] sm:$0xff]  ;;  %v649_v22 = vld [vmem:[#allocation2 + $0x28] sm:$0xff] }
  0x96   :  { %169 = vst.msk [vmem:[#allocation2 + $0x128] sm:$0xff] %vm131_vm0, %v6752_v1  ;;  %170 = vst.msk [vmem:[#allocation2 + $0x130] sm:$0xff] %vm131_vm0, %v6752_v1  ;;  %v667_v35 = vld [vmem:[#allocation2 + $0xb8] sm:$0xff] }
  0x97   :  { %171 = vst.msk [vmem:[#allocation2 + $0x138] sm:$0xff] %vm131_vm0, %v6752_v1  ;;  %172 = vst.msk [vmem:[#allocation2 + $0x140] sm:$0xff] %vm131_vm0, %v6752_v1 }
  0x98   :  { %173 = vst.msk [vmem:[#allocation2 + $0x148] sm:$0xff] %vm131_vm0, %v6752_v1  ;;  %174 = vst.msk [vmem:[#allocation2 + $0x150] sm:$0xff] %vm131_vm0, %v6752_v1 }
  0x99   :  { %175 = vst.msk [vmem:[#allocation2 + $0x158] sm:$0xff] %vm131_vm0, %v6752_v1  ;;  %176 = vst.msk [vmem:[#allocation2 + $0x160] sm:$0xff] %vm131_vm0, %v6752_v1 }
  0x9a   :  { %177 = vst.msk [vmem:[#allocation2 + $0x168] sm:$0xff] %vm131_vm0, %v6752_v1  ;;  %178 = vst.msk [vmem:[#allocation2 + $0x170] sm:$0xff] %vm131_vm0, %v6752_v1 }
  0x9b   :  { %179 = vst.msk [vmem:[#allocation2 + $0x178] sm:$0xff] %vm131_vm0, %v6752_v1  ;;  %180 = vst.msk [vmem:[#allocation2 + $0x180] sm:$0xff] %vm131_vm0, %v6752_v1 }
  0x9c   :  { %181 = vst.msk [vmem:[#allocation2 + $0x188] sm:$0xff] %vm131_vm0, %v6752_v1  ;;  %182 = vst.msk [vmem:[#allocation2 + $0x190] sm:$0xff] %vm131_vm0, %v6752_v1 }
  0x9d   :  { %183 = vst.msk [vmem:[#allocation2 + $0x198] sm:$0xff] %vm131_vm0, %v6752_v1  ;;  %184 = vst.msk [vmem:[#allocation2 + $0x1a0] sm:$0xff] %vm131_vm0, %v6752_v1 }
  0x9e   :  { %185 = vst.msk [vmem:[#allocation2 + $0x1a8] sm:$0xff] %vm131_vm0, %v6752_v1  ;;  %186 = vst.msk [vmem:[#allocation2 + $0x1b0] sm:$0xff] %vm131_vm0, %v6752_v1 }
  0x9f   :  { %187 = vst.msk [vmem:[#allocation2 + $0x1b8] sm:$0xff] %vm131_vm0, %v6752_v1  ;;  %188 = vst.msk [vmem:[#allocation2 + $0x1c0] sm:$0xff] %vm131_vm0, %v6752_v1 }
  0xa0   :  { %189 = vst.msk [vmem:[#allocation2 + $0x1c8] sm:$0xff] %vm131_vm0, %v6752_v1  ;;  %190 = vst.msk [vmem:[#allocation2 + $0x1d0] sm:$0xff] %vm131_vm0, %v6752_v1 }
  0xa1   :  { %191 = vst.msk [vmem:[#allocation2 + $0x1d8] sm:$0xff] %vm131_vm0, %v6752_v1  ;;  %192 = vst.msk [vmem:[#allocation2 + $0x1e0] sm:$0xff] %vm131_vm0, %v6752_v1 }
  0xa2   :  { %193 = vst.msk [vmem:[#allocation2 + $0x1e8] sm:$0xff] %vm131_vm0, %v6752_v1  ;;  %194 = vst.msk [vmem:[#allocation2 + $0x1f0] sm:$0xff] %vm131_vm0, %v6752_v1 }
  0xa3   :  { %195 = vst.msk [vmem:[#allocation2 + $0x1f8] sm:$0xff] %vm131_vm0, %v6752_v1  ;;  %196 = vst.msk [vmem:[#allocation2 + $0x200] sm:$0xff] %vm131_vm0, %v6752_v1 }
  0xa4   :  { %197 = vst.msk [vmem:[#allocation2 + $0x208] sm:$0xff] %vm131_vm0, %v6752_v1  ;;  %198 = vst.msk [vmem:[#allocation2 + $0x210] sm:$0xff] %vm131_vm0, %v6752_v1 }
  0xa5   :  { %199 = vst.msk [vmem:[#allocation2 + $0x218] sm:$0xff] %vm131_vm0, %v6752_v1  ;;  %200 = vst.msk [vmem:[#allocation2 + $0x220] sm:$0xff] %vm131_vm0, %v6752_v1 }
  0xa6   :  { %201 = vst.msk [vmem:[#allocation2 + $0x228] sm:$0xff] %vm131_vm0, %v6752_v1  ;;  %202 = vst.msk [vmem:[#allocation2 + $0x230] sm:$0xff] %vm131_vm0, %v6752_v1 }
  0xa7   :  { %203 = vst.msk [vmem:[#allocation2 + $0x238] sm:$0xff] %vm131_vm0, %v6752_v1  ;;  %204 = vst.msk [vmem:[#allocation2 + $0x240] sm:$0xff] %vm131_vm0, %v6752_v1 }
  0xa8   :  { %205 = vst.msk [vmem:[#allocation2 + $0x248] sm:$0xff] %vm131_vm0, %v6752_v1  ;;  %206 = vst.msk [vmem:[#allocation2 + $0x250] sm:$0xff] %vm131_vm0, %v6752_v1 }
  0xa9   :  { %207 = vst.msk [vmem:[#allocation2 + $0x258] sm:$0xff] %vm131_vm0, %v6752_v1  ;;  %208 = vst.msk [vmem:[#allocation2 + $0x260] sm:$0xff] %vm131_vm0, %v6752_v1 }
  0xaa   :  { %209 = vst.msk [vmem:[#allocation2 + $0x268] sm:$0xff] %vm131_vm0, %v6752_v1  ;;  %210 = vst.msk [vmem:[#allocation2 + $0x270] sm:$0xff] %vm131_vm0, %v6752_v1 }
  0xab   :  { %211 = vst.msk [vmem:[#allocation2 + $0x278] sm:$0xff] %vm131_vm0, %v6752_v1  ;;  %212 = vst.msk [vmem:[#allocation2 + $0x280] sm:$0xff] %vm131_vm0, %v6752_v1 }
  0xac   :  { %213 = vst.msk [vmem:[#allocation2 + $0x288] sm:$0xff] %vm131_vm0, %v6752_v1  ;;  %214 = vst.msk [vmem:[#allocation2 + $0x290] sm:$0xff] %vm131_vm0, %v6752_v1 }
  0xad   :  { %215 = vst.msk [vmem:[#allocation2 + $0x298] sm:$0xff] %vm131_vm0, %v6752_v1  ;;  %216 = vst.msk [vmem:[#allocation2 + $0x2a0] sm:$0xff] %vm131_vm0, %v6752_v1 }
  0xae   :  { %217 = vst.msk [vmem:[#allocation2 + $0x2a8] sm:$0xff] %vm131_vm0, %v6752_v1  ;;  %218 = vst.msk [vmem:[#allocation2 + $0x2b0] sm:$0xff] %vm131_vm0, %v6752_v1 }
  0xaf   :  { %219 = vst.msk [vmem:[#allocation2 + $0x2b8] sm:$0xff] %vm131_vm0, %v6752_v1  ;;  %220 = vst.msk [vmem:[#allocation2 + $0x2c0] sm:$0xff] %vm131_vm0, %v6752_v1 }
  0xb0   :  { %221 = vst.msk [vmem:[#allocation2 + $0x2c8] sm:$0xff] %vm131_vm0, %v6752_v1  ;;  %222 = vst.msk [vmem:[#allocation2 + $0x2d0] sm:$0xff] %vm131_vm0, %v6752_v1 }
  0xb1   :  { %223 = vst.msk [vmem:[#allocation2 + $0x2d8] sm:$0xff] %vm131_vm0, %v6752_v1  ;;  %224 = vst.msk [vmem:[#allocation2 + $0x2e0] sm:$0xff] %vm131_vm0, %v6752_v1 }
  0xb2   :  { %225 = vst.msk [vmem:[#allocation2 + $0x2e8] sm:$0xff] %vm131_vm0, %v6752_v1  ;;  %226 = vst.msk [vmem:[#allocation2 + $0x2f0] sm:$0xff] %vm131_vm0, %v6752_v1 }
  0xb3   :  { %227 = vst.msk [vmem:[#allocation2 + $0x2f8] sm:$0xff] %vm131_vm0, %v6752_v1  ;;  %228 = vst.msk [vmem:[#allocation2 + $0x300] sm:$0xff] %vm131_vm0, %v6752_v1 }
  0xb4   :  { %229 = vst.msk [vmem:[#allocation2 + $0x308] sm:$0xff] %vm131_vm0, %v6752_v1  ;;  %230 = vst.msk [vmem:[#allocation2 + $0x310] sm:$0xff] %vm131_vm0, %v6752_v1 }
  0xb5   :  { %231 = vst.msk [vmem:[#allocation2 + $0x318] sm:$0xff] %vm131_vm0, %v6752_v1  ;;  %232 = vst.msk [vmem:[#allocation2 + $0x320] sm:$0xff] %vm131_vm0, %v6752_v1 }
  0xb6   :  { %233 = vst.msk [vmem:[#allocation2 + $0x328] sm:$0xff] %vm131_vm0, %v6752_v1  ;;  %234 = vst.msk [vmem:[#allocation2 + $0x330] sm:$0xff] %vm131_vm0, %v6752_v1 }
  0xb7   :  { %235 = vst.msk [vmem:[#allocation2 + $0x338] sm:$0xff] %vm131_vm0, %v6752_v1  ;;  %236 = vst.msk [vmem:[#allocation2 + $0x340] sm:$0xff] %vm131_vm0, %v6752_v1 }
  0xb8   :  { %237 = vst.msk [vmem:[#allocation2 + $0x348] sm:$0xff] %vm131_vm0, %v6752_v1  ;;  %238 = vst.msk [vmem:[#allocation2 + $0x350] sm:$0xff] %vm131_vm0, %v6752_v1 }
  0xb9   :  { %239 = vst.msk [vmem:[#allocation2 + $0x358] sm:$0xff] %vm131_vm0, %v6752_v1  ;;  %240 = vst.msk [vmem:[#allocation2 + $0x360] sm:$0xff] %vm131_vm0, %v6752_v1 }
  0xba   :  { %241 = vst.msk [vmem:[#allocation2 + $0x368] sm:$0xff] %vm131_vm0, %v6752_v1  ;;  %242 = vst.msk [vmem:[#allocation2 + $0x370] sm:$0xff] %vm131_vm0, %v6752_v1 }
  0xbb   :  { %243 = vst.msk [vmem:[#allocation2 + $0x378] sm:$0xff] %vm131_vm0, %v6752_v1  ;;  %244 = vst.msk [vmem:[#allocation2 + $0x380] sm:$0xff] %vm131_vm0, %v6752_v1 }
  0xbc   :  { %245 = vst.msk [vmem:[#allocation2 + $0x388] sm:$0xff] %vm131_vm0, %v6752_v1  ;;  %246 = vst.msk [vmem:[#allocation2 + $0x390] sm:$0xff] %vm131_vm0, %v6752_v1 }
  0xbd   :  { %247 = vst.msk [vmem:[#allocation2 + $0x398] sm:$0xff] %vm131_vm0, %v6752_v1  ;;  %248 = vst.msk [vmem:[#allocation2 + $0x3a0] sm:$0xff] %vm131_vm0, %v6752_v1 }
  0xbe   :  { %249 = vst.msk [vmem:[#allocation2 + $0x3a8] sm:$0xff] %vm131_vm0, %v6752_v1  ;;  %250 = vst.msk [vmem:[#allocation2 + $0x3b0] sm:$0xff] %vm131_vm0, %v6752_v1 }
  0xbf   :  { %251 = vst.msk [vmem:[#allocation2 + $0x3b8] sm:$0xff] %vm131_vm0, %v6752_v1  ;;  %252 = vst.msk [vmem:[#allocation2 + $0x3c0] sm:$0xff] %vm131_vm0, %v6752_v1 }
  0xc0   :  { %253 = vst.msk [vmem:[#allocation2 + $0x3c8] sm:$0xff] %vm131_vm0, %v6752_v1  ;;  %254 = vst.msk [vmem:[#allocation2 + $0x3d0] sm:$0xff] %vm131_vm0, %v6752_v1 }
  0xc1   :  { %255 = vst.msk [vmem:[#allocation2 + $0x3d8] sm:$0xff] %vm131_vm0, %v6752_v1  ;;  %256 = vst.msk [vmem:[#allocation2 + $0x3e0] sm:$0xff] %vm131_vm0, %v6752_v1 }
  0xc2   :  { %257 = vst.msk [vmem:[#allocation2 + $0x3e8] sm:$0xff] %vm131_vm0, %v6752_v1  ;;  %258 = vst.msk [vmem:[#allocation2 + $0x3f0] sm:$0xff] %vm131_vm0, %v6752_v1 }
  0xc3   :  { %259 = vst.msk [vmem:[#allocation2 + $0x3f8] sm:$0xff] %vm131_vm0, %v6752_v1  ;;  %260 = vst.msk [vmem:[#allocation2 + $0x400] sm:$0xff] %vm131_vm0, %v6752_v1 }
  0xc4   :  { %261 = vst.msk [vmem:[#allocation2 + $0x408] sm:$0xff] %vm131_vm0, %v6752_v1  ;;  %262 = vst.msk [vmem:[#allocation2 + $0x410] sm:$0xff] %vm131_vm0, %v6752_v1 }
  0xc5   :  { %263 = vst.msk [vmem:[#allocation2 + $0x418] sm:$0xff] %vm131_vm0, %v6752_v1  ;;  %264 = vst.msk [vmem:[#allocation2 + $0x420] sm:$0xff] %vm131_vm0, %v6752_v1 }
  0xc6   :  { %265 = vst.msk [vmem:[#allocation2 + $0x428] sm:$0xff] %vm131_vm0, %v6752_v1  ;;  %266 = vst.msk [vmem:[#allocation2 + $0x430] sm:$0xff] %vm131_vm0, %v6752_v1 }
  0xc7   :  { %267 = vst.msk [vmem:[#allocation2 + $0x438] sm:$0xff] %vm131_vm0, %v6752_v1  ;;  %268 = vst.msk [vmem:[#allocation2 + $0x440] sm:$0xff] %vm131_vm0, %v6752_v1 }
  0xc8   :  { %269 = vst.msk [vmem:[#allocation2 + $0x448] sm:$0xff] %vm131_vm0, %v6752_v1  ;;  %270 = vst.msk [vmem:[#allocation2 + $0x450] sm:$0xff] %vm131_vm0, %v6752_v1 }
  0xc9   :  { %271 = vst.msk [vmem:[#allocation2 + $0x458] sm:$0xff] %vm131_vm0, %v6752_v1  ;;  %272 = vst.msk [vmem:[#allocation2 + $0x460] sm:$0xff] %vm131_vm0, %v6752_v1 }
  0xca   :  { %273 = vst.msk [vmem:[#allocation2 + $0x468] sm:$0xff] %vm131_vm0, %v6752_v1  ;;  %274 = vst.msk [vmem:[#allocation2 + $0x470] sm:$0xff] %vm131_vm0, %v6752_v1  ;;  %v772_v21 = vld [vmem:[#allocation2 + $0x400] sm:$0xff] }
  0xcb   :  { %275 = vst.msk [vmem:[#allocation2 + $0x478] sm:$0xff] %vm131_vm0, %v6752_v1  ;;  %277 = vst.msk [vmem:[#allocation2 + $0x488] sm:$0xff] %vm131_vm0, %v6752_v1  ;;  %v1028_v23 = vmax.f32 %v772_v21, %v516_v20  ;;  %v773_v30 = vld [vmem:[#allocation2 + $0x408] sm:$0xff]  ;;  %v774_v42 = vld [vmem:[#allocation2 + $0x410] sm:$0xff] }
  0xcc   :  { %278 = vst.msk [vmem:[#allocation2 + $0x490] sm:$0xff] %vm131_vm0, %v6752_v1  ;;  %279 = vst.msk [vmem:[#allocation2 + $0x498] sm:$0xff] %vm131_vm0, %v6752_v1  ;;  %v1029_v32 = vmax.f32 %v773_v30, %v517_v29  ;;  %v1030_v45 = vmax.f32 %v774_v42, %v518_v40  ;;  %v775_v60 = vld [vmem:[#allocation2 + $0x418] sm:$0xff]  ;;  %v393_v20 = vld [vmem:[%s10179_s0 + $0x28] sm:$0xff] }
  0xcd   :  { %280 = vst.msk [vmem:[#allocation2 + $0x4a0] sm:$0xff] %vm131_vm0, %v6752_v1  ;;  %281 = vst.msk [vmem:[#allocation2 + $0x4a8] sm:$0xff] %vm131_vm0, %v6752_v1  ;;  %v1031_v63 = vmax.f32 %v775_v60, %v519_v58  ;;  %v521_v30 = vld [vmem:[%s10179_s0 + $0x428] sm:$0xff]  ;;  %v539_v40 = vld [vmem:[%s10179_s0 + $0x4b8] sm:$0xff] }
  0xce   :  { %282 = vst.msk [vmem:[#allocation2 + $0x4b0] sm:$0xff] %vm131_vm0, %v6752_v1  ;;  %283 = vst.msk [vmem:[#allocation2 + $0x4b8] sm:$0xff] %vm131_vm0, %v6752_v1  ;;  %v777_v31 = vld [vmem:[#allocation2 + $0x428] sm:$0xff]  ;;  %v522_v42 = vld [vmem:[%s10179_s0 + $0x430] sm:$0xff] }
  0xcf   :  { %284 = vst.msk [vmem:[#allocation2 + $0x4c0] sm:$0xff] %vm131_vm0, %v6752_v1  ;;  %285 = vst.msk [vmem:[#allocation2 + $0x4c8] sm:$0xff] %vm131_vm0, %v6752_v1  ;;  %v1033_v33 = vmax.f32 %v777_v31, %v521_v30  ;;  %v778_v47 = vld [vmem:[#allocation2 + $0x430] sm:$0xff]  ;;  %v523_v58 = vld [vmem:[%s10179_s0 + $0x438] sm:$0xff] }
  0xd0   :  { %286 = vst.msk [vmem:[#allocation2 + $0x4d0] sm:$0xff] %vm131_vm0, %v6752_v1  ;;  %287 = vst.msk [vmem:[#allocation2 + $0x4d8] sm:$0xff] %vm131_vm0, %v6752_v1  ;;  %v781_v30 = vld [vmem:[#allocation2 + $0x448] sm:$0xff]  ;;  %v415_v31 = vld [vmem:[%s10179_s0 + $0xd8] sm:$0xff] }
  0xd1   :  { %288 = vst.msk [vmem:[#allocation2 + $0x4e0] sm:$0xff] %vm131_vm0, %v6752_v1  ;;  %289 = vst.msk [vmem:[#allocation2 + $0x4e8] sm:$0xff] %vm131_vm0, %v6752_v1 }
  0xd2   :  { %290 = vst.msk [vmem:[#allocation2 + $0x4f0] sm:$0xff] %vm131_vm0, %v6752_v1  ;;  %291 = vst.msk [vmem:[#allocation2 + $0x4f8] sm:$0xff] %vm131_vm0, %v6752_v1  ;;  %v789_v7 = vld [vmem:[#allocation2 + $0x488] sm:$0xff] }
  0xd3   :  { %292 = vst.msk [vmem:[#allocation2 + $0x500] sm:$0xff] %vm131_vm0, %v6752_v1  ;;  %293 = vst.msk [vmem:[#allocation2 + $0x508] sm:$0xff] %vm131_vm0, %v6752_v1  ;;  %v1045_v10 = vmax.f32 %v789_v7, %v533_v4  ;;  %v790_v26 = vld [vmem:[#allocation2 + $0x490] sm:$0xff]  ;;  %v791_v39 = vld [vmem:[#allocation2 + $0x498] sm:$0xff] }
  0xd4   :  { %294 = vst.msk [vmem:[#allocation2 + $0x510] sm:$0xff] %vm131_vm0, %v6752_v1  ;;  %295 = vst.msk [vmem:[#allocation2 + $0x518] sm:$0xff] %vm131_vm0, %v6752_v1  ;;  %v1046_v28 = vmax.f32 %v790_v26, %v534_v25  ;;  %v1047_v41 = vmax.f32 %v791_v39, %v535_v38  ;;  %v792_v57 = vld [vmem:[#allocation2 + $0x4a0] sm:$0xff]  ;;  %v537_v7 = vld [vmem:[%s10179_s0 + $0x4a8] sm:$0xff] }
  0xd5   :  { %296 = vst.msk [vmem:[#allocation2 + $0x520] sm:$0xff] %vm131_vm0, %v6752_v1  ;;  %297 = vst.msk [vmem:[#allocation2 + $0x528] sm:$0xff] %vm131_vm0, %v6752_v1  ;;  %v1048_v59 = vmax.f32 %v792_v57, %v536_v49  ;;  %v794_v24 = vld [vmem:[#allocation2 + $0x4b0] sm:$0xff] }
  0xd6   :  { %298 = vst.msk [vmem:[#allocation2 + $0x530] sm:$0xff] %vm131_vm0, %v6752_v1  ;;  %299 = vst.msk [vmem:[#allocation2 + $0x538] sm:$0xff] %vm131_vm0, %v6752_v1  ;;  %v650_v38 = vld [vmem:[#allocation2 + $0x30] sm:$0xff]  ;;  %v796_v57 = vld [vmem:[#allocation2 + $0x4c0] sm:$0xff] }
  0xd7   :  { %300 = vst.msk [vmem:[#allocation2 + $0x540] sm:$0xff] %vm131_vm0, %v6752_v1  ;;  %301 = vst.msk [vmem:[#allocation2 + $0x548] sm:$0xff] %vm131_vm0, %v6752_v1 }
  0xd8   :  { %302 = vst.msk [vmem:[#allocation2 + $0x550] sm:$0xff] %vm131_vm0, %v6752_v1  ;;  %303 = vst.msk [vmem:[#allocation2 + $0x558] sm:$0xff] %vm131_vm0, %v6752_v1 }
  0xd9   :  { %304 = vst.msk [vmem:[#allocation2 + $0x560] sm:$0xff] %vm131_vm0, %v6752_v1  ;;  %305 = vst.msk [vmem:[#allocation2 + $0x568] sm:$0xff] %vm131_vm0, %v6752_v1 }
  0xda   :  { %306 = vst.msk [vmem:[#allocation2 + $0x570] sm:$0xff] %vm131_vm0, %v6752_v1  ;;  %307 = vst.msk [vmem:[#allocation2 + $0x578] sm:$0xff] %vm131_vm0, %v6752_v1 }
  0xdb   :  { %308 = vst.msk [vmem:[#allocation2 + $0x580] sm:$0xff] %vm131_vm0, %v6752_v1  ;;  %309 = vst.msk [vmem:[#allocation2 + $0x588] sm:$0xff] %vm131_vm0, %v6752_v1 }
  0xdc   :  { %310 = vst.msk [vmem:[#allocation2 + $0x590] sm:$0xff] %vm131_vm0, %v6752_v1  ;;  %311 = vst.msk [vmem:[#allocation2 + $0x598] sm:$0xff] %vm131_vm0, %v6752_v1 }
  0xdd   :  { %312 = vst.msk [vmem:[#allocation2 + $0x5a0] sm:$0xff] %vm131_vm0, %v6752_v1  ;;  %313 = vst.msk [vmem:[#allocation2 + $0x5a8] sm:$0xff] %vm131_vm0, %v6752_v1 }
  0xde   :  { %314 = vst.msk [vmem:[#allocation2 + $0x5b0] sm:$0xff] %vm131_vm0, %v6752_v1  ;;  %315 = vst.msk [vmem:[#allocation2 + $0x5b8] sm:$0xff] %vm131_vm0, %v6752_v1 }
  0xdf   :  { %316 = vst.msk [vmem:[#allocation2 + $0x5c0] sm:$0xff] %vm131_vm0, %v6752_v1  ;;  %317 = vst.msk [vmem:[#allocation2 + $0x5c8] sm:$0xff] %vm131_vm0, %v6752_v1 }
  0xe0   :  { %318 = vst.msk [vmem:[#allocation2 + $0x5d0] sm:$0xff] %vm131_vm0, %v6752_v1  ;;  %319 = vst.msk [vmem:[#allocation2 + $0x5d8] sm:$0xff] %vm131_vm0, %v6752_v1 }
  0xe1   :  { %320 = vst.msk [vmem:[#allocation2 + $0x5e0] sm:$0xff] %vm131_vm0, %v6752_v1  ;;  %321 = vst.msk [vmem:[#allocation2 + $0x5e8] sm:$0xff] %vm131_vm0, %v6752_v1 }
  0xe2   :  { %322 = vst.msk [vmem:[#allocation2 + $0x5f0] sm:$0xff] %vm131_vm0, %v6752_v1  ;;  %323 = vst.msk [vmem:[#allocation2 + $0x5f8] sm:$0xff] %vm131_vm0, %v6752_v1 }
  0xe3   :  { %324 = vst.msk [vmem:[#allocation2 + $0x600] sm:$0xff] %vm131_vm0, %v6752_v1  ;;  %325 = vst.msk [vmem:[#allocation2 + $0x608] sm:$0xff] %vm131_vm0, %v6752_v1 }
  0xe4   :  { %326 = vst.msk [vmem:[#allocation2 + $0x610] sm:$0xff] %vm131_vm0, %v6752_v1  ;;  %327 = vst.msk [vmem:[#allocation2 + $0x618] sm:$0xff] %vm131_vm0, %v6752_v1 }
  0xe5   :  { %328 = vst.msk [vmem:[#allocation2 + $0x620] sm:$0xff] %vm131_vm0, %v6752_v1  ;;  %329 = vst.msk [vmem:[#allocation2 + $0x628] sm:$0xff] %vm131_vm0, %v6752_v1 }
  0xe6   :  { %330 = vst.msk [vmem:[#allocation2 + $0x630] sm:$0xff] %vm131_vm0, %v6752_v1  ;;  %331 = vst.msk [vmem:[#allocation2 + $0x638] sm:$0xff] %vm131_vm0, %v6752_v1 }
  0xe7   :  { %332 = vst.msk [vmem:[#allocation2 + $0x640] sm:$0xff] %vm131_vm0, %v6752_v1  ;;  %333 = vst.msk [vmem:[#allocation2 + $0x648] sm:$0xff] %vm131_vm0, %v6752_v1 }
  0xe8   :  { %334 = vst.msk [vmem:[#allocation2 + $0x650] sm:$0xff] %vm131_vm0, %v6752_v1  ;;  %335 = vst.msk [vmem:[#allocation2 + $0x658] sm:$0xff] %vm131_vm0, %v6752_v1 }
  0xe9   :  { %336 = vst.msk [vmem:[#allocation2 + $0x660] sm:$0xff] %vm131_vm0, %v6752_v1  ;;  %337 = vst.msk [vmem:[#allocation2 + $0x668] sm:$0xff] %vm131_vm0, %v6752_v1 }
  0xea   :  { %338 = vst.msk [vmem:[#allocation2 + $0x670] sm:$0xff] %vm131_vm0, %v6752_v1  ;;  %339 = vst.msk [vmem:[#allocation2 + $0x678] sm:$0xff] %vm131_vm0, %v6752_v1 }
  0xeb   :  { %340 = vst.msk [vmem:[#allocation2 + $0x680] sm:$0xff] %vm131_vm0, %v6752_v1  ;;  %341 = vst.msk [vmem:[#allocation2 + $0x688] sm:$0xff] %vm131_vm0, %v6752_v1 }
  0xec   :  { %342 = vst.msk [vmem:[#allocation2 + $0x690] sm:$0xff] %vm131_vm0, %v6752_v1  ;;  %343 = vst.msk [vmem:[#allocation2 + $0x698] sm:$0xff] %vm131_vm0, %v6752_v1 }
  0xed   :  { %344 = vst.msk [vmem:[#allocation2 + $0x6a0] sm:$0xff] %vm131_vm0, %v6752_v1  ;;  %345 = vst.msk [vmem:[#allocation2 + $0x6a8] sm:$0xff] %vm131_vm0, %v6752_v1 }
  0xee   :  { %346 = vst.msk [vmem:[#allocation2 + $0x6b0] sm:$0xff] %vm131_vm0, %v6752_v1  ;;  %347 = vst.msk [vmem:[#allocation2 + $0x6b8] sm:$0xff] %vm131_vm0, %v6752_v1 }
  0xef   :  { %348 = vst.msk [vmem:[#allocation2 + $0x6c0] sm:$0xff] %vm131_vm0, %v6752_v1  ;;  %349 = vst.msk [vmem:[#allocation2 + $0x6c8] sm:$0xff] %vm131_vm0, %v6752_v1 }
  0xf0   :  { %350 = vst.msk [vmem:[#allocation2 + $0x6d0] sm:$0xff] %vm131_vm0, %v6752_v1  ;;  %351 = vst.msk [vmem:[#allocation2 + $0x6d8] sm:$0xff] %vm131_vm0, %v6752_v1 }
  0xf1   :  { %352 = vst.msk [vmem:[#allocation2 + $0x6e0] sm:$0xff] %vm131_vm0, %v6752_v1  ;;  %353 = vst.msk [vmem:[#allocation2 + $0x6e8] sm:$0xff] %vm131_vm0, %v6752_v1 }
  0xf2   :  { %354 = vst.msk [vmem:[#allocation2 + $0x6f0] sm:$0xff] %vm131_vm0, %v6752_v1  ;;  %355 = vst.msk [vmem:[#allocation2 + $0x6f8] sm:$0xff] %vm131_vm0, %v6752_v1 }
  0xf3   :  { %356 = vst.msk [vmem:[#allocation2 + $0x700] sm:$0xff] %vm131_vm0, %v6752_v1  ;;  %357 = vst.msk [vmem:[#allocation2 + $0x708] sm:$0xff] %vm131_vm0, %v6752_v1 }
  0xf4   :  { %358 = vst.msk [vmem:[#allocation2 + $0x710] sm:$0xff] %vm131_vm0, %v6752_v1  ;;  %359 = vst.msk [vmem:[#allocation2 + $0x718] sm:$0xff] %vm131_vm0, %v6752_v1 }
  0xf5   :  { %360 = vst.msk [vmem:[#allocation2 + $0x720] sm:$0xff] %vm131_vm0, %v6752_v1  ;;  %361 = vst.msk [vmem:[#allocation2 + $0x728] sm:$0xff] %vm131_vm0, %v6752_v1 }
  0xf6   :  { %362 = vst.msk [vmem:[#allocation2 + $0x730] sm:$0xff] %vm131_vm0, %v6752_v1  ;;  %363 = vst.msk [vmem:[#allocation2 + $0x738] sm:$0xff] %vm131_vm0, %v6752_v1 }
  0xf7   :  { %364 = vst.msk [vmem:[#allocation2 + $0x740] sm:$0xff] %vm131_vm0, %v6752_v1  ;;  %365 = vst.msk [vmem:[#allocation2 + $0x748] sm:$0xff] %vm131_vm0, %v6752_v1 }
  0xf8   :  { %366 = vst.msk [vmem:[#allocation2 + $0x750] sm:$0xff] %vm131_vm0, %v6752_v1  ;;  %367 = vst.msk [vmem:[#allocation2 + $0x758] sm:$0xff] %vm131_vm0, %v6752_v1 }
  0xf9   :  { %368 = vst.msk [vmem:[#allocation2 + $0x760] sm:$0xff] %vm131_vm0, %v6752_v1  ;;  %369 = vst.msk [vmem:[#allocation2 + $0x768] sm:$0xff] %vm131_vm0, %v6752_v1 }
  0xfa   :  { %370 = vst.msk [vmem:[#allocation2 + $0x770] sm:$0xff] %vm131_vm0, %v6752_v1  ;;  %371 = vst.msk [vmem:[#allocation2 + $0x778] sm:$0xff] %vm131_vm0, %v6752_v1 }
  0xfb   :  { %372 = vst.msk [vmem:[#allocation2 + $0x780] sm:$0xff] %vm131_vm0, %v6752_v1  ;;  %373 = vst.msk [vmem:[#allocation2 + $0x788] sm:$0xff] %vm131_vm0, %v6752_v1 }
  0xfc   :  { %374 = vst.msk [vmem:[#allocation2 + $0x790] sm:$0xff] %vm131_vm0, %v6752_v1  ;;  %375 = vst.msk [vmem:[#allocation2 + $0x798] sm:$0xff] %vm131_vm0, %v6752_v1 }
  0xfd   :  { %376 = vst.msk [vmem:[#allocation2 + $0x7a0] sm:$0xff] %vm131_vm0, %v6752_v1  ;;  %377 = vst.msk [vmem:[#allocation2 + $0x7a8] sm:$0xff] %vm131_vm0, %v6752_v1 }
  0xfe   :  { %378 = vst.msk [vmem:[#allocation2 + $0x7b0] sm:$0xff] %vm131_vm0, %v6752_v1  ;;  %379 = vst.msk [vmem:[#allocation2 + $0x7b8] sm:$0xff] %vm131_vm0, %v6752_v1 }
  0xff   :  { %380 = vst.msk [vmem:[#allocation2 + $0x7c0] sm:$0xff] %vm131_vm0, %v6752_v1  ;;  %381 = vst.msk [vmem:[#allocation2 + $0x7c8] sm:$0xff] %vm131_vm0, %v6752_v1 }
 0x100   :  { %382 = vst.msk [vmem:[#allocation2 + $0x7d0] sm:$0xff] %vm131_vm0, %v6752_v1  ;;  %383 = vst.msk [vmem:[#allocation2 + $0x7d8] sm:$0xff] %vm131_vm0, %v6752_v1 }
 0x101   :  { %384 = vst.msk [vmem:[#allocation2 + $0x7e0] sm:$0xff] %vm131_vm0, %v6752_v1  ;;  %385 = vst.msk [vmem:[#allocation2 + $0x7e8] sm:$0xff] %vm131_vm0, %v6752_v1 }
 0x102   :  { %386 = vst.msk [vmem:[#allocation2 + $0x7f0] sm:$0xff] %vm131_vm0, %v6752_v1  ;;  %387 = vst.msk [vmem:[#allocation2 + $0x7f8] sm:$0xff] %vm131_vm0, %v6752_v1  ;;  %v665_v1 = vld [vmem:[#allocation2 + $0xa8] sm:$0xff] }
 0x103   :  { %1301 = vst.msk [vmem:[#allocation2 + $0x480] sm:$0xff] %vm131_vm0, %v1044_v8  ;;  %1173 = vst.msk [vmem:[#allocation2 + $0x80] sm:$0xff] %vm131_vm0, %v916_v9  ;;  %v921_v4 = vmax.f32 %v665_v1, %v409_v0  ;;  %v904_v8 = vmax.f32 %v648_v6, %v392_v5  ;;  %v793_v9 = vld [vmem:[#allocation2 + $0x4a8] sm:$0xff]  ;;  %v396_v5 = vld [vmem:[%s10179_s0 + $0x40] sm:$0xff] }
 0x104   :  { %1302 = vst.msk [vmem:[#allocation2 + $0x488] sm:$0xff] %vm131_vm0, %v1045_v10  ;;  %1174 = vst.msk [vmem:[#allocation2 + $0x88] sm:$0xff] %vm131_vm0, %v917_v14  ;;  %v1049_v12 = vmax.f32 %v793_v9, %v537_v7  ;;  %v776_v14 = vld [vmem:[#allocation2 + $0x420] sm:$0xff]  ;;  %v413_v0 = vld [vmem:[%s10179_s0 + $0xc8] sm:$0xff] }
 0x105   :  { %1158 = vst.msk [vmem:[#allocation2 + $0x8] sm:$0xff] %vm131_vm0, %v901_v18  ;;  %1157 = vst.msk [vmem:[#allocation2] sm:$0xff] %vm131_vm0, %v900_v19  ;;  %v1032_v17 = vmax.f32 %v776_v14, %v520_v13  ;;  %v410_v18 = vld [vmem:[%s10179_s0 + $0xb0] sm:$0xff]  ;;  %v669_v1 = vld [vmem:[#allocation2 + $0xc8] sm:$0xff] }
 0x106   :  { %1285 = vst.msk [vmem:[#allocation2 + $0x400] sm:$0xff] %vm131_vm0, %v1028_v23  ;;  %1175 = vst.msk [vmem:[#allocation2 + $0x90] sm:$0xff] %vm131_vm0, %v918_v27  ;;  %v666_v19 = vld [vmem:[#allocation2 + $0xb0] sm:$0xff]  ;;  %v652_v6 = vld [vmem:[#allocation2 + $0x40] sm:$0xff] }
 0x107   :  { %1303 = vst.msk [vmem:[#allocation2 + $0x490] sm:$0xff] %vm131_vm0, %v1046_v28  ;;  %1286 = vst.msk [vmem:[#allocation2 + $0x408] sm:$0xff] %vm131_vm0, %v1029_v32  ;;  %v922_v21 = vmax.f32 %v666_v19, %v410_v18  ;;  %v538_v23 = vld [vmem:[%s10179_s0 + $0x4b0] sm:$0xff]  ;;  %v905_v28 = vmax.f32 %v649_v22, %v393_v20  ;;  %v541_v7 = vld [vmem:[%s10179_s0 + $0x4c8] sm:$0xff] }
 0x108   :  { %1176 = vst.msk [vmem:[#allocation2 + $0x98] sm:$0xff] %vm131_vm0, %v919_v36  ;;  %1159 = vst.msk [vmem:[#allocation2 + $0x10] sm:$0xff] %vm131_vm0, %v902_v37  ;;  %v1050_v29 = vmax.f32 %v794_v24, %v538_v23  ;;  %v923_v36 = vmax.f32 %v667_v35, %v411_v34  ;;  %v394_v37 = vld [vmem:[%s10179_s0 + $0x30] sm:$0xff]  ;;  %v797_v9 = vld [vmem:[#allocation2 + $0x4c8] sm:$0xff] }
 0x109   :  { %1304 = vst.msk [vmem:[#allocation2 + $0x498] sm:$0xff] %vm131_vm0, %v1047_v41  ;;  %1287 = vst.msk [vmem:[#allocation2 + $0x410] sm:$0xff] %vm131_vm0, %v1030_v45  ;;  %v906_v39 = vmax.f32 %v650_v38, %v394_v37  ;;  %v795_v41 = vld [vmem:[#allocation2 + $0x4b8] sm:$0xff]  ;;  %v1053_v14 = vmax.f32 %v797_v9, %v541_v7  ;;  %v670_v19 = vld [vmem:[#allocation2 + $0xd0] sm:$0xff] }
 0x10a   :  { %v1560_v50 = vld [vmem:[#allocation2 + $0x480] sm:$0xff]  ;;  %1177 = vst.msk [vmem:[#allocation2 + $0xa0] sm:$0xff] %vm131_vm0, %v920_v46  ;;  %1160 = vst.msk [vmem:[#allocation2 + $0x18] sm:$0xff] %vm131_vm0, %v903_v53  ;;  %v1051_v46 = vmax.f32 %v795_v41, %v539_v40  ;;  %v397_v20 = vld [vmem:[%s10179_s0 + $0x48] sm:$0xff] }
 0x10b   :  { %v1432_v51 = vld [vmem:[#allocation2 + $0x80] sm:$0xff]  ;;  %v1561_v52 = vld [vmem:[#allocation2 + $0x488] sm:$0xff]  ;;  %v2104_v54 = vsel %vm131_vm0, %v1560_v50, -inf  ;;  %1305 = vst.msk [vmem:[#allocation2 + $0x4a0] sm:$0xff] %vm131_vm0, %v1048_v59  ;;  %1288 = vst.msk [vmem:[#allocation2 + $0x418] sm:$0xff] %vm131_vm0, %v1031_v63  ;;  %v1034_v50 = vmax.f32 %v778_v47, %v522_v42 }
 0x10c   :  { %v1720_v55 = vsel %vm131_vm0, %v1432_v51, -inf  ;;  %v1433_v56 = vld [vmem:[#allocation2 + $0x88] sm:$0xff]  ;;  %2105 = vmax.xlane.f32.xlu1 %v2104_v54  ;;  %v2107_v61 = vsel %vm131_vm0, %v1561_v52, -inf  ;;  %v1416_v3 = vld [vmem:[#allocation2] sm:$0xff]  ;;  %1178 = vst.msk [vmem:[#allocation2 + $0xa8] sm:$0xff] %vm131_vm0, %v921_v4  ;;  %1161 = vst.msk [vmem:[#allocation2 + $0x20] sm:$0xff] %vm131_vm0, %v904_v8  ;;  %v925_v4 = vmax.f32 %v669_v1, %v413_v0  ;;  %v908_v8 = vmax.f32 %v652_v6, %v396_v5 }
 0x10d   :  { %1721 = vmax.xlane.f32.xlu0 %v1720_v55  ;;  %v1723_v62 = vsel %vm131_vm0, %v1433_v56, -inf  ;;  %v1417_v2 = vld [vmem:[#allocation2 + $0x8] sm:$0xff]  ;;  %v1672_v11 = vsel %vm131_vm0, %v1416_v3, -inf  ;;  %v1544_v15 = vld [vmem:[#allocation2 + $0x400] sm:$0xff]  ;;  %v1434_v16 = vld [vmem:[#allocation2 + $0x90] sm:$0xff]  ;;  %1306 = vst.msk [vmem:[#allocation2 + $0x4a8] sm:$0xff] %vm131_vm0, %v1049_v12 }
 0x10e   :  { %v1675_v10 = vsel %vm131_vm0, %v1417_v2, -inf  ;;  %1289 = vst.msk [vmem:[#allocation2 + $0x420] sm:$0xff] %vm131_vm0, %v1032_v17  ;;  %v2056_v25 = vsel %vm131_vm0, %v1544_v15, -inf  ;;  %v1726_v26 = vsel %vm131_vm0, %v1434_v16, -inf  ;;  %v1562_v27 = vld [vmem:[#allocation2 + $0x490] sm:$0xff]  ;;  %v1545_v32 = vld [vmem:[#allocation2 + $0x408] sm:$0xff] }
 0x10f   :  { %1179 = vst.msk [vmem:[#allocation2 + $0xb0] sm:$0xff] %vm131_vm0, %v922_v21  ;;  %1162 = vst.msk [vmem:[#allocation2 + $0x28] sm:$0xff] %vm131_vm0, %v905_v28  ;;  %v2110_v43 = vsel %vm131_vm0, %v1562_v27, -inf  ;;  %v2059_v44 = vsel %vm131_vm0, %v1545_v32, -inf  ;;  %v1435_v45 = vld [vmem:[#allocation2 + $0x98] sm:$0xff]  ;;  %v1418_v49 = vld [vmem:[#allocation2 + $0x10] sm:$0xff] }
 0x110   :  { %2108 = vmax.xlane.f32.xlu1 %v2107_v61  ;;  %1307 = vst.msk [vmem:[#allocation2 + $0x4b0] sm:$0xff] %vm131_vm0, %v1050_v29  ;;  %1290 = vst.msk [vmem:[#allocation2 + $0x428] sm:$0xff] %vm131_vm0, %v1033_v33  ;;  %v668_v51 = vld [vmem:[#allocation2 + $0xc0] sm:$0xff]  ;;  %v395_v52 = vld [vmem:[%s10179_s0 + $0x38] sm:$0xff]  ;;  %v1729_v60 = vsel %vm131_vm0, %v1435_v45, -inf  ;;  %v1678_v61 = vsel %vm131_vm0, %v1418_v49, -inf }
 0x111   :  { %1724 = vmax.xlane.f32.xlu0 %v1723_v62  ;;  %1180 = vst.msk [vmem:[#allocation2 + $0xb8] sm:$0xff] %vm131_vm0, %v923_v36  ;;  %1163 = vst.msk [vmem:[#allocation2 + $0x30] sm:$0xff] %vm131_vm0, %v906_v39  ;;  %v924_v53 = vmax.f32 %v668_v51, %v412_v48  ;;  %v651_v54 = vld [vmem:[#allocation2 + $0x38] sm:$0xff]  ;;  %v540_v55 = vld [vmem:[%s10179_s0 + $0x4c0] sm:$0xff] }
 0x112   :  { %1308 = vst.msk [vmem:[#allocation2 + $0x4b8] sm:$0xff] %vm131_vm0, %v1051_v46  ;;  %1291 = vst.msk [vmem:[#allocation2 + $0x430] sm:$0xff] %vm131_vm0, %v1034_v50  ;;  %v907_v56 = vmax.f32 %v651_v54, %v395_v52  ;;  %v779_v59 = vld [vmem:[#allocation2 + $0x438] sm:$0xff]  ;;  %v1052_v62 = vmax.f32 %v796_v57, %v540_v55  ;;  %v1546_v3 = vld [vmem:[#allocation2 + $0x410] sm:$0xff] }
 0x113   :  { %1181 = vst.msk [vmem:[#allocation2 + $0xc0] sm:$0xff] %vm131_vm0, %v924_v53  ;;  %v1035_v63 = vmax.f32 %v779_v59, %v523_v58  ;;  %v1563_v2 = vld [vmem:[#allocation2 + $0x498] sm:$0xff]  ;;  %1182 = vst.msk [vmem:[#allocation2 + $0xc8] sm:$0xff] %vm131_vm0, %v925_v4  ;;  %v2062_v12 = vsel %vm131_vm0, %v1546_v3, -inf  ;;  %v1436_v13 = vld [vmem:[#allocation2 + $0xa0] sm:$0xff] }
 0x114   :  { %1676 = vmax.xlane.f32.xlu1 %v1675_v10  ;;  %1164 = vst.msk [vmem:[#allocation2 + $0x38] sm:$0xff] %vm131_vm0, %v907_v56  ;;  %1309 = vst.msk [vmem:[#allocation2 + $0x4c0] sm:$0xff] %vm131_vm0, %v1052_v62  ;;  %v524_v10 = vld [vmem:[%s10179_s0 + $0x440] sm:$0xff]  ;;  %v414_v16 = vld [vmem:[%s10179_s0 + $0xd0] sm:$0xff]  ;;  %v1732_v27 = vsel %vm131_vm0, %v1436_v13, -inf }
 0x115   :  { %1673 = vmax.xlane.f32.xlu0 %v1672_v11  ;;  %1292 = vst.msk [vmem:[#allocation2 + $0x438] sm:$0xff] %vm131_vm0, %v1035_v63  ;;  %v2113_v11 = vsel %vm131_vm0, %v1563_v2, -inf  ;;  %v780_v15 = vld [vmem:[#allocation2 + $0x440] sm:$0xff]  ;;  %v1419_v17 = vld [vmem:[#allocation2 + $0x18] sm:$0xff]  ;;  %1165 = vst.msk [vmem:[#allocation2 + $0x40] sm:$0xff] %vm131_vm0, %v908_v8  ;;  %v926_v21 = vmax.f32 %v670_v19, %v414_v16 }
 0x116   :  { %v1036_v18 = vmax.f32 %v780_v15, %v524_v10  ;;  %1310 = vst.msk [vmem:[#allocation2 + $0x4c8] sm:$0xff] %vm131_vm0, %v1053_v14  ;;  %v653_v22 = vld [vmem:[#allocation2 + $0x48] sm:$0xff]  ;;  %v542_v23 = vld [vmem:[%s10179_s0 + $0x4d0] sm:$0xff]  ;;  %v1681_v28 = vsel %vm131_vm0, %v1419_v17, -inf  ;;  %v1564_v32 = vld [vmem:[#allocation2 + $0x4a0] sm:$0xff] }
 0x117   :  { %v909_v24 = vmax.f32 %v653_v22, %v397_v20  ;;  %1183 = vst.msk [vmem:[#allocation2 + $0xd0] sm:$0xff] %vm131_vm0, %v926_v21  ;;  %v1547_v33 = vld [vmem:[#allocation2 + $0x418] sm:$0xff]  ;;  %v398_v37 = vld [vmem:[%s10179_s0 + $0x50] sm:$0xff]  ;;  %v1437_v45 = vld [vmem:[#allocation2 + $0xa8] sm:$0xff] }
 0x118   :  { %2057 = vmax.xlane.f32.xlu1 %v2056_v25  ;;  %1293 = vst.msk [vmem:[#allocation2 + $0x440] sm:$0xff] %vm131_vm0, %v1036_v18  ;;  %v798_v25 = vld [vmem:[#allocation2 + $0x4d0] sm:$0xff]  ;;  %v671_v35 = vld [vmem:[#allocation2 + $0xd8] sm:$0xff]  ;;  %v416_v48 = vld [vmem:[%s10179_s0 + $0xe0] sm:$0xff]  ;;  %v1735_v59 = vsel %vm131_vm0, %v1437_v45, -inf }
 0x119   :  { %1727 = vmax.xlane.f32.xlu0 %v1726_v26  ;;  %v525_v26 = vld [vmem:[%s10179_s0 + $0x448] sm:$0xff]  ;;  %v1054_v29 = vmax.f32 %v798_v25, %v542_v23  ;;  %1166 = vst.msk [vmem:[#allocation2 + $0x48] sm:$0xff] %vm131_vm0, %v909_v24  ;;  %v927_v36 = vmax.f32 %v671_v35, %v415_v31  ;;  %v654_v38 = vld [vmem:[#allocation2 + $0x50] sm:$0xff]  ;;  %v543_v40 = vld [vmem:[%s10179_s0 + $0x4d8] sm:$0xff] }
 0x11a   :  { %v1037_v34 = vmax.f32 %v781_v30, %v525_v26  ;;  %v910_v39 = vmax.f32 %v654_v38, %v398_v37  ;;  %v799_v41 = vld [vmem:[#allocation2 + $0x4d8] sm:$0xff]  ;;  %v526_v42 = vld [vmem:[%s10179_s0 + $0x450] sm:$0xff]  ;;  %v1420_v49 = vld [vmem:[#allocation2 + $0x20] sm:$0xff] }
 0x11b   :  { %1311 = vst.msk [vmem:[#allocation2 + $0x4d0] sm:$0xff] %vm131_vm0, %v1054_v29  ;;  %1184 = vst.msk [vmem:[#allocation2 + $0xd8] sm:$0xff] %vm131_vm0, %v927_v36  ;;  %v1055_v46 = vmax.f32 %v799_v41, %v543_v40  ;;  %v782_v47 = vld [vmem:[#allocation2 + $0x450] sm:$0xff]  ;;  %v672_v51 = vld [vmem:[#allocation2 + $0xe0] sm:$0xff] }
 0x11c   :  { %2111 = vmax.xlane.f32.xlu1 %v2110_v43  ;;  %1294 = vst.msk [vmem:[#allocation2 + $0x448] sm:$0xff] %vm131_vm0, %v1037_v34  ;;  %v2116_v43 = vsel %vm131_vm0, %v1564_v32, -inf  ;;  %1167 = vst.msk [vmem:[#allocation2 + $0x50] sm:$0xff] %vm131_vm0, %v910_v39  ;;  %v1038_v50 = vmax.f32 %v782_v47, %v526_v42  ;;  %v399_v52 = vld [vmem:[%s10179_s0 + $0x58] sm:$0xff]  ;;  %v928_v53 = vmax.f32 %v672_v51, %v416_v48  ;;  %v544_v55 = vld [vmem:[%s10179_s0 + $0x4e0] sm:$0xff] }
 0x11d   :  { %2060 = vmax.xlane.f32.xlu0 %v2059_v44  ;;  %v2065_v44 = vsel %vm131_vm0, %v1547_v33, -inf  ;;  %1312 = vst.msk [vmem:[#allocation2 + $0x4d8] sm:$0xff] %vm131_vm0, %v1055_v46  ;;  %v655_v54 = vld [vmem:[#allocation2 + $0x58] sm:$0xff]  ;;  %v800_v57 = vld [vmem:[#allocation2 + $0x4e0] sm:$0xff]  ;;  %v417_v0 = vld [vmem:[%s10179_s0 + $0xe8] sm:$0xff] }
 0x11e   :  { %1295 = vst.msk [vmem:[#allocation2 + $0x450] sm:$0xff] %vm131_vm0, %v1038_v50  ;;  %v911_v56 = vmax.f32 %v655_v54, %v399_v52  ;;  %v527_v58 = vld [vmem:[%s10179_s0 + $0x458] sm:$0xff]  ;;  %1185 = vst.msk [vmem:[#allocation2 + $0xe0] sm:$0xff] %vm131_vm0, %v928_v53  ;;  %v1056_v62 = vmax.f32 %v800_v57, %v544_v55  ;;  %v1548_v1 = vld [vmem:[#allocation2 + $0x420] sm:$0xff] }
 0x11f   :  { %v783_v63 = vld [vmem:[#allocation2 + $0x458] sm:$0xff]  ;;  %v673_v3 = vld [vmem:[#allocation2 + $0xe8] sm:$0xff]  ;;  %v400_v4 = vld [vmem:[%s10179_s0 + $0x60] sm:$0xff] }
 0x120   :  { %1730 = vmax.xlane.f32.xlu1 %v1729_v60  ;;  %v1684_v60 = vsel %vm131_vm0, %v1420_v49, -inf  ;;  %1168 = vst.msk [vmem:[#allocation2 + $0x58] sm:$0xff] %vm131_vm0, %v911_v56  ;;  %v1039_v2 = vmax.f32 %v783_v63, %v527_v58  ;;  %1313 = vst.msk [vmem:[#allocation2 + $0x4e0] sm:$0xff] %vm131_vm0, %v1056_v62  ;;  %v929_v5 = vmax.f32 %v673_v3, %v417_v0  ;;  %v656_v6 = vld [vmem:[#allocation2 + $0x60] sm:$0xff]  ;;  %v545_v7 = vld [vmem:[%s10179_s0 + $0x4e8] sm:$0xff] }
 0x121   :  { %1679 = vmax.xlane.f32.xlu0 %v1678_v61  ;;  %v1565_v61 = vld [vmem:[#allocation2 + $0x4a8] sm:$0xff]  ;;  %v912_v8 = vmax.f32 %v656_v6, %v400_v4  ;;  %v528_v10 = vld [vmem:[%s10179_s0 + $0x460] sm:$0xff]  ;;  %v1438_v13 = vld [vmem:[#allocation2 + $0xb0] sm:$0xff] }
 0x122   :  { %1296 = vst.msk [vmem:[#allocation2 + $0x458] sm:$0xff] %vm131_vm0, %v1039_v2  ;;  %v801_v9 = vld [vmem:[#allocation2 + $0x4e8] sm:$0xff]  ;;  %1186 = vst.msk [vmem:[#allocation2 + $0xe8] sm:$0xff] %vm131_vm0, %v929_v5  ;;  %v784_v15 = vld [vmem:[#allocation2 + $0x460] sm:$0xff] }
 0x123   :  { %v1057_v14 = vmax.f32 %v801_v9, %v545_v7  ;;  %v418_v16 = vld [vmem:[%s10179_s0 + $0xf0] sm:$0xff]  ;;  %v1421_v17 = vld [vmem:[#allocation2 + $0x28] sm:$0xff]  ;;  %1169 = vst.msk [vmem:[#allocation2 + $0x60] sm:$0xff] %vm131_vm0, %v912_v8  ;;  %v1040_v18 = vmax.f32 %v784_v15, %v528_v10  ;;  %v419_v32 = vld [vmem:[%s10179_s0 + $0xf8] sm:$0xff] }
 0x124   :  { %2114 = vmax.xlane.f32.xlu1 %v2113_v11  ;;  %v2119_v11 = vsel %vm131_vm0, %v1565_v61, -inf  ;;  %v674_v19 = vld [vmem:[#allocation2 + $0xf0] sm:$0xff]  ;;  %v401_v20 = vld [vmem:[%s10179_s0 + $0x68] sm:$0xff]  ;;  %v675_v35 = vld [vmem:[#allocation2 + $0xf8] sm:$0xff] }
 0x125   :  { %2063 = vmax.xlane.f32.xlu0 %v2062_v12  ;;  %v2068_v12 = vsel %vm131_vm0, %v1548_v1, -inf  ;;  %1314 = vst.msk [vmem:[#allocation2 + $0x4e8] sm:$0xff] %vm131_vm0, %v1057_v14  ;;  %v930_v21 = vmax.f32 %v674_v19, %v418_v16  ;;  %v657_v22 = vld [vmem:[#allocation2 + $0x68] sm:$0xff]  ;;  %v546_v23 = vld [vmem:[%s10179_s0 + $0x4f0] sm:$0xff]  ;;  %1297 = vst.msk [vmem:[#allocation2 + $0x460] sm:$0xff] %vm131_vm0, %v1040_v18  ;;  %v931_v37 = vmax.f32 %v675_v35, %v419_v32 }
 0x126   :  { %v913_v24 = vmax.f32 %v657_v22, %v401_v20  ;;  %v802_v25 = vld [vmem:[#allocation2 + $0x4f0] sm:$0xff]  ;;  %v529_v26 = vld [vmem:[%s10179_s0 + $0x468] sm:$0xff]  ;;  %v547_v39 = vld [vmem:[%s10179_s0 + $0x4f8] sm:$0xff] }
 0x127   :  { %v1566_v29 = vld [vmem:[#allocation2 + $0x4b0] sm:$0xff]  ;;  %1187 = vst.msk [vmem:[#allocation2 + $0xf0] sm:$0xff] %vm131_vm0, %v930_v21  ;;  %v1058_v30 = vmax.f32 %v802_v25, %v546_v23  ;;  %v785_v31 = vld [vmem:[#allocation2 + $0x468] sm:$0xff]  ;;  %v803_v41 = vld [vmem:[#allocation2 + $0x4f8] sm:$0xff] }
 0x128   :  { %1733 = vmax.xlane.f32.xlu1 %v1732_v27  ;;  %v1738_v27 = vsel %vm131_vm0, %v1438_v13, -inf  ;;  %v1549_v33 = vld [vmem:[#allocation2 + $0x428] sm:$0xff]  ;;  %1170 = vst.msk [vmem:[#allocation2 + $0x68] sm:$0xff] %vm131_vm0, %v913_v24  ;;  %v1041_v34 = vmax.f32 %v785_v31, %v529_v26  ;;  %v402_v36 = vld [vmem:[%s10179_s0 + $0x70] sm:$0xff]  ;;  %v1439_v45 = vld [vmem:[#allocation2 + $0xb8] sm:$0xff]  ;;  %v1059_v46 = vmax.f32 %v803_v41, %v547_v39 }
 0x129   :  { %1682 = vmax.xlane.f32.xlu0 %v1681_v28  ;;  %v1687_v28 = vsel %vm131_vm0, %v1421_v17, -inf  ;;  %1315 = vst.msk [vmem:[#allocation2 + $0x4f0] sm:$0xff] %vm131_vm0, %v1058_v30  ;;  %v658_v38 = vld [vmem:[#allocation2 + $0x70] sm:$0xff]  ;;  %1188 = vst.msk [vmem:[#allocation2 + $0xf8] sm:$0xff] %vm131_vm0, %v931_v37  ;;  %v531_v48 = vld [vmem:[%s10179_s0 + $0x478] sm:$0xff] }
 0x12a   :  { %1298 = vst.msk [vmem:[#allocation2 + $0x468] sm:$0xff] %vm131_vm0, %v1041_v34  ;;  %v914_v40 = vmax.f32 %v658_v38, %v402_v36  ;;  %v530_v42 = vld [vmem:[%s10179_s0 + $0x470] sm:$0xff]  ;;  %v787_v51 = vld [vmem:[#allocation2 + $0x478] sm:$0xff]  ;;  %1316 = vst.msk [vmem:[#allocation2 + $0x4f8] sm:$0xff] %vm131_vm0, %v1059_v46 }
 0x12b   :  { %v786_v47 = vld [vmem:[#allocation2 + $0x470] sm:$0xff]  ;;  %v403_v52 = vld [vmem:[%s10179_s0 + $0x78] sm:$0xff]  ;;  %v1043_v53 = vmax.f32 %v787_v51, %v531_v48  ;;  %v437_v55 = vld [vmem:[%s10179_s0 + $0x188] sm:$0xff] }
 0x12c   :  { %2117 = vmax.xlane.f32.xlu1 %v2116_v43  ;;  %v2122_v43 = vsel %vm131_vm0, %v1566_v29, -inf  ;;  %v1422_v49 = vld [vmem:[#allocation2 + $0x30] sm:$0xff]  ;;  %1171 = vst.msk [vmem:[#allocation2 + $0x70] sm:$0xff] %vm131_vm0, %v914_v40  ;;  %v1042_v50 = vmax.f32 %v786_v47, %v530_v42  ;;  %v659_v54 = vld [vmem:[#allocation2 + $0x78] sm:$0xff]  ;;  %v693_v57 = vld [vmem:[#allocation2 + $0x188] sm:$0xff] }
 0x12d   :  { %2066 = vmax.xlane.f32.xlu0 %v2065_v44  ;;  %v2071_v44 = vsel %vm131_vm0, %v1549_v33, -inf  ;;  %v915_v56 = vmax.f32 %v659_v54, %v403_v52  ;;  %v436_v58 = vld [vmem:[%s10179_s0 + $0x180] sm:$0xff]  ;;  %v1567_v61 = vld [vmem:[#allocation2 + $0x4b8] sm:$0xff]  ;;  %1300 = vst.msk [vmem:[#allocation2 + $0x478] sm:$0xff] %vm131_vm0, %v1043_v53  ;;  %v949_v62 = vmax.f32 %v693_v57, %v437_v55  ;;  %v565_v0 = vld [vmem:[%s10179_s0 + $0x588] sm:$0xff] }
 0x12e   :  { %1299 = vst.msk [vmem:[#allocation2 + $0x470] sm:$0xff] %vm131_vm0, %v1042_v50  ;;  %v692_v63 = vld [vmem:[#allocation2 + $0x180] sm:$0xff]  ;;  %v1550_v1 = vld [vmem:[#allocation2 + $0x430] sm:$0xff]  ;;  %v821_v3 = vld [vmem:[#allocation2 + $0x588] sm:$0xff] }
 0x12f   :  { %1172 = vst.msk [vmem:[#allocation2 + $0x78] sm:$0xff] %vm131_vm0, %v915_v56  ;;  %v948_v2 = vmax.f32 %v692_v63, %v436_v58  ;;  %v564_v4 = vld [vmem:[%s10179_s0 + $0x580] sm:$0xff]  ;;  %1206 = vst.msk [vmem:[#allocation2 + $0x188] sm:$0xff] %vm131_vm0, %v949_v62  ;;  %v1077_v5 = vmax.f32 %v821_v3, %v565_v0  ;;  %v421_v7 = vld [vmem:[%s10179_s0 + $0x108] sm:$0xff] }
 0x130   :  { %1736 = vmax.xlane.f32.xlu1 %v1735_v59  ;;  %v1741_v59 = vsel %vm131_vm0, %v1439_v45, -inf  ;;  %v820_v6 = vld [vmem:[#allocation2 + $0x580] sm:$0xff]  ;;  %v677_v9 = vld [vmem:[#allocation2 + $0x108] sm:$0xff]  ;;  %v1423_v17 = vld [vmem:[#allocation2 + $0x38] sm:$0xff] }
 0x131   :  { %1685 = vmax.xlane.f32.xlu0 %v1684_v60  ;;  %v1690_v60 = vsel %vm131_vm0, %v1422_v49, -inf  ;;  %1205 = vst.msk [vmem:[#allocation2 + $0x180] sm:$0xff] %vm131_vm0, %v948_v2  ;;  %v1076_v8 = vmax.f32 %v820_v6, %v564_v4  ;;  %v420_v10 = vld [vmem:[%s10179_s0 + $0x100] sm:$0xff]  ;;  %1334 = vst.msk [vmem:[#allocation2 + $0x588] sm:$0xff] %vm131_vm0, %v1077_v5  ;;  %v933_v14 = vmax.f32 %v677_v9, %v421_v7  ;;  %v438_v20 = vld [vmem:[%s10179_s0 + $0x190] sm:$0xff] }
 0x132   :  { %v1440_v13 = vld [vmem:[#allocation2 + $0xc0] sm:$0xff]  ;;  %v694_v22 = vld [vmem:[#allocation2 + $0x190] sm:$0xff]  ;;  %v549_v26 = vld [vmem:[%s10179_s0 + $0x508] sm:$0xff] }
 0x133   :  { %v676_v15 = vld [vmem:[#allocation2 + $0x100] sm:$0xff]  ;;  %1333 = vst.msk [vmem:[#allocation2 + $0x580] sm:$0xff] %vm131_vm0, %v1076_v8  ;;  %1190 = vst.msk [vmem:[#allocation2 + $0x108] sm:$0xff] %vm131_vm0, %v933_v14  ;;  %v566_v23 = vld [vmem:[%s10179_s0 + $0x590] sm:$0xff]  ;;  %v950_v24 = vmax.f32 %v694_v22, %v438_v20 }
 0x134   :  { %2120 = vmax.xlane.f32.xlu1 %v2119_v11  ;;  %v2125_v11 = vsel %vm131_vm0, %v1567_v61, -inf  ;;  %v548_v16 = vld [vmem:[%s10179_s0 + $0x500] sm:$0xff]  ;;  %v932_v18 = vmax.f32 %v676_v15, %v420_v10  ;;  %v822_v25 = vld [vmem:[#allocation2 + $0x590] sm:$0xff]  ;;  %v805_v31 = vld [vmem:[#allocation2 + $0x508] sm:$0xff] }
 0x135   :  { %2069 = vmax.xlane.f32.xlu0 %v2068_v12  ;;  %v2074_v12 = vsel %vm131_vm0, %v1550_v1, -inf  ;;  %v804_v19 = vld [vmem:[#allocation2 + $0x500] sm:$0xff]  ;;  %v1078_v30 = vmax.f32 %v822_v25, %v566_v23  ;;  %v439_v32 = vld [vmem:[%s10179_s0 + $0x198] sm:$0xff]  ;;  %1207 = vst.msk [vmem:[#allocation2 + $0x190] sm:$0xff] %vm131_vm0, %v950_v24  ;;  %v1061_v34 = vmax.f32 %v805_v31, %v549_v26  ;;  %v422_v36 = vld [vmem:[%s10179_s0 + $0x110] sm:$0xff] }
 0x136   :  { %v1060_v21 = vmax.f32 %v804_v19, %v548_v16  ;;  %1189 = vst.msk [vmem:[#allocation2 + $0x100] sm:$0xff] %vm131_vm0, %v932_v18  ;;  %v1568_v29 = vld [vmem:[#allocation2 + $0x4c0] sm:$0xff]  ;;  %v1551_v33 = vld [vmem:[#allocation2 + $0x438] sm:$0xff]  ;;  %v678_v38 = vld [vmem:[#allocation2 + $0x110] sm:$0xff] }
 0x137   :  { %v695_v35 = vld [vmem:[#allocation2 + $0x198] sm:$0xff]  ;;  %1335 = vst.msk [vmem:[#allocation2 + $0x590] sm:$0xff] %vm131_vm0, %v1078_v30  ;;  %1318 = vst.msk [vmem:[#allocation2 + $0x508] sm:$0xff] %vm131_vm0, %v1061_v34  ;;  %v934_v40 = vmax.f32 %v678_v38, %v422_v36  ;;  %v550_v42 = vld [vmem:[%s10179_s0 + $0x510] sm:$0xff] }
 0x138   :  { %1739 = vmax.xlane.f32.xlu1 %v1738_v27  ;;  %v1744_v27 = vsel %vm131_vm0, %v1440_v13, -inf  ;;  %1317 = vst.msk [vmem:[#allocation2 + $0x500] sm:$0xff] %vm131_vm0, %v1060_v21  ;;  %v951_v37 = vmax.f32 %v695_v35, %v439_v32  ;;  %v567_v39 = vld [vmem:[%s10179_s0 + $0x598] sm:$0xff]  ;;  %v1441_v45 = vld [vmem:[#allocation2 + $0xc8] sm:$0xff]  ;;  %v806_v47 = vld [vmem:[#allocation2 + $0x510] sm:$0xff] }
 0x139   :  { %1688 = vmax.xlane.f32.xlu0 %v1687_v28  ;;  %v1693_v28 = vsel %vm131_vm0, %v1423_v17, -inf  ;;  %v823_v41 = vld [vmem:[#allocation2 + $0x598] sm:$0xff]  ;;  %v440_v48 = vld [vmem:[%s10179_s0 + $0x1a0] sm:$0xff]  ;;  %1191 = vst.msk [vmem:[#allocation2 + $0x110] sm:$0xff] %vm131_vm0, %v934_v40  ;;  %v1062_v50 = vmax.f32 %v806_v47, %v550_v42  ;;  %v1569_v61 = vld [vmem:[#allocation2 + $0x4c8] sm:$0xff] }
 0x13a   :  { %1208 = vst.msk [vmem:[#allocation2 + $0x198] sm:$0xff] %vm131_vm0, %v951_v37  ;;  %v1079_v46 = vmax.f32 %v823_v41, %v567_v39  ;;  %v1424_v49 = vld [vmem:[#allocation2 + $0x40] sm:$0xff]  ;;  %v423_v52 = vld [vmem:[%s10179_s0 + $0x118] sm:$0xff]  ;;  %v441_v0 = vld [vmem:[%s10179_s0 + $0x1a8] sm:$0xff] }
 0x13b   :  { %v696_v51 = vld [vmem:[#allocation2 + $0x1a0] sm:$0xff]  ;;  %v679_v54 = vld [vmem:[#allocation2 + $0x118] sm:$0xff]  ;;  %1319 = vst.msk [vmem:[#allocation2 + $0x510] sm:$0xff] %vm131_vm0, %v1062_v50  ;;  %v697_v3 = vld [vmem:[#allocation2 + $0x1a8] sm:$0xff] }
 0x13c   :  { %2123 = vmax.xlane.f32.xlu1 %v2122_v43  ;;  %v2128_v43 = vsel %vm131_vm0, %v1568_v29, -inf  ;;  %1336 = vst.msk [vmem:[#allocation2 + $0x598] sm:$0xff] %vm131_vm0, %v1079_v46  ;;  %v952_v53 = vmax.f32 %v696_v51, %v440_v48  ;;  %v568_v55 = vld [vmem:[%s10179_s0 + $0x5a0] sm:$0xff]  ;;  %v935_v56 = vmax.f32 %v679_v54, %v423_v52  ;;  %v551_v58 = vld [vmem:[%s10179_s0 + $0x518] sm:$0xff]  ;;  %v953_v5 = vmax.f32 %v697_v3, %v441_v0  ;;  %v569_v7 = vld [vmem:[%s10179_s0 + $0x5a8] sm:$0xff] }
 0x13d   :  { %2072 = vmax.xlane.f32.xlu0 %v2071_v44  ;;  %v2077_v44 = vsel %vm131_vm0, %v1551_v33, -inf  ;;  %v824_v57 = vld [vmem:[#allocation2 + $0x5a0] sm:$0xff]  ;;  %v807_v63 = vld [vmem:[#allocation2 + $0x518] sm:$0xff]  ;;  %v825_v9 = vld [vmem:[#allocation2 + $0x5a8] sm:$0xff] }
 0x13e   :  { %1209 = vst.msk [vmem:[#allocation2 + $0x1a0] sm:$0xff] %vm131_vm0, %v952_v53  ;;  %v1080_v62 = vmax.f32 %v824_v57, %v568_v55  ;;  %v1552_v1 = vld [vmem:[#allocation2 + $0x440] sm:$0xff]  ;;  %1192 = vst.msk [vmem:[#allocation2 + $0x118] sm:$0xff] %vm131_vm0, %v935_v56  ;;  %v1063_v2 = vmax.f32 %v807_v63, %v551_v58  ;;  %v1442_v13 = vld [vmem:[#allocation2 + $0xd0] sm:$0xff]  ;;  %v1081_v14 = vmax.f32 %v825_v9, %v569_v7 }
 0x13f   :  { %v424_v4 = vld [vmem:[%s10179_s0 + $0x120] sm:$0xff]  ;;  %1210 = vst.msk [vmem:[#allocation2 + $0x1a8] sm:$0xff] %vm131_vm0, %v953_v5  ;;  %v442_v16 = vld [vmem:[%s10179_s0 + $0x1b0] sm:$0xff]  ;;  %v1425_v17 = vld [vmem:[#allocation2 + $0x48] sm:$0xff] }
 0x140   :  { %1742 = vmax.xlane.f32.xlu1 %v1741_v59  ;;  %v1747_v59 = vsel %vm131_vm0, %v1441_v45, -inf  ;;  %1337 = vst.msk [vmem:[#allocation2 + $0x5a0] sm:$0xff] %vm131_vm0, %v1080_v62  ;;  %v680_v6 = vld [vmem:[#allocation2 + $0x120] sm:$0xff]  ;;  %1320 = vst.msk [vmem:[#allocation2 + $0x518] sm:$0xff] %vm131_vm0, %v1063_v2  ;;  %v698_v19 = vld [vmem:[#allocation2 + $0x1b0] sm:$0xff] }
 0x141   :  { %1691 = vmax.xlane.f32.xlu0 %v1690_v60  ;;  %v1696_v60 = vsel %vm131_vm0, %v1424_v49, -inf  ;;  %v936_v8 = vmax.f32 %v680_v6, %v424_v4  ;;  %v552_v10 = vld [vmem:[%s10179_s0 + $0x520] sm:$0xff]  ;;  %v425_v20 = vld [vmem:[%s10179_s0 + $0x128] sm:$0xff]  ;;  %1338 = vst.msk [vmem:[#allocation2 + $0x5a8] sm:$0xff] %vm131_vm0, %v1081_v14  ;;  %v954_v21 = vmax.f32 %v698_v19, %v442_v16  ;;  %v570_v23 = vld [vmem:[%s10179_s0 + $0x5b0] sm:$0xff] }
 0x142   :  { %v808_v15 = vld [vmem:[#allocation2 + $0x520] sm:$0xff]  ;;  %v681_v22 = vld [vmem:[#allocation2 + $0x128] sm:$0xff]  ;;  %v826_v25 = vld [vmem:[#allocation2 + $0x5b0] sm:$0xff] }
 0x143   :  { %1193 = vst.msk [vmem:[#allocation2 + $0x120] sm:$0xff] %vm131_vm0, %v936_v8  ;;  %v1064_v18 = vmax.f32 %v808_v15, %v552_v10  ;;  %v937_v24 = vmax.f32 %v681_v22, %v425_v20  ;;  %v553_v26 = vld [vmem:[%s10179_s0 + $0x528] sm:$0xff]  ;;  %v1570_v29 = vld [vmem:[#allocation2 + $0x4d0] sm:$0xff]  ;;  %1211 = vst.msk [vmem:[#allocation2 + $0x1b0] sm:$0xff] %vm131_vm0, %v954_v21  ;;  %v1082_v30 = vmax.f32 %v826_v25, %v570_v23 }
 0x144   :  { %2126 = vmax.xlane.f32.xlu1 %v2125_v11  ;;  %v2131_v11 = vsel %vm131_vm0, %v1569_v61, -inf  ;;  %v809_v31 = vld [vmem:[#allocation2 + $0x528] sm:$0xff]  ;;  %v443_v32 = vld [vmem:[%s10179_s0 + $0x1b8] sm:$0xff]  ;;  %v426_v36 = vld [vmem:[%s10179_s0 + $0x130] sm:$0xff] }
 0x145   :  { %2075 = vmax.xlane.f32.xlu0 %v2074_v12  ;;  %v2080_v12 = vsel %vm131_vm0, %v1552_v1, -inf  ;;  %1321 = vst.msk [vmem:[#allocation2 + $0x520] sm:$0xff] %vm131_vm0, %v1064_v18  ;;  %v1553_v33 = vld [vmem:[#allocation2 + $0x448] sm:$0xff]  ;;  %1194 = vst.msk [vmem:[#allocation2 + $0x128] sm:$0xff] %vm131_vm0, %v937_v24  ;;  %v1065_v34 = vmax.f32 %v809_v31, %v553_v26  ;;  %v699_v35 = vld [vmem:[#allocation2 + $0x1b8] sm:$0xff] }
 0x146   :  { %1339 = vst.msk [vmem:[#allocation2 + $0x5b0] sm:$0xff] %vm131_vm0, %v1082_v30  ;;  %v955_v37 = vmax.f32 %v699_v35, %v443_v32  ;;  %v682_v38 = vld [vmem:[#allocation2 + $0x130] sm:$0xff]  ;;  %v571_v39 = vld [vmem:[%s10179_s0 + $0x5b8] sm:$0xff]  ;;  %v444_v48 = vld [vmem:[%s10179_s0 + $0x1c0] sm:$0xff] }
 0x147   :  { %1322 = vst.msk [vmem:[#allocation2 + $0x528] sm:$0xff] %vm131_vm0, %v1065_v34  ;;  %v938_v40 = vmax.f32 %v682_v38, %v426_v36  ;;  %v827_v41 = vld [vmem:[#allocation2 + $0x5b8] sm:$0xff]  ;;  %v554_v42 = vld [vmem:[%s10179_s0 + $0x530] sm:$0xff]  ;;  %v700_v51 = vld [vmem:[#allocation2 + $0x1c0] sm:$0xff] }
 0x148   :  { %1745 = vmax.xlane.f32.xlu1 %v1744_v27  ;;  %v1750_v27 = vsel %vm131_vm0, %v1442_v13, -inf  ;;  %v1443_v45 = vld [vmem:[#allocation2 + $0xd8] sm:$0xff]  ;;  %1212 = vst.msk [vmem:[#allocation2 + $0x1b8] sm:$0xff] %vm131_vm0, %v955_v37  ;;  %v1083_v46 = vmax.f32 %v827_v41, %v571_v39  ;;  %v810_v47 = vld [vmem:[#allocation2 + $0x530] sm:$0xff]  ;;  %v956_v53 = vmax.f32 %v700_v51, %v444_v48  ;;  %v572_v55 = vld [vmem:[%s10179_s0 + $0x5c0] sm:$0xff] }
 0x149   :  { %1694 = vmax.xlane.f32.xlu0 %v1693_v28  ;;  %v1699_v28 = vsel %vm131_vm0, %v1425_v17, -inf  ;;  %v1426_v49 = vld [vmem:[#allocation2 + $0x50] sm:$0xff]  ;;  %1195 = vst.msk [vmem:[#allocation2 + $0x130] sm:$0xff] %vm131_vm0, %v938_v40  ;;  %v1066_v50 = vmax.f32 %v810_v47, %v554_v42  ;;  %v427_v52 = vld [vmem:[%s10179_s0 + $0x138] sm:$0xff]  ;;  %v828_v57 = vld [vmem:[#allocation2 + $0x5c0] sm:$0xff] }
 0x14a   :  { %1340 = vst.msk [vmem:[#allocation2 + $0x5b8] sm:$0xff] %vm131_vm0, %v1083_v46  ;;  %v683_v54 = vld [vmem:[#allocation2 + $0x138] sm:$0xff]  ;;  %1213 = vst.msk [vmem:[#allocation2 + $0x1c0] sm:$0xff] %vm131_vm0, %v956_v53  ;;  %v1084_v62 = vmax.f32 %v828_v57, %v572_v55  ;;  %v445_v0 = vld [vmem:[%s10179_s0 + $0x1c8] sm:$0xff] }
 0x14b   :  { %1323 = vst.msk [vmem:[#allocation2 + $0x530] sm:$0xff] %vm131_vm0, %v1066_v50  ;;  %v939_v56 = vmax.f32 %v683_v54, %v427_v52  ;;  %v555_v58 = vld [vmem:[%s10179_s0 + $0x538] sm:$0xff]  ;;  %v1554_v1 = vld [vmem:[#allocation2 + $0x450] sm:$0xff]  ;;  %v701_v3 = vld [vmem:[#allocation2 + $0x1c8] sm:$0xff] }
 0x14c   :  { %2129 = vmax.xlane.f32.xlu1 %v2128_v43  ;;  %v2134_v43 = vsel %vm131_vm0, %v1570_v29, -inf  ;;  %v1571_v61 = vld [vmem:[#allocation2 + $0x4d8] sm:$0xff]  ;;  %v428_v4 = vld [vmem:[%s10179_s0 + $0x140] sm:$0xff]  ;;  %1341 = vst.msk [vmem:[#allocation2 + $0x5c0] sm:$0xff] %vm131_vm0, %v1084_v62  ;;  %v957_v5 = vmax.f32 %v701_v3, %v445_v0  ;;  %v573_v7 = vld [vmem:[%s10179_s0 + $0x5c8] sm:$0xff] }
 0x14d   :  { %2078 = vmax.xlane.f32.xlu0 %v2077_v44  ;;  %v2083_v44 = vsel %vm131_vm0, %v1553_v33, -inf  ;;  %v811_v63 = vld [vmem:[#allocation2 + $0x538] sm:$0xff]  ;;  %1196 = vst.msk [vmem:[#allocation2 + $0x138] sm:$0xff] %vm131_vm0, %v939_v56  ;;  %v684_v6 = vld [vmem:[#allocation2 + $0x140] sm:$0xff]  ;;  %v829_v9 = vld [vmem:[#allocation2 + $0x5c8] sm:$0xff] }
 0x14e   :  { %v1067_v2 = vmax.f32 %v811_v63, %v555_v58  ;;  %v940_v8 = vmax.f32 %v684_v6, %v428_v4  ;;  %v556_v10 = vld [vmem:[%s10179_s0 + $0x540] sm:$0xff]  ;;  %1214 = vst.msk [vmem:[#allocation2 + $0x1c8] sm:$0xff] %vm131_vm0, %v957_v5  ;;  %v1085_v14 = vmax.f32 %v829_v9, %v573_v7  ;;  %v446_v16 = vld [vmem:[%s10179_s0 + $0x1d0] sm:$0xff]  ;;  %v1427_v17 = vld [vmem:[#allocation2 + $0x58] sm:$0xff] }
 0x14f   :  { %v1444_v13 = vld [vmem:[#allocation2 + $0xe0] sm:$0xff]  ;;  %v702_v19 = vld [vmem:[#allocation2 + $0x1d0] sm:$0xff]  ;;  %v429_v20 = vld [vmem:[%s10179_s0 + $0x148] sm:$0xff] }
 0x150   :  { %1748 = vmax.xlane.f32.xlu1 %v1747_v59  ;;  %v1753_v59 = vsel %vm131_vm0, %v1443_v45, -inf  ;;  %1324 = vst.msk [vmem:[#allocation2 + $0x538] sm:$0xff] %vm131_vm0, %v1067_v2  ;;  %v812_v15 = vld [vmem:[#allocation2 + $0x540] sm:$0xff]  ;;  %1197 = vst.msk [vmem:[#allocation2 + $0x140] sm:$0xff] %vm131_vm0, %v940_v8  ;;  %v958_v21 = vmax.f32 %v702_v19, %v446_v16  ;;  %v685_v22 = vld [vmem:[#allocation2 + $0x148] sm:$0xff] }
 0x151   :  { %1697 = vmax.xlane.f32.xlu0 %v1696_v60  ;;  %v1702_v60 = vsel %vm131_vm0, %v1426_v49, -inf  ;;  %v1068_v18 = vmax.f32 %v812_v15, %v556_v10  ;;  %1342 = vst.msk [vmem:[#allocation2 + $0x5c8] sm:$0xff] %vm131_vm0, %v1085_v14  ;;  %v2441_v23 = vld [vmem:[#allocation4 + $0x8] sm:$0xff]  ;;  %v941_v24 = vmax.f32 %v685_v22, %v429_v20  ;;  %v2443_v26 = vld [vmem:[#allocation4 + $0x18] sm:$0xff]  ;;  %v2440_v32 = vld [vmem:[#allocation4] sm:$0xff] }
 0x152   :  { %v2445_v25 = vld [vmem:[#allocation4 + $0x28] sm:$0xff]  ;;  %v1572_v29 = vld [vmem:[#allocation2 + $0x4e0] sm:$0xff]  ;;  %1215 = vst.msk [vmem:[#allocation2 + $0x1d0] sm:$0xff] %vm131_vm0, %v958_v21  ;;  %v1555_v33 = vld [vmem:[#allocation2 + $0x458] sm:$0xff] }
 0x153   :  { %1325 = vst.msk [vmem:[#allocation2 + $0x540] sm:$0xff] %vm131_vm0, %v1068_v18  ;;  %v5828_v30 = vpack.c.bf16 %v2445_v25, %v2441_v23  ;;  %v2447_v31 = vld [vmem:[#allocation4 + $0x38] sm:$0xff]  ;;  %1198 = vst.msk [vmem:[#allocation2 + $0x148] sm:$0xff] %vm131_vm0, %v941_v24  ;;  %v2444_v35 = vld [vmem:[#allocation4 + $0x20] sm:$0xff] }
 0x154   :  { %2132 = vmax.xlane.f32.xlu1 %v2131_v11  ;;  %v2137_v11 = vsel %vm131_vm0, %v1571_v61, -inf  ;;  %v6084_v34 = vpack.c.bf16 %v2447_v31, %v2443_v26  ;;  %v2442_v36 = vld [vmem:[#allocation4 + $0x10] sm:$0xff]  ;;  %v5830_v37 = vpack.c.bf16 %v2444_v35, %v2440_v32  ;;  %v557_v42 = vld [vmem:[%s10179_s0 + $0x548] sm:$0xff]  ;;  %v1428_v49 = vld [vmem:[#allocation2 + $0x60] sm:$0xff] }
 0x155   :  { %2081 = vmax.xlane.f32.xlu0 %v2080_v12  ;;  %v2086_v12 = vsel %vm131_vm0, %v1554_v1, -inf  ;;  %5829 = vmatprep.subr.bf16.mxu0 %v5828_v30  ;;  %v2446_v38 = vld [vmem:[#allocation4 + $0x30] sm:$0xff]  ;;  %v1445_v45 = vld [vmem:[#allocation2 + $0xe8] sm:$0xff]  ;;  %v2451_v52 = vld [vmem:[#allocation4 + $0x58] sm:$0xff]  ;;  %v1708_v61 = vsel %vm131_vm0, %v1428_v49, -inf }
 0x156   :  { %v574_v39 = vld [vmem:[%s10179_s0 + $0x5d0] sm:$0xff]  ;;  %v6086_v40 = vpack.c.bf16 %v2446_v38, %v2442_v36  ;;  %6085 = vmatprep.subr.bf16.mxu1 %v6084_v34  ;;  %5831 = vmatpush1.bf16.msra.mxu0 %v5830_v37  ;;  %v813_v47 = vld [vmem:[#allocation2 + $0x548] sm:$0xff]  ;;  %v2455_v54 = vld [vmem:[#allocation4 + $0x78] sm:$0xff] }
 0x157   :  { %v830_v41 = vld [vmem:[#allocation2 + $0x5d0] sm:$0xff]  ;;  %v1069_v50 = vmax.f32 %v813_v47, %v557_v42  ;;  %v2448_v55 = vld [vmem:[#allocation4 + $0x40] sm:$0xff]  ;;  %v6088_v57 = vpack.c.bf16 %v2455_v54, %v2451_v52  ;;  %v447_v1 = vld [vmem:[%s10179_s0 + $0x1d8] sm:$0xff] }
 0x158   :  { %1751 = vmax.xlane.f32.xlu1 %v1750_v27  ;;  %v1756_v27 = vsel %vm131_vm0, %v1444_v13, -inf  ;;  %v1086_v46 = vmax.f32 %v830_v41, %v574_v39  ;;  %v2449_v48 = vld [vmem:[#allocation4 + $0x48] sm:$0xff]  ;;  %6087 = vmatpush1.bf16.msra.mxu1 %v6086_v40  ;;  %v2452_v58 = vld [vmem:[#allocation4 + $0x60] sm:$0xff]  ;;  %v2454_v0 = vld [vmem:[#allocation4 + $0x70] sm:$0xff] }
 0x159   :  { %1700 = vmax.xlane.f32.xlu0 %v1699_v28  ;;  %v1705_v28 = vsel %vm131_vm0, %v1427_v17, -inf  ;;  %v2453_v51 = vld [vmem:[#allocation4 + $0x68] sm:$0xff]  ;;  %1326 = vst.msk [vmem:[#allocation2 + $0x548] sm:$0xff] %vm131_vm0, %v1069_v50  ;;  %v1556_v62 = vld [vmem:[#allocation2 + $0x460] sm:$0xff]  ;;  %v5834_v63 = vpack.c.bf16 %v2452_v58, %v2448_v55  ;;  %6089 = vmatprep.subr.bf16.mxu1 %v6088_v57  ;;  %v703_v3 = vld [vmem:[#allocation2 + $0x1d8] sm:$0xff] }
 0x15a   :  { %1343 = vst.msk [vmem:[#allocation2 + $0x5d0] sm:$0xff] %vm131_vm0, %v1086_v46  ;;  %v5832_v53 = vpack.c.bf16 %v2453_v51, %v2449_v48  ;;  %v1573_v56 = vld [vmem:[#allocation2 + $0x4e8] sm:$0xff]  ;;  %v430_v4 = vld [vmem:[%s10179_s0 + $0x150] sm:$0xff]  ;;  %v959_v6 = vmax.f32 %v703_v3, %v447_v1  ;;  %v2459_v10 = vld [vmem:[#allocation4 + $0x98] sm:$0xff]  ;;  %v2092_v17 = vsel %vm131_vm0, %v1556_v62, -inf }
 0x15b   :  { %v686_v5 = vld [vmem:[#allocation2 + $0x150] sm:$0xff]  ;;  %v2463_v13 = vld [vmem:[#allocation4 + $0xb8] sm:$0xff]  ;;  %v2456_v14 = vld [vmem:[#allocation4 + $0x80] sm:$0xff]  ;;  %v2143_v16 = vsel %vm131_vm0, %v1573_v56, -inf }
 0x15c   :  { %2135 = vmax.xlane.f32.xlu1 %v2134_v43  ;;  %v2140_v43 = vsel %vm131_vm0, %v1572_v29, -inf  ;;  %5833 = vmatprep.subr.bf16.mxu0 %v5832_v53  ;;  %v942_v7 = vmax.f32 %v686_v5, %v430_v4  ;;  %v2457_v8 = vld [vmem:[#allocation4 + $0x88] sm:$0xff]  ;;  %v2460_v15 = vld [vmem:[#allocation4 + $0xa0] sm:$0xff]  ;;  %1216 = vst.msk [vmem:[#allocation2 + $0x1d8] sm:$0xff] %vm131_vm0, %v959_v6  ;;  %v6092_v18 = vpack.c.bf16 %v2463_v13, %v2459_v10  ;;  %v2458_v20 = vld [vmem:[#allocation4 + $0x90] sm:$0xff] }
 0x15d   :  { %2084 = vmax.xlane.f32.xlu0 %v2083_v44  ;;  %v2089_v44 = vsel %vm131_vm0, %v1555_v33, -inf  ;;  %5835 = vmatpush1.bf16.msra.mxu0 %v5834_v63  ;;  %v2461_v9 = vld [vmem:[#allocation4 + $0xa8] sm:$0xff]  ;;  %v5838_v19 = vpack.c.bf16 %v2460_v15, %v2456_v14  ;;  %v2462_v21 = vld [vmem:[#allocation4 + $0xb0] sm:$0xff]  ;;  %v2467_v34 = vld [vmem:[#allocation4 + $0xd8] sm:$0xff] }
 0x15e   :  { %1199 = vst.msk [vmem:[#allocation2 + $0x150] sm:$0xff] %vm131_vm0, %v942_v7  ;;  %v575_v22 = vld [vmem:[%s10179_s0 + $0x5d8] sm:$0xff]  ;;  %v1429_v23 = vld [vmem:[#allocation2 + $0x68] sm:$0xff]  ;;  %v6094_v24 = vpack.c.bf16 %v2462_v21, %v2458_v20  ;;  %v558_v26 = vld [vmem:[%s10179_s0 + $0x550] sm:$0xff] }
 0x15f   :  { %v831_v25 = vld [vmem:[#allocation2 + $0x5d8] sm:$0xff]  ;;  %v2465_v29 = vld [vmem:[#allocation4 + $0xc8] sm:$0xff]  ;;  %v1711_v37 = vsel %vm131_vm0, %v1429_v23, -inf  ;;  %v2464_v40 = vld [vmem:[#allocation4 + $0xc0] sm:$0xff] }
 0x160   :  { %1754 = vmax.xlane.f32.xlu1 %v1753_v59  ;;  %v2450_v59 = vld [vmem:[#allocation4 + $0x50] sm:$0xff]  ;;  %v1557_v31 = vld [vmem:[#allocation2 + $0x468] sm:$0xff]  ;;  %v2471_v35 = vld [vmem:[#allocation4 + $0xf8] sm:$0xff] }
 0x161   :  { %1703 = vmax.xlane.f32.xlu0 %v1702_v60  ;;  %v1759_v60 = vsel %vm131_vm0, %v1445_v45, -inf  ;;  %v6090_v2 = vpack.c.bf16 %v2454_v0, %v2450_v59  ;;  %v1574_v30 = vld [vmem:[#allocation2 + $0x4f0] sm:$0xff]  ;;  %v6096_v39 = vpack.c.bf16 %v2471_v35, %v2467_v34  ;;  %v2468_v41 = vld [vmem:[#allocation4 + $0xe0] sm:$0xff]  ;;  %v431_v49 = vld [vmem:[%s10179_s0 + $0x158] sm:$0xff]  ;;  %v2095_v57 = vsel %vm131_vm0, %v1557_v31, -inf }
 0x162   :  { %v2469_v33 = vld [vmem:[#allocation4 + $0xe8] sm:$0xff]  ;;  %v2466_v42 = vld [vmem:[#allocation4 + $0xd0] sm:$0xff]  ;;  %v448_v45 = vld [vmem:[%s10179_s0 + $0x1e0] sm:$0xff]  ;;  %v2146_v56 = vsel %vm131_vm0, %v1574_v30, -inf }
 0x163   :  { %6091 = vmatpush1.bf16.msra.mxu1 %v6090_v2  ;;  %v5840_v38 = vpack.c.bf16 %v2469_v33, %v2465_v29  ;;  %v704_v46 = vld [vmem:[#allocation2 + $0x1e0] sm:$0xff]  ;;  %v687_v50 = vld [vmem:[#allocation2 + $0x158] sm:$0xff]  ;;  %v2473_v51 = vld [vmem:[#allocation4 + $0x108] sm:$0xff] }
 0x164   :  { %2138 = vmax.xlane.f32.xlu1 %v2137_v11  ;;  %v1446_v11 = vld [vmem:[#allocation2 + $0xf0] sm:$0xff]  ;;  %6093 = vmatprep.subr.bf16.mxu1 %v6092_v18  ;;  %v960_v48 = vmax.f32 %v704_v46, %v448_v45  ;;  %v1447_v52 = vld [vmem:[#allocation2 + $0xf8] sm:$0xff]  ;;  %v943_v54 = vmax.f32 %v687_v50, %v431_v49  ;;  %v2476_v63 = vld [vmem:[#allocation4 + $0x120] sm:$0xff] }
 0x165   :  { %2087 = vmax.xlane.f32.xlu0 %v2086_v12  ;;  %v5836_v12 = vpack.c.bf16 %v2461_v9, %v2457_v8  ;;  %v1762_v36 = vsel %vm131_vm0, %v1446_v11, -inf  ;;  %v1430_v53 = vld [vmem:[#allocation2 + $0x70] sm:$0xff]  ;;  %v2475_v59 = vld [vmem:[#allocation4 + $0x118] sm:$0xff]  ;;  %v1765_v11 = vsel %vm131_vm0, %v1447_v52, -inf  ;;  %v2484_v20 = vld [vmem:[#allocation4 + $0x160] sm:$0xff] }
 0x166   :  { %v2477_v55 = vld [vmem:[#allocation4 + $0x128] sm:$0xff]  ;;  %1217 = vst.msk [vmem:[#allocation2 + $0x1e0] sm:$0xff] %vm131_vm0, %v960_v48  ;;  %1200 = vst.msk [vmem:[#allocation2 + $0x158] sm:$0xff] %vm131_vm0, %v943_v54  ;;  %v2474_v0 = vld [vmem:[#allocation4 + $0x110] sm:$0xff] }
 0x167   :  { %5837 = vmatprep.subr.bf16.mxu0 %v5836_v12  ;;  %6095 = vmatpush1.bf16.msra.mxu1 %v6094_v24  ;;  %v5844_v58 = vpack.c.bf16 %v2477_v55, %v2473_v51  ;;  %v2478_v1 = vld [vmem:[#allocation4 + $0x130] sm:$0xff]  ;;  %v576_v4 = vld [vmem:[%s10179_s0 + $0x5e0] sm:$0xff]  ;;  %v2481_v10 = vld [vmem:[#allocation4 + $0x148] sm:$0xff]  ;;  %v1714_v12 = vsel %vm131_vm0, %v1430_v53, -inf }
 0x168   :  { %1757 = vmax.xlane.f32.xlu1 %v1756_v27  ;;  %5839 = vmatpush1.bf16.msra.mxu0 %v5838_v19  ;;  %v1087_v27 = vmax.f32 %v831_v25, %v575_v22  ;;  %v6102_v3 = vpack.c.bf16 %v2478_v1, %v2474_v0  ;;  %v832_v5 = vld [vmem:[#allocation2 + $0x5e0] sm:$0xff]  ;;  %v559_v6 = vld [vmem:[%s10179_s0 + $0x558] sm:$0xff]  ;;  %v1558_v13 = vld [vmem:[#allocation2 + $0x470] sm:$0xff] }
 0x169   :  { %1706 = vmax.xlane.f32.xlu0 %v1705_v28  ;;  %v814_v28 = vld [vmem:[#allocation2 + $0x550] sm:$0xff]  ;;  %5841 = vmatprep.subr.bf16.mxu0 %v5840_v38  ;;  %v1575_v7 = vld [vmem:[#allocation2 + $0x4f8] sm:$0xff]  ;;  %v1088_v8 = vmax.f32 %v832_v5, %v576_v4  ;;  %v2480_v19 = vld [vmem:[#allocation4 + $0x140] sm:$0xff]  ;;  %v2098_v31 = vsel %vm131_vm0, %v1558_v13, -inf }
 0x16a   :  { %v1070_v32 = vmax.f32 %v814_v28, %v558_v26  ;;  %1344 = vst.msk [vmem:[#allocation2 + $0x5d8] sm:$0xff] %vm131_vm0, %v1087_v27  ;;  %6097 = vmatprep.subr.bf16.mxu1 %v6096_v39  ;;  %v815_v9 = vld [vmem:[#allocation2 + $0x558] sm:$0xff]  ;;  %v2485_v15 = vld [vmem:[#allocation4 + $0x168] sm:$0xff]  ;;  %v5850_v22 = vpack.c.bf16 %v2484_v20, %v2480_v19  ;;  %v432_v29 = vld [vmem:[%s10179_s0 + $0x160] sm:$0xff]  ;;  %v2149_v30 = vsel %vm131_vm0, %v1575_v7, -inf }
 0x16b   :  { %v1071_v14 = vmax.f32 %v815_v9, %v559_v6  ;;  %1345 = vst.msk [vmem:[#allocation2 + $0x5e0] sm:$0xff] %vm131_vm0, %v1088_v8  ;;  %v2487_v18 = vld [vmem:[#allocation4 + $0x178] sm:$0xff]  ;;  %v2482_v23 = vld [vmem:[#allocation4 + $0x150] sm:$0xff]  ;;  %v449_v25 = vld [vmem:[%s10179_s0 + $0x1e8] sm:$0xff] }
 0x16c   :  { %2141 = vmax.xlane.f32.xlu1 %v2140_v43  ;;  %1327 = vst.msk [vmem:[#allocation2 + $0x550] sm:$0xff] %vm131_vm0, %v1070_v32  ;;  %v5842_v43 = vpack.c.bf16 %v2468_v41, %v2464_v40  ;;  %v2486_v24 = vld [vmem:[#allocation4 + $0x170] sm:$0xff]  ;;  %v705_v28 = vld [vmem:[#allocation2 + $0x1e8] sm:$0xff]  ;;  %v688_v34 = vld [vmem:[#allocation2 + $0x160] sm:$0xff] }
 0x16d   :  { %2090 = vmax.xlane.f32.xlu0 %v2089_v44  ;;  %v2470_v44 = vld [vmem:[#allocation4 + $0xf0] sm:$0xff]  ;;  %1328 = vst.msk [vmem:[#allocation2 + $0x558] sm:$0xff] %vm131_vm0, %v1071_v14  ;;  %v6106_v27 = vpack.c.bf16 %v2486_v24, %v2482_v23  ;;  %v961_v33 = vmax.f32 %v705_v28, %v449_v25  ;;  %v2489_v35 = vld [vmem:[#allocation4 + $0x188] sm:$0xff]  ;;  %v2491_v38 = vld [vmem:[#allocation4 + $0x198] sm:$0xff] }
 0x16e   :  { %v6098_v47 = vpack.c.bf16 %v2470_v44, %v2466_v42  ;;  %5843 = vmatpush1.bf16.msra.mxu0 %v5842_v43  ;;  %v1559_v26 = vld [vmem:[#allocation2 + $0x478] sm:$0xff]  ;;  %v2488_v42 = vld [vmem:[#allocation4 + $0x180] sm:$0xff]  ;;  %v450_v9 = vld [vmem:[%s10179_s0 + $0x1f0] sm:$0xff] }
 0x16f   :  { %5845 = vmatprep.subr.bf16.mxu0 %v5844_v58  ;;  %v1431_v32 = vld [vmem:[#allocation2 + $0x78] sm:$0xff]  ;;  %1218 = vst.msk [vmem:[#allocation2 + $0x1e8] sm:$0xff] %vm131_vm0, %v961_v33  ;;  %v2492_v43 = vld [vmem:[#allocation4 + $0x1a0] sm:$0xff]  ;;  %v2101_v49 = vsel %vm131_vm0, %v1559_v26, -inf  ;;  %v2497_v58 = vld [vmem:[#allocation4 + $0x1c8] sm:$0xff] }
 0x170   :  { %1760 = vmax.xlane.f32.xlu1 %v1759_v60  ;;  %6099 = vmatpush1.bf16.msra.mxu1 %v6098_v47  ;;  %v2479_v60 = vld [vmem:[#allocation4 + $0x138] sm:$0xff]  ;;  %v2490_v44 = vld [vmem:[#allocation4 + $0x190] sm:$0xff]  ;;  %v5854_v45 = vpack.c.bf16 %v2492_v43, %v2488_v42  ;;  %v577_v47 = vld [vmem:[%s10179_s0 + $0x5e8] sm:$0xff]  ;;  %v1717_v50 = vsel %vm131_vm0, %v1431_v32, -inf }
 0x171   :  { %1709 = vmax.xlane.f32.xlu0 %v1708_v61  ;;  %v2472_v61 = vld [vmem:[#allocation4 + $0x100] sm:$0xff]  ;;  %v6100_v62 = vpack.c.bf16 %v2479_v60, %v2475_v59  ;;  %v2495_v39 = vld [vmem:[#allocation4 + $0x1b8] sm:$0xff]  ;;  %v2494_v46 = vld [vmem:[#allocation4 + $0x1b0] sm:$0xff] }
 0x172   :  { %v5846_v2 = vpack.c.bf16 %v2476_v63, %v2472_v61  ;;  %v6108_v41 = vpack.c.bf16 %v2495_v39, %v2491_v38  ;;  %v833_v48 = vld [vmem:[#allocation2 + $0x5e8] sm:$0xff]  ;;  %v6110_v52 = vpack.c.bf16 %v2494_v46, %v2490_v44  ;;  %v560_v54 = vld [vmem:[%s10179_s0 + $0x560] sm:$0xff]  ;;  %v2502_v4 = vld [vmem:[#allocation4 + $0x1f0] sm:$0xff] }
 0x173   :  { %6101 = vmatprep.subr.bf16.mxu1 %v6100_v62  ;;  %v1465_v51 = vld [vmem:[#allocation2 + $0x188] sm:$0xff]  ;;  %v1089_v53 = vmax.f32 %v833_v48, %v577_v47  ;;  %v816_v55 = vld [vmem:[#allocation2 + $0x560] sm:$0xff]  ;;  %v2506_v28 = vld [vmem:[#allocation4 + $0x210] sm:$0xff] }
 0x174   :  { %2144 = vmax.xlane.f32.xlu1 %v2143_v16  ;;  %5847 = vmatpush1.bf16.msra.mxu0 %v5846_v2  ;;  %v2483_v16 = vld [vmem:[#allocation4 + $0x158] sm:$0xff]  ;;  %v2501_v59 = vld [vmem:[#allocation4 + $0x1e8] sm:$0xff]  ;;  %v2496_v63 = vld [vmem:[#allocation4 + $0x1c0] sm:$0xff]  ;;  %v1819_v5 = vsel %vm131_vm0, %v1465_v51, -inf }
 0x175   :  { %2093 = vmax.xlane.f32.xlu0 %v2092_v17  ;;  %6103 = vmatpush1.bf16.msra.mxu1 %v6102_v3  ;;  %v5848_v17 = vpack.c.bf16 %v2485_v15, %v2481_v10  ;;  %v6104_v21 = vpack.c.bf16 %v2487_v18, %v2483_v16  ;;  %1346 = vst.msk [vmem:[#allocation2 + $0x5e8] sm:$0xff] %vm131_vm0, %v1089_v53  ;;  %v2499_v61 = vld [vmem:[#allocation4 + $0x1d8] sm:$0xff]  ;;  %v1593_v0 = vld [vmem:[#allocation2 + $0x588] sm:$0xff]  ;;  %v2498_v3 = vld [vmem:[#allocation4 + $0x1d0] sm:$0xff] }
 0x176   :  { %v5856_v60 = vpack.c.bf16 %v2501_v59, %v2497_v58  ;;  %v2503_v62 = vld [vmem:[#allocation4 + $0x1f8] sm:$0xff]  ;;  %v2500_v2 = vld [vmem:[#allocation4 + $0x1e0] sm:$0xff]  ;;  %v6114_v8 = vpack.c.bf16 %v2502_v4, %v2498_v3  ;;  %v706_v10 = vld [vmem:[#allocation2 + $0x1f0] sm:$0xff]  ;;  %v2203_v24 = vsel %vm131_vm0, %v1593_v0, -inf }
 0x177   :  { %5849 = vmatprep.subr.bf16.mxu0 %v5848_v17  ;;  %6105 = vmatprep.subr.bf16.mxu1 %v6104_v21  ;;  %v6112_v1 = vpack.c.bf16 %v2503_v62, %v2499_v61  ;;  %v5858_v7 = vpack.c.bf16 %v2500_v2, %v2496_v63  ;;  %v962_v13 = vmax.f32 %v706_v10, %v450_v9  ;;  %v689_v14 = vld [vmem:[#allocation2 + $0x168] sm:$0xff]  ;;  %v2507_v18 = vld [vmem:[#allocation4 + $0x218] sm:$0xff]  ;;  %v834_v33 = vld [vmem:[#allocation2 + $0x5f0] sm:$0xff] }
 0x178   :  { %1763 = vmax.xlane.f32.xlu1 %v1762_v36  ;;  %5851 = vmatpush1.bf16.msra.mxu0 %v5850_v22  ;;  %v944_v36 = vmax.f32 %v688_v34, %v432_v29  ;;  %v2505_v15 = vld [vmem:[#allocation4 + $0x208] sm:$0xff]  ;;  %v2511_v21 = vld [vmem:[#allocation4 + $0x238] sm:$0xff]  ;;  %v2504_v22 = vld [vmem:[#allocation4 + $0x200] sm:$0xff] }
 0x179   :  { %1712 = vmax.xlane.f32.xlu0 %v1711_v37  ;;  %6107 = vmatpush1.bf16.msra.mxu1 %v6106_v27  ;;  %v2493_v37 = vld [vmem:[#allocation4 + $0x1a8] sm:$0xff]  ;;  %1219 = vst.msk [vmem:[#allocation2 + $0x1f0] sm:$0xff] %vm131_vm0, %v962_v13  ;;  %v2508_v23 = vld [vmem:[#allocation4 + $0x220] sm:$0xff]  ;;  %v6116_v26 = vpack.c.bf16 %v2511_v21, %v2507_v18  ;;  %v2510_v29 = vld [vmem:[#allocation4 + $0x230] sm:$0xff] }
 0x17a   :  { %v5852_v40 = vpack.c.bf16 %v2493_v37, %v2489_v35  ;;  %1201 = vst.msk [vmem:[#allocation2 + $0x160] sm:$0xff] %vm131_vm0, %v944_v36  ;;  %6109 = vmatprep.subr.bf16.mxu1 %v6108_v41  ;;  %v2509_v17 = vld [vmem:[#allocation4 + $0x228] sm:$0xff]  ;;  %v5862_v27 = vpack.c.bf16 %v2508_v23, %v2504_v22  ;;  %v6118_v32 = vpack.c.bf16 %v2510_v29, %v2506_v28  ;;  %v1576_v38 = vld [vmem:[#allocation2 + $0x500] sm:$0xff]  ;;  %v2514_v51 = vld [vmem:[#allocation4 + $0x250] sm:$0xff] }
 0x17b   :  { %v1449_v19 = vld [vmem:[#allocation2 + $0x108] sm:$0xff]  ;;  %v5860_v20 = vpack.c.bf16 %v2509_v17, %v2505_v15  ;;  %v1466_v39 = vld [vmem:[#allocation2 + $0x190] sm:$0xff]  ;;  %v2515_v43 = vld [vmem:[#allocation4 + $0x258] sm:$0xff]  ;;  %v2152_v2 = vsel %vm131_vm0, %v1576_v38, -inf }
 0x17c   :  { %2147 = vmax.xlane.f32.xlu1 %v2146_v56  ;;  %5853 = vmatprep.subr.bf16.mxu0 %v5852_v40  ;;  %v1464_v56 = vld [vmem:[#allocation2 + $0x180] sm:$0xff]  ;;  %v561_v34 = vld [vmem:[%s10179_s0 + $0x568] sm:$0xff]  ;;  %v2954_v40 = vlaneseq  ;;  %v2518_v53 = vld [vmem:[#allocation4 + $0x270] sm:$0xff]  ;;  %v1822_v3 = vsel %vm131_vm0, %v1466_v39, -inf }
 0x17d   :  { %2096 = vmax.xlane.f32.xlu0 %v2095_v57  ;;  %5855 = vmatpush1.bf16.msra.mxu0 %v5854_v45  ;;  %v1072_v57 = vmax.f32 %v816_v55, %v560_v54  ;;  %v1816_v6 = vsel %vm131_vm0, %v1464_v56, -inf  ;;  %v817_v36 = vld [vmem:[#allocation2 + $0x568] sm:$0xff]  ;;  %v2519_v44 = vld [vmem:[#allocation4 + $0x278] sm:$0xff]  ;;  %v1771_v45 = vsel %vm131_vm0, %v1449_v19, -inf  ;;  %v6122_v56 = vpack.c.bf16 %v2518_v53, %v2514_v51  ;;  %v434_v58 = vld [vmem:[%s10179_s0 + $0x170] sm:$0xff] }
 0x17e   :  { %6111 = vmatpush1.bf16.msra.mxu1 %v6110_v52  ;;  %5857 = vmatprep.subr.bf16.mxu0 %v5856_v60  ;;  %v2513_v37 = vld [vmem:[#allocation4 + $0x248] sm:$0xff]  ;;  %v1073_v41 = vmax.f32 %v817_v36, %v561_v34  ;;  %v6120_v48 = vpack.c.bf16 %v2519_v44, %v2515_v43  ;;  %v451_v54 = vld [vmem:[%s10179_s0 + $0x1f8] sm:$0xff]  ;;  %v7986_v60 = vand.u32 127, %v2954_v40  ;;  %v7990_v4 = vshrl.u32 %v2954_v40, 7  ;;  %v2532_v36 = vld [vmem:[#allocation4 + $0x2e0] sm:$0xff] }
 0x17f   :  { %1329 = vst.msk [vmem:[#allocation2 + $0x560] sm:$0xff] %vm131_vm0, %v1072_v57  ;;  %6113 = vmatprep.subr.bf16.mxu1 %v6112_v1  ;;  %v2517_v42 = vld [vmem:[#allocation4 + $0x268] sm:$0xff]  ;;  %v707_v55 = vld [vmem:[#allocation2 + $0x1f8] sm:$0xff] }
 0x180   :  { %1766 = vmax.xlane.f32.xlu1 %v1765_v11  ;;  %v433_v11 = vld [vmem:[%s10179_s0 + $0x168] sm:$0xff]  ;;  %v5864_v47 = vpack.c.bf16 %v2517_v42, %v2513_v37  ;;  %1330 = vst.msk [vmem:[#allocation2 + $0x568] sm:$0xff] %vm131_vm0, %v1073_v41  ;;  %v963_v57 = vmax.f32 %v707_v55, %v451_v54  ;;  %v690_v59 = vld [vmem:[#allocation2 + $0x170] sm:$0xff]  ;;  %10209 = vst [vmem:[#allocation19_spill] sm:$0xff] %v7990_v4  ;;  %v3236_v9 = vadd.s32 4294967288, %v7986_v60 }
 0x181   :  { %1715 = vmax.xlane.f32.xlu0 %v1714_v12  ;;  %v1592_v12 = vld [vmem:[#allocation2 + $0x580] sm:$0xff]  ;;  %5859 = vmatpush1.bf16.msra.mxu0 %v5858_v7  ;;  %v945_v16 = vmax.f32 %v689_v14, %v433_v11  ;;  %v1594_v61 = vld [vmem:[#allocation2 + $0x590] sm:$0xff]  ;;  %v1577_v62 = vld [vmem:[#allocation2 + $0x508] sm:$0xff]  ;;  %v946_v63 = vmax.f32 %v690_v59, %v434_v58  ;;  %v8003_v23 = vsub.s32 %v7986_v60, %v7990_v4  ;;  %v3243_v58 = vadd.s32 4294967280, %v7986_v60 }
 0x182   :  { %6115 = vmatpush1.bf16.msra.mxu1 %v6114_v8  ;;  %v2200_v25 = vsel %vm131_vm0, %v1592_v12, -inf  ;;  %5861 = vmatprep.subr.bf16.mxu0 %v5860_v20  ;;  %v2521_v0 = vld [vmem:[#allocation4 + $0x288] sm:$0xff]  ;;  %1220 = vst.msk [vmem:[#allocation2 + $0x1f8] sm:$0xff] %vm131_vm0, %v963_v57  ;;  %v2527_v7 = vld [vmem:[#allocation4 + $0x2b8] sm:$0xff]  ;;  %v2520_v8 = vld [vmem:[#allocation4 + $0x280] sm:$0xff] }
 0x183   :  { %1202 = vst.msk [vmem:[#allocation2 + $0x168] sm:$0xff] %vm131_vm0, %v945_v16  ;;  %6117 = vmatprep.subr.bf16.mxu1 %v6116_v26  ;;  %v2525_v1 = vld [vmem:[#allocation4 + $0x2a8] sm:$0xff]  ;;  %1203 = vst.msk [vmem:[#allocation2 + $0x170] sm:$0xff] %vm131_vm0, %v946_v63  ;;  %v2524_v11 = vld [vmem:[#allocation4 + $0x2a0] sm:$0xff]  ;;  %v2206_v26 = vsel %vm131_vm0, %v1594_v61, -inf }
 0x184   :  { %2150 = vmax.xlane.f32.xlu1 %v2149_v30  ;;  %v578_v30 = vld [vmem:[%s10179_s0 + $0x5f0] sm:$0xff]  ;;  %v5870_v14 = vpack.c.bf16 %v2524_v11, %v2520_v8  ;;  %v579_v16 = vld [vmem:[%s10179_s0 + $0x5f8] sm:$0xff]  ;;  %v725_v11 = vld [vmem:[#allocation2 + $0x288] sm:$0xff] }
 0x185   :  { %2099 = vmax.xlane.f32.xlu0 %v2098_v31  ;;  %v1448_v31 = vld [vmem:[#allocation2 + $0x100] sm:$0xff]  ;;  %5863 = vmatpush1.bf16.msra.mxu0 %v5862_v27  ;;  %v1090_v35 = vmax.f32 %v834_v33, %v578_v30  ;;  %v2522_v12 = vld [vmem:[#allocation4 + $0x290] sm:$0xff]  ;;  %v2529_v22 = vld [vmem:[#allocation4 + $0x2c8] sm:$0xff]  ;;  %v2155_v27 = vsel %vm131_vm0, %v1577_v62, -inf }
 0x186   :  { %v1768_v46 = vsel %vm131_vm0, %v1448_v31, -inf  ;;  %6119 = vmatpush1.bf16.msra.mxu1 %v6118_v32  ;;  %5865 = vmatprep.subr.bf16.mxu0 %v5864_v47  ;;  %v2526_v13 = vld [vmem:[#allocation4 + $0x2b0] sm:$0xff]  ;;  %v2533_v30 = vld [vmem:[#allocation4 + $0x2e8] sm:$0xff]  ;;  %v2531_v31 = vld [vmem:[#allocation4 + $0x2d8] sm:$0xff]  ;;  %v8008_v32 = vsub.s32 %v3236_v9, %v7990_v4 }
 0x187   :  { %1347 = vst.msk [vmem:[#allocation2 + $0x5f0] sm:$0xff] %vm131_vm0, %v1090_v35  ;;  %6121 = vmatprep.subr.bf16.mxu1 %v6120_v48  ;;  %v6126_v15 = vpack.c.bf16 %v2526_v13, %v2522_v12  ;;  %v835_v17 = vld [vmem:[#allocation2 + $0x5f8] sm:$0xff]  ;;  %v562_v18 = vld [vmem:[%s10179_s0 + $0x570] sm:$0xff]  ;;  %v5872_v33 = vpack.c.bf16 %v2533_v30, %v2529_v22  ;;  %v2528_v35 = vld [vmem:[#allocation4 + $0x2c0] sm:$0xff] }
 0x188   :  { %2102 = vmax.xlane.f32.xlu1 %v2101_v49  ;;  %v2512_v49 = vld [vmem:[#allocation4 + $0x240] sm:$0xff]  ;;  %v1467_v19 = vld [vmem:[#allocation2 + $0x198] sm:$0xff]  ;;  %v1091_v20 = vmax.f32 %v835_v17, %v579_v16  ;;  %v818_v21 = vld [vmem:[#allocation2 + $0x570] sm:$0xff]  ;;  %v5874_v38 = vpack.c.bf16 %v2532_v36, %v2528_v35  ;;  %v3250_v36 = vadd.s32 4294967272, %v7986_v60 }
 0x189   :  { %1718 = vmax.xlane.f32.xlu0 %v1717_v50  ;;  %v2516_v50 = vld [vmem:[#allocation4 + $0x260] sm:$0xff]  ;;  %v1450_v28 = vld [vmem:[#allocation2 + $0x110] sm:$0xff]  ;;  %v1074_v29 = vmax.f32 %v818_v21, %v562_v18  ;;  %v2535_v34 = vld [vmem:[#allocation4 + $0x2f8] sm:$0xff]  ;;  %v1825_v42 = vsel %vm131_vm0, %v1467_v19, -inf }
 0x18a   :  { %v5866_v52 = vpack.c.bf16 %v2516_v50, %v2512_v49  ;;  %6123 = vmatpush1.bf16.msra.mxu1 %v6122_v56  ;;  %1348 = vst.msk [vmem:[#allocation2 + $0x5f8] sm:$0xff] %vm131_vm0, %v1091_v20  ;;  %v6128_v37 = vpack.c.bf16 %v2535_v34, %v2531_v31  ;;  %v2530_v39 = vld [vmem:[#allocation4 + $0x2d0] sm:$0xff]  ;;  %v1774_v51 = vsel %vm131_vm0, %v1450_v28, -inf  ;;  %v2537_v55 = vld [vmem:[#allocation4 + $0x308] sm:$0xff]  ;;  %v2539_v62 = vld [vmem:[#allocation4 + $0x318] sm:$0xff] }
 0x18b   :  { %1331 = vst.msk [vmem:[#allocation2 + $0x570] sm:$0xff] %vm131_vm0, %v1074_v29  ;;  %v2534_v40 = vld [vmem:[#allocation4 + $0x2f0] sm:$0xff]  ;;  %v2541_v61 = vld [vmem:[#allocation4 + $0x328] sm:$0xff]  ;;  %v2543_v63 = vld [vmem:[#allocation4 + $0x338] sm:$0xff] }
 0x18c   :  { %1820 = vmax.xlane.f32.xlu1 %v1819_v5  ;;  %5867 = vmatpush1.bf16.msra.mxu0 %v5866_v52  ;;  %v5868_v5 = vpack.c.bf16 %v2525_v1, %v2521_v0  ;;  %v563_v41 = vld [vmem:[%s10179_s0 + $0x578] sm:$0xff]  ;;  %v6130_v44 = vpack.c.bf16 %v2534_v40, %v2530_v39  ;;  %v1578_v52 = vld [vmem:[#allocation2 + $0x510] sm:$0xff]  ;;  %v5876_v0 = vpack.c.bf16 %v2541_v61, %v2537_v55  ;;  %v1468_v16 = vld [vmem:[#allocation2 + $0x1a0] sm:$0xff] }
 0x18d   :  { %1817 = vmax.xlane.f32.xlu0 %v1816_v6  ;;  %v2523_v6 = vld [vmem:[#allocation4 + $0x298] sm:$0xff]  ;;  %v6132_v1 = vpack.c.bf16 %v2543_v63, %v2539_v62  ;;  %v2542_v9 = vld [vmem:[#allocation4 + $0x330] sm:$0xff]  ;;  %v2549_v28 = vld [vmem:[#allocation4 + $0x368] sm:$0xff] }
 0x18e   :  { %v6124_v10 = vpack.c.bf16 %v2527_v7, %v2523_v6  ;;  %5869 = vmatprep.subr.bf16.mxu0 %v5868_v5  ;;  %v1595_v43 = vld [vmem:[#allocation2 + $0x598] sm:$0xff]  ;;  %v468_v19 = vld [vmem:[%s10179_s0 + $0x280] sm:$0xff]  ;;  %v1469_v61 = vld [vmem:[#allocation2 + $0x1a8] sm:$0xff] }
 0x18f   :  { %v691_v54 = vld [vmem:[#allocation2 + $0x178] sm:$0xff]  ;;  %v724_v20 = vld [vmem:[#allocation2 + $0x280] sm:$0xff] }
 0x190   :  { %2204 = vmax.xlane.f32.xlu1 %v2203_v24  ;;  %6125 = vmatprep.subr.bf16.mxu1 %v6124_v10  ;;  %v2538_v5 = vld [vmem:[#allocation4 + $0x310] sm:$0xff]  ;;  %v469_v10 = vld [vmem:[%s10179_s0 + $0x288] sm:$0xff]  ;;  %v2547_v30 = vld [vmem:[#allocation4 + $0x358] sm:$0xff] }
 0x191   :  { %2201 = vmax.xlane.f32.xlu0 %v2200_v25  ;;  %5871 = vmatpush1.bf16.msra.mxu0 %v5870_v14  ;;  %v2209_v14 = vsel %vm131_vm0, %v1595_v43, -inf  ;;  %v6134_v17 = vpack.c.bf16 %v2542_v9, %v2538_v5  ;;  %v981_v18 = vmax.f32 %v725_v11, %v469_v10  ;;  %v2551_v31 = vld [vmem:[#allocation4 + $0x378] sm:$0xff]  ;;  %v2546_v39 = vld [vmem:[#allocation4 + $0x350] sm:$0xff]  ;;  %v1828_v43 = vsel %vm131_vm0, %v1468_v16, -inf }
 0x192   :  { %6127 = vmatpush1.bf16.msra.mxu1 %v6126_v15  ;;  %5873 = vmatprep.subr.bf16.mxu0 %v5872_v33  ;;  %v2158_v15 = vsel %vm131_vm0, %v1578_v52, -inf  ;;  %v2544_v33 = vld [vmem:[#allocation4 + $0x340] sm:$0xff]  ;;  %v2550_v40 = vld [vmem:[#allocation4 + $0x370] sm:$0xff]  ;;  %v2559_v63 = vld [vmem:[#allocation4 + $0x3b8] sm:$0xff] }
 0x193   :  { %6129 = vmatprep.subr.bf16.mxu1 %v6128_v37  ;;  %1238 = vst.msk [vmem:[#allocation2 + $0x288] sm:$0xff] %vm131_vm0, %v981_v18  ;;  %v1596_v35 = vld [vmem:[#allocation2 + $0x5a0] sm:$0xff]  ;;  %v6136_v37 = vpack.c.bf16 %v2551_v31, %v2547_v30  ;;  %v2554_v10 = vld [vmem:[#allocation4 + $0x390] sm:$0xff]  ;;  %v709_v18 = vld [vmem:[#allocation2 + $0x208] sm:$0xff] }
 0x194   :  { %1772 = vmax.xlane.f32.xlu1 %v1771_v45  ;;  %v819_v45 = vld [vmem:[#allocation2 + $0x578] sm:$0xff]  ;;  %v2212_v5 = vsel %vm131_vm0, %v1596_v35, -inf  ;;  %v1452_v16 = vld [vmem:[#allocation2 + $0x120] sm:$0xff]  ;;  %v2565_v30 = vld [vmem:[#allocation4 + $0x3e8] sm:$0xff] }
 0x195   :  { %1769 = vmax.xlane.f32.xlu0 %v1768_v46  ;;  %v435_v46 = vld [vmem:[%s10179_s0 + $0x178] sm:$0xff]  ;;  %v1075_v53 = vmax.f32 %v819_v45, %v563_v41  ;;  %5875 = vmatpush1.bf16.msra.mxu0 %v5874_v38  ;;  %v2548_v38 = vld [vmem:[#allocation4 + $0x360] sm:$0xff] }
 0x196   :  { %6131 = vmatpush1.bf16.msra.mxu1 %v6130_v44  ;;  %v947_v59 = vmax.f32 %v691_v54, %v435_v46  ;;  %5877 = vmatprep.subr.bf16.mxu0 %v5876_v0  ;;  %v5882_v45 = vpack.c.bf16 %v2548_v38, %v2544_v33  ;;  %v6138_v46 = vpack.c.bf16 %v2550_v40, %v2546_v39  ;;  %v2553_v54 = vld [vmem:[#allocation4 + $0x388] sm:$0xff]  ;;  %v2552_v0 = vld [vmem:[#allocation4 + $0x380] sm:$0xff]  ;;  %v2558_v11 = vld [vmem:[#allocation4 + $0x3b0] sm:$0xff]  ;;  %v1780_v38 = vsel %vm131_vm0, %v1452_v16, -inf }
 0x197   :  { %1332 = vst.msk [vmem:[#allocation2 + $0x578] sm:$0xff] %vm131_vm0, %v1075_v53  ;;  %6133 = vmatprep.subr.bf16.mxu1 %v6132_v1  ;;  %v852_v53 = vld [vmem:[#allocation2 + $0x680] sm:$0xff] }
 0x198   :  { %2153 = vmax.xlane.f32.xlu1 %v2152_v2  ;;  %v2536_v2 = vld [vmem:[#allocation4 + $0x300] sm:$0xff]  ;;  %1204 = vst.msk [vmem:[#allocation2 + $0x178] sm:$0xff] %vm131_vm0, %v947_v59  ;;  %v8066_v59 = vsub.s32 %v3250_v36, %v7990_v4  ;;  %v2563_v31 = vld [vmem:[#allocation4 + $0x3d8] sm:$0xff] }
 0x199   :  { %1823 = vmax.xlane.f32.xlu0 %v1822_v3  ;;  %v2106_v24 = vpop.xlane.xlu1 %2105  ;;  %v2540_v3 = vld [vmem:[#allocation4 + $0x320] sm:$0xff]  ;;  %v2567_v33 = vld [vmem:[#allocation4 + $0x3f8] sm:$0xff] }
 0x19a   :  { %v1722_v25 = vpop.xlane.xlu0 %1721  ;;  %v3976_v47 = vrot.slane %v2106_v24, %v8003_v23  ;;  %v5878_v8 = vpack.c.bf16 %v2540_v3, %v2536_v2  ;;  %v8044_v24 = vsub.s32 %v3243_v58, %v7990_v4  ;;  %6135 = vmatpush1.bf16.msra.mxu1 %v6134_v17  ;;  %10211 = vst [vmem:[#allocation21_spill] sm:$0xff] %v8066_v59  ;;  %v2556_v1 = vld [vmem:[#allocation4 + $0x3a0] sm:$0xff] }
 0x19b   :  { %v3344_v48 = vrot.slane %v1722_v25, %v8003_v23  ;;  %v1451_v25 = vld [vmem:[#allocation2 + $0x118] sm:$0xff]  ;;  %6137 = vmatprep.subr.bf16.mxu1 %v6136_v37  ;;  %v5886_v9 = vpack.c.bf16 %v2556_v1, %v2552_v0  ;;  %v6142_v17 = vpack.c.bf16 %v2558_v11, %v2554_v10  ;;  %v1831_v37 = vsel %vm131_vm0, %v1469_v61, -inf  ;;  %v2560_v40 = vld [vmem:[#allocation4 + $0x3c0] sm:$0xff] }
 0x19c   :  { %2207 = vmax.xlane.f32.xlu1 %v2206_v26  ;;  %10210 = vst [vmem:[#allocation20_spill] sm:$0xff] %v8044_v24  ;;  %5879 = vmatpush1.bf16.msra.mxu0 %v5878_v8  ;;  %v980_v26 = vmax.f32 %v724_v20, %v468_v19  ;;  %v1777_v44 = vsel %vm131_vm0, %v1451_v25, -inf  ;;  %v452_v19 = vld [vmem:[%s10179_s0 + $0x200] sm:$0xff]  ;;  %v6144_v39 = vpack.c.bf16 %v2567_v33, %v2563_v31 }
 0x19d   :  { %2156 = vmax.xlane.f32.xlu0 %v2155_v27  ;;  %v2109_v49 = vpop.xlane.xlu1 %2108  ;;  %v2545_v27 = vld [vmem:[#allocation4 + $0x348] sm:$0xff] }
 0x19e   :  { %v1725_v50 = vpop.xlane.xlu0 %1724  ;;  %v3980_v56 = vrot.slane %v2109_v49, %v8008_v32  ;;  %v5880_v29 = vpack.c.bf16 %v2549_v28, %v2545_v27  ;;  %1237 = vst.msk [vmem:[#allocation2 + $0x280] sm:$0xff] %vm131_vm0, %v980_v26  ;;  %v596_v49 = vld [vmem:[%s10179_s0 + $0x680] sm:$0xff]  ;;  %6139 = vmatpush1.bf16.msra.mxu1 %v6138_v46  ;;  %v1597_v27 = vld [vmem:[#allocation2 + $0x5a8] sm:$0xff] }
 0x19f   :  { %v3348_v57 = vrot.slane %v1725_v50, %v8008_v32  ;;  %v1108_v55 = vmax.f32 %v852_v53, %v596_v49  ;;  %v1580_v28 = vld [vmem:[#allocation2 + $0x520] sm:$0xff]  ;;  %v726_v53 = vld [vmem:[#allocation2 + $0x290] sm:$0xff] }
 0x1a0   :  { %v8027_v6 = vsel %vm3241_vm1, %v3980_v56, %v3976_v47  ;;  %1826 = vmax.xlane.f32.xlu1 %v1825_v42  ;;  %5881 = vmatprep.subr.bf16.mxu0 %v5880_v29  ;;  %v597_v47 = vld [vmem:[%s10179_s0 + $0x688] sm:$0xff]  ;;  %v836_v49 = vld [vmem:[#allocation2 + $0x600] sm:$0xff] }
 0x1a1   :  { %v8030_v7 = vsel %vm3241_vm1, %v3348_v57, %v3344_v48  ;;  %1775 = vmax.xlane.f32.xlu0 %v1774_v51  ;;  %v1677_v12 = vpop.xlane.xlu1 %1676  ;;  %v853_v48 = vld [vmem:[#allocation2 + $0x688] sm:$0xff]  ;;  %v1579_v51 = vld [vmem:[#allocation2 + $0x518] sm:$0xff]  ;;  %5883 = vmatpush1.bf16.msra.mxu0 %v5882_v45  ;;  %1365 = vst.msk [vmem:[#allocation2 + $0x680] sm:$0xff] %vm131_vm0, %v1108_v55  ;;  %v3257_v45 = vadd.s32 4294967264, %v7986_v60 }
 0x1a2   :  { %v1674_v13 = vpop.xlane.xlu0 %1673  ;;  %v3240_v21 = vrot.slane %v1677_v12, %v8008_v32  ;;  %v1109_v52 = vmax.f32 %v853_v48, %v597_v47  ;;  %v2557_v56 = vld [vmem:[#allocation4 + $0x3a8] sm:$0xff]  ;;  %v2555_v57 = vld [vmem:[#allocation4 + $0x398] sm:$0xff]  ;;  %v2161_v8 = vsel %vm131_vm0, %v1579_v51, -inf  ;;  %v2566_v47 = vld [vmem:[#allocation4 + $0x3f0] sm:$0xff] }
 0x1a3   :  { %v3235_v22 = vrot.slane %v1674_v13, %v8003_v23  ;;  %v5884_v62 = vpack.c.bf16 %v2557_v56, %v2553_v54  ;;  %v453_v12 = vld [vmem:[%s10179_s0 + $0x208] sm:$0xff]  ;;  %v580_v48 = vld [vmem:[%s10179_s0 + $0x600] sm:$0xff]  ;;  %v1470_v56 = vld [vmem:[#allocation2 + $0x1b0] sm:$0xff]  ;;  %v8124_v10 = vsub.s32 %v3257_v45, %v7990_v4 }
 0x1a4   :  { %2210 = vmax.xlane.f32.xlu1 %v2209_v14  ;;  %1366 = vst.msk [vmem:[#allocation2 + $0x688] sm:$0xff] %vm131_vm0, %v1109_v52  ;;  %v965_v20 = vmax.f32 %v709_v18, %v453_v12  ;;  %v1092_v51 = vmax.f32 %v836_v49, %v580_v48  ;;  %v470_v52 = vld [vmem:[%s10179_s0 + $0x290] sm:$0xff]  ;;  %v727_v12 = vld [vmem:[#allocation2 + $0x298] sm:$0xff]  ;;  %v473_v48 = vld [vmem:[%s10179_s0 + $0x2a8] sm:$0xff] }
 0x1a5   :  { %v8048_v34 = vsel %vm3241_vm1, %v3240_v21, %v3235_v22  ;;  %2159 = vmax.xlane.f32.xlu0 %v2158_v15  ;;  %v2058_v41 = vpop.xlane.xlu1 %2057  ;;  %5885 = vmatprep.subr.bf16.mxu0 %v5884_v62  ;;  %v708_v21 = vld [vmem:[#allocation2 + $0x200] sm:$0xff]  ;;  %v2561_v22 = vld [vmem:[#allocation4 + $0x3c8] sm:$0xff]  ;;  %v982_v61 = vmax.f32 %v726_v53, %v470_v52  ;;  %10212 = vst [vmem:[#allocation22_spill] sm:$0xff] %v8124_v10  ;;  %v855_v18 = vld [vmem:[#allocation2 + $0x698] sm:$0xff] }
 0x1a6   :  { %v1728_v42 = vpop.xlane.xlu0 %1727  ;;  %v3897_v13 = vrot.slane %v2058_v41, %v8003_v23  ;;  %5887 = vmatpush1.bf16.msra.mxu0 %v5886_v9  ;;  %v964_v29 = vmax.f32 %v708_v21, %v452_v19  ;;  %1222 = vst.msk [vmem:[#allocation2 + $0x208] sm:$0xff] %vm131_vm0, %v965_v20  ;;  %v2564_v41 = vld [vmem:[#allocation4 + $0x3e0] sm:$0xff]  ;;  %v598_v62 = vld [vmem:[%s10179_s0 + $0x690] sm:$0xff]  ;;  %1349 = vst.msk [vmem:[#allocation2 + $0x600] sm:$0xff] %vm131_vm0, %v1092_v51 }
 0x1a7   :  { %v3353_v50 = vrot.slane %v1728_v42, %v8044_v24  ;;  %v2562_v42 = vld [vmem:[#allocation4 + $0x3d0] sm:$0xff]  ;;  %v5890_v46 = vpack.c.bf16 %v2564_v41, %v2560_v40  ;;  %1239 = vst.msk [vmem:[#allocation2 + $0x290] sm:$0xff] %vm131_vm0, %v982_v61  ;;  %v729_v52 = vld [vmem:[#allocation2 + $0x2a8] sm:$0xff]  ;;  %v456_v53 = vld [vmem:[%s10179_s0 + $0x220] sm:$0xff] }
 0x1a8   :  { %1829 = vmax.xlane.f32.xlu1 %v1828_v43  ;;  %1221 = vst.msk [vmem:[#allocation2 + $0x200] sm:$0xff] %vm131_vm0, %v964_v29  ;;  %v582_v19 = vld [vmem:[%s10179_s0 + $0x610] sm:$0xff]  ;;  %v472_v29 = vld [vmem:[%s10179_s0 + $0x2a0] sm:$0xff]  ;;  %v711_v41 = vld [vmem:[#allocation2 + $0x218] sm:$0xff] }
 0x1a9   :  { %v8063_v58 = vsel %vm3248_vm2, %v3353_v50, %v8030_v7  ;;  %1778 = vmax.xlane.f32.xlu0 %v1777_v44  ;;  %v2112_v2 = vpop.xlane.xlu1 %2111  ;;  %v6140_v7 = vpack.c.bf16 %v2559_v63, %v2555_v57  ;;  %v6146_v50 = vpack.c.bf16 %v2566_v47, %v2562_v42  ;;  %v1453_v57 = vld [vmem:[#allocation2 + $0x128] sm:$0xff]  ;;  %v854_v63 = vld [vmem:[#allocation2 + $0x690] sm:$0xff]  ;;  %v600_v42 = vld [vmem:[%s10179_s0 + $0x6a0] sm:$0xff] }
 0x1aa   :  { %v2061_v3 = vpop.xlane.xlu0 %2060  ;;  %v3985_v14 = vrot.slane %v2112_v2, %v8044_v24  ;;  %v2215_v2 = vsel %vm131_vm0, %v1597_v27, -inf  ;;  %v1783_v33 = vsel %vm131_vm0, %v1453_v57, -inf  ;;  %v839_v47 = vld [vmem:[#allocation2 + $0x618] sm:$0xff] }
 0x1ab   :  { %v3901_v15 = vrot.slane %v2061_v3, %v8008_v32  ;;  %6141 = vmatprep.subr.bf16.mxu1 %v6140_v7  ;;  %v581_v3 = vld [vmem:[%s10179_s0 + $0x608] sm:$0xff] }
 0x1ac   :  { %v8083_v25 = vsel %vm3248_vm2, %v3985_v14, %v8027_v6  ;;  %2213 = vmax.xlane.f32.xlu1 %v2212_v5  ;;  %6143 = vmatpush1.bf16.msra.mxu1 %v6142_v17  ;;  %v5888_v6 = vpack.c.bf16 %v2565_v30, %v2561_v22  ;;  %v837_v5 = vld [vmem:[#allocation2 + $0x608] sm:$0xff]  ;;  %v710_v14 = vld [vmem:[#allocation2 + $0x210] sm:$0xff]  ;;  %v599_v17 = vld [vmem:[%s10179_s0 + $0x698] sm:$0xff] }
 0x1ad   :  { %v8086_v26 = vsel %vm3241_vm1, %v3901_v15, %v3897_v13  ;;  %2162 = vmax.xlane.f32.xlu0 %v2161_v8  ;;  %v1731_v35 = vpop.xlane.xlu1 %1730  ;;  %6145 = vmatprep.subr.bf16.mxu1 %v6144_v39  ;;  %v471_v8 = vld [vmem:[%s10179_s0 + $0x298] sm:$0xff]  ;;  %v1093_v11 = vmax.f32 %v837_v5, %v581_v3  ;;  %v454_v13 = vld [vmem:[%s10179_s0 + $0x210] sm:$0xff]  ;;  %v1111_v27 = vmax.f32 %v855_v18, %v599_v17  ;;  %v3264_v39 = vadd.s32 4294967256, %v7986_v60  ;;  %v857_v5 = vld [vmem:[#allocation2 + $0x6a8] sm:$0xff] }
 0x1ae   :  { %v1680_v36 = vpop.xlane.xlu0 %1679  ;;  %v3358_v43 = vrot.slane %v1731_v35, %v8066_v59  ;;  %5889 = vmatprep.subr.bf16.mxu0 %v5888_v6  ;;  %v983_v15 = vmax.f32 %v727_v12, %v471_v8  ;;  %v966_v16 = vmax.f32 %v710_v14, %v454_v13  ;;  %v1598_v22 = vld [vmem:[#allocation2 + $0x5b0] sm:$0xff]  ;;  %v584_v8 = vld [vmem:[%s10179_s0 + $0x620] sm:$0xff] }
 0x1af   :  { %v3247_v44 = vrot.slane %v1680_v36, %v8044_v24  ;;  %5891 = vmatpush1.bf16.msra.mxu0 %v5890_v46  ;;  %1350 = vst.msk [vmem:[#allocation2 + $0x608] sm:$0xff] %vm131_vm0, %v1093_v11  ;;  %v728_v36 = vld [vmem:[#allocation2 + $0x2a0] sm:$0xff]  ;;  %1368 = vst.msk [vmem:[#allocation2 + $0x698] sm:$0xff] %vm131_vm0, %v1111_v27  ;;  %v583_v46 = vld [vmem:[%s10179_s0 + $0x618] sm:$0xff]  ;;  %v2218_v61 = vsel %vm131_vm0, %v1598_v22, -inf }
 0x1b0   :  { %v8103_v54 = vsel %vm3255_vm3, %v3358_v43, %v8063_v58  ;;  %1832 = vmax.xlane.f32.xlu1 %v1831_v37  ;;  %v2164_v58 = vsel %vm131_vm0, %v1580_v28, -inf  ;;  %6147 = vmatpush1.bf16.msra.mxu1 %v6146_v50  ;;  %v838_v28 = vld [vmem:[#allocation2 + $0x610] sm:$0xff]  ;;  %1240 = vst.msk [vmem:[#allocation2 + $0x298] sm:$0xff] %vm131_vm0, %v983_v15  ;;  %1223 = vst.msk [vmem:[#allocation2 + $0x210] sm:$0xff] %vm131_vm0, %v966_v16  ;;  %v455_v37 = vld [vmem:[%s10179_s0 + $0x218] sm:$0xff]  ;;  %v984_v40 = vmax.f32 %v728_v36, %v472_v29 }
 0x1b1   :  { %v8107_v55 = vsel %vm3248_vm2, %v3247_v44, %v8048_v34  ;;  %1781 = vmax.xlane.f32.xlu0 %v1780_v38  ;;  %v2115_v0 = vpop.xlane.xlu1 %2114  ;;  %v1110_v34 = vmax.f32 %v854_v63, %v598_v62  ;;  %v1094_v35 = vmax.f32 %v838_v28, %v582_v19  ;;  %v856_v43 = vld [vmem:[#allocation2 + $0x6a0] sm:$0xff]  ;;  %v967_v44 = vmax.f32 %v711_v41, %v455_v37  ;;  %v474_v11 = vld [vmem:[%s10179_s0 + $0x2b0] sm:$0xff]  ;;  %v1599_v22 = vld [vmem:[#allocation2 + $0x5b8] sm:$0xff] }
 0x1b2   :  { %v2064_v1 = vpop.xlane.xlu0 %2063  ;;  %v3990_v7 = vrot.slane %v2115_v0, %v8066_v59  ;;  %v1112_v45 = vmax.f32 %v856_v43, %v600_v42  ;;  %1241 = vst.msk [vmem:[#allocation2 + $0x2a0] sm:$0xff] %vm131_vm0, %v984_v40  ;;  %v1095_v51 = vmax.f32 %v839_v47, %v583_v46  ;;  %v712_v63 = vld [vmem:[#allocation2 + $0x220] sm:$0xff]  ;;  %v601_v0 = vld [vmem:[%s10179_s0 + $0x6a8] sm:$0xff]  ;;  %v730_v15 = vld [vmem:[#allocation2 + $0x2b0] sm:$0xff]  ;;  %v2221_v43 = vsel %vm131_vm0, %v1599_v22, -inf }
 0x1b3   :  { %v3906_v9 = vrot.slane %v2064_v1, %v8044_v24  ;;  %1367 = vst.msk [vmem:[#allocation2 + $0x690] sm:$0xff] %vm131_vm0, %v1110_v34  ;;  %1351 = vst.msk [vmem:[#allocation2 + $0x610] sm:$0xff] %vm131_vm0, %v1094_v35  ;;  %v1454_v34 = vld [vmem:[#allocation2 + $0x130] sm:$0xff]  ;;  %v968_v3 = vmax.f32 %v712_v63, %v456_v53  ;;  %v713_v27 = vld [vmem:[#allocation2 + $0x228] sm:$0xff] }
 0x1b4   :  { %v8139_v20 = vsel %vm3255_vm3, %v3990_v7, %v8083_v25  ;;  %2216 = vmax.xlane.f32.xlu1 %v2215_v2  ;;  %v1834_v25 = vsel %vm131_vm0, %v1470_v56, -inf  ;;  %1224 = vst.msk [vmem:[#allocation2 + $0x218] sm:$0xff] %vm131_vm0, %v967_v44  ;;  %1369 = vst.msk [vmem:[#allocation2 + $0x6a0] sm:$0xff] %vm131_vm0, %v1112_v45  ;;  %v1113_v7 = vmax.f32 %v857_v5, %v601_v0  ;;  %v1786_v19 = vsel %vm131_vm0, %v1454_v34, -inf  ;;  %v585_v36 = vld [vmem:[%s10179_s0 + $0x628] sm:$0xff]  ;;  %v475_v40 = vld [vmem:[%s10179_s0 + $0x2b8] sm:$0xff] }
 0x1b5   :  { %v8143_v21 = vsel %vm3248_vm2, %v3906_v9, %v8086_v26  ;;  %2165 = vmax.xlane.f32.xlu0 %v2164_v58  ;;  %v1734_v30 = vpop.xlane.xlu1 %1733  ;;  %v1581_v26 = vld [vmem:[#allocation2 + $0x528] sm:$0xff]  ;;  %v8188_v58 = vsub.s32 %v3264_v39, %v7990_v4  ;;  %1352 = vst.msk [vmem:[#allocation2 + $0x618] sm:$0xff] %vm131_vm0, %v1095_v51  ;;  %v840_v9 = vld [vmem:[#allocation2 + $0x620] sm:$0xff]  ;;  %1225 = vst.msk [vmem:[#allocation2 + $0x220] sm:$0xff] %vm131_vm0, %v968_v3 }
 0x1b6   :  { %v1683_v31 = vpop.xlane.xlu0 %1682  ;;  %v3363_v38 = vrot.slane %v1734_v30, %v8124_v10  ;;  %v2167_v62 = vsel %vm131_vm0, %v1581_v26, -inf  ;;  %v1096_v14 = vmax.f32 %v840_v9, %v584_v8  ;;  %1370 = vst.msk [vmem:[#allocation2 + $0x6a8] sm:$0xff] %vm131_vm0, %v1113_v7  ;;  %v1582_v30 = vld [vmem:[#allocation2 + $0x530] sm:$0xff]  ;;  %v841_v37 = vld [vmem:[#allocation2 + $0x628] sm:$0xff]  ;;  %v1472_v45 = vld [vmem:[#allocation2 + $0x1c0] sm:$0xff] }
 0x1b7   :  { %v3254_v6 = vrot.slane %v1683_v31, %v8066_v59  ;;  %10213 = vst [vmem:[#allocation23_spill] sm:$0xff] %v8188_v58  ;;  %v3271_v31 = vadd.s32 4294967248, %v7986_v60  ;;  %v858_v26 = vld [vmem:[#allocation2 + $0x6b0] sm:$0xff]  ;;  %v1097_v39 = vmax.f32 %v841_v37, %v585_v36  ;;  %v2170_v44 = vsel %vm131_vm0, %v1582_v30, -inf  ;;  %v731_v46 = vld [vmem:[#allocation2 + $0x2b8] sm:$0xff]  ;;  %v1600_v8 = vld [vmem:[#allocation2 + $0x5c0] sm:$0xff] }
 0x1b8   :  { %v3364_v49 = vsel %vm3262_vm4, %v3363_v38, %v8103_v54  ;;  %1835 = vmax.xlane.f32.xlu1 %v1834_v25  ;;  %v1471_v54 = vld [vmem:[#allocation2 + $0x1b8] sm:$0xff]  ;;  %1353 = vst.msk [vmem:[#allocation2 + $0x620] sm:$0xff] %vm131_vm0, %v1096_v14  ;;  %v458_v47 = vld [vmem:[%s10179_s0 + $0x230] sm:$0xff]  ;;  %v1840_v3 = vsel %vm131_vm0, %v1472_v45, -inf  ;;  %v732_v9 = vld [vmem:[#allocation2 + $0x2c0] sm:$0xff] }
 0x1b9   :  { %v3256_v50 = vsel %vm3255_vm3, %v3254_v6, %v8107_v55  ;;  %1784 = vmax.xlane.f32.xlu0 %v1783_v33  ;;  %v2118_v56 = vpop.xlane.xlu1 %2117  ;;  %v985_v55 = vmax.f32 %v729_v52, %v473_v48  ;;  %v1837_v18 = vsel %vm131_vm0, %v1471_v54, -inf  ;;  %v602_v33 = vld [vmem:[%s10179_s0 + $0x6b0] sm:$0xff]  ;;  %v1455_v51 = vld [vmem:[#allocation2 + $0x138] sm:$0xff]  ;;  %1354 = vst.msk [vmem:[#allocation2 + $0x628] sm:$0xff] %vm131_vm0, %v1097_v39  ;;  %v987_v52 = vmax.f32 %v731_v46, %v475_v40  ;;  %v477_v30 = vld [vmem:[%s10179_s0 + $0x2c8] sm:$0xff] }
 0x1ba   :  { %v2067_v57 = vpop.xlane.xlu0 %2066  ;;  %v3995_v1 = vrot.slane %v2118_v56, %v8124_v10  ;;  %v1114_v35 = vmax.f32 %v858_v26, %v602_v33  ;;  %v714_v53 = vld [vmem:[#allocation2 + $0x230] sm:$0xff]  ;;  %v603_v56 = vld [vmem:[%s10179_s0 + $0x6b8] sm:$0xff]  ;;  %v1789_v5 = vsel %vm131_vm0, %v1455_v51, -inf  ;;  %v2224_v33 = vsel %vm131_vm0, %v1600_v8, -inf  ;;  %v733_v37 = vld [vmem:[#allocation2 + $0x2c8] sm:$0xff] }
 0x1bb   :  { %v3911_v2 = vrot.slane %v2067_v57, %v8066_v59  ;;  %1242 = vst.msk [vmem:[#allocation2 + $0x2a8] sm:$0xff] %vm131_vm0, %v985_v55  ;;  %v970_v57 = vmax.f32 %v714_v53, %v458_v47  ;;  %1244 = vst.msk [vmem:[#allocation2 + $0x2b8] sm:$0xff] %vm131_vm0, %v987_v52  ;;  %v842_v0 = vld [vmem:[#allocation2 + $0x630] sm:$0xff]  ;;  %v1583_v14 = vld [vmem:[#allocation2 + $0x538] sm:$0xff]  ;;  %v989_v39 = vmax.f32 %v733_v37, %v477_v30 }
 0x1bc   :  { %v3996_v12 = vsel %vm3262_vm4, %v3995_v1, %v8139_v20  ;;  %2219 = vmax.xlane.f32.xlu1 %v2218_v61  ;;  %v986_v20 = vmax.f32 %v730_v15, %v474_v11  ;;  %1371 = vst.msk [vmem:[#allocation2 + $0x6b0] sm:$0xff] %vm131_vm0, %v1114_v35  ;;  %v859_v61 = vld [vmem:[#allocation2 + $0x6b8] sm:$0xff]  ;;  %v476_v1 = vld [vmem:[%s10179_s0 + $0x2c0] sm:$0xff]  ;;  %v2173_v26 = vsel %vm131_vm0, %v1583_v14, -inf  ;;  %v734_v51 = vld [vmem:[#allocation2 + $0x2d0] sm:$0xff] }
 0x1bd   :  { %v3912_v13 = vsel %vm3255_vm3, %v3911_v2, %v8143_v21  ;;  %2168 = vmax.xlane.f32.xlu0 %v2167_v62  ;;  %v1737_v16 = vpop.xlane.xlu1 %1736  ;;  %v457_v21 = vld [vmem:[%s10179_s0 + $0x228] sm:$0xff]  ;;  %v586_v62 = vld [vmem:[%s10179_s0 + $0x630] sm:$0xff]  ;;  %v1115_v63 = vmax.f32 %v859_v61, %v603_v56  ;;  %1227 = vst.msk [vmem:[#allocation2 + $0x230] sm:$0xff] %vm131_vm0, %v970_v57  ;;  %v459_v11 = vld [vmem:[%s10179_s0 + $0x238] sm:$0xff]  ;;  %v988_v15 = vmax.f32 %v732_v9, %v476_v1 }
 0x1be   :  { %v1686_v17 = vpop.xlane.xlu0 %1685  ;;  %v3368_v28 = vrot.slane %v1737_v16, %v8188_v58  ;;  %v969_v25 = vmax.f32 %v713_v27, %v457_v21  ;;  %1243 = vst.msk [vmem:[#allocation2 + $0x2b0] sm:$0xff] %vm131_vm0, %v986_v20  ;;  %v1098_v7 = vmax.f32 %v842_v0, %v586_v62  ;;  %v715_v16 = vld [vmem:[#allocation2 + $0x238] sm:$0xff]  ;;  %v1473_v27 = vld [vmem:[#allocation2 + $0x1c8] sm:$0xff]  ;;  %v1456_v35 = vld [vmem:[#allocation2 + $0x140] sm:$0xff] }
 0x1bf   :  { %v3261_v29 = vrot.slane %v1686_v17, %v8124_v10  ;;  %1372 = vst.msk [vmem:[#allocation2 + $0x6b8] sm:$0xff] %vm131_vm0, %v1115_v63  ;;  %v604_v17 = vld [vmem:[%s10179_s0 + $0x6c0] sm:$0xff]  ;;  %v587_v22 = vld [vmem:[%s10179_s0 + $0x638] sm:$0xff]  ;;  %1245 = vst.msk [vmem:[#allocation2 + $0x2c0] sm:$0xff] %vm131_vm0, %v988_v15  ;;  %v1843_v56 = vsel %vm131_vm0, %v1473_v27, -inf  ;;  %v1792_v57 = vsel %vm131_vm0, %v1456_v35, -inf }
 0x1c0   :  { %v3369_v38 = vsel %vm10207_vm5, %v3368_v28, %v3364_v49  ;;  %1838 = vmax.xlane.f32.xlu1 %v1837_v18  ;;  %1226 = vst.msk [vmem:[#allocation2 + $0x228] sm:$0xff] %vm131_vm0, %v969_v25  ;;  %1355 = vst.msk [vmem:[#allocation2 + $0x630] sm:$0xff] %vm131_vm0, %v1098_v7  ;;  %v971_v18 = vmax.f32 %v715_v16, %v459_v11  ;;  %v716_v40 = vld [vmem:[#allocation2 + $0x240] sm:$0xff]  ;;  %v461_v62 = vld [vmem:[%s10179_s0 + $0x248] sm:$0xff] }
 0x1c1   :  { %v3263_v6 = vsel %vm3262_vm4, %v3261_v29, %v3256_v50  ;;  %1787 = vmax.xlane.f32.xlu0 %v1786_v19  ;;  %v2121_v41 = vpop.xlane.xlu1 %2120  ;;  %v8235_v50 = vsub.s32 %v3271_v31, %v7990_v4  ;;  %v860_v19 = vld [vmem:[#allocation2 + $0x6c0] sm:$0xff]  ;;  %v843_v29 = vld [vmem:[#allocation2 + $0x638] sm:$0xff]  ;;  %1246 = vst.msk [vmem:[#allocation2 + $0x2c8] sm:$0xff] %vm131_vm0, %v989_v39  ;;  %v1601_v63 = vld [vmem:[#allocation2 + $0x5c8] sm:$0xff] }
 0x1c2   :  { %v2070_v42 = vpop.xlane.xlu0 %2069  ;;  %v4000_v48 = vrot.slane %v2121_v41, %v8188_v58  ;;  %v1116_v28 = vmax.f32 %v860_v19, %v604_v17  ;;  %1228 = vst.msk [vmem:[#allocation2 + $0x238] sm:$0xff] %vm131_vm0, %v971_v18  ;;  %v1099_v36 = vmax.f32 %v843_v29, %v587_v22  ;;  %v605_v41 = vld [vmem:[%s10179_s0 + $0x6c8] sm:$0xff]  ;;  %v588_v45 = vld [vmem:[%s10179_s0 + $0x640] sm:$0xff]  ;;  %v2227_v8 = vsel %vm131_vm0, %v1601_v63, -inf  ;;  %v479_v16 = vld [vmem:[%s10179_s0 + $0x2d8] sm:$0xff] }
 0x1c3   :  { %v3916_v49 = vrot.slane %v2070_v42, %v8124_v10  ;;  %10214 = vst [vmem:[#allocation24_spill] sm:$0xff] %v8235_v50  ;;  %v861_v42 = vld [vmem:[#allocation2 + $0x6c8] sm:$0xff]  ;;  %v844_v46 = vld [vmem:[#allocation2 + $0x640] sm:$0xff]  ;;  %v735_v27 = vld [vmem:[#allocation2 + $0x2d8] sm:$0xff] }
 0x1c4   :  { %v8245_v54 = vsel %vm10207_vm5, %v4000_v48, %v3996_v12  ;;  %2222 = vmax.xlane.f32.xlu1 %v2221_v43  ;;  %1373 = vst.msk [vmem:[#allocation2 + $0x6c0] sm:$0xff] %vm131_vm0, %v1116_v28  ;;  %1356 = vst.msk [vmem:[#allocation2 + $0x638] sm:$0xff] %vm131_vm0, %v1099_v36  ;;  %v1100_v48 = vmax.f32 %v844_v46, %v588_v45  ;;  %v1584_v0 = vld [vmem:[#allocation2 + $0x540] sm:$0xff]  ;;  %v589_v11 = vld [vmem:[%s10179_s0 + $0x648] sm:$0xff] }
 0x1c5   :  { %v3917_v55 = vsel %vm3262_vm4, %v3916_v49, %v3912_v13  ;;  %2171 = vmax.xlane.f32.xlu0 %v2170_v44  ;;  %v1740_v2 = vpop.xlane.xlu1 %1739  ;;  %v1117_v44 = vmax.f32 %v861_v42, %v605_v41  ;;  %v478_v49 = vld [vmem:[%s10179_s0 + $0x2d0] sm:$0xff]  ;;  %v2176_v7 = vsel %vm131_vm0, %v1584_v0, -inf  ;;  %v1457_v14 = vld [vmem:[#allocation2 + $0x148] sm:$0xff]  ;;  %v607_v46 = vld [vmem:[%s10179_s0 + $0x6d8] sm:$0xff] }
 0x1c6   :  { %v1689_v34 = vpop.xlane.xlu0 %1688  ;;  %v3373_v12 = vrot.slane %v1740_v2, %v8235_v50  ;;  %v990_v61 = vmax.f32 %v734_v51, %v478_v49  ;;  %1357 = vst.msk [vmem:[#allocation2 + $0x640] sm:$0xff] %vm131_vm0, %v1100_v48  ;;  %v606_v2 = vld [vmem:[%s10179_s0 + $0x6d0] sm:$0xff]  ;;  %v1795_v22 = vsel %vm131_vm0, %v1457_v14, -inf  ;;  %v1585_v30 = vld [vmem:[#allocation2 + $0x548] sm:$0xff]  ;;  %v863_v48 = vld [vmem:[#allocation2 + $0x6d8] sm:$0xff] }
 0x1c7   :  { %v3268_v13 = vrot.slane %v1689_v34, %v8188_v58  ;;  %1374 = vst.msk [vmem:[#allocation2 + $0x6c8] sm:$0xff] %vm131_vm0, %v1117_v44  ;;  %v862_v34 = vld [vmem:[#allocation2 + $0x6d0] sm:$0xff]  ;;  %v2179_v42 = vsel %vm131_vm0, %v1585_v30, -inf  ;;  %v1119_v49 = vmax.f32 %v863_v48, %v607_v46  ;;  %v719_v30 = vld [vmem:[#allocation2 + $0x258] sm:$0xff]  ;;  %v481_v46 = vld [vmem:[%s10179_s0 + $0x2e8] sm:$0xff] }
 0x1c8   :  { %v8269_v20 = vsel %vm10208_vm6, %v3373_v12, %v3369_v38  ;;  %1841 = vmax.xlane.f32.xlu1 %v1840_v3  ;;  %v460_v38 = vld [vmem:[%s10179_s0 + $0x240] sm:$0xff]  ;;  %1247 = vst.msk [vmem:[#allocation2 + $0x2d0] sm:$0xff] %vm131_vm0, %v990_v61  ;;  %v1118_v9 = vmax.f32 %v862_v34, %v606_v2  ;;  %v845_v12 = vld [vmem:[#allocation2 + $0x648] sm:$0xff]  ;;  %v462_v28 = vld [vmem:[%s10179_s0 + $0x250] sm:$0xff] }
 0x1c9   :  { %v8272_v21 = vsel %vm10207_vm5, %v3268_v13, %v3263_v6  ;;  %1790 = vmax.xlane.f32.xlu0 %v1789_v5  ;;  %v8278_v31 = vpop.xlane.xlu1 %2123  ;;  %v972_v43 = vmax.f32 %v716_v40, %v460_v38  ;;  %v1474_v13 = vld [vmem:[#allocation2 + $0x1d0] sm:$0xff]  ;;  %v1101_v15 = vmax.f32 %v845_v12, %v589_v11  ;;  %v2571_v38 = vld [vmem:[#allocation4 + $0x418] sm:$0xff]  ;;  %1376 = vst.msk [vmem:[#allocation2 + $0x6d8] sm:$0xff] %vm131_vm0, %v1119_v49 }
 0x1ca   :  { %v2073_v25 = vpop.xlane.xlu0 %2072  ;;  %1375 = vst.msk [vmem:[#allocation2 + $0x6d0] sm:$0xff] %vm131_vm0, %v1118_v9  ;;  %v1846_v19 = vsel %vm131_vm0, %v1474_v13, -inf  ;;  %v1602_v29 = vld [vmem:[#allocation2 + $0x5d0] sm:$0xff]  ;;  %v480_v2 = vld [vmem:[%s10179_s0 + $0x2e0] sm:$0xff]  ;;  %v1459_v12 = vld [vmem:[#allocation2 + $0x158] sm:$0xff] }
 0x1cb   :  { %v3921_v6 = vrot.slane %v2073_v25, %v8188_v58  ;;  %1229 = vst.msk [vmem:[#allocation2 + $0x240] sm:$0xff] %vm131_vm0, %v972_v43  ;;  %1358 = vst.msk [vmem:[#allocation2 + $0x648] sm:$0xff] %vm131_vm0, %v1101_v15  ;;  %v991_v25 = vmax.f32 %v735_v27, %v479_v16  ;;  %v2573_v35 = vld [vmem:[#allocation4 + $0x428] sm:$0xff]  ;;  %v2230_v41 = vsel %vm131_vm0, %v1602_v29, -inf  ;;  %v1475_v43 = vld [vmem:[#allocation2 + $0x1d8] sm:$0xff]  ;;  %v1801_v27 = vsel %vm131_vm0, %v1459_v12, -inf }
 0x1cc   :  { %2225 = vmax.xlane.f32.xlu1 %v2224_v33  ;;  %v718_v33 = vld [vmem:[#allocation2 + $0x250] sm:$0xff]  ;;  %v1476_v11 = vld [vmem:[#allocation2 + $0x1e0] sm:$0xff]  ;;  %v463_v15 = vld [vmem:[%s10179_s0 + $0x258] sm:$0xff]  ;;  %v4005_v58 = vrot.slane %v8278_v31, %v8235_v50 }
 0x1cd   :  { %v8296_v47 = vsel %vm10207_vm5, %v3921_v6, %v3917_v55  ;;  %2174 = vmax.xlane.f32.xlu0 %v2173_v26  ;;  %v8302_v52 = vpop.xlane.xlu1 %1742  ;;  %v717_v55 = vld [vmem:[#allocation2 + $0x248] sm:$0xff]  ;;  %v974_v36 = vmax.f32 %v718_v33, %v462_v28  ;;  %v2575_v6 = vld [vmem:[#allocation4 + $0x438] sm:$0xff]  ;;  %1248 = vst.msk [vmem:[#allocation2 + $0x2d8] sm:$0xff] %vm131_vm0, %v991_v25  ;;  %v1458_v45 = vld [vmem:[#allocation2 + $0x150] sm:$0xff] }
 0x1ce   :  { %v8304_v53 = vpop.xlane.xlu0 %1691  ;;  %v973_v1 = vmax.f32 %v717_v55, %v461_v62  ;;  %v2569_v26 = vld [vmem:[#allocation4 + $0x408] sm:$0xff]  ;;  %v6148_v44 = vpack.c.bf16 %v2575_v6, %v2571_v38  ;;  %v1798_v61 = vsel %vm131_vm0, %v1458_v45, -inf  ;;  %v1603_v62 = vld [vmem:[#allocation2 + $0x5d8] sm:$0xff]  ;;  %v736_v13 = vld [vmem:[#allocation2 + $0x2e0] sm:$0xff] }
 0x1cf   :  { %v5892_v37 = vpack.c.bf16 %v2573_v35, %v2569_v26  ;;  %1231 = vst.msk [vmem:[#allocation2 + $0x250] sm:$0xff] %vm131_vm0, %v974_v36  ;;  %v1586_v55 = vld [vmem:[#allocation2 + $0x550] sm:$0xff]  ;;  %v992_v14 = vmax.f32 %v736_v13, %v480_v2  ;;  %v1604_v28 = vld [vmem:[#allocation2 + $0x5e0] sm:$0xff]  ;;  %v1587_v29 = vld [vmem:[#allocation2 + $0x558] sm:$0xff]  ;;  %v975_v26 = vmax.f32 %v719_v30, %v463_v15 }
 0x1d0   :  { %1844 = vmax.xlane.f32.xlu1 %v1843_v56  ;;  %1230 = vst.msk [vmem:[#allocation2 + $0x248] sm:$0xff] %vm131_vm0, %v973_v1  ;;  %6149 = vmatprep.subr.bf16.mxu1 %v6148_v44  ;;  %v590_v63 = vld [vmem:[%s10179_s0 + $0x650] sm:$0xff]  ;;  %v2182_v9 = vsel %vm131_vm0, %v1586_v55, -inf  ;;  %v608_v25 = vld [vmem:[%s10179_s0 + $0x6e0] sm:$0xff]  ;;  %v2236_v38 = vsel %vm131_vm0, %v1604_v28, -inf  ;;  %v2185_v6 = vsel %vm131_vm0, %v1587_v29, -inf }
 0x1d1   :  { %1793 = vmax.xlane.f32.xlu0 %v1792_v57  ;;  %v8319_v3 = vpop.xlane.xlu1 %2126  ;;  %5893 = vmatprep.subr.bf16.mxu0 %v5892_v37  ;;  %v1849_v57 = vsel %vm131_vm0, %v1475_v43, -inf  ;;  %v846_v0 = vld [vmem:[#allocation2 + $0x650] sm:$0xff]  ;;  %1249 = vst.msk [vmem:[#allocation2 + $0x2e0] sm:$0xff] %vm131_vm0, %v992_v14  ;;  %v864_v33 = vld [vmem:[#allocation2 + $0x6e0] sm:$0xff]  ;;  %1232 = vst.msk [vmem:[#allocation2 + $0x258] sm:$0xff] %vm131_vm0, %v975_v26 }
 0x1d2   :  { %v8321_v5 = vpop.xlane.xlu0 %2075  ;;  %v1102_v1 = vmax.f32 %v846_v0, %v590_v63  ;;  %v1120_v35 = vmax.f32 %v864_v33, %v608_v25  ;;  %v591_v43 = vld [vmem:[%s10179_s0 + $0x658] sm:$0xff]  ;;  %v1588_v55 = vld [vmem:[#allocation2 + $0x560] sm:$0xff]  ;;  %v737_v63 = vld [vmem:[#allocation2 + $0x2e8] sm:$0xff] }
 0x1d3   :  { %v847_v44 = vld [vmem:[#allocation2 + $0x658] sm:$0xff]  ;;  %v464_v0 = vld [vmem:[%s10179_s0 + $0x260] sm:$0xff]  ;;  %v993_v2 = vmax.f32 %v737_v63, %v481_v46  ;;  %v2188_v13 = vsel %vm131_vm0, %v1588_v55, -inf  ;;  %v1478_v14 = vld [vmem:[#allocation2 + $0x1f0] sm:$0xff]  ;;  %v3299_v46 = vadd.s32 4294967216, %v7986_v60  ;;  %v3306_v55 = vadd.s32 4294967208, %v7986_v60 }
 0x1d4   :  { %2228 = vmax.xlane.f32.xlu1 %v2227_v8  ;;  %1359 = vst.msk [vmem:[#allocation2 + $0x650] sm:$0xff] %vm131_vm0, %v1102_v1  ;;  %1377 = vst.msk [vmem:[#allocation2 + $0x6e0] sm:$0xff] %vm131_vm0, %v1120_v35  ;;  %v1103_v45 = vmax.f32 %v847_v44, %v591_v43  ;;  %v720_v1 = vld [vmem:[#allocation2 + $0x260] sm:$0xff]  ;;  %v1461_v15 = vld [vmem:[#allocation2 + $0x168] sm:$0xff]  ;;  %v1858_v35 = vsel %vm131_vm0, %v1478_v14, -inf  ;;  %v3285_v44 = vadd.s32 4294967232, %v7986_v60 }
 0x1d5   :  { %2177 = vmax.xlane.f32.xlu0 %v2176_v7  ;;  %v8333_v17 = vpop.xlane.xlu1 %1745  ;;  %v2233_v7 = vsel %vm131_vm0, %v1603_v62, -inf  ;;  %v1605_v62 = vld [vmem:[#allocation2 + $0x5e8] sm:$0xff]  ;;  %1250 = vst.msk [vmem:[#allocation2 + $0x2e8] sm:$0xff] %vm131_vm0, %v993_v2  ;;  %v592_v29 = vld [vmem:[%s10179_s0 + $0x660] sm:$0xff]  ;;  %v482_v43 = vld [vmem:[%s10179_s0 + $0x2f0] sm:$0xff]  ;;  %v3313_v63 = vadd.s32 4294967200, %v7986_v60 }
 0x1d6   :  { %v8335_v18 = vpop.xlane.xlu0 %1694  ;;  %1360 = vst.msk [vmem:[#allocation2 + $0x658] sm:$0xff] %vm131_vm0, %v1103_v45  ;;  %v2239_v12 = vsel %vm131_vm0, %v1605_v62, -inf  ;;  %v848_v30 = vld [vmem:[#allocation2 + $0x660] sm:$0xff]  ;;  %v3292_v45 = vadd.s32 4294967224, %v7986_v60  ;;  %v721_v62 = vld [vmem:[#allocation2 + $0x268] sm:$0xff] }
 0x1d7   :  { %v1104_v25 = vmax.f32 %v848_v30, %v592_v29  ;;  %v3327_v29 = vadd.s32 4294967184, %v7986_v60  ;;  %v3334_v30 = vadd.s32 4294967176, %v7986_v60  ;;  %v1625_v31 = vld [vmem:[#allocation2 + $0x688] sm:$0xff] }
 0x1d8   :  { %1847 = vmax.xlane.f32.xlu1 %v1846_v19 }
 0x1d9   :  { %1796 = vmax.xlane.f32.xlu0 %v1795_v22  ;;  %v8343_v39 = vpop.xlane.xlu1 %2129  ;;  %v1852_v22 = vsel %vm131_vm0, %v1476_v11, -inf  ;;  %1361 = vst.msk [vmem:[#allocation2 + $0x660] sm:$0xff] %vm131_vm0, %v1104_v25  ;;  %v8458_v25 = vsub.s32 %v3285_v44, %v7990_v4  ;;  %v8492_v59 = vsub.s32 %v3327_v29, %v7990_v4  ;;  %v8495_v24 = vsub.s32 %v3334_v30, %v7990_v4  ;;  %v483_v30 = vld [vmem:[%s10179_s0 + $0x2f8] sm:$0xff] }
 0x1da   :  { %v8345_v40 = vpop.xlane.xlu0 %2078 }
 0x1dc   :  { %2231 = vmax.xlane.f32.xlu1 %v2230_v41  ;;  %v1477_v41 = vld [vmem:[#allocation2 + $0x1e8] sm:$0xff] }
 0x1dd   :  { %2180 = vmax.xlane.f32.xlu0 %v2179_v42  ;;  %v8353_v51 = vpop.xlane.xlu1 %1748  ;;  %v1460_v42 = vld [vmem:[#allocation2 + $0x160] sm:$0xff] }
 0x1de   :  { %v8355_v56 = vpop.xlane.xlu0 %1697 }
 0x1e0   :  { %1850 = vmax.xlane.f32.xlu1 %v1849_v57  ;;  %v1855_v57 = vsel %vm131_vm0, %v1477_v41, -inf  ;;  %v1606_v41 = vld [vmem:[#allocation2 + $0x5f0] sm:$0xff] }
 0x1e1   :  { %1799 = vmax.xlane.f32.xlu0 %v1798_v61  ;;  %v8366_v34 = vpop.xlane.xlu1 %2132  ;;  %v1804_v61 = vsel %vm131_vm0, %v1460_v42, -inf  ;;  %v1589_v42 = vld [vmem:[#allocation2 + $0x568] sm:$0xff] }
 0x1e2   :  { %v8368_v8 = vpop.xlane.xlu0 %2081 }
 0x1e4   :  { %2234 = vmax.xlane.f32.xlu1 %v2233_v7  ;;  %v976_v7 = vmax.f32 %v720_v1, %v464_v0  ;;  %v3320_v0 = vadd.s32 4294967192, %v7986_v60 }
 0x1e5   :  { %2183 = vmax.xlane.f32.xlu0 %v2182_v9  ;;  %v8376_v16 = vpop.xlane.xlu1 %1751 }
 0x1e6   :  { %v8378_v19 = vpop.xlane.xlu0 %1700  ;;  %1233 = vst.msk [vmem:[#allocation2 + $0x260] sm:$0xff] %vm131_vm0, %v976_v7  ;;  %v8477_v44 = vsub.s32 %v3320_v0, %v7990_v4 }
 0x1e8   :  { %1853 = vmax.xlane.f32.xlu1 %v1852_v22  ;;  %v609_v22 = vld [vmem:[%s10179_s0 + $0x6e8] sm:$0xff] }
 0x1e9   :  { %1802 = vmax.xlane.f32.xlu0 %v1801_v27  ;;  %v8386_v36 = vpop.xlane.xlu1 %2135  ;;  %v865_v27 = vld [vmem:[#allocation2 + $0x6e8] sm:$0xff] }
 0x1ea   :  { %v8388_v37 = vpop.xlane.xlu0 %2084  ;;  %v1121_v28 = vmax.f32 %v865_v27, %v609_v22  ;;  %v1479_v22 = vld [vmem:[#allocation2 + $0x1f8] sm:$0xff]  ;;  %v1462_v27 = vld [vmem:[#allocation2 + $0x170] sm:$0xff] }
 0x1ec   :  { %2237 = vmax.xlane.f32.xlu1 %v2236_v38  ;;  %v1807_v38 = vsel %vm131_vm0, %v1461_v15, -inf  ;;  %1378 = vst.msk [vmem:[#allocation2 + $0x6e8] sm:$0xff] %vm131_vm0, %v1121_v28  ;;  %v1607_v28 = vld [vmem:[#allocation2 + $0x5f8] sm:$0xff] }
 0x1ed   :  { %2186 = vmax.xlane.f32.xlu0 %v2185_v6  ;;  %v8400_v48 = vpop.xlane.xlu1 %1754  ;;  %v3278_v6 = vadd.s32 4294967240, %v7986_v60  ;;  %v866_v60 = vld [vmem:[#allocation2 + $0x6f0] sm:$0xff]  ;;  %v2245_v10 = vsel %vm131_vm0, %v1607_v28, -inf }
 0x1ee   :  { %v8402_v49 = vpop.xlane.xlu0 %1703 }
 0x1ef   :  { %v8452_v15 = vsub.s32 %v3278_v6, %v7990_v4  ;;  %v1590_v6 = vld [vmem:[#allocation2 + $0x570] sm:$0xff] }
 0x1f0   :  { %1856 = vmax.xlane.f32.xlu1 %v1855_v57  ;;  %v738_v57 = vld [vmem:[#allocation2 + $0x2f0] sm:$0xff] }
 0x1f1   :  { %1805 = vmax.xlane.f32.xlu0 %v1804_v61  ;;  %v8410_v9 = vpop.xlane.xlu1 %2138  ;;  %v465_v61 = vld [vmem:[%s10179_s0 + $0x268] sm:$0xff]  ;;  %v994_v1 = vmax.f32 %v738_v57, %v482_v43  ;;  %v8474_v43 = vsub.s32 %v3313_v63, %v7990_v4  ;;  %v1810_v63 = vsel %vm131_vm0, %v1462_v27, -inf  ;;  %v3275_v27 = vrot.slane %v8304_v53, %v8235_v50 }
 0x1f2   :  { %v8412_v11 = vpop.xlane.xlu0 %2087  ;;  %v977_v14 = vmax.f32 %v721_v62, %v465_v61  ;;  %v849_v57 = vld [vmem:[#allocation2 + $0x668] sm:$0xff]  ;;  %v4010_v28 = vrot.slane %v8319_v3, %v8452_v15  ;;  %v3926_v3 = vrot.slane %v8321_v5, %v8235_v50  ;;  %v8535_v5 = vsel %vm131_vm0, %v1625_v31, -inf  ;;  %v867_v31 = vld [vmem:[#allocation2 + $0x6f8] sm:$0xff] }
 0x1f3   :  { %1251 = vst.msk [vmem:[#allocation2 + $0x2f0] sm:$0xff] %vm131_vm0, %v994_v1  ;;  %v1463_v1 = vld [vmem:[#allocation2 + $0x178] sm:$0xff] }
 0x1f4   :  { %2240 = vmax.xlane.f32.xlu1 %v2239_v12  ;;  %v2242_v12 = vsel %vm131_vm0, %v1606_v41, -inf  ;;  %1234 = vst.msk [vmem:[#allocation2 + $0x268] sm:$0xff] %vm131_vm0, %v977_v14  ;;  %v610_v41 = vld [vmem:[%s10179_s0 + $0x6f0] sm:$0xff] }
 0x1f5   :  { %2189 = vmax.xlane.f32.xlu0 %v2188_v13  ;;  %v8424_v33 = vpop.xlane.xlu1 %1757  ;;  %v2191_v13 = vsel %vm131_vm0, %v1589_v42, -inf  ;;  %v8471_v42 = vsub.s32 %v3306_v55, %v7990_v4  ;;  %v1861_v55 = vsel %vm131_vm0, %v1479_v22, -inf  ;;  %v1122_v14 = vmax.f32 %v866_v60, %v610_v41 }
 0x1f6   :  { %v8426_v26 = vpop.xlane.xlu0 %1706  ;;  %v3378_v22 = vrot.slane %v8302_v52, %v8452_v15  ;;  %v2194_v41 = vsel %vm131_vm0, %v1590_v6, -inf  ;;  %v1813_v52 = vsel %vm131_vm0, %v1463_v1, -inf  ;;  %v739_v6 = vld [vmem:[#allocation2 + $0x2f8] sm:$0xff]  ;;  %v1624_v1 = vld [vmem:[#allocation2 + $0x680] sm:$0xff] }
 0x1f7   :  { %1379 = vst.msk [vmem:[#allocation2 + $0x6f0] sm:$0xff] %vm131_vm0, %v1122_v14  ;;  %v4006_v14 = vsel %vm10208_vm6, %v4005_v58, %v8245_v54 }
 0x1f8   :  { %1859 = vmax.xlane.f32.xlu1 %v1858_v35  ;;  %v8461_v35 = vsub.s32 %v3292_v45, %v7990_v4  ;;  %v1591_v45 = vld [vmem:[#allocation2 + $0x578] sm:$0xff]  ;;  %v4011_v54 = vsel %vm3283_vm7, %v4010_v28, %v4006_v14  ;;  %v594_v28 = vld [vmem:[%s10179_s0 + $0x670] sm:$0xff] }
 0x1f9   :  { %1808 = vmax.xlane.f32.xlu0 %v1807_v38  ;;  %v8445_v2 = vpop.xlane.xlu1 %2141  ;;  %v8464_v38 = vsub.s32 %v3299_v46, %v7990_v4  ;;  %v593_v46 = vld [vmem:[%s10179_s0 + $0x668] sm:$0xff]  ;;  %v2197_v60 = vsel %vm131_vm0, %v1591_v45, -inf  ;;  %v466_v45 = vld [vmem:[%s10179_s0 + $0x270] sm:$0xff]  ;;  %v3277_v4 = vsel %vm10208_vm6, %v3275_v27, %v8272_v21  ;;  %v8552_v21 = vsel %vm131_vm0, %v1624_v1, -inf }
 0x1fa   :  { %v8447_v7 = vpop.xlane.xlu0 %2090  ;;  %v1105_v0 = vmax.f32 %v849_v57, %v593_v46  ;;  %v3383_v46 = vrot.slane %v8333_v17, %v8458_v25  ;;  %v3282_v57 = vrot.slane %v8335_v18, %v8452_v15  ;;  %v3379_v18 = vsel %vm3283_vm7, %v3378_v22, %v8269_v20 }
 0x1fb   :  { %v3388_v58 = vrot.slane %v8353_v51, %v8461_v35  ;;  %v4020_v20 = vrot.slane %v8366_v34, %v8461_v35  ;;  %v611_v51 = vld [vmem:[%s10179_s0 + $0x6f8] sm:$0xff]  ;;  %v3927_v22 = vsel %vm10208_vm6, %v3926_v3, %v8296_v47  ;;  %v3393_v47 = vrot.slane %v8376_v16, %v8464_v38 }
 0x1fc   :  { %2243 = vmax.xlane.f32.xlu1 %v2242_v12  ;;  %v1497_v12 = vld [vmem:[#allocation2 + $0x288] sm:$0xff]  ;;  %1362 = vst.msk [vmem:[#allocation2 + $0x668] sm:$0xff] %vm131_vm0, %v1105_v0  ;;  %v4015_v0 = vrot.slane %v8343_v39, %v8458_v25  ;;  %v3289_v39 = vrot.slane %v8355_v56, %v8458_v25  ;;  %v3384_v56 = vsel %vm10201_vm8, %v3383_v46, %v3379_v18  ;;  %v595_v18 = vld [vmem:[%s10179_s0 + $0x678] sm:$0xff] }
 0x1fd   :  { %2192 = vmax.xlane.f32.xlu0 %v2191_v13  ;;  %v8482_v61 = vpop.xlane.xlu1 %1760  ;;  %v1496_v13 = vld [vmem:[#allocation2 + $0x280] sm:$0xff]  ;;  %v8509_v29 = vsel %vm131_vm0, %v1497_v12, -inf  ;;  %v995_v12 = vmax.f32 %v739_v6, %v483_v30  ;;  %v3931_v30 = vrot.slane %v8345_v40, %v8452_v15  ;;  %v1481_v40 = vld [vmem:[#allocation2 + $0x208] sm:$0xff]  ;;  %v3284_v27 = vsel %vm3283_vm7, %v3282_v57, %v3277_v4  ;;  %v850_v6 = vld [vmem:[#allocation2 + $0x670] sm:$0xff] }
 0x1fe   :  { %v8484_v62 = vpop.xlane.xlu0 %1709  ;;  %v8512_v53 = vsel %vm131_vm0, %v1496_v13, -inf  ;;  %v722_v13 = vld [vmem:[#allocation2 + $0x270] sm:$0xff]  ;;  %v1123_v4 = vmax.f32 %v867_v31, %v611_v51  ;;  %v1106_v3 = vmax.f32 %v850_v6, %v594_v28  ;;  %v3389_v46 = vsel %vm3297_vm9, %v3388_v58, %v3384_v56 }
 0x1ff   :  { %v978_v17 = vmax.f32 %v722_v13, %v466_v45  ;;  %1252 = vst.msk [vmem:[#allocation2 + $0x2f8] sm:$0xff] %vm131_vm0, %v995_v12  ;;  %v4016_v45 = vsel %vm10201_vm8, %v4015_v0, %v4011_v54  ;;  %v3296_v57 = vrot.slane %v8378_v19, %v8461_v35  ;;  %v4025_v1 = vrot.slane %v8386_v36, %v8464_v38  ;;  %v467_v54 = vld [vmem:[%s10179_s0 + $0x278] sm:$0xff] }
 0x200   :  { %1862 = vmax.xlane.f32.xlu1 %v1861_v55  ;;  %v3291_v12 = vsel %vm10201_vm8, %v3289_v39, %v3284_v27  ;;  %v4021_v13 = vsel %vm3297_vm9, %v4020_v20, %v4016_v45  ;;  %v3941_v16 = vrot.slane %v8388_v37, %v8461_v35  ;;  %v8585_v14 = vsel %vm131_vm0, %v1481_v40, -inf  ;;  %1380 = vst.msk [vmem:[#allocation2 + $0x6f8] sm:$0xff] %vm131_vm0, %v1123_v4  ;;  %v723_v39 = vld [vmem:[#allocation2 + $0x278] sm:$0xff]  ;;  %v757_v4 = vld [vmem:[#allocation2 + $0x388] sm:$0xff] }
 0x201   :  { %1811 = vmax.xlane.f32.xlu0 %v1810_v63  ;;  %v8526_v55 = vpop.xlane.xlu1 %2144  ;;  %1235 = vst.msk [vmem:[#allocation2 + $0x270] sm:$0xff] %vm131_vm0, %v978_v17  ;;  %1363 = vst.msk [vmem:[#allocation2 + $0x670] sm:$0xff] %vm131_vm0, %v1106_v3  ;;  %v3398_v36 = vrot.slane %v8400_v48, %v8471_v42  ;;  %v3303_v0 = vrot.slane %v8402_v49, %v8464_v38  ;;  %v4030_v37 = vrot.slane %v8410_v9, %v8471_v42  ;;  %v1480_v17 = vld [vmem:[#allocation2 + $0x200] sm:$0xff] }
 0x202   :  { %v8528_v63 = vpop.xlane.xlu0 %2093  ;;  %v3394_v58 = vsel %vm3304_vm10, %v3393_v47, %v3389_v46  ;;  %v3946_v48 = vrot.slane %v8412_v11, %v8464_v38  ;;  %v3403_v49 = vrot.slane %v8424_v33, %v8474_v43  ;;  %v3298_v20 = vsel %vm3297_vm9, %v3296_v57, %v3291_v12  ;;  %v500_v3 = vld [vmem:[%s10179_s0 + $0x380] sm:$0xff] }
 0x203   :  { %v4026_v40 = vsel %vm3304_vm10, %v4025_v1, %v4021_v13  ;;  %v3310_v51 = vrot.slane %v8426_v26, %v8471_v42  ;;  %v4035_v33 = vrot.slane %v8445_v2, %v8474_v43  ;;  %v3951_v56 = vrot.slane %v8447_v7, %v8471_v42  ;;  %v1608_v7 = vld [vmem:[#allocation2 + $0x600] sm:$0xff] }
 0x204   :  { %2246 = vmax.xlane.f32.xlu1 %v2245_v10  ;;  %v3936_v10 = vrot.slane %v8368_v8, %v8458_v25  ;;  %v3932_v8 = vsel %vm3283_vm7, %v3931_v30, %v3927_v22  ;;  %v851_v30 = vld [vmem:[#allocation2 + $0x678] sm:$0xff]  ;;  %v979_v22 = vmax.f32 %v723_v39, %v467_v54  ;;  %v1864_v27 = vsel %vm131_vm0, %v1480_v17, -inf  ;;  %v756_v1 = vld [vmem:[#allocation2 + $0x380] sm:$0xff]  ;;  %v1609_v39 = vld [vmem:[#allocation2 + $0x608] sm:$0xff] }
 0x205   :  { %2195 = vmax.xlane.f32.xlu0 %v2194_v41  ;;  %v8564_v34 = vpop.xlane.xlu1 %1763  ;;  %v1107_v9 = vmax.f32 %v851_v30, %v595_v18  ;;  %v3305_v26 = vsel %vm3304_vm10, %v3303_v0, %v3298_v20  ;;  %v4031_v31 = vsel %vm3311_vm11, %v4030_v37, %v4026_v40  ;;  %v3408_v2 = vrot.slane %v8482_v61, %v8477_v44  ;;  %v501_v61 = vld [vmem:[%s10179_s0 + $0x388] sm:$0xff]  ;;  %v628_v40 = vld [vmem:[%s10179_s0 + $0x780] sm:$0xff] }
 0x206   :  { %v8566_v41 = vpop.xlane.xlu0 %1712  ;;  %v3937_v19 = vsel %vm10201_vm8, %v3936_v10, %v3932_v8  ;;  %vm4526_vm8 = vcmask 1041409   ;;  %v3399_v10 = vsel %vm3311_vm11, %v3398_v36, %v3394_v58  ;;  %1236 = vst.msk [vmem:[#allocation2 + $0x278] sm:$0xff] %vm131_vm0, %v979_v22  ;;  %v3317_v45 = vrot.slane %v8484_v62, %v8474_v43  ;;  %v1626_v58 = vld [vmem:[#allocation2 + $0x690] sm:$0xff]  ;;  %v885_v20 = vld [vmem:[#allocation2 + $0x788] sm:$0xff] }
 0x207   :  { %v3942_v11 = vsel %vm3297_vm9, %v3941_v16, %v3937_v19  ;;  %1364 = vst.msk [vmem:[#allocation2 + $0x678] sm:$0xff] %vm131_vm0, %v1107_v9  ;;  %v4040_v47 = vrot.slane %v8526_v55, %v8477_v44  ;;  %v3312_v8 = vsel %vm3311_vm11, %v3310_v51, %v3305_v26  ;;  %v3413_v46 = vrot.slane %v8564_v34, %v8492_v59  ;;  %v884_v26 = vld [vmem:[#allocation2 + $0x780] sm:$0xff] }
 0x208   :  { %2198 = vmax.xlane.f32.xlu1 %v2197_v60  ;;  %v1013_v57 = vmax.f32 %v757_v4, %v501_v61  ;;  %v4036_v55 = vsel %vm3318_vm12, %v4035_v33, %v4031_v31  ;;  %v2248_v16 = vsel %vm131_vm0, %v1608_v7, -inf  ;;  %v3956_v34 = vrot.slane %v8528_v63, %v8474_v43  ;;  %v8666_v63 = vld [vmem:[#allocation4 + $0x400] sm:$0xff]  ;;  %v2570_v33 = vld [vmem:[#allocation4 + $0x410] sm:$0xff] }
 0x209   :  { %1814 = vmax.xlane.f32.xlu0 %v1813_v52  ;;  %v8596_v60 = vpop.xlane.xlu1 %2147  ;;  %v3324_v36 = vrot.slane %v8566_v41, %v8477_v44  ;;  %v1012_v17 = vmax.f32 %v756_v1, %v500_v3  ;;  %v629_v41 = vld [vmem:[%s10179_s0 + $0x788] sm:$0xff]  ;;  %v2302_v4 = vsel %vm131_vm0, %v1626_v58, -inf  ;;  %v8699_v3 = vld [vmem:[#allocation4 + $0x478] sm:$0xff]  ;;  %v1482_v58 = vld [vmem:[#allocation2 + $0x210] sm:$0xff] }
 0x20a   :  { %v8598_v52 = vpop.xlane.xlu0 %2096  ;;  %v4045_v62 = vrot.slane %v8596_v60, %v8492_v59  ;;  %v1498_v60 = vld [vmem:[#allocation2 + $0x290] sm:$0xff]  ;;  %1270 = vst.msk [vmem:[#allocation2 + $0x388] sm:$0xff] %vm131_vm0, %v1013_v57  ;;  %v1499_v1 = vld [vmem:[#allocation2 + $0x298] sm:$0xff] }
 0x20b   :  { %v3961_v18 = vrot.slane %v8598_v52, %v8477_v44  ;;  %v8676_v52 = vld [vmem:[#allocation4 + $0x420] sm:$0xff]  ;;  %1269 = vst.msk [vmem:[#allocation2 + $0x380] sm:$0xff] %vm131_vm0, %v1012_v17  ;;  %v2582_v17 = vld [vmem:[#allocation4 + $0x470] sm:$0xff] }
 0x20c   :  { %1916 = vmax.xlane.f32.xlu1 %v8509_v29  ;;  %v3947_v29 = vsel %vm3304_vm10, %v3946_v48, %v3942_v11  ;;  %v1918_v11 = vsel %vm131_vm0, %v1498_v60, -inf }
 0x20d   :  { %1913 = vmax.xlane.f32.xlu0 %v8512_v53  ;;  %v1767_v28 = vpop.xlane.xlu1 %1766  ;;  %v3404_v53 = vsel %vm3318_vm12, %v3403_v49, %v3399_v10  ;;  %v3952_v12 = vsel %vm3311_vm11, %v3951_v56, %v3947_v29  ;;  %v2574_v56 = vld [vmem:[#allocation4 + $0x430] sm:$0xff]  ;;  %v1141_v10 = vmax.f32 %v885_v20, %v629_v41  ;;  %v8693_v29 = vld [vmem:[#allocation4 + $0x458] sm:$0xff]  ;;  %v8727_v41 = vld [vmem:[#allocation4 + $0x488] sm:$0xff] }
 0x20e   :  { %v8629_v6 = vpop.xlane.xlu0 %1715  ;;  %v3418_v13 = vrot.slane %v1767_v28, %v8495_v24  ;;  %v3409_v19 = vsel %vm3325_vm13, %v3408_v2, %v3404_v53  ;;  %v3957_v31 = vsel %vm3318_vm12, %v3956_v34, %v3952_v12  ;;  %v1140_v53 = vmax.f32 %v884_v26, %v628_v40  ;;  %v741_v34 = vld [vmem:[#allocation2 + $0x308] sm:$0xff]  ;;  %v8735_v20 = vld [vmem:[#allocation4 + $0x4b8] sm:$0xff] }
 0x20f   :  { %v3331_v48 = vrot.slane %v8629_v6, %v8492_v59  ;;  %v3414_v9 = vsel %vm3332_vm14, %v3413_v46, %v3409_v19  ;;  %v8703_v46 = vld [vmem:[#allocation4 + $0x460] sm:$0xff]  ;;  %1398 = vst.msk [vmem:[#allocation2 + $0x788] sm:$0xff] %vm131_vm0, %v1141_v10  ;;  %v6150_v12 = vpack.c.bf16 %v2574_v56, %v2570_v33  ;;  %v8744_v56 = vld [vmem:[#allocation4 + $0x490] sm:$0xff] }
 0x210   :  { %2300 = vmax.xlane.f32.xlu1 %v8535_v5  ;;  %v3319_v5 = vsel %vm3318_vm12, %v3317_v45, %v3312_v8  ;;  %v3419_v51 = vsel %vm3339_vm15, %v3418_v13, %v3414_v9  ;;  %v3962_v45 = vsel %vm3325_vm13, %v3961_v18, %v3957_v31  ;;  %v8701_v8 = vld [vmem:[#allocation4 + $0x440] sm:$0xff]  ;;  %v8710_v13 = vld [vmem:[#allocation4 + $0x450] sm:$0xff]  ;;  %1397 = vst.msk [vmem:[#allocation2 + $0x780] sm:$0xff] %vm131_vm0, %v1140_v53  ;;  %v1921_v31 = vsel %vm131_vm0, %v1499_v1, -inf }
 0x211   :  { %2297 = vmax.xlane.f32.xlu0 %v8552_v21  ;;  %v2151_v0 = vpop.xlane.xlu1 %2150  ;;  %v4041_v21 = vsel %vm3325_vm13, %v4040_v47, %v4036_v55  ;;  %v3326_v2 = vsel %vm3325_vm13, %v3324_v36, %v3319_v5  ;;  %v5894_v55 = vpack.c.bf16 %v8676_v52, %v8666_v63  ;;  %v485_v19 = vld [vmem:[%s10179_s0 + $0x308] sm:$0xff]  ;;  %v484_v5 = vld [vmem:[%s10179_s0 + $0x300] sm:$0xff]  ;;  %v6152_v63 = vpack.c.bf16 %v8699_v3, %v8693_v29  ;;  %v8746_v10 = vld [vmem:[#allocation4 + $0x4b0] sm:$0xff] }
 0x212   :  { %v2100_v37 = vpop.xlane.xlu0 %2099  ;;  %v4050_v30 = vrot.slane %v2151_v0, %v8495_v24  ;;  %v4046_v54 = vsel %vm3332_vm14, %v4045_v62, %v4041_v21  ;;  %v3333_v62 = vsel %vm3332_vm14, %v3331_v48, %v3326_v2  ;;  %v740_v21 = vld [vmem:[#allocation2 + $0x300] sm:$0xff]  ;;  %v8729_v48 = vld [vmem:[#allocation4 + $0x4a8] sm:$0xff] }
 0x213   :  { %v3966_v49 = vrot.slane %v2100_v37, %v8492_v59  ;;  %v2251_v37 = vsel %vm131_vm0, %v1609_v39, -inf  ;;  %v996_v9 = vmax.f32 %v740_v21, %v484_v5  ;;  %v8733_v52 = vld [vmem:[#allocation4 + $0x498] sm:$0xff]  ;;  %v8737_v40 = vld [vmem:[#allocation4 + $0x480] sm:$0xff]  ;;  %v1610_v2 = vld [vmem:[#allocation2 + $0x610] sm:$0xff] }
 0x214   :  { %1868 = vmax.xlane.f32.xlu1 %v8585_v14  ;;  %v4051_v22 = vsel %vm3339_vm15, %v4050_v30, %v4046_v54  ;;  %v8689_v14 = vld [vmem:[#allocation4 + $0x448] sm:$0xff]  ;;  %v8742_v33 = vld [vmem:[#allocation4 + $0x4a0] sm:$0xff]  ;;  %v8771_v3 = vld [vmem:[#allocation4 + $0x4f8] sm:$0xff] }
 0x215   :  { %1865 = vmax.xlane.f32.xlu0 %v1864_v27  ;;  %v2103_v28 = vpop.xlane.xlu1 %2102  ;;  %v4528_v7 = vsel %vm4526_vm8, %v4051_v22, %v3419_v51  ;;  %v8691_v27 = vld [vmem:[#allocation4 + $0x468] sm:$0xff]  ;;  %v3967_v57 = vsel %vm3332_vm14, %v3966_v49, %v3962_v45  ;;  %v997_v49 = vmax.f32 %v741_v34, %v485_v19  ;;  %v1627_v51 = vld [vmem:[#allocation2 + $0x698] sm:$0xff]  ;;  %v5898_v22 = vpack.c.bf16 %v8703_v46, %v8701_v8 }
 0x216   :  { %v1719_v6 = vpop.xlane.xlu0 %1718  ;;  %v3971_v47 = vrot.slane %v2103_v28, %v8495_v24  ;;  %4607 = vmatprep.mubr.f32.mxu0 %v4528_v7  ;;  %4891 = vmatprep.mubr.f32.mxu1 %v4528_v7  ;;  %v5896_v60 = vpack.c.bf16 %v8691_v27, %v8689_v14  ;;  %1253 = vst.msk [vmem:[#allocation2 + $0x300] sm:$0xff] %vm131_vm0, %v996_v9  ;;  %v8754_v28 = vld [vmem:[#allocation4 + $0x4c8] sm:$0xff]  ;;  %v8758_v7 = vld [vmem:[#allocation4 + $0x4d8] sm:$0xff]  ;;  %v8784_v19 = vld [vmem:[#allocation4 + $0x4f0] sm:$0xff] }
 0x217   :  { %v3338_v61 = vrot.slane %v1719_v6, %v8495_v24  ;;  %1254 = vst.msk [vmem:[#allocation2 + $0x308] sm:$0xff] %vm131_vm0, %v997_v49  ;;  %v8756_v6 = vld [vmem:[#allocation4 + $0x4e8] sm:$0xff]  ;;  %v612_v14 = vld [vmem:[%s10179_s0 + $0x700] sm:$0xff] }
 0x218   :  { %2249 = vmax.xlane.f32.xlu1 %v2248_v16  ;;  %v3972_v0 = vsel %vm3339_vm15, %v3971_v47, %v3967_v57  ;;  %v868_v27 = vld [vmem:[#allocation2 + $0x700] sm:$0xff]  ;;  %v502_v29 = vld [vmem:[%s10179_s0 + $0x390] sm:$0xff]  ;;  %v1870_v47 = vsel %vm131_vm0, %v1482_v58, -inf  ;;  %v869_v21 = vld [vmem:[#allocation2 + $0x708] sm:$0xff]  ;;  %v2305_v58 = vsel %vm131_vm0, %v1627_v51, -inf }
 0x219   :  { %1919 = vmax.xlane.f32.xlu0 %v1918_v11  ;;  %v3340_v36 = vsel %vm3339_vm15, %v3338_v61, %v3333_v62  ;;  %v1821_v18 = vpop.xlane.xlu1 %1820  ;;  %v6154_v11 = vpack.c.bf16 %v2582_v17, %v8710_v13  ;;  %v5900_v61 = vpack.c.bf16 %v8729_v48, %v8727_v41  ;;  %v1124_v8 = vmax.f32 %v868_v27, %v612_v14  ;;  %v758_v46 = vld [vmem:[#allocation2 + $0x390] sm:$0xff]  ;;  %v8805_v49 = vld [vmem:[#allocation4 + $0x518] sm:$0xff] }
 0x21a   :  { %v1818_v30 = vpop.xlane.xlu0 %1817  ;;  %v4527_v16 = vsel %vm4526_vm8, %v3972_v0, %v3340_v36  ;;  %v3506_v54 = vrot.slane %v1821_v18, %v8008_v32  ;;  %v630_v62 = vld [vmem:[%s10179_s0 + $0x790] sm:$0xff]  ;;  %v1014_v34 = vmax.f32 %v758_v46, %v502_v29  ;;  %v613_v0 = vld [vmem:[%s10179_s0 + $0x708] sm:$0xff]  ;;  %v6158_v17 = vpack.c.bf16 %v8746_v10, %v8744_v56  ;;  %v503_v18 = vld [vmem:[%s10179_s0 + $0x398] sm:$0xff] }
 0x21b   :  { %v3502_v39 = vrot.slane %v1818_v30, %v8003_v23  ;;  %4608 = vmatmul.mubr.f32.vlgmr.msra.gmra.mrb[0].mxu0 %v4527_v16  ;;  %4892 = vmatmul.mubr.f32.vlgmr.msra.gmra.mrb[0].mxu1 %v4527_v16  ;;  %v8782_v13 = vld [vmem:[#allocation4 + $0x4d0] sm:$0xff]  ;;  %1381 = vst.msk [vmem:[#allocation2 + $0x700] sm:$0xff] %vm131_vm0, %v1124_v8  ;;  %v8801_v41 = vld [vmem:[#allocation4 + $0x508] sm:$0xff]  ;;  %v8807_v9 = vld [vmem:[#allocation4 + $0x538] sm:$0xff]  ;;  %v6160_v56 = vpack.c.bf16 %v8771_v3, %v8758_v7 }
 0x21c   :  { %5895 = vmatpush1.bf16.msra.mxu0 %v5894_v55  ;;  %6151 = vmatpush1.bf16.msra.mxu1 %v6150_v12  ;;  %v8778_v55 = vld [vmem:[#allocation4 + $0x4c0] sm:$0xff]  ;;  %v886_v36 = vld [vmem:[#allocation2 + $0x790] sm:$0xff]  ;;  %v759_v30 = vld [vmem:[#allocation2 + $0x398] sm:$0xff]  ;;  %1271 = vst.msk [vmem:[#allocation2 + $0x390] sm:$0xff] %vm131_vm0, %v1014_v34  ;;  %v6162_v8 = vpack.c.bf16 %v8784_v19, %v8782_v13 }
 0x21d   :  { %v8751_v26 = vsel %vm3241_vm1, %v3506_v54, %v3502_v39  ;;  %2303 = vmax.xlane.f32.xlu1 %v2302_v4  ;;  %2252 = vmax.xlane.f32.xlu0 %v2251_v37  ;;  %v2205_v53 = vpop.xlane.xlu1 %2204  ;;  %v6156_v4 = vpack.c.bf16 %v8735_v20, %v8733_v52  ;;  %v8780_v12 = vld [vmem:[#allocation4 + $0x4e0] sm:$0xff]  ;;  %v1142_v5 = vmax.f32 %v886_v36, %v630_v62  ;;  %v8803_v48 = vld [vmem:[#allocation4 + $0x528] sm:$0xff]  ;;  %v487_v62 = vld [vmem:[%s10179_s0 + $0x318] sm:$0xff] }
 0x21e   :  { %v2202_v45 = vpop.xlane.xlu0 %2201  ;;  %5897 = vmatprep.subr.bf16.mxu0 %v5896_v60  ;;  %6153 = vmatprep.subr.bf16.mxu1 %v6152_v63  ;;  %v4138_v57 = vrot.slane %v2205_v53, %v8008_v32  ;;  %v1500_v37 = vld [vmem:[#allocation2 + $0x2a0] sm:$0xff]  ;;  %v5902_v60 = vpack.c.bf16 %v8742_v33, %v8737_v40  ;;  %v1483_v63 = vld [vmem:[#allocation2 + $0x218] sm:$0xff]  ;;  %v1125_v54 = vmax.f32 %v869_v21, %v613_v0  ;;  %v486_v52 = vld [vmem:[%s10179_s0 + $0x310] sm:$0xff] }
 0x21f   :  { %v4134_v1 = vrot.slane %v2202_v45, %v8003_v23  ;;  %v1015_v39 = vmax.f32 %v759_v30, %v503_v18  ;;  %v742_v20 = vld [vmem:[#allocation2 + $0x310] sm:$0xff]  ;;  %v631_v40 = vld [vmem:[%s10179_s0 + $0x798] sm:$0xff]  ;;  %v5904_v33 = vpack.c.bf16 %v8756_v6, %v8754_v28  ;;  %1399 = vst.msk [vmem:[#allocation2 + $0x790] sm:$0xff] %vm131_vm0, %v1142_v5  ;;  %v8827_v53 = vld [vmem:[#allocation4 + $0x500] sm:$0xff]  ;;  %v5906_v3 = vpack.c.bf16 %v8780_v12, %v8778_v55 }
 0x220   :  { %5899 = vmatpush1.bf16.msra.mxu0 %v5898_v22  ;;  %6155 = vmatpush1.bf16.msra.mxu1 %v6154_v11  ;;  %v2254_v11 = vsel %vm131_vm0, %v1610_v2, -inf  ;;  %v998_v10 = vmax.f32 %v742_v20, %v486_v52  ;;  %v614_v14 = vld [vmem:[%s10179_s0 + $0x710] sm:$0xff]  ;;  %v8829_v45 = vld [vmem:[#allocation4 + $0x520] sm:$0xff]  ;;  %1382 = vst.msk [vmem:[#allocation2 + $0x708] sm:$0xff] %vm131_vm0, %v1125_v54  ;;  %v1924_v34 = vsel %vm131_vm0, %v1500_v37, -inf  ;;  %v1611_v36 = vld [vmem:[#allocation2 + $0x618] sm:$0xff]  ;;  %v6164_v54 = vpack.c.bf16 %v8807_v9, %v8805_v49 }
 0x221   :  { %v8798_v16 = vsel %vm3241_vm1, %v4138_v57, %v4134_v1  ;;  %1922 = vmax.xlane.f32.xlu1 %v1921_v31  ;;  %1871 = vmax.xlane.f32.xlu0 %v1870_v47  ;;  %v1773_v51 = vpop.xlane.xlu1 %1772  ;;  %v887_v31 = vld [vmem:[#allocation2 + $0x798] sm:$0xff]  ;;  %v870_v27 = vld [vmem:[#allocation2 + $0x710] sm:$0xff]  ;;  %1272 = vst.msk [vmem:[#allocation2 + $0x398] sm:$0xff] %vm131_vm0, %v1015_v39  ;;  %v760_v46 = vld [vmem:[#allocation2 + $0x3a0] sm:$0xff]  ;;  %v1873_v30 = vsel %vm131_vm0, %v1483_v63, -inf }
 0x222   :  { %v1770_v22 = vpop.xlane.xlu0 %1769  ;;  %5901 = vmatprep.subr.bf16.mxu0 %v5900_v61  ;;  %6157 = vmatprep.subr.bf16.mxu1 %v6156_v4  ;;  %v3427_v29 = vrot.slane %v1773_v51, %v8008_v32  ;;  %v8831_v28 = vld [vmem:[#allocation4 + $0x510] sm:$0xff]  ;;  %v1143_v7 = vmax.f32 %v887_v31, %v631_v40  ;;  %v1126_v47 = vmax.f32 %v870_v27, %v614_v14  ;;  %v504_v61 = vld [vmem:[%s10179_s0 + $0x3a0] sm:$0xff]  ;;  %v8852_v55 = vld [vmem:[#allocation4 + $0x548] sm:$0xff] }
 0x223   :  { %v3423_v2 = vrot.slane %v1770_v22, %v8003_v23  ;;  %v8833_v6 = vld [vmem:[#allocation4 + $0x530] sm:$0xff]  ;;  %v1628_v4 = vld [vmem:[#allocation2 + $0x6a0] sm:$0xff]  ;;  %1255 = vst.msk [vmem:[#allocation2 + $0x310] sm:$0xff] %vm131_vm0, %v998_v10  ;;  %v8854_v12 = vld [vmem:[#allocation4 + $0x568] sm:$0xff]  ;;  %v1016_v0 = vmax.f32 %v760_v46, %v504_v61 }
 0x224   :  { %5903 = vmatpush1.bf16.msra.mxu0 %v5902_v60  ;;  %6159 = vmatpush1.bf16.msra.mxu1 %v6158_v17  ;;  %v743_v57 = vld [vmem:[#allocation2 + $0x318] sm:$0xff]  ;;  %1400 = vst.msk [vmem:[#allocation2 + $0x798] sm:$0xff] %vm131_vm0, %v1143_v7  ;;  %1383 = vst.msk [vmem:[#allocation2 + $0x710] sm:$0xff] %vm131_vm0, %v1126_v47  ;;  %v632_v17 = vld [vmem:[%s10179_s0 + $0x7a0] sm:$0xff]  ;;  %v5912_v61 = vpack.c.bf16 %v8854_v12, %v8852_v55 }
 0x225   :  { %v8849_v1 = vsel %vm3241_vm1, %v3427_v29, %v3423_v2  ;;  %2306 = vmax.xlane.f32.xlu1 %v2305_v58  ;;  %2255 = vmax.xlane.f32.xlu0 %v2254_v11  ;;  %v8856_v13 = vld [vmem:[#allocation4 + $0x558] sm:$0xff]  ;;  %v999_v60 = vmax.f32 %v743_v57, %v487_v62  ;;  %v8868_v21 = vpop.xlane.xlu1 %2153  ;;  %v5908_v58 = vpack.c.bf16 %v8803_v48, %v8801_v41  ;;  %v505_v20 = vld [vmem:[%s10179_s0 + $0x3a8] sm:$0xff]  ;;  %v8892_v31 = vld [vmem:[#allocation4 + $0x550] sm:$0xff]  ;;  %v2308_v2 = vsel %vm131_vm0, %v1628_v4, -inf }
 0x226   :  { %v8858_v19 = vld [vmem:[#allocation4 + $0x578] sm:$0xff]  ;;  %v1824_v18 = vpop.xlane.xlu0 %1823  ;;  %5905 = vmatprep.subr.bf16.mxu0 %v5904_v33  ;;  %6161 = vmatprep.subr.bf16.mxu1 %v6160_v56  ;;  %v761_v40 = vld [vmem:[#allocation2 + $0x3a8] sm:$0xff]  ;;  %1273 = vst.msk [vmem:[#allocation2 + $0x3a0] sm:$0xff] %vm131_vm0, %v1016_v0  ;;  %v5910_v33 = vpack.c.bf16 %v8829_v45, %v8827_v53  ;;  %v6166_v56 = vpack.c.bf16 %v8833_v6, %v8831_v28  ;;  %v8894_v14 = vld [vmem:[#allocation4 + $0x570] sm:$0xff] }
 0x227   :  { %v888_v37 = vld [vmem:[#allocation2 + $0x7a0] sm:$0xff]  ;;  %v615_v5 = vld [vmem:[%s10179_s0 + $0x718] sm:$0xff]  ;;  %1256 = vst.msk [vmem:[#allocation2 + $0x318] sm:$0xff] %vm131_vm0, %v999_v60  ;;  %v1017_v41 = vmax.f32 %v761_v40, %v505_v20  ;;  %v1501_v9 = vld [vmem:[#allocation2 + $0x2a8] sm:$0xff]  ;;  %v6168_v4 = vpack.c.bf16 %v8858_v19, %v8856_v13  ;;  %v4055_v57 = vrot.slane %v8868_v21, %v8003_v23  ;;  %v6170_v60 = vpack.c.bf16 %v8894_v14, %v8892_v31 }
 0x228   :  { %v1144_v39 = vmax.f32 %v888_v37, %v632_v17  ;;  %v871_v52 = vld [vmem:[#allocation2 + $0x718] sm:$0xff]  ;;  %v8879_v11 = vld [vmem:[#allocation4 + $0x540] sm:$0xff]  ;;  %5907 = vmatpush1.bf16.msra.mxu0 %v5906_v3  ;;  %6163 = vmatpush1.bf16.msra.mxu1 %v6162_v8  ;;  %v8902_v45 = vld [vmem:[#allocation4 + $0x588] sm:$0xff] }
 0x229   :  { %v10215_v51 = vld [vmem:[#allocation20_spill] sm:$0xff]  ;;  %v1127_v63 = vmax.f32 %v871_v52, %v615_v5  ;;  %v488_v48 = vld [vmem:[%s10179_s0 + $0x320] sm:$0xff]  ;;  %1925 = vmax.xlane.f32.xlu1 %v1924_v34  ;;  %1874 = vmax.xlane.f32.xlu0 %v1873_v30  ;;  %1274 = vst.msk [vmem:[#allocation2 + $0x3a8] sm:$0xff] %vm131_vm0, %v1017_v41  ;;  %v633_v28 = vld [vmem:[%s10179_s0 + $0x7a8] sm:$0xff]  ;;  %v2208_v7 = vpop.xlane.xlu1 %2207 }
 0x22a   :  { %v3511_v22 = vrot.slane %v1824_v18, %v10215_v51  ;;  %v744_v49 = vld [vmem:[#allocation2 + $0x320] sm:$0xff]  ;;  %1401 = vst.msk [vmem:[#allocation2 + $0x7a0] sm:$0xff] %vm131_vm0, %v1144_v39  ;;  %v889_v6 = vld [vmem:[#allocation2 + $0x7a8] sm:$0xff]  ;;  %v2157_v47 = vpop.xlane.xlu0 %2156  ;;  %5909 = vmatprep.subr.bf16.mxu0 %v5908_v58  ;;  %6165 = vmatprep.subr.bf16.mxu1 %v6164_v54  ;;  %v4143_v34 = vrot.slane %v2208_v7, %v10215_v51  ;;  %v8934_v37 = vld [vmem:[#allocation4 + $0x590] sm:$0xff]  ;;  %v1927_v58 = vsel %vm131_vm0, %v1501_v9, -inf }
 0x22b   :  { %v8890_v10 = vld [vmem:[#allocation4 + $0x560] sm:$0xff]  ;;  %v1000_v27 = vmax.f32 %v744_v49, %v488_v48  ;;  %1384 = vst.msk [vmem:[#allocation2 + $0x718] sm:$0xff] %vm131_vm0, %v1127_v63  ;;  %v8914_v3 = vld [vmem:[#allocation4 + $0x5a8] sm:$0xff]  ;;  %v8916_v8 = vld [vmem:[#allocation4 + $0x598] sm:$0xff]  ;;  %v1145_v46 = vmax.f32 %v889_v6, %v633_v28 }
 0x22c   :  { %v8899_v29 = vsel %vm3248_vm2, %v3511_v22, %v8751_v26  ;;  %v1484_v53 = vld [vmem:[#allocation2 + $0x220] sm:$0xff]  ;;  %v2257_v26 = vsel %vm131_vm0, %v1611_v36, -inf  ;;  %v4059_v36 = vrot.slane %v2157_v47, %v8008_v32  ;;  %v1629_v19 = vld [vmem:[#allocation2 + $0x6a8] sm:$0xff]  ;;  %5911 = vmatpush1.bf16.msra.mxu0 %v5910_v33  ;;  %6167 = vmatpush1.bf16.msra.mxu1 %v6166_v56  ;;  %v5914_v0 = vpack.c.bf16 %v8890_v10, %v8879_v11  ;;  %v8936_v5 = vld [vmem:[#allocation4 + $0x5b0] sm:$0xff] }
 0x22d   :  { %1257 = vst.msk [vmem:[#allocation2 + $0x320] sm:$0xff] %vm131_vm0, %v1000_v27  ;;  %v616_v62 = vld [vmem:[%s10179_s0 + $0x720] sm:$0xff]  ;;  %1402 = vst.msk [vmem:[#allocation2 + $0x7a8] sm:$0xff] %vm131_vm0, %v1145_v46  ;;  %v8941_v18 = vsel %vm3248_vm2, %v4143_v34, %v8798_v16  ;;  %2309 = vmax.xlane.f32.xlu1 %v2308_v2  ;;  %2258 = vmax.xlane.f32.xlu0 %v2257_v26  ;;  %v506_v39 = vld [vmem:[%s10179_s0 + $0x3b0] sm:$0xff]  ;;  %v1827_v40 = vpop.xlane.xlu1 %1826  ;;  %v1876_v22 = vsel %vm131_vm0, %v1484_v53, -inf  ;;  %v5916_v11 = vpack.c.bf16 %v8914_v3, %v8902_v45 }
 0x22e   :  { %v2623_v55 = vld [vmem:[#allocation4 + $0x5b8] sm:$0xff]  ;;  %v8926_v12 = vld [vmem:[#allocation4 + $0x580] sm:$0xff]  ;;  %v8944_v30 = vsel %vm3241_vm1, %v4059_v36, %v4055_v57  ;;  %v762_v52 = vld [vmem:[#allocation2 + $0x3b0] sm:$0xff]  ;;  %v1776_v16 = vpop.xlane.xlu0 %1775  ;;  %5913 = vmatprep.subr.bf16.mxu0 %v5912_v61  ;;  %6169 = vmatprep.subr.bf16.mxu1 %v6168_v4  ;;  %v6174_v45 = vpack.c.bf16 %v8936_v5, %v8934_v37  ;;  %v2311_v4 = vsel %vm131_vm0, %v1629_v19, -inf }
 0x22f   :  { %v872_v13 = vld [vmem:[#allocation2 + $0x720] sm:$0xff]  ;;  %v489_v20 = vld [vmem:[%s10179_s0 + $0x328] sm:$0xff]  ;;  %v6172_v63 = vpack.c.bf16 %v2623_v55, %v8916_v8  ;;  %v1018_v49 = vmax.f32 %v762_v52, %v506_v39  ;;  %v3432_v10 = vrot.slane %v1776_v16, %v10215_v51  ;;  %v1502_v2 = vld [vmem:[#allocation2 + $0x2b0] sm:$0xff] }
 0x230   :  { %v8932_v17 = vld [vmem:[#allocation4 + $0x5a0] sm:$0xff]  ;;  %v1128_v21 = vmax.f32 %v872_v13, %v616_v62  ;;  %v8957_v41 = vld [vmem:[#allocation4 + $0x5c8] sm:$0xff]  ;;  %v8964_v31 = vld [vmem:[#allocation4 + $0x5d8] sm:$0xff]  ;;  %5915 = vmatpush1.bf16.msra.mxu0 %v5914_v0  ;;  %6171 = vmatpush1.bf16.msra.mxu1 %v6170_v60 }
 0x231   :  { %v1612_v54 = vld [vmem:[#allocation2 + $0x620] sm:$0xff]  ;;  %v8959_v48 = vld [vmem:[#allocation4 + $0x5e8] sm:$0xff]  ;;  %v5918_v53 = vpack.c.bf16 %v8932_v17, %v8926_v12  ;;  %v8974_v6 = vld [vmem:[#allocation4 + $0x5d0] sm:$0xff]  ;;  %1275 = vst.msk [vmem:[#allocation2 + $0x3b0] sm:$0xff] %vm131_vm0, %v1018_v49  ;;  %v8985_v61 = vsel %vm3248_vm2, %v3432_v10, %v8849_v1  ;;  %1928 = vmax.xlane.f32.xlu1 %v1927_v58  ;;  %1877 = vmax.xlane.f32.xlu0 %v1876_v22  ;;  %v2211_v57 = vpop.xlane.xlu1 %2210 }
 0x232   :  { %1385 = vst.msk [vmem:[#allocation2 + $0x720] sm:$0xff] %vm131_vm0, %v1128_v21  ;;  %v745_v9 = vld [vmem:[#allocation2 + $0x328] sm:$0xff]  ;;  %v10216_v33 = vld [vmem:[#allocation21_spill] sm:$0xff]  ;;  %v8976_v7 = vld [vmem:[#allocation4 + $0x5f0] sm:$0xff]  ;;  %v2160_v34 = vpop.xlane.xlu0 %2159  ;;  %5917 = vmatprep.subr.bf16.mxu0 %v5916_v11  ;;  %6173 = vmatprep.subr.bf16.mxu1 %v6172_v63  ;;  %v5920_v1 = vpack.c.bf16 %v8959_v48, %v8957_v41  ;;  %v1930_v11 = vsel %vm131_vm0, %v1502_v2, -inf }
 0x233   :  { %v3516_v56 = vrot.slane %v1827_v40, %v10216_v33  ;;  %v2631_v14 = vld [vmem:[#allocation4 + $0x5f8] sm:$0xff]  ;;  %v8966_v27 = vld [vmem:[#allocation4 + $0x5c0] sm:$0xff]  ;;  %v1001_v47 = vmax.f32 %v745_v9, %v489_v20  ;;  %v8988_v8 = vld [vmem:[#allocation4 + $0x608] sm:$0xff]  ;;  %v4148_v0 = vrot.slane %v2211_v57, %v10216_v33  ;;  %v4064_v60 = vrot.slane %v2160_v34, %v10215_v51 }
 0x234   :  { %v8972_v28 = vld [vmem:[#allocation4 + $0x5e0] sm:$0xff]  ;;  %v634_v46 = vld [vmem:[%s10179_s0 + $0x7b0] sm:$0xff]  ;;  %v6176_v36 = vpack.c.bf16 %v2631_v14, %v8964_v31  ;;  %v9005_v17 = vld [vmem:[#allocation4 + $0x618] sm:$0xff]  ;;  %5919 = vmatpush1.bf16.msra.mxu0 %v5918_v53  ;;  %6175 = vmatpush1.bf16.msra.mxu1 %v6174_v45  ;;  %v6178_v39 = vpack.c.bf16 %v8976_v7, %v8974_v6 }
 0x235   :  { %v8981_v26 = vsel %vm3255_vm3, %v3516_v56, %v8899_v29  ;;  %v1485_v3 = vld [vmem:[#allocation2 + $0x228] sm:$0xff]  ;;  %v890_v62 = vld [vmem:[#allocation2 + $0x7b0] sm:$0xff]  ;;  %v2260_v29 = vsel %vm131_vm0, %v1612_v54, -inf  ;;  %1258 = vst.msk [vmem:[#allocation2 + $0x328] sm:$0xff] %vm131_vm0, %v1001_v47  ;;  %v2639_v37 = vld [vmem:[#allocation4 + $0x638] sm:$0xff]  ;;  %v5922_v54 = vpack.c.bf16 %v8972_v28, %v8966_v27  ;;  %v9022_v16 = vsel %vm3255_vm3, %v4148_v0, %v8941_v18  ;;  %2312 = vmax.xlane.f32.xlu1 %v2311_v4  ;;  %v1830_v18 = vpop.xlane.xlu1 %1829 }
 0x236   :  { %v8997_v55 = vld [vmem:[#allocation4 + $0x628] sm:$0xff]  ;;  %v1146_v12 = vmax.f32 %v890_v62, %v634_v46  ;;  %v9007_v5 = vld [vmem:[#allocation4 + $0x600] sm:$0xff]  ;;  %v9015_v20 = vld [vmem:[#allocation4 + $0x610] sm:$0xff]  ;;  %v9026_v22 = vsel %vm3248_vm2, %v4064_v60, %v8944_v30  ;;  %2261 = vmax.xlane.f32.xlu0 %v2260_v29  ;;  %v1779_v9 = vpop.xlane.xlu0 %1778  ;;  %v1879_v56 = vsel %vm131_vm0, %v1485_v3, -inf  ;;  %5921 = vmatprep.subr.bf16.mxu0 %v5920_v1  ;;  %v6180_v10 = vpack.c.bf16 %v2639_v37, %v9005_v17 }
 0x237   :  { %v617_v13 = vld [vmem:[%s10179_s0 + $0x728] sm:$0xff]  ;;  %v1630_v58 = vld [vmem:[#allocation2 + $0x6b0] sm:$0xff]  ;;  %v507_v48 = vld [vmem:[%s10179_s0 + $0x3b8] sm:$0xff]  ;;  %6177 = vmatprep.subr.bf16.mxu1 %v6176_v36  ;;  %v5924_v30 = vpack.c.bf16 %v8997_v55, %v8988_v8  ;;  %v3437_v28 = vrot.slane %v1779_v9, %v10216_v33 }
 0x238   :  { %v873_v19 = vld [vmem:[#allocation2 + $0x728] sm:$0xff]  ;;  %v9017_v40 = vld [vmem:[#allocation4 + $0x630] sm:$0xff]  ;;  %1403 = vst.msk [vmem:[#allocation2 + $0x7b0] sm:$0xff] %vm131_vm0, %v1146_v12  ;;  %v9046_v6 = vld [vmem:[#allocation4 + $0x658] sm:$0xff]  ;;  %5923 = vmatpush1.bf16.msra.mxu0 %v5922_v54  ;;  %6179 = vmatpush1.bf16.msra.mxu1 %v6178_v39  ;;  %v2314_v36 = vsel %vm131_vm0, %v1630_v58, -inf }
 0x239   :  { %v1129_v21 = vmax.f32 %v873_v19, %v617_v13  ;;  %v9013_v52 = vld [vmem:[#allocation4 + $0x620] sm:$0xff]  ;;  %v9029_v41 = vld [vmem:[#allocation4 + $0x648] sm:$0xff]  ;;  %v763_v49 = vld [vmem:[#allocation2 + $0x3b8] sm:$0xff]  ;;  %v6182_v46 = vpack.c.bf16 %v9017_v40, %v9015_v20  ;;  %v9067_v1 = vsel %vm3255_vm3, %v3437_v28, %v8985_v61  ;;  %1931 = vmax.xlane.f32.xlu1 %v1930_v11  ;;  %5925 = vmatprep.subr.bf16.mxu0 %v5924_v30 }
 0x23a   :  { %v1613_v63 = vld [vmem:[#allocation2 + $0x628] sm:$0xff]  ;;  %v1019_v14 = vmax.f32 %v763_v49, %v507_v48  ;;  %v490_v27 = vld [vmem:[%s10179_s0 + $0x330] sm:$0xff]  ;;  %v2647_v7 = vld [vmem:[#allocation4 + $0x678] sm:$0xff]  ;;  %v5926_v8 = vpack.c.bf16 %v9013_v52, %v9007_v5  ;;  %1880 = vmax.xlane.f32.xlu0 %v1879_v56  ;;  %v2163_v0 = vpop.xlane.xlu0 %2162  ;;  %6181 = vmatprep.subr.bf16.mxu1 %v6180_v10 }
 0x23b   :  { %1386 = vst.msk [vmem:[#allocation2 + $0x728] sm:$0xff] %vm131_vm0, %v1129_v21  ;;  %v9039_v31 = vld [vmem:[#allocation4 + $0x668] sm:$0xff]  ;;  %v9048_v47 = vld [vmem:[#allocation4 + $0x640] sm:$0xff]  ;;  %v1503_v3 = vld [vmem:[#allocation2 + $0x2b8] sm:$0xff]  ;;  %v2263_v60 = vsel %vm131_vm0, %v1613_v63, -inf  ;;  %v6184_v17 = vpack.c.bf16 %v2647_v7, %v9046_v6  ;;  %v4069_v39 = vrot.slane %v2163_v0, %v10216_v33 }
 0x23c   :  { %v746_v2 = vld [vmem:[#allocation2 + $0x330] sm:$0xff]  ;;  %v10217_v53 = vld [vmem:[#allocation22_spill] sm:$0xff]  ;;  %1276 = vst.msk [vmem:[#allocation2 + $0x3b8] sm:$0xff] %vm131_vm0, %v1019_v14  ;;  %v635_v13 = vld [vmem:[%s10179_s0 + $0x7b8] sm:$0xff]  ;;  %v5928_v61 = vpack.c.bf16 %v9039_v31, %v9029_v41  ;;  %5927 = vmatpush1.bf16.msra.mxu0 %v5926_v8  ;;  %6183 = vmatpush1.bf16.msra.mxu1 %v6182_v46  ;;  %v1933_v10 = vsel %vm131_vm0, %v1503_v3, -inf }
 0x23d   :  { %v3521_v45 = vrot.slane %v1830_v18, %v10217_v53  ;;  %v1002_v4 = vmax.f32 %v746_v2, %v490_v27  ;;  %v9054_v62 = vld [vmem:[#allocation4 + $0x660] sm:$0xff]  ;;  %v9056_v57 = vld [vmem:[#allocation4 + $0x650] sm:$0xff]  ;;  %v9070_v12 = vld [vmem:[#allocation4 + $0x688] sm:$0xff]  ;;  %v9108_v30 = vsel %vm3255_vm3, %v4069_v39, %v9026_v22  ;;  %2315 = vmax.xlane.f32.xlu1 %v2314_v36  ;;  %6185 = vmatprep.subr.bf16.mxu1 %v6184_v17 }
 0x23e   :  { %v9058_v34 = vld [vmem:[#allocation4 + $0x670] sm:$0xff]  ;;  %v9080_v37 = vld [vmem:[#allocation4 + $0x6a8] sm:$0xff]  ;;  %v9087_v52 = vld [vmem:[#allocation4 + $0x698] sm:$0xff]  ;;  %v5930_v41 = vpack.c.bf16 %v9054_v62, %v9048_v47  ;;  %2264 = vmax.xlane.f32.xlu0 %v2263_v60  ;;  %5929 = vmatprep.subr.bf16.mxu0 %v5928_v61 }
 0x23f   :  { %v9063_v29 = vsel %vm3262_vm4, %v3521_v45, %v8981_v26  ;;  %v1486_v55 = vld [vmem:[#allocation2 + $0x230] sm:$0xff]  ;;  %1259 = vst.msk [vmem:[#allocation2 + $0x330] sm:$0xff] %vm131_vm0, %v1002_v4  ;;  %v891_v19 = vld [vmem:[#allocation2 + $0x7b8] sm:$0xff]  ;;  %v2214_v26 = vpop.xlane.xlu1 %2213  ;;  %v9089_v40 = vld [vmem:[#allocation4 + $0x680] sm:$0xff]  ;;  %v6186_v48 = vpack.c.bf16 %v9058_v34, %v9056_v57  ;;  %v1782_v45 = vpop.xlane.xlu0 %1781  ;;  %v5932_v28 = vpack.c.bf16 %v9080_v37, %v9070_v12 }
 0x240   :  { %v1147_v5 = vmax.f32 %v891_v19, %v635_v13  ;;  %v618_v21 = vld [vmem:[%s10179_s0 + $0x730] sm:$0xff]  ;;  %v4153_v54 = vrot.slane %v2214_v26, %v10217_v53  ;;  %v2655_v20 = vld [vmem:[#allocation4 + $0x6b8] sm:$0xff]  ;;  %v9095_v49 = vld [vmem:[#allocation4 + $0x6a0] sm:$0xff]  ;;  %v1882_v22 = vsel %vm131_vm0, %v1486_v55, -inf  ;;  %v3442_v62 = vrot.slane %v1782_v45, %v10217_v53  ;;  %5931 = vmatpush1.bf16.msra.mxu0 %v5930_v41 }
 0x241   :  { %v874_v58 = vld [vmem:[#allocation2 + $0x730] sm:$0xff]  ;;  %v1631_v63 = vld [vmem:[#allocation2 + $0x6b8] sm:$0xff]  ;;  %v508_v14 = vld [vmem:[%s10179_s0 + $0x3c0] sm:$0xff]  ;;  %v6188_v6 = vpack.c.bf16 %v2655_v20, %v9087_v52  ;;  %6187 = vmatpush1.bf16.msra.mxu1 %v6186_v48  ;;  %v5934_v12 = vpack.c.bf16 %v9095_v49, %v9089_v40  ;;  %1934 = vmax.xlane.f32.xlu1 %v1933_v10 }
 0x242   :  { %v1130_v11 = vmax.f32 %v874_v58, %v618_v21  ;;  %v9097_v18 = vld [vmem:[#allocation4 + $0x690] sm:$0xff]  ;;  %1404 = vst.msk [vmem:[#allocation2 + $0x7b8] sm:$0xff] %vm131_vm0, %v1147_v5  ;;  %v9104_v56 = vsel %vm3262_vm4, %v4153_v54, %v9022_v16  ;;  %v764_v27 = vld [vmem:[#allocation2 + $0x3c0] sm:$0xff]  ;;  %v9122_v7 = vld [vmem:[#allocation4 + $0x6c8] sm:$0xff]  ;;  %v9149_v17 = vsel %vm3262_vm4, %v3442_v62, %v9067_v1  ;;  %1883 = vmax.xlane.f32.xlu0 %v1882_v22  ;;  %v2317_v37 = vsel %vm131_vm0, %v1631_v63, -inf }
 0x243   :  { %v9099_v9 = vld [vmem:[#allocation4 + $0x6b0] sm:$0xff]  ;;  %v1833_v2 = vpop.xlane.xlu1 %1832  ;;  %v9124_v47 = vld [vmem:[#allocation4 + $0x6e8] sm:$0xff]  ;;  %v1020_v4 = vmax.f32 %v764_v27, %v508_v14  ;;  %v9128_v57 = vld [vmem:[#allocation4 + $0x6d8] sm:$0xff]  ;;  %v2166_v39 = vpop.xlane.xlu0 %2165  ;;  %5933 = vmatprep.subr.bf16.mxu0 %v5932_v28  ;;  %6189 = vmatprep.subr.bf16.mxu1 %v6188_v6 }
 0x244   :  { %v1614_v31 = vld [vmem:[#allocation2 + $0x630] sm:$0xff]  ;;  %1387 = vst.msk [vmem:[#allocation2 + $0x730] sm:$0xff] %vm131_vm0, %v1130_v11  ;;  %v491_v16 = vld [vmem:[%s10179_s0 + $0x338] sm:$0xff]  ;;  %v9130_v36 = vld [vmem:[#allocation4 + $0x6c0] sm:$0xff]  ;;  %v6190_v19 = vpack.c.bf16 %v9099_v9, %v9097_v18  ;;  %v5936_v52 = vpack.c.bf16 %v9124_v47, %v9122_v7  ;;  %v4074_v49 = vrot.slane %v2166_v39, %v10217_v53  ;;  %5935 = vmatpush1.bf16.msra.mxu0 %v5934_v12 }
 0x245   :  { %v747_v3 = vld [vmem:[#allocation2 + $0x338] sm:$0xff]  ;;  %v10218_v8 = vld [vmem:[#allocation23_spill] sm:$0xff]  ;;  %v1504_v13 = vld [vmem:[#allocation2 + $0x2c0] sm:$0xff]  ;;  %1277 = vst.msk [vmem:[#allocation2 + $0x3c0] sm:$0xff] %vm131_vm0, %v1020_v4  ;;  %v2266_v1 = vsel %vm131_vm0, %v1614_v31, -inf  ;;  %2318 = vmax.xlane.f32.xlu1 %v2317_v37 }
 0x246   :  { %v3526_v46 = vrot.slane %v1833_v2, %v10218_v8  ;;  %v2663_v34 = vld [vmem:[#allocation4 + $0x6f8] sm:$0xff]  ;;  %v1003_v55 = vmax.f32 %v747_v3, %v491_v16  ;;  %v9136_v26 = vld [vmem:[#allocation4 + $0x6e0] sm:$0xff]  ;;  %v9138_v0 = vld [vmem:[#allocation4 + $0x6d0] sm:$0xff]  ;;  %6191 = vmatpush1.bf16.msra.mxu1 %v6190_v19  ;;  %v9190_v6 = vsel %vm3262_vm4, %v4074_v49, %v9108_v30  ;;  %2267 = vmax.xlane.f32.xlu0 %v2266_v1  ;;  %v1936_v7 = vsel %vm131_vm0, %v1504_v13, -inf }
 0x247   :  { %v9140_v60 = vld [vmem:[#allocation4 + $0x6f0] sm:$0xff]  ;;  %v636_v21 = vld [vmem:[%s10179_s0 + $0x7c0] sm:$0xff]  ;;  %v2217_v54 = vpop.xlane.xlu1 %2216  ;;  %v6192_v20 = vpack.c.bf16 %v2663_v34, %v9128_v57  ;;  %v9163_v40 = vld [vmem:[#allocation4 + $0x708] sm:$0xff]  ;;  %v5938_v27 = vpack.c.bf16 %v9136_v26, %v9130_v36  ;;  %v1785_v62 = vpop.xlane.xlu0 %1784  ;;  %5937 = vmatprep.subr.bf16.mxu0 %v5936_v52 }
 0x248   :  { %v9145_v61 = vsel %vm10207_vm5, %v3526_v46, %v9063_v29  ;;  %v1487_v5 = vld [vmem:[#allocation2 + $0x238] sm:$0xff]  ;;  %1260 = vst.msk [vmem:[#allocation2 + $0x338] sm:$0xff] %vm131_vm0, %v1003_v55  ;;  %v892_v58 = vld [vmem:[#allocation2 + $0x7c0] sm:$0xff]  ;;  %v9165_v11 = vld [vmem:[#allocation4 + $0x728] sm:$0xff]  ;;  %v4158_v48 = vrot.slane %v2217_v54, %v10218_v8  ;;  %v6194_v16 = vpack.c.bf16 %v9140_v60, %v9138_v0  ;;  %v3447_v26 = vrot.slane %v1785_v62, %v10218_v8 }
 0x249   :  { %v619_v29 = vld [vmem:[%s10179_s0 + $0x738] sm:$0xff]  ;;  %v1148_v63 = vmax.f32 %v892_v58, %v636_v21  ;;  %v9171_v10 = vld [vmem:[#allocation4 + $0x700] sm:$0xff]  ;;  %v1885_v30 = vsel %vm131_vm0, %v1487_v5, -inf  ;;  %6193 = vmatprep.subr.bf16.mxu1 %v6192_v20  ;;  %v5940_v57 = vpack.c.bf16 %v9165_v11, %v9163_v40  ;;  %v9204_v36 = vld [vmem:[#allocation4 + $0x748] sm:$0xff]  ;;  %5939 = vmatpush1.bf16.msra.mxu0 %v5938_v27 }
 0x24a   :  { %v875_v41 = vld [vmem:[#allocation2 + $0x738] sm:$0xff]  ;;  %v1632_v14 = vld [vmem:[#allocation2 + $0x6c0] sm:$0xff]  ;;  %v9186_v28 = vsel %vm10207_vm5, %v4158_v48, %v9104_v56  ;;  %v509_v4 = vld [vmem:[%s10179_s0 + $0x3c8] sm:$0xff]  ;;  %6195 = vmatpush1.bf16.msra.mxu1 %v6194_v16  ;;  %v9227_v20 = vsel %vm10207_vm5, %v3447_v26, %v9149_v17  ;;  %1937 = vmax.xlane.f32.xlu1 %v1936_v7 }
 0x24b   :  { %v9169_v18 = vld [vmem:[#allocation4 + $0x718] sm:$0xff]  ;;  %v1131_v31 = vmax.f32 %v875_v41, %v619_v29  ;;  %v9177_v2 = vld [vmem:[#allocation4 + $0x720] sm:$0xff]  ;;  %v9179_v45 = vld [vmem:[#allocation4 + $0x710] sm:$0xff]  ;;  %1405 = vst.msk [vmem:[#allocation2 + $0x7c0] sm:$0xff] %vm131_vm0, %v1148_v63  ;;  %v1836_v46 = vpop.xlane.xlu1 %1835  ;;  %1886 = vmax.xlane.f32.xlu0 %v1885_v30  ;;  %v2320_v40 = vsel %vm131_vm0, %v1632_v14, -inf  ;;  %v2169_v17 = vpop.xlane.xlu0 %2168  ;;  %5941 = vmatprep.subr.bf16.mxu0 %v5940_v57 }
 0x24c   :  { %v2671_v9 = vld [vmem:[#allocation4 + $0x738] sm:$0xff]  ;;  %v9181_v22 = vld [vmem:[#allocation4 + $0x730] sm:$0xff]  ;;  %v765_v3 = vld [vmem:[#allocation2 + $0x3c8] sm:$0xff]  ;;  %v3531_v19 = vrot.slane %v1836_v46, %v8235_v50  ;;  %v5942_v58 = vpack.c.bf16 %v9177_v2, %v9171_v10  ;;  %v4079_v16 = vrot.slane %v2169_v17, %v10218_v8 }
 0x24d   :  { %v1615_v47 = vld [vmem:[#allocation2 + $0x638] sm:$0xff]  ;;  %1388 = vst.msk [vmem:[#allocation2 + $0x738] sm:$0xff] %vm131_vm0, %v1131_v31  ;;  %v492_v56 = vld [vmem:[%s10179_s0 + $0x340] sm:$0xff]  ;;  %v6196_v34 = vpack.c.bf16 %v2671_v9, %v9169_v18  ;;  %v9206_v55 = vld [vmem:[#allocation4 + $0x768] sm:$0xff]  ;;  %v1021_v13 = vmax.f32 %v765_v3, %v509_v4  ;;  %v6198_v29 = vpack.c.bf16 %v9181_v22, %v9179_v45 }
 0x24e   :  { %v748_v12 = vld [vmem:[#allocation2 + $0x340] sm:$0xff]  ;;  %v1505_v21 = vld [vmem:[#allocation2 + $0x2c8] sm:$0xff]  ;;  %v9218_v39 = vld [vmem:[#allocation4 + $0x750] sm:$0xff]  ;;  %v9223_v52 = vsel %vm10208_vm6, %v3531_v19, %v9145_v61  ;;  %v2269_v49 = vsel %vm131_vm0, %v1615_v47, -inf  ;;  %v5944_v18 = vpack.c.bf16 %v9206_v55, %v9204_v36  ;;  %5943 = vmatpush1.bf16.msra.mxu0 %v5942_v58  ;;  %v9249_v30 = vsel %vm10207_vm5, %v4079_v16, %v9190_v6  ;;  %2321 = vmax.xlane.f32.xlu1 %v2320_v40 }
 0x24f   :  { %v2675_v0 = vld [vmem:[#allocation4 + $0x758] sm:$0xff]  ;;  %v9210_v37 = vld [vmem:[#allocation4 + $0x740] sm:$0xff]  ;;  %v1004_v5 = vmax.f32 %v748_v12, %v492_v56  ;;  %v2678_v1 = vld [vmem:[#allocation4 + $0x770] sm:$0xff]  ;;  %1278 = vst.msk [vmem:[#allocation2 + $0x3c8] sm:$0xff] %vm131_vm0, %v1021_v13  ;;  %v9237_v48 = vpop.xlane.xlu1 %2219  ;;  %6197 = vmatprep.subr.bf16.mxu1 %v6196_v34  ;;  %2270 = vmax.xlane.f32.xlu0 %v2269_v49  ;;  %v1939_v57 = vsel %vm131_vm0, %v1505_v21, -inf  ;;  %v9261_v6 = vpop.xlane.xlu0 %1787  ;;  %vm10219_vm5 = vcmask 589312  }
 0x250   :  { %v2679_v60 = vld [vmem:[#allocation4 + $0x778] sm:$0xff]  ;;  %v9216_v54 = vld [vmem:[#allocation4 + $0x760] sm:$0xff]  ;;  %v2681_v10 = vld [vmem:[#allocation4 + $0x788] sm:$0xff]  ;;  %6199 = vmatpush1.bf16.msra.mxu1 %v6198_v29  ;;  %v6202_v3 = vpack.c.bf16 %v2678_v1, %v9218_v39  ;;  %5945 = vmatprep.subr.bf16.mxu0 %v5944_v18 }
 0x251   :  { %v1488_v11 = vld [vmem:[#allocation2 + $0x240] sm:$0xff]  ;;  %1261 = vst.msk [vmem:[#allocation2 + $0x340] sm:$0xff] %vm131_vm0, %v1004_v5  ;;  %v637_v63 = vld [vmem:[%s10179_s0 + $0x7c8] sm:$0xff]  ;;  %v6200_v9 = vpack.c.bf16 %v2679_v60, %v2675_v0  ;;  %v5946_v47 = vpack.c.bf16 %v9216_v54, %v9210_v37  ;;  %v2682_v46 = vld [vmem:[#allocation4 + $0x790] sm:$0xff] }
 0x252   :  { %v893_v41 = vld [vmem:[#allocation2 + $0x7c8] sm:$0xff]  ;;  %v620_v61 = vld [vmem:[%s10179_s0 + $0x740] sm:$0xff]  ;;  %v2686_v62 = vld [vmem:[#allocation4 + $0x7b0] sm:$0xff]  ;;  %v1888_v19 = vsel %vm131_vm0, %v1488_v11, -inf  ;;  %1940 = vmax.xlane.f32.xlu1 %v1939_v57 }
 0x253   :  { %v2685_v31 = vld [vmem:[#allocation4 + $0x7a8] sm:$0xff]  ;;  %v1149_v14 = vmax.f32 %v893_v41, %v637_v63  ;;  %v876_v27 = vld [vmem:[#allocation2 + $0x740] sm:$0xff]  ;;  %v9259_v12 = vpop.xlane.xlu1 %1838  ;;  %6201 = vmatprep.subr.bf16.mxu1 %v6200_v9  ;;  %5947 = vmatpush1.bf16.msra.mxu0 %v5946_v47  ;;  %v6206_v40 = vpack.c.bf16 %v2686_v62, %v2682_v46  ;;  %v2690_v41 = vld [vmem:[#allocation4 + $0x7d0] sm:$0xff] }
 0x254   :  { %v2683_v2 = vld [vmem:[#allocation4 + $0x798] sm:$0xff]  ;;  %v2680_v22 = vld [vmem:[#allocation4 + $0x780] sm:$0xff]  ;;  %v1132_v7 = vmax.f32 %v876_v27, %v620_v61  ;;  %v510_v36 = vld [vmem:[%s10179_s0 + $0x3d0] sm:$0xff]  ;;  %v5948_v26 = vpack.c.bf16 %v2685_v31, %v2681_v10  ;;  %6203 = vmatpush1.bf16.msra.mxu1 %v6202_v3  ;;  %1889 = vmax.xlane.f32.xlu0 %v1888_v19  ;;  %v9275_v10 = vpop.xlane.xlu0 %2171 }
 0x255   :  { %v2687_v45 = vld [vmem:[#allocation4 + $0x7b8] sm:$0xff]  ;;  %v1633_v4 = vld [vmem:[#allocation2 + $0x6c8] sm:$0xff]  ;;  %1406 = vst.msk [vmem:[#allocation2 + $0x7c8] sm:$0xff] %vm131_vm0, %v1149_v14  ;;  %v766_v55 = vld [vmem:[#allocation2 + $0x3d0] sm:$0xff] }
 0x256   :  { %v2684_v56 = vld [vmem:[#allocation4 + $0x7a0] sm:$0xff]  ;;  %1389 = vst.msk [vmem:[#allocation2 + $0x740] sm:$0xff] %vm131_vm0, %v1132_v7  ;;  %v6204_v0 = vpack.c.bf16 %v2687_v45, %v2683_v2  ;;  %v2689_v60 = vld [vmem:[#allocation4 + $0x7c8] sm:$0xff]  ;;  %v1022_v5 = vmax.f32 %v766_v55, %v510_v36  ;;  %v2691_v58 = vld [vmem:[#allocation4 + $0x7d8] sm:$0xff]  ;;  %v2323_v11 = vsel %vm131_vm0, %v1633_v4, -inf  ;;  %5949 = vmatprep.subr.bf16.mxu0 %v5948_v26 }
 0x257   :  { %v1616_v34 = vld [vmem:[#allocation2 + $0x640] sm:$0xff]  ;;  %v493_v13 = vld [vmem:[%s10179_s0 + $0x348] sm:$0xff]  ;;  %v5950_v1 = vpack.c.bf16 %v2684_v56, %v2680_v22  ;;  %v2694_v61 = vld [vmem:[#allocation4 + $0x7f0] sm:$0xff]  ;;  %v9273_v9 = vpop.xlane.xlu1 %2222  ;;  %2324 = vmax.xlane.f32.xlu1 %v2323_v11 }
 0x258   :  { %v2693_v37 = vld [vmem:[#allocation4 + $0x7e8] sm:$0xff]  ;;  %v2695_v29 = vld [vmem:[#allocation4 + $0x7f8] sm:$0xff]  ;;  %v2688_v54 = vld [vmem:[#allocation4 + $0x7c0] sm:$0xff]  ;;  %1279 = vst.msk [vmem:[#allocation2 + $0x3d0] sm:$0xff] %vm131_vm0, %v1022_v5  ;;  %v2272_v31 = vsel %vm131_vm0, %v1616_v34, -inf  ;;  %6205 = vmatprep.subr.bf16.mxu1 %v6204_v0  ;;  %v6210_v47 = vpack.c.bf16 %v2694_v61, %v2690_v41  ;;  %v9288_v57 = vpop.xlane.xlu0 %1790 }
 0x259   :  { %v749_v21 = vld [vmem:[#allocation2 + $0x348] sm:$0xff]  ;;  %v638_v17 = vld [vmem:[%s10179_s0 + $0x7d0] sm:$0xff]  ;;  %v5952_v14 = vpack.c.bf16 %v2693_v37, %v2689_v60  ;;  %v6208_v27 = vpack.c.bf16 %v2695_v29, %v2691_v58  ;;  %5951 = vmatpush1.bf16.msra.mxu0 %v5950_v1  ;;  %6207 = vmatpush1.bf16.msra.mxu1 %v6206_v40  ;;  %v511_v3 = vld [vmem:[%s10179_s0 + $0x3d8] sm:$0xff] }
 0x25a   :  { %v1005_v39 = vmax.f32 %v749_v21, %v493_v13  ;;  %v2692_v63 = vld [vmem:[#allocation4 + $0x7e0] sm:$0xff]  ;;  %v894_v49 = vld [vmem:[#allocation2 + $0x7d0] sm:$0xff]  ;;  %2273 = vmax.xlane.f32.xlu0 %v2272_v31  ;;  %v767_v56 = vld [vmem:[#allocation2 + $0x3d8] sm:$0xff] }
 0x25b   :  { %v621_v18 = vld [vmem:[%s10179_s0 + $0x748] sm:$0xff]  ;;  %v1150_v16 = vmax.f32 %v894_v49, %v638_v17  ;;  %v1506_v45 = vld [vmem:[#allocation2 + $0x2d0] sm:$0xff]  ;;  %v5954_v4 = vpack.c.bf16 %v2692_v63, %v2688_v54  ;;  %v9286_v62 = vpop.xlane.xlu1 %1841  ;;  %5953 = vmatprep.subr.bf16.mxu0 %v5952_v14  ;;  %6209 = vmatprep.subr.bf16.mxu1 %v6208_v27  ;;  %v1023_v55 = vmax.f32 %v767_v56, %v511_v3  ;;  %v2699_v21 = vld [vmem:[#allocation4 + $0x818] sm:$0xff] }
 0x25c   :  { %1262 = vst.msk [vmem:[#allocation2 + $0x348] sm:$0xff] %vm131_vm0, %v1005_v39  ;;  %v877_v2 = vld [vmem:[#allocation2 + $0x748] sm:$0xff]  ;;  %v494_v46 = vld [vmem:[%s10179_s0 + $0x350] sm:$0xff]  ;;  %v1942_v34 = vsel %vm131_vm0, %v1506_v45, -inf  ;;  %v2703_v58 = vld [vmem:[#allocation4 + $0x838] sm:$0xff]  ;;  %v9296_v54 = vpop.xlane.xlu0 %2174 }
 0x25d   :  { %v1489_v22 = vld [vmem:[#allocation2 + $0x248] sm:$0xff]  ;;  %v1133_v7 = vmax.f32 %v877_v2, %v621_v18  ;;  %1407 = vst.msk [vmem:[#allocation2 + $0x7d0] sm:$0xff] %vm131_vm0, %v1150_v16  ;;  %v750_v13 = vld [vmem:[#allocation2 + $0x350] sm:$0xff]  ;;  %5955 = vmatpush1.bf16.msra.mxu0 %v5954_v4  ;;  %6211 = vmatpush1.bf16.msra.mxu1 %v6210_v47  ;;  %1280 = vst.msk [vmem:[#allocation2 + $0x3d8] sm:$0xff] %vm131_vm0, %v1023_v55  ;;  %v6212_v63 = vpack.c.bf16 %v2703_v58, %v2699_v21 }
 0x25e   :  { %v1891_v36 = vsel %vm131_vm0, %v1489_v22, -inf  ;;  %v1634_v19 = vld [vmem:[#allocation2 + $0x6d0] sm:$0xff]  ;;  %v1617_v26 = vld [vmem:[#allocation2 + $0x648] sm:$0xff]  ;;  %v1006_v0 = vmax.f32 %v750_v13, %v494_v46  ;;  %1943 = vmax.xlane.f32.xlu1 %v1942_v34  ;;  %v1507_v40 = vld [vmem:[#allocation2 + $0x2d8] sm:$0xff] }
 0x25f   :  { %1390 = vst.msk [vmem:[#allocation2 + $0x748] sm:$0xff] %vm131_vm0, %v1133_v7  ;;  %v2697_v60 = vld [vmem:[#allocation4 + $0x808] sm:$0xff]  ;;  %1892 = vmax.xlane.f32.xlu0 %v1891_v36  ;;  %v9294_v29 = vpop.xlane.xlu1 %2225  ;;  %v2326_v39 = vsel %vm131_vm0, %v1634_v19, -inf  ;;  %v2275_v1 = vsel %vm131_vm0, %v1617_v26, -inf  ;;  %v639_v61 = vld [vmem:[%s10179_s0 + $0x7d8] sm:$0xff]  ;;  %6213 = vmatprep.subr.bf16.mxu1 %v6212_v63  ;;  %v1945_v31 = vsel %vm131_vm0, %v1507_v40, -inf }
 0x260   :  { %v2701_v37 = vld [vmem:[#allocation4 + $0x828] sm:$0xff]  ;;  %1263 = vst.msk [vmem:[#allocation2 + $0x350] sm:$0xff] %vm131_vm0, %v1006_v0  ;;  %v895_v11 = vld [vmem:[#allocation2 + $0x7d8] sm:$0xff]  ;;  %v9305_v18 = vpop.xlane.xlu0 %1793  ;;  %v1508_v56 = vld [vmem:[#allocation2 + $0x2e0] sm:$0xff] }
 0x261   :  { %v5956_v5 = vpack.c.bf16 %v2701_v37, %v2697_v60  ;;  %v1490_v41 = vld [vmem:[#allocation2 + $0x250] sm:$0xff]  ;;  %v1151_v17 = vmax.f32 %v895_v11, %v639_v61  ;;  %v1635_v27 = vld [vmem:[#allocation2 + $0x6d8] sm:$0xff]  ;;  %v512_v34 = vld [vmem:[%s10179_s0 + $0x3e0] sm:$0xff]  ;;  %v1948_v0 = vsel %vm131_vm0, %v1508_v56, -inf }
 0x262   :  { %2327 = vmax.xlane.f32.xlu1 %v2326_v39  ;;  %v1894_v14 = vsel %vm131_vm0, %v1490_v41, -inf  ;;  %v1618_v16 = vld [vmem:[#allocation2 + $0x650] sm:$0xff]  ;;  %v2329_v47 = vsel %vm131_vm0, %v1635_v27, -inf  ;;  %v1491_v46 = vld [vmem:[#allocation2 + $0x258] sm:$0xff]  ;;  %v768_v36 = vld [vmem:[#allocation2 + $0x3e0] sm:$0xff] }
 0x263   :  { %5957 = vmatprep.subr.bf16.mxu0 %v5956_v5  ;;  %2276 = vmax.xlane.f32.xlu0 %v2275_v1  ;;  %v9303_v49 = vpop.xlane.xlu1 %1844  ;;  %1408 = vst.msk [vmem:[#allocation2 + $0x7d8] sm:$0xff] %vm131_vm0, %v1151_v17  ;;  %v622_v2 = vld [vmem:[%s10179_s0 + $0x750] sm:$0xff]  ;;  %v2278_v3 = vsel %vm131_vm0, %v1618_v16, -inf  ;;  %v1024_v55 = vmax.f32 %v768_v36, %v512_v34  ;;  %v495_v13 = vld [vmem:[%s10179_s0 + $0x358] sm:$0xff]  ;;  %v1897_v60 = vsel %vm131_vm0, %v1491_v46, -inf  ;;  %v1636_v37 = vld [vmem:[#allocation2 + $0x6e0] sm:$0xff] }
 0x264   :  { %v878_v45 = vld [vmem:[#allocation2 + $0x750] sm:$0xff]  ;;  %v9315_v4 = vpop.xlane.xlu0 %2177  ;;  %v1619_v5 = vld [vmem:[#allocation2 + $0x658] sm:$0xff]  ;;  %v640_v58 = vld [vmem:[%s10179_s0 + $0x7e0] sm:$0xff]  ;;  %v2332_v61 = vsel %vm131_vm0, %v1636_v37, -inf }
 0x265   :  { %v1134_v22 = vmax.f32 %v878_v45, %v622_v2  ;;  %1281 = vst.msk [vmem:[#allocation2 + $0x3e0] sm:$0xff] %vm131_vm0, %v1024_v55  ;;  %v751_v21 = vld [vmem:[#allocation2 + $0x358] sm:$0xff]  ;;  %v896_v39 = vld [vmem:[#allocation2 + $0x7e0] sm:$0xff]  ;;  %v2281_v11 = vsel %vm131_vm0, %v1619_v5, -inf  ;;  %v1509_v17 = vld [vmem:[#allocation2 + $0x2e8] sm:$0xff] }
 0x266   :  { %1946 = vmax.xlane.f32.xlu1 %v1945_v31  ;;  %v1007_v1 = vmax.f32 %v751_v21, %v495_v13  ;;  %v1152_v40 = vmax.f32 %v896_v39, %v640_v58  ;;  %v1492_v31 = vld [vmem:[#allocation2 + $0x260] sm:$0xff]  ;;  %v879_v27 = vld [vmem:[#allocation2 + $0x758] sm:$0xff]  ;;  %v513_v2 = vld [vmem:[%s10179_s0 + $0x3e8] sm:$0xff] }
 0x267   :  { %1895 = vmax.xlane.f32.xlu0 %v1894_v14  ;;  %v9313_v7 = vpop.xlane.xlu1 %2228  ;;  %1391 = vst.msk [vmem:[#allocation2 + $0x750] sm:$0xff] %vm131_vm0, %v1134_v22  ;;  %v623_v14 = vld [vmem:[%s10179_s0 + $0x758] sm:$0xff]  ;;  %v1637_v56 = vld [vmem:[#allocation2 + $0x6e8] sm:$0xff]  ;;  %v1620_v46 = vld [vmem:[#allocation2 + $0x660] sm:$0xff] }
 0x268   :  { %v9328_v26 = vpop.xlane.xlu0 %1796  ;;  %1264 = vst.msk [vmem:[#allocation2 + $0x358] sm:$0xff] %vm131_vm0, %v1007_v1  ;;  %1409 = vst.msk [vmem:[#allocation2 + $0x7e0] sm:$0xff] %vm131_vm0, %v1152_v40  ;;  %v1135_v16 = vmax.f32 %v879_v27, %v623_v14  ;;  %v769_v34 = vld [vmem:[#allocation2 + $0x3e8] sm:$0xff]  ;;  %v496_v36 = vld [vmem:[%s10179_s0 + $0x360] sm:$0xff]  ;;  %v2335_v5 = vsel %vm131_vm0, %v1637_v56, -inf  ;;  %v2284_v21 = vsel %vm131_vm0, %v1620_v46, -inf }
 0x269   :  { %v752_v55 = vld [vmem:[#allocation2 + $0x360] sm:$0xff]  ;;  %v1025_v13 = vmax.f32 %v769_v34, %v513_v2  ;;  %v1510_v58 = vld [vmem:[#allocation2 + $0x2f0] sm:$0xff]  ;;  %v1493_v39 = vld [vmem:[#allocation2 + $0x268] sm:$0xff] }
 0x26a   :  { %2330 = vmax.xlane.f32.xlu1 %v2329_v47  ;;  %v1951_v47 = vsel %vm131_vm0, %v1509_v17, -inf  ;;  %1392 = vst.msk [vmem:[#allocation2 + $0x758] sm:$0xff] %vm131_vm0, %v1135_v16  ;;  %v641_v1 = vld [vmem:[%s10179_s0 + $0x7e8] sm:$0xff]  ;;  %v880_v17 = vld [vmem:[#allocation2 + $0x760] sm:$0xff]  ;;  %v1954_v16 = vsel %vm131_vm0, %v1510_v58, -inf  ;;  %v1903_v2 = vsel %vm131_vm0, %v1493_v39, -inf }
 0x26b   :  { %2279 = vmax.xlane.f32.xlu0 %v2278_v3  ;;  %v9326_v19 = vpop.xlane.xlu1 %1847  ;;  %v1900_v3 = vsel %vm131_vm0, %v1492_v31, -inf  ;;  %1282 = vst.msk [vmem:[#allocation2 + $0x3e8] sm:$0xff] %vm131_vm0, %v1025_v13  ;;  %v897_v40 = vld [vmem:[#allocation2 + $0x7e8] sm:$0xff]  ;;  %v514_v56 = vld [vmem:[%s10179_s0 + $0x3f0] sm:$0xff]  ;;  %v1511_v39 = vld [vmem:[#allocation2 + $0x2f8] sm:$0xff] }
 0x26c   :  { %v9338_v41 = vpop.xlane.xlu0 %2180  ;;  %v770_v46 = vld [vmem:[#allocation2 + $0x3f0] sm:$0xff]  ;;  %v497_v34 = vld [vmem:[%s10179_s0 + $0x368] sm:$0xff]  ;;  %v1528_v8 = vld [vmem:[#allocation2 + $0x380] sm:$0xff] }
 0x26e   :  { %1949 = vmax.xlane.f32.xlu1 %v1948_v0  ;;  %v1008_v0 = vmax.f32 %v752_v55, %v496_v36  ;;  %v753_v36 = vld [vmem:[#allocation2 + $0x368] sm:$0xff]  ;;  %v1026_v55 = vmax.f32 %v770_v46, %v514_v56  ;;  %v1622_v56 = vld [vmem:[#allocation2 + $0x670] sm:$0xff]  ;;  %v1623_v46 = vld [vmem:[#allocation2 + $0x678] sm:$0xff] }
 0x26f   :  { %1898 = vmax.xlane.f32.xlu0 %v1897_v60  ;;  %v9336_v63 = vpop.xlane.xlu1 %2231  ;;  %v1009_v58 = vmax.f32 %v753_v36, %v497_v34 }
 0x270   :  { %v9352_v22 = vpop.xlane.xlu0 %1799  ;;  %1265 = vst.msk [vmem:[#allocation2 + $0x360] sm:$0xff] %vm131_vm0, %v1008_v0  ;;  %1283 = vst.msk [vmem:[#allocation2 + $0x3f0] sm:$0xff] %vm131_vm0, %v1026_v55  ;;  %v1495_v55 = vld [vmem:[#allocation2 + $0x278] sm:$0xff] }
 0x271   :  { %1266 = vst.msk [vmem:[#allocation2 + $0x368] sm:$0xff] %vm131_vm0, %v1009_v58  ;;  %v1529_v58 = vld [vmem:[#allocation2 + $0x388] sm:$0xff] }
 0x272   :  { %2333 = vmax.xlane.f32.xlu1 %v2332_v61  ;;  %v1153_v61 = vmax.f32 %v897_v40, %v641_v1  ;;  %v1494_v1 = vld [vmem:[#allocation2 + $0x270] sm:$0xff]  ;;  %v9437_v53 = vsel %vm131_vm0, %v1529_v58, -inf }
 0x273   :  { %2282 = vmax.xlane.f32.xlu0 %v2281_v11  ;;  %v9350_v45 = vpop.xlane.xlu1 %1850  ;;  %v624_v11 = vld [vmem:[%s10179_s0 + $0x760] sm:$0xff]  ;;  %v642_v40 = vld [vmem:[%s10179_s0 + $0x7f0] sm:$0xff] }
 0x274   :  { %v9362_v37 = vpop.xlane.xlu0 %2183  ;;  %v1136_v31 = vmax.f32 %v880_v17, %v624_v11  ;;  %1410 = vst.msk [vmem:[#allocation2 + $0x7e8] sm:$0xff] %vm131_vm0, %v1153_v61  ;;  %v898_v61 = vld [vmem:[#allocation2 + $0x7f0] sm:$0xff]  ;;  %v1639_v11 = vld [vmem:[#allocation2 + $0x6f8] sm:$0xff]  ;;  %v625_v17 = vld [vmem:[%s10179_s0 + $0x768] sm:$0xff] }
 0x275   :  { %v1154_v34 = vmax.f32 %v898_v61, %v642_v40  ;;  %v2290_v40 = vsel %vm131_vm0, %v1622_v56, -inf  ;;  %v515_v61 = vld [vmem:[%s10179_s0 + $0x3f8] sm:$0xff]  ;;  %v1657_v56 = vld [vmem:[#allocation2 + $0x788] sm:$0xff] }
 0x276   :  { %1952 = vmax.xlane.f32.xlu1 %v1951_v47  ;;  %v1638_v47 = vld [vmem:[#allocation2 + $0x6f0] sm:$0xff]  ;;  %1393 = vst.msk [vmem:[#allocation2 + $0x760] sm:$0xff] %vm131_vm0, %v1136_v31  ;;  %v881_v31 = vld [vmem:[#allocation2 + $0x768] sm:$0xff] }
 0x277   :  { %1901 = vmax.xlane.f32.xlu0 %v1900_v3  ;;  %v9360_v60 = vpop.xlane.xlu1 %2234  ;;  %v1621_v3 = vld [vmem:[#allocation2 + $0x668] sm:$0xff]  ;;  %v1137_v36 = vmax.f32 %v881_v31, %v625_v17  ;;  %1411 = vst.msk [vmem:[#allocation2 + $0x7f0] sm:$0xff] %vm131_vm0, %v1154_v34  ;;  %v498_v17 = vld [vmem:[%s10179_s0 + $0x370] sm:$0xff] }
 0x278   :  { %v9376_v27 = vpop.xlane.xlu0 %1802  ;;  %v754_v34 = vld [vmem:[#allocation2 + $0x370] sm:$0xff] }
 0x279   :  { %1394 = vst.msk [vmem:[#allocation2 + $0x768] sm:$0xff] %vm131_vm0, %v1137_v36  ;;  %v3541_v36 = vrot.slane %v9286_v62, %v8458_v25  ;;  %v1010_v33 = vmax.f32 %v754_v34, %v498_v17  ;;  %v4183_v34 = vrot.slane %v9336_v63, %v8464_v38 }
 0x27a   :  { %2336 = vmax.xlane.f32.xlu1 %v2335_v5  ;;  %v2338_v5 = vsel %vm131_vm0, %v1638_v47, -inf  ;;  %v1957_v47 = vsel %vm131_vm0, %v1511_v39, -inf  ;;  %v3536_v39 = vrot.slane %v9259_v12, %v8452_v15  ;;  %v4168_v12 = vrot.slane %v9273_v9, %v8452_v15 }
 0x27b   :  { %2285 = vmax.xlane.f32.xlu0 %v2284_v21  ;;  %v9374_v14 = vpop.xlane.xlu1 %1853  ;;  %v2287_v21 = vsel %vm131_vm0, %v1621_v3, -inf  ;;  %v1906_v3 = vsel %vm131_vm0, %v1494_v1, -inf  ;;  %v3452_v1 = vrot.slane %v9261_v6, %v8235_v50  ;;  %v4084_v6 = vrot.slane %v9275_v10, %v8235_v50  ;;  %1267 = vst.msk [vmem:[#allocation2 + $0x370] sm:$0xff] %vm131_vm0, %v1010_v33  ;;  %v899_v33 = vld [vmem:[#allocation2 + $0x7f8] sm:$0xff] }
 0x27c   :  { %v9390_v0 = vpop.xlane.xlu0 %2186  ;;  %v9440_v9 = vsel %vm131_vm0, %v1528_v8, -inf  ;;  %v3537_v62 = vsel %vm3283_vm7, %v3536_v39, %v9223_v52  ;;  %v626_v39 = vld [vmem:[%s10179_s0 + $0x770] sm:$0xff] }
 0x27d   :  { %v3453_v8 = vsel %vm10208_vm6, %v3452_v1, %v9227_v20  ;;  %v4085_v20 = vsel %vm10208_vm6, %v4084_v6, %v9249_v30  ;;  %v882_v1 = vld [vmem:[#allocation2 + $0x770] sm:$0xff]  ;;  %v4094_v30 = vrot.slane %v9315_v4, %v8458_v25  ;;  %v3551_v6 = vrot.slane %v9326_v19, %v8464_v38 }
 0x27e   :  { %1955 = vmax.xlane.f32.xlu1 %v1954_v16 }
 0x27f   :  { %1904 = vmax.xlane.f32.xlu0 %v1903_v2  ;;  %v9388_v13 = vpop.xlane.xlu1 %2237 }
 0x280   :  { %v9404_v2 = vpop.xlane.xlu0 %1805 }
 0x282   :  { %2339 = vmax.xlane.f32.xlu1 %v2338_v5  ;;  %v4163_v5 = vrot.slane %v9237_v48, %v8235_v50  ;;  %v2293_v48 = vsel %vm131_vm0, %v1623_v46, -inf  ;;  %v3457_v50 = vrot.slane %v9288_v57, %v8452_v15  ;;  %v9458_v57 = vsel %vm131_vm0, %v1657_v56, -inf }
 0x283   :  { %2288 = vmax.xlane.f32.xlu0 %v2287_v21  ;;  %v9402_v16 = vpop.xlane.xlu1 %1856  ;;  %v2341_v21 = vsel %vm131_vm0, %v1639_v11, -inf  ;;  %v771_v11 = vld [vmem:[#allocation2 + $0x3f8] sm:$0xff] }
 0x284   :  { %v1027_v46 = vmax.f32 %v771_v11, %v515_v61  ;;  %v4164_v10 = vsel %vm10208_vm6, %v4163_v5, %v9186_v28  ;;  %v4089_v61 = vrot.slane %v9296_v54, %v8452_v15  ;;  %v3546_v28 = vrot.slane %v9303_v49, %v8461_v35  ;;  %v643_v54 = vld [vmem:[%s10179_s0 + $0x7f8] sm:$0xff]  ;;  %vm10220_vm6 = vmmov %vm10219_vm5 }
 0x285   :  { %v4169_v52 = vsel %vm3283_vm7, %v4168_v12, %v4164_v10  ;;  %v3462_v49 = vrot.slane %v9305_v18, %v8458_v25  ;;  %v4178_v5 = vrot.slane %v9313_v7, %v8461_v35  ;;  %v1155_v11 = vmax.f32 %v899_v33, %v643_v54 }
 0x286   :  { %1958 = vmax.xlane.f32.xlu1 %v1957_v47  ;;  %v9431_v47 = vpop.xlane.xlu0 %2189  ;;  %1284 = vst.msk [vmem:[#allocation2 + $0x3f8] sm:$0xff] %vm131_vm0, %v1027_v46  ;;  %v1138_v18 = vmax.f32 %v882_v1, %v626_v39  ;;  %v3458_v17 = vsel %vm3283_vm7, %v3457_v50, %v3453_v8  ;;  %v4090_v12 = vsel %vm3283_vm7, %v4089_v61, %v4085_v20 }
 0x287   :  { %1907 = vmax.xlane.f32.xlu0 %v1906_v3  ;;  %v9429_v31 = vpop.xlane.xlu1 %2240  ;;  %v1909_v3 = vsel %vm131_vm0, %v1495_v55, -inf  ;;  %v4173_v55 = vrot.slane %v9294_v29, %v8458_v25  ;;  %v1656_v29 = vld [vmem:[#allocation2 + $0x780] sm:$0xff]  ;;  %v3467_v46 = vrot.slane %v9328_v26, %v8461_v35  ;;  %1412 = vst.msk [vmem:[#allocation2 + $0x7f8] sm:$0xff] %vm131_vm0, %v1155_v11  ;;  %v3463_v50 = vsel %vm10219_vm5, %v3462_v49, %v3458_v17 }
 0x288   :  { %v2392_v4 = vsel %vm131_vm0, %v1656_v29, -inf  ;;  %1395 = vst.msk [vmem:[#allocation2 + $0x770] sm:$0xff] %vm131_vm0, %v1138_v18  ;;  %v3556_v26 = vrot.slane %v9350_v45, %v8471_v42  ;;  %v499_v45 = vld [vmem:[%s10179_s0 + $0x378] sm:$0xff]  ;;  %v4104_v54 = vrot.slane %v9362_v37, %v8464_v38  ;;  %v4193_v33 = vrot.slane %v9388_v13, %v8474_v43 }
 0x289   :  { %v4174_v7 = vsel %vm10220_vm6, %v4173_v55, %v4169_v52  ;;  %v883_v55 = vld [vmem:[#allocation2 + $0x778] sm:$0xff]  ;;  %vm10221_vm6 = vmmov %vm10219_vm5  ;;  %v3561_v52 = vrot.slane %v9374_v14, %v8474_v43  ;;  %v4109_v39 = vrot.slane %v9390_v0, %v8471_v42  ;;  %v4198_v11 = vrot.slane %v9429_v31, %v8477_v44 }
 0x28a   :  { %2342 = vmax.xlane.f32.xlu1 %v2341_v21  ;;  %v9473_v58 = vpop.xlane.xlu0 %1808  ;;  %v4179_v19 = vsel %vm3297_vm9, %v4178_v5, %v4174_v7  ;;  %v4095_v61 = vsel %vm10221_vm6, %v4094_v30, %v4090_v12  ;;  %v3566_v30 = vrot.slane %v9402_v16, %v8477_v44  ;;  %v3482_v12 = vrot.slane %v9404_v2, %v8474_v43  ;;  %v1640_v2 = vld [vmem:[#allocation2 + $0x700] sm:$0xff] }
 0x28b   :  { %2291 = vmax.xlane.f32.xlu0 %v2290_v40  ;;  %v9471_v21 = vpop.xlane.xlu1 %1859  ;;  %v3542_v40 = vsel %vm10219_vm5, %v3541_v36, %v3537_v62  ;;  %v4099_v36 = vrot.slane %v9338_v41, %v8461_v35  ;;  %v3472_v62 = vrot.slane %v9352_v22, %v8464_v38  ;;  %v4188_v41 = vrot.slane %v9360_v60, %v8471_v42 }
 0x28c   :  { %v3547_v56 = vsel %vm3297_vm9, %v3546_v28, %v3542_v40  ;;  %v755_v28 = vld [vmem:[#allocation2 + $0x378] sm:$0xff]  ;;  %v3468_v22 = vsel %vm3297_vm9, %v3467_v46, %v3463_v50  ;;  %v4184_v49 = vsel %vm3304_vm10, %v4183_v34, %v4179_v19  ;;  %v3477_v60 = vrot.slane %v9376_v27, %v8471_v42  ;;  %v1512_v40 = vld [vmem:[#allocation2 + $0x300] sm:$0xff] }
 0x28d   :  { %v3552_v29 = vsel %vm3304_vm10, %v3551_v6, %v3547_v56  ;;  %v1011_v20 = vmax.f32 %v755_v28, %v499_v45  ;;  %v4100_v37 = vsel %vm3297_vm9, %v4099_v36, %v4095_v61  ;;  %v3571_v0 = vrot.slane %v9471_v21, %v8492_v59  ;;  %v2702_v45 = vld [vmem:[#allocation4 + $0x830] sm:$0xff] }
 0x28e   :  { %2294 = vmax.xlane.f32.xlu1 %v2293_v48  ;;  %v9500_v63 = vpop.xlane.xlu0 %2192  ;;  %v1513_v48 = vld [vmem:[#allocation2 + $0x308] sm:$0xff]  ;;  %v3557_v14 = vsel %vm3311_vm11, %v3556_v26, %v3552_v29  ;;  %v4105_v13 = vsel %vm3304_vm10, %v4104_v54, %v4100_v37  ;;  %v1960_v16 = vsel %vm131_vm0, %v1512_v40, -inf  ;;  %v4114_v21 = vrot.slane %v9431_v47, %v8474_v43  ;;  %v1530_v26 = vld [vmem:[#allocation2 + $0x390] sm:$0xff] }
 0x28f   :  { %1910 = vmax.xlane.f32.xlu0 %v1909_v3  ;;  %v2244_v10 = vpop.xlane.xlu1 %2243  ;;  %v627_v3 = vld [vmem:[%s10179_s0 + $0x778] sm:$0xff]  ;;  %v1963_v5 = vsel %vm131_vm0, %v1513_v48, -inf  ;;  %1268 = vst.msk [vmem:[#allocation2 + $0x378] sm:$0xff] %vm131_vm0, %v1011_v20  ;;  %v3562_v18 = vsel %vm3318_vm12, %v3561_v52, %v3557_v14  ;;  %v4110_v56 = vsel %vm3311_vm11, %v4109_v39, %v4105_v13  ;;  %v3487_v46 = vrot.slane %v9473_v58, %v8477_v44  ;;  %v2709_v39 = vld [vmem:[#allocation4 + $0x868] sm:$0xff] }
 0x290   :  { %v1139_v8 = vmax.f32 %v883_v55, %v627_v3  ;;  %v4203_v17 = vrot.slane %v2244_v10, %v8492_v59  ;;  %v3567_v19 = vsel %vm3325_vm13, %v3566_v30, %v3562_v18  ;;  %v2696_v3 = vld [vmem:[#allocation4 + $0x800] sm:$0xff]  ;;  %v4115_v28 = vsel %vm3318_vm12, %v4114_v21, %v4110_v56  ;;  %v1531_v21 = vld [vmem:[#allocation2 + $0x398] sm:$0xff] }
 0x291   :  { %v3572_v48 = vsel %vm3332_vm14, %v3571_v0, %v3567_v19  ;;  %vm10225_vm5 = vcmask 392512  }
 0x292   :  { %2012 = vmax.xlane.f32.xlu1 %v9437_v53  ;;  %1396 = vst.msk [vmem:[#allocation2 + $0x778] sm:$0xff] %vm131_vm0, %v1139_v8  ;;  %v1812_v27 = vpop.xlane.xlu0 %1811  ;;  %v3473_v53 = vsel %vm3304_vm10, %v3472_v62, %v3468_v22  ;;  %v2344_v62 = vsel %vm131_vm0, %v1640_v2, -inf  ;;  %v2698_v8 = vld [vmem:[#allocation4 + $0x810] sm:$0xff]  ;;  %v2014_v22 = vsel %vm131_vm0, %v1530_v26, -inf  ;;  %v2713_v2 = vld [vmem:[#allocation4 + $0x888] sm:$0xff]  ;;  %v2719_v26 = vld [vmem:[#allocation4 + $0x8b8] sm:$0xff] }
 0x293   :  { %2009 = vmax.xlane.f32.xlu0 %v9440_v9  ;;  %v1863_v1 = vpop.xlane.xlu1 %1862  ;;  %v4189_v9 = vsel %vm3311_vm11, %v4188_v41, %v4184_v49  ;;  %v3478_v7 = vsel %vm3311_vm11, %v3477_v60, %v3473_v53  ;;  %v3492_v10 = vrot.slane %v1812_v27, %v8492_v59  ;;  %v2700_v41 = vld [vmem:[#allocation4 + $0x820] sm:$0xff]  ;;  %v1658_v49 = vld [vmem:[#allocation2 + $0x790] sm:$0xff]  ;;  %v2711_v27 = vld [vmem:[#allocation4 + $0x878] sm:$0xff]  ;;  %v6214_v30 = vpack.c.bf16 %v2702_v45, %v2698_v8 }
 0x294   :  { %v3576_v6 = vrot.slane %v1863_v1, %v8495_v24  ;;  %v4194_v31 = vsel %vm3318_vm12, %v4193_v33, %v4189_v9  ;;  %v3483_v55 = vsel %vm3318_vm12, %v3482_v12, %v3478_v7  ;;  %v1641_v60 = vld [vmem:[#allocation2 + $0x708] sm:$0xff]  ;;  %v2707_v1 = vld [vmem:[#allocation4 + $0x858] sm:$0xff]  ;;  %v5958_v9 = vpack.c.bf16 %v2700_v41, %v2696_v3  ;;  %v2706_v7 = vld [vmem:[#allocation4 + $0x850] sm:$0xff] }
 0x295   :  { %v3488_v29 = vsel %vm3325_vm13, %v3487_v46, %v3483_v55  ;;  %v2398_v0 = vsel %vm131_vm0, %v1658_v49, -inf  ;;  %v2710_v12 = vld [vmem:[#allocation4 + $0x870] sm:$0xff]  ;;  %v2347_v56 = vsel %vm131_vm0, %v1641_v60, -inf  ;;  %v2716_v3 = vld [vmem:[#allocation4 + $0x8a0] sm:$0xff]  ;;  %v2017_v41 = vsel %vm131_vm0, %v1531_v21, -inf  ;;  %v2725_v49 = vld [vmem:[#allocation4 + $0x8e8] sm:$0xff] }
 0x296   :  { %2396 = vmax.xlane.f32.xlu1 %v9458_v57  ;;  %v2196_v50 = vpop.xlane.xlu0 %2195  ;;  %v4199_v57 = vsel %vm3325_vm13, %v4198_v11, %v4194_v31  ;;  %v3577_v61 = vsel %vm3339_vm15, %v3576_v6, %v3572_v48  ;;  %v3493_v40 = vsel %vm3332_vm14, %v3492_v10, %v3488_v29  ;;  %v2704_v11 = vld [vmem:[#allocation4 + $0x840] sm:$0xff]  ;;  %v1514_v46 = vld [vmem:[#allocation2 + $0x310] sm:$0xff]  ;;  %v1659_v45 = vld [vmem:[#allocation2 + $0x798] sm:$0xff] }
 0x297   :  { %2393 = vmax.xlane.f32.xlu0 %v2392_v4  ;;  %v2247_v34 = vpop.xlane.xlu1 %2246  ;;  %v4119_v4 = vrot.slane %v9500_v63, %v8477_v44  ;;  %v4124_v47 = vrot.slane %v2196_v50, %v8492_v59  ;;  %v4204_v58 = vsel %vm3332_vm14, %v4203_v17, %v4199_v57  ;;  %v2708_v17 = vld [vmem:[#allocation4 + $0x860] sm:$0xff]  ;;  %v6216_v50 = vpack.c.bf16 %v2711_v27, %v2707_v1  ;;  %v2714_v55 = vld [vmem:[#allocation4 + $0x890] sm:$0xff]  ;;  %v2723_v60 = vld [vmem:[#allocation4 + $0x8d8] sm:$0xff] }
 0x298   :  { %v4208_v36 = vrot.slane %v2247_v34, %v8495_v24  ;;  %v5962_v10 = vpack.c.bf16 %v2708_v17, %v2704_v11  ;;  %v2712_v48 = vld [vmem:[#allocation4 + $0x880] sm:$0xff]  ;;  %v1966_v8 = vsel %vm131_vm0, %v1514_v46, -inf  ;;  %v2722_v27 = vld [vmem:[#allocation4 + $0x8d0] sm:$0xff]  ;;  %vm10226_vm6 = vmmov %vm10225_vm5 }
 0x299   :  { %v4120_v37 = vsel %vm3325_vm13, %v4119_v4, %v4115_v28  ;;  %v2717_v4 = vld [vmem:[#allocation4 + $0x8a8] sm:$0xff]  ;;  %v2724_v1 = vld [vmem:[#allocation4 + $0x8e0] sm:$0xff] }
 0x29a   :  { %1964 = vmax.xlane.f32.xlu1 %v1963_v5  ;;  %v4209_v63 = vsel %vm3339_vm15, %v4208_v36, %v4204_v58  ;;  %v1815_v52 = vpop.xlane.xlu0 %1814  ;;  %v2705_v5 = vld [vmem:[#allocation4 + $0x848] sm:$0xff]  ;;  %v4125_v53 = vsel %vm3332_vm14, %v4124_v47, %v4120_v37  ;;  %v2715_v36 = vld [vmem:[#allocation4 + $0x898] sm:$0xff]  ;;  %v6218_v47 = vpack.c.bf16 %v2710_v12, %v2706_v7  ;;  %v5964_v29 = vpack.c.bf16 %v2717_v4, %v2713_v2  ;;  %v2732_v2 = vld [vmem:[#allocation4 + $0x920] sm:$0xff] }
 0x29b   :  { %1961 = vmax.xlane.f32.xlu0 %v1960_v16  ;;  %v2199_v54 = vpop.xlane.xlu1 %2198  ;;  %v4530_v20 = vsel %vm4526_vm8, %v4209_v63, %v3577_v61  ;;  %v3497_v33 = vrot.slane %v1815_v52, %v8495_v24  ;;  %v5960_v34 = vpack.c.bf16 %v2709_v39, %v2705_v5  ;;  %v2718_v61 = vld [vmem:[#allocation4 + $0x8b0] sm:$0xff]  ;;  %v2721_v52 = vld [vmem:[#allocation4 + $0x8c8] sm:$0xff]  ;;  %v2727_v5 = vld [vmem:[#allocation4 + $0x8f8] sm:$0xff]  ;;  %v5966_v37 = vpack.c.bf16 %v2716_v3, %v2712_v48 }
 0x29c   :  { %v4129_v14 = vrot.slane %v2199_v54, %v8495_v24  ;;  %4678 = vmatprep.mubr.f32.mxu0 %v4530_v20  ;;  %4962 = vmatprep.mubr.f32.mxu1 %v4530_v20  ;;  %v1642_v28 = vld [vmem:[#allocation2 + $0x710] sm:$0xff]  ;;  %v6220_v54 = vpack.c.bf16 %v2719_v26, %v2715_v36  ;;  %v6224_v17 = vpack.c.bf16 %v2727_v5, %v2723_v60  ;;  %v1643_v48 = vld [vmem:[#allocation2 + $0x718] sm:$0xff] }
 0x29d   :  { %v3498_v13 = vsel %vm3339_vm15, %v3497_v33, %v3493_v40  ;;  %v2720_v33 = vld [vmem:[#allocation4 + $0x8c0] sm:$0xff]  ;;  %v2726_v40 = vld [vmem:[#allocation4 + $0x8f0] sm:$0xff]  ;;  %v2350_v11 = vsel %vm131_vm0, %v1642_v28, -inf  ;;  %v2729_v7 = vld [vmem:[#allocation4 + $0x908] sm:$0xff] }
 0x29e   :  { %2345 = vmax.xlane.f32.xlu1 %v2344_v62  ;;  %v4130_v18 = vsel %vm3339_vm15, %v4129_v14, %v4125_v53  ;;  %v1914_v16 = vpop.xlane.xlu0 %1913  ;;  %v6222_v14 = vpack.c.bf16 %v2718_v61, %v2714_v55  ;;  %v5970_v21 = vpack.c.bf16 %v2724_v1, %v2720_v33  ;;  %v6226_v46 = vpack.c.bf16 %v2726_v40, %v2722_v27  ;;  %v2737_v61 = vld [vmem:[#allocation4 + $0x948] sm:$0xff]  ;;  %v1516_v33 = vld [vmem:[#allocation2 + $0x320] sm:$0xff] }
 0x29f   :  { %2015 = vmax.xlane.f32.xlu0 %v2014_v22  ;;  %v1917_v6 = vpop.xlane.xlu1 %1916  ;;  %v4529_v31 = vsel %vm4526_vm8, %v4130_v18, %v3498_v13  ;;  %v3660_v57 = vrot.slane %v1914_v16, %v8003_v23  ;;  %v1532_v13 = vld [vmem:[#allocation2 + $0x3a0] sm:$0xff]  ;;  %v1515_v18 = vld [vmem:[#allocation2 + $0x318] sm:$0xff]  ;;  %v2733_v16 = vld [vmem:[#allocation4 + $0x928] sm:$0xff] }
 0x2a0   :  { %v3664_v19 = vrot.slane %v1917_v6, %v8008_v32  ;;  %4679 = vmatmul.mubr.f32.vlgmr.msra.gmra.mrb[0].mxu0 %v4529_v31  ;;  %4963 = vmatmul.mubr.f32.vlgmr.msra.gmra.mrb[0].mxu1 %v4529_v31  ;;  %v2731_v31 = vld [vmem:[#allocation4 + $0x918] sm:$0xff]  ;;  %v2020_v26 = vsel %vm131_vm0, %v1532_v13, -inf  ;;  %v5972_v3 = vpack.c.bf16 %v2733_v16, %v2729_v7  ;;  %v2745_v40 = vld [vmem:[#allocation4 + $0x988] sm:$0xff]  ;;  %v2746_v16 = vld [vmem:[#allocation4 + $0x990] sm:$0xff] }
 0x2a1   :  { %5959 = vmatpush1.bf16.msra.mxu0 %v5958_v9  ;;  %6215 = vmatpush1.bf16.msra.mxu1 %v6214_v30  ;;  %v2401_v30 = vsel %vm131_vm0, %v1659_v45, -inf  ;;  %v2751_v13 = vld [vmem:[#allocation4 + $0x9b8] sm:$0xff] }
 0x2a2   :  { %v9586_v58 = vsel %vm3241_vm1, %v3664_v19, %v3660_v57  ;;  %2399 = vmax.xlane.f32.xlu1 %v2398_v0  ;;  %v2298_v62 = vpop.xlane.xlu0 %2297  ;;  %5961 = vmatprep.subr.bf16.mxu0 %v5960_v34  ;;  %v5968_v0 = vpack.c.bf16 %v2725_v49, %v2721_v52  ;;  %v2728_v34 = vld [vmem:[#allocation4 + $0x900] sm:$0xff]  ;;  %v2730_v19 = vld [vmem:[#allocation4 + $0x910] sm:$0xff] }
 0x2a3   :  { %2348 = vmax.xlane.f32.xlu0 %v2347_v56  ;;  %v2301_v63 = vpop.xlane.xlu1 %2300  ;;  %6217 = vmatprep.subr.bf16.mxu1 %v6216_v50  ;;  %v4292_v22 = vrot.slane %v2298_v62, %v8003_v23  ;;  %v2735_v56 = vld [vmem:[#allocation4 + $0x938] sm:$0xff]  ;;  %v2734_v57 = vld [vmem:[#allocation4 + $0x930] sm:$0xff]  ;;  %v2741_v62 = vld [vmem:[#allocation4 + $0x968] sm:$0xff]  ;;  %v5974_v45 = vpack.c.bf16 %v2732_v2, %v2728_v34  ;;  %v1972_v34 = vsel %vm131_vm0, %v1516_v33, -inf }
 0x2a4   :  { %v4296_v20 = vrot.slane %v2301_v63, %v8008_v32  ;;  %v6228_v55 = vpack.c.bf16 %v2735_v56, %v2731_v31  ;;  %v6230_v28 = vpack.c.bf16 %v2734_v57, %v2730_v19  ;;  %v2740_v52 = vld [vmem:[#allocation4 + $0x960] sm:$0xff]  ;;  %v5976_v1 = vpack.c.bf16 %v2741_v62, %v2737_v61  ;;  %v2750_v31 = vld [vmem:[#allocation4 + $0x9b0] sm:$0xff]  ;;  %v2765_v33 = vld [vmem:[#allocation4 + $0xa28] sm:$0xff] }
 0x2a5   :  { %5963 = vmatpush1.bf16.msra.mxu0 %v5962_v10  ;;  %6219 = vmatpush1.bf16.msra.mxu1 %v6218_v47  ;;  %v1969_v10 = vsel %vm131_vm0, %v1515_v18, -inf  ;;  %v1660_v47 = vld [vmem:[#allocation2 + $0x7a0] sm:$0xff]  ;;  %v1661_v2 = vld [vmem:[#allocation2 + $0x7a8] sm:$0xff]  ;;  %v6238_v61 = vpack.c.bf16 %v2750_v31, %v2746_v16  ;;  %v1662_v31 = vld [vmem:[#allocation2 + $0x7b0] sm:$0xff] }
 0x2a6   :  { %v9593_v39 = vsel %vm3241_vm1, %v4296_v20, %v4292_v22  ;;  %2018 = vmax.xlane.f32.xlu1 %v2017_v41  ;;  %v1866_v9 = vpop.xlane.xlu0 %1865  ;;  %5965 = vmatprep.subr.bf16.mxu0 %v5964_v29  ;;  %v2739_v41 = vld [vmem:[#allocation4 + $0x958] sm:$0xff]  ;;  %v2736_v29 = vld [vmem:[#allocation4 + $0x940] sm:$0xff]  ;;  %v2738_v20 = vld [vmem:[#allocation4 + $0x950] sm:$0xff]  ;;  %v2404_v5 = vsel %vm131_vm0, %v1660_v47, -inf }
 0x2a7   :  { %1967 = vmax.xlane.f32.xlu0 %v1966_v8  ;;  %v1869_v53 = vpop.xlane.xlu1 %1868  ;;  %6221 = vmatprep.subr.bf16.mxu1 %v6220_v54  ;;  %v3581_v6 = vrot.slane %v1866_v9, %v8003_v23  ;;  %v2743_v8 = vld [vmem:[#allocation4 + $0x978] sm:$0xff]  ;;  %v2742_v22 = vld [vmem:[#allocation4 + $0x970] sm:$0xff]  ;;  %v5978_v18 = vpack.c.bf16 %v2740_v52, %v2736_v29  ;;  %v2757_v47 = vld [vmem:[#allocation4 + $0x9e8] sm:$0xff] }
 0x2a8   :  { %v3585_v12 = vrot.slane %v1869_v53, %v8008_v32  ;;  %v6232_v27 = vpack.c.bf16 %v2743_v8, %v2739_v41  ;;  %v1644_v19 = vld [vmem:[#allocation2 + $0x720] sm:$0xff] }
 0x2a9   :  { %5967 = vmatpush1.bf16.msra.mxu0 %v5966_v37  ;;  %6223 = vmatpush1.bf16.msra.mxu1 %v6222_v14  ;;  %v2353_v37 = vsel %vm131_vm0, %v1643_v48, -inf  ;;  %v1533_v14 = vld [vmem:[#allocation2 + $0x3a8] sm:$0xff]  ;;  %v2755_v48 = vld [vmem:[#allocation4 + $0x9d8] sm:$0xff] }
 0x2aa   :  { %v9600_v50 = vsel %vm3241_vm1, %v3585_v12, %v3581_v6  ;;  %2402 = vmax.xlane.f32.xlu1 %v2401_v30  ;;  %v1920_v36 = vpop.xlane.xlu0 %1919  ;;  %5969 = vmatprep.subr.bf16.mxu0 %v5968_v0  ;;  %v2749_v30 = vld [vmem:[#allocation4 + $0x9a8] sm:$0xff]  ;;  %v6234_v0 = vpack.c.bf16 %v2742_v22, %v2738_v20  ;;  %v2748_v6 = vld [vmem:[#allocation4 + $0x9a0] sm:$0xff]  ;;  %v2407_v20 = vsel %vm131_vm0, %v1661_v2, -inf  ;;  %v2356_v22 = vsel %vm131_vm0, %v1644_v19, -inf }
 0x2ab   :  { %2351 = vmax.xlane.f32.xlu0 %v2350_v11  ;;  %v2250_v4 = vpop.xlane.xlu1 %2249  ;;  %6225 = vmatprep.subr.bf16.mxu1 %v6224_v17  ;;  %v3669_v63 = vrot.slane %v1920_v36, %v10215_v51  ;;  %v2747_v11 = vld [vmem:[#allocation4 + $0x998] sm:$0xff]  ;;  %v2744_v17 = vld [vmem:[#allocation4 + $0x980] sm:$0xff]  ;;  %v5980_v57 = vpack.c.bf16 %v2749_v30, %v2745_v40  ;;  %v2773_v19 = vld [vmem:[#allocation4 + $0xa68] sm:$0xff] }
 0x2ac   :  { %v10222_v36 = vld [vmem:[#allocation21_spill] sm:$0xff] }
 0x2ad   :  { %5971 = vmatpush1.bf16.msra.mxu0 %v5970_v21  ;;  %6227 = vmatpush1.bf16.msra.mxu1 %v6226_v46  ;;  %v3670_v54 = vsel %vm3248_vm2, %v3669_v63, %v9586_v58  ;;  %v4213_v58 = vrot.slane %v2250_v4, %v8003_v23  ;;  %v2023_v46 = vsel %vm131_vm0, %v1533_v14, -inf  ;;  %v6236_v4 = vpack.c.bf16 %v2751_v13, %v2747_v11  ;;  %v2752_v63 = vld [vmem:[#allocation4 + $0x9c0] sm:$0xff]  ;;  %v2762_v13 = vld [vmem:[#allocation4 + $0xa10] sm:$0xff] }
 0x2ae   :  { %2021 = vmax.xlane.f32.xlu1 %v2020_v26  ;;  %v2253_v60 = vpop.xlane.xlu0 %2252  ;;  %5973 = vmatprep.subr.bf16.mxu0 %v5972_v3  ;;  %v2759_v3 = vld [vmem:[#allocation4 + $0x9f8] sm:$0xff]  ;;  %v2756_v8 = vld [vmem:[#allocation4 + $0x9e0] sm:$0xff] }
 0x2af   :  { %1970 = vmax.xlane.f32.xlu0 %v1969_v10  ;;  %v2304_v49 = vpop.xlane.xlu1 %2303  ;;  %6229 = vmatprep.subr.bf16.mxu1 %v6228_v55  ;;  %v4217_v9 = vrot.slane %v2253_v60, %v8008_v32  ;;  %v5982_v55 = vpack.c.bf16 %v2748_v6, %v2744_v17  ;;  %v1517_v60 = vld [vmem:[#allocation2 + $0x328] sm:$0xff]  ;;  %v5986_v40 = vpack.c.bf16 %v2756_v8, %v2752_v63 }
 0x2b0   :  { %v4301_v53 = vrot.slane %v2304_v49, %v10215_v51  ;;  %v1534_v49 = vld [vmem:[#allocation2 + $0x3b0] sm:$0xff]  ;;  %v2764_v11 = vld [vmem:[#allocation4 + $0xa20] sm:$0xff]  ;;  %v1975_v16 = vsel %vm131_vm0, %v1517_v60, -inf }
 0x2b1   :  { %5975 = vmatpush1.bf16.msra.mxu0 %v5974_v45  ;;  %6231 = vmatpush1.bf16.msra.mxu1 %v6230_v28  ;;  %v4218_v12 = vsel %vm3241_vm1, %v4217_v9, %v4213_v58  ;;  %v2754_v45 = vld [vmem:[#allocation4 + $0x9d0] sm:$0xff]  ;;  %v2026_v6 = vsel %vm131_vm0, %v1534_v49, -inf  ;;  %v2781_v60 = vld [vmem:[#allocation4 + $0xaa8] sm:$0xff] }
 0x2b2   :  { %v4302_v7 = vsel %vm3248_vm2, %v4301_v53, %v9593_v39  ;;  %2405 = vmax.xlane.f32.xlu1 %v2404_v5  ;;  %v1872_v21 = vpop.xlane.xlu0 %1871  ;;  %5977 = vmatprep.subr.bf16.mxu0 %v5976_v1  ;;  %v2753_v39 = vld [vmem:[#allocation4 + $0x9c8] sm:$0xff]  ;;  %v2758_v28 = vld [vmem:[#allocation4 + $0x9f0] sm:$0xff]  ;;  %v2763_v1 = vld [vmem:[#allocation4 + $0xa18] sm:$0xff] }
 0x2b3   :  { %2354 = vmax.xlane.f32.xlu0 %v2353_v37  ;;  %v1923_v56 = vpop.xlane.xlu1 %1922  ;;  %6233 = vmatprep.subr.bf16.mxu1 %v6232_v27  ;;  %v3590_v10 = vrot.slane %v1872_v21, %v10215_v51  ;;  %v5984_v5 = vpack.c.bf16 %v2757_v47, %v2753_v39  ;;  %v2761_v37 = vld [vmem:[#allocation4 + $0xa08] sm:$0xff]  ;;  %v2767_v27 = vld [vmem:[#allocation4 + $0xa38] sm:$0xff]  ;;  %v6242_v58 = vpack.c.bf16 %v2758_v28, %v2754_v45  ;;  %v2760_v53 = vld [vmem:[#allocation4 + $0xa00] sm:$0xff]  ;;  %v2410_v45 = vsel %vm131_vm0, %v1662_v31, -inf }
 0x2b4   :  { %v3674_v26 = vrot.slane %v1923_v56, %v10222_v36  ;;  %v1645_v56 = vld [vmem:[#allocation2 + $0x728] sm:$0xff]  ;;  %v5988_v21 = vpack.c.bf16 %v2765_v33, %v2761_v37  ;;  %v5990_v39 = vpack.c.bf16 %v2764_v11, %v2760_v53 }
 0x2b5   :  { %5979 = vmatpush1.bf16.msra.mxu0 %v5978_v18  ;;  %6235 = vmatpush1.bf16.msra.mxu1 %v6234_v0  ;;  %v3591_v41 = vsel %vm3248_vm2, %v3590_v10, %v9600_v50  ;;  %v2766_v18 = vld [vmem:[#allocation4 + $0xa30] sm:$0xff]  ;;  %v2768_v10 = vld [vmem:[#allocation4 + $0xa40] sm:$0xff]  ;;  %v2359_v28 = vsel %vm131_vm0, %v1645_v56, -inf }
 0x2b6   :  { %v3675_v62 = vsel %vm3255_vm3, %v3674_v26, %v3670_v54  ;;  %2024 = vmax.xlane.f32.xlu1 %v2023_v46  ;;  %v2256_v52 = vpop.xlane.xlu0 %2255  ;;  %5981 = vmatprep.subr.bf16.mxu0 %v5980_v57  ;;  %v6240_v54 = vpack.c.bf16 %v2759_v3, %v2755_v48  ;;  %v6244_v46 = vpack.c.bf16 %v2767_v27, %v2763_v1  ;;  %v2771_v57 = vld [vmem:[#allocation4 + $0xa58] sm:$0xff]  ;;  %v2772_v3 = vld [vmem:[#allocation4 + $0xa60] sm:$0xff]  ;;  %v10224_v31 = vld [vmem:[#allocation23_spill] sm:$0xff] }
 0x2b7   :  { %1973 = vmax.xlane.f32.xlu0 %v1972_v34  ;;  %v2307_v29 = vpop.xlane.xlu1 %2306  ;;  %6237 = vmatprep.subr.bf16.mxu1 %v6236_v4  ;;  %v4222_v14 = vrot.slane %v2256_v52, %v10215_v51  ;;  %v10223_v34 = vld [vmem:[#allocation22_spill] sm:$0xff]  ;;  %v2775_v4 = vld [vmem:[#allocation4 + $0xa78] sm:$0xff]  ;;  %v6246_v26 = vpack.c.bf16 %v2766_v18, %v2762_v13  ;;  %v1518_v52 = vld [vmem:[#allocation2 + $0x330] sm:$0xff]  ;;  %v5994_v37 = vpack.c.bf16 %v2772_v3, %v2768_v10 }
 0x2b8   :  { %v4306_v50 = vrot.slane %v2307_v29, %v10222_v36  ;;  %v1535_v29 = vld [vmem:[#allocation2 + $0x3b8] sm:$0xff]  ;;  %v2780_v27 = vld [vmem:[#allocation4 + $0xaa0] sm:$0xff]  ;;  %v1978_v18 = vsel %vm131_vm0, %v1518_v52, -inf }
 0x2b9   :  { %5983 = vmatpush1.bf16.msra.mxu0 %v5982_v55  ;;  %6239 = vmatpush1.bf16.msra.mxu1 %v6238_v61  ;;  %v4223_v30 = vsel %vm3248_vm2, %v4222_v14, %v4218_v12  ;;  %v2770_v55 = vld [vmem:[#allocation4 + $0xa50] sm:$0xff]  ;;  %v2776_v14 = vld [vmem:[#allocation4 + $0xa80] sm:$0xff]  ;;  %v2029_v13 = vsel %vm131_vm0, %v1535_v29, -inf }
 0x2ba   :  { %v4307_v9 = vsel %vm3255_vm3, %v4306_v50, %v4302_v7  ;;  %2408 = vmax.xlane.f32.xlu1 %v2407_v20  ;;  %v1875_v17 = vpop.xlane.xlu0 %1874  ;;  %5985 = vmatprep.subr.bf16.mxu0 %v5984_v5  ;;  %v2769_v7 = vld [vmem:[#allocation4 + $0xa48] sm:$0xff]  ;;  %v2774_v61 = vld [vmem:[#allocation4 + $0xa70] sm:$0xff]  ;;  %v2779_v5 = vld [vmem:[#allocation4 + $0xa98] sm:$0xff] }
 0x2bb   :  { %2357 = vmax.xlane.f32.xlu0 %v2356_v22  ;;  %v1926_v0 = vpop.xlane.xlu1 %1925  ;;  %6241 = vmatprep.subr.bf16.mxu1 %v6240_v54  ;;  %v3595_v2 = vrot.slane %v1875_v17, %v10222_v36  ;;  %v5992_v20 = vpack.c.bf16 %v2773_v19, %v2769_v7  ;;  %v6248_v22 = vpack.c.bf16 %v2775_v4, %v2771_v57  ;;  %v2783_v54 = vld [vmem:[#allocation4 + $0xab8] sm:$0xff]  ;;  %v1646_v17 = vld [vmem:[#allocation2 + $0x730] sm:$0xff]  ;;  %v2784_v19 = vld [vmem:[#allocation4 + $0xac0] sm:$0xff] }
 0x2bc   :  { %v3679_v12 = vrot.slane %v1926_v0, %v10223_v34  ;;  %v6250_v50 = vpack.c.bf16 %v2774_v61, %v2770_v55  ;;  %v1663_v0 = vld [vmem:[#allocation2 + $0x7b8] sm:$0xff] }
 0x2bd   :  { %5987 = vmatpush1.bf16.msra.mxu0 %v5986_v40  ;;  %6243 = vmatpush1.bf16.msra.mxu1 %v6242_v58  ;;  %v3596_v48 = vsel %vm3255_vm3, %v3595_v2, %v3591_v41  ;;  %v2778_v40 = vld [vmem:[#allocation4 + $0xa90] sm:$0xff]  ;;  %v2791_v7 = vld [vmem:[#allocation4 + $0xaf8] sm:$0xff]  ;;  %v2413_v61 = vsel %vm131_vm0, %v1663_v0, -inf  ;;  %v2801_v0 = vld [vmem:[#allocation4 + $0xb48] sm:$0xff] }
 0x2be   :  { %v3680_v47 = vsel %vm3262_vm4, %v3679_v12, %v3675_v62  ;;  %2027 = vmax.xlane.f32.xlu1 %v2026_v6  ;;  %v2259_v8 = vpop.xlane.xlu0 %2258  ;;  %5989 = vmatprep.subr.bf16.mxu0 %v5988_v21  ;;  %v2777_v62 = vld [vmem:[#allocation4 + $0xa88] sm:$0xff]  ;;  %v2782_v58 = vld [vmem:[#allocation4 + $0xab0] sm:$0xff]  ;;  %v5998_v12 = vpack.c.bf16 %v2780_v27, %v2776_v14 }
 0x2bf   :  { %1976 = vmax.xlane.f32.xlu0 %v1975_v16  ;;  %v2310_v63 = vpop.xlane.xlu1 %2309  ;;  %6245 = vmatprep.subr.bf16.mxu1 %v6244_v46  ;;  %v4227_v49 = vrot.slane %v2259_v8, %v10222_v36  ;;  %v5996_v6 = vpack.c.bf16 %v2781_v60, %v2777_v62  ;;  %v6252_v16 = vpack.c.bf16 %v2783_v54, %v2779_v5  ;;  %v2789_v21 = vld [vmem:[#allocation4 + $0xae8] sm:$0xff]  ;;  %v2787_v46 = vld [vmem:[#allocation4 + $0xad8] sm:$0xff]  ;;  %v2790_v10 = vld [vmem:[#allocation4 + $0xaf0] sm:$0xff] }
 0x2c0   :  { %v4311_v41 = vrot.slane %v2310_v63, %v10223_v34  ;;  %v6254_v2 = vpack.c.bf16 %v2782_v58, %v2778_v40  ;;  %v2362_v63 = vsel %vm131_vm0, %v1646_v17, -inf  ;;  %v1536_v8 = vld [vmem:[#allocation2 + $0x3c0] sm:$0xff]  ;;  %v6256_v29 = vpack.c.bf16 %v2791_v7, %v2787_v46  ;;  %v2798_v14 = vld [vmem:[#allocation4 + $0xb30] sm:$0xff] }
 0x2c1   :  { %5991 = vmatpush1.bf16.msra.mxu0 %v5990_v39  ;;  %6247 = vmatpush1.bf16.msra.mxu1 %v6246_v26  ;;  %v4228_v1 = vsel %vm3255_vm3, %v4227_v49, %v4223_v30  ;;  %v2788_v39 = vld [vmem:[#allocation4 + $0xae0] sm:$0xff]  ;;  %v2786_v26 = vld [vmem:[#allocation4 + $0xad0] sm:$0xff]  ;;  %v2799_v62 = vld [vmem:[#allocation4 + $0xb38] sm:$0xff]  ;;  %v2032_v58 = vsel %vm131_vm0, %v1536_v8, -inf }
 0x2c2   :  { %v4312_v33 = vsel %vm3262_vm4, %v4311_v41, %v4307_v9  ;;  %2411 = vmax.xlane.f32.xlu1 %v2410_v45  ;;  %v1878_v11 = vpop.xlane.xlu0 %1877  ;;  %5993 = vmatprep.subr.bf16.mxu0 %v5992_v20  ;;  %v2785_v9 = vld [vmem:[#allocation4 + $0xac8] sm:$0xff]  ;;  %v1519_v45 = vld [vmem:[#allocation2 + $0x338] sm:$0xff]  ;;  %v6002_v41 = vpack.c.bf16 %v2788_v39, %v2784_v19  ;;  %v6258_v49 = vpack.c.bf16 %v2790_v10, %v2786_v26  ;;  %v2792_v60 = vld [vmem:[#allocation4 + $0xb00] sm:$0xff] }
 0x2c3   :  { %2360 = vmax.xlane.f32.xlu0 %v2359_v28  ;;  %v1929_v53 = vpop.xlane.xlu1 %1928  ;;  %6249 = vmatprep.subr.bf16.mxu1 %v6248_v22  ;;  %v3600_v56 = vrot.slane %v1878_v11, %v10223_v34  ;;  %v6000_v28 = vpack.c.bf16 %v2789_v21, %v2785_v9  ;;  %v2797_v20 = vld [vmem:[#allocation4 + $0xb28] sm:$0xff]  ;;  %v2795_v22 = vld [vmem:[#allocation4 + $0xb18] sm:$0xff]  ;;  %v2800_v46 = vld [vmem:[#allocation4 + $0xb40] sm:$0xff] }
 0x2c4   :  { %v3684_v30 = vrot.slane %v1929_v53, %v10224_v31  ;;  %v1981_v53 = vsel %vm131_vm0, %v1519_v45, -inf  ;;  %v1664_v11 = vld [vmem:[#allocation2 + $0x7c0] sm:$0xff]  ;;  %v10227_v17 = vld [vmem:[#allocation24_spill] sm:$0xff] }
 0x2c5   :  { %5995 = vmatpush1.bf16.msra.mxu0 %v5994_v37  ;;  %6251 = vmatpush1.bf16.msra.mxu1 %v6250_v50  ;;  %v3601_v4 = vsel %vm3262_vm4, %v3600_v56, %v3596_v48  ;;  %v2796_v37 = vld [vmem:[#allocation4 + $0xb20] sm:$0xff]  ;;  %v2794_v50 = vld [vmem:[#allocation4 + $0xb10] sm:$0xff]  ;;  %v2803_v9 = vld [vmem:[#allocation4 + $0xb58] sm:$0xff] }
 0x2c6   :  { %v3685_v57 = vsel %vm10225_vm5, %v3684_v30, %v3680_v47  ;;  %2030 = vmax.xlane.f32.xlu1 %v2029_v13  ;;  %v2262_v55 = vpop.xlane.xlu0 %2261  ;;  %5997 = vmatprep.subr.bf16.mxu0 %v5996_v6  ;;  %v2793_v47 = vld [vmem:[#allocation4 + $0xb08] sm:$0xff]  ;;  %v1647_v13 = vld [vmem:[#allocation2 + $0x738] sm:$0xff]  ;;  %v6006_v56 = vpack.c.bf16 %v2796_v37, %v2792_v60  ;;  %v6262_v21 = vpack.c.bf16 %v2798_v14, %v2794_v50  ;;  %vm10228_vm5 = vcmask 458112  }
 0x2c7   :  { %1979 = vmax.xlane.f32.xlu0 %v1978_v18  ;;  %v2313_v3 = vpop.xlane.xlu1 %2312  ;;  %6253 = vmatprep.subr.bf16.mxu1 %v6252_v16  ;;  %v4232_v52 = vrot.slane %v2262_v55, %v10223_v34  ;;  %v6004_v18 = vpack.c.bf16 %v2797_v20, %v2793_v47  ;;  %v2805_v16 = vld [vmem:[#allocation4 + $0xb68] sm:$0xff]  ;;  %v2807_v30 = vld [vmem:[#allocation4 + $0xb78] sm:$0xff]  ;;  %v2802_v19 = vld [vmem:[#allocation4 + $0xb50] sm:$0xff]  ;;  %v2365_v55 = vsel %vm131_vm0, %v1647_v13, -inf }
 0x2c8   :  { %v4316_v48 = vrot.slane %v2313_v3, %v10224_v31  ;;  %v2806_v39 = vld [vmem:[#allocation4 + $0xb70] sm:$0xff]  ;;  %v2416_v3 = vsel %vm131_vm0, %v1664_v11, -inf  ;;  %v6264_v8 = vpack.c.bf16 %v2807_v30, %v2803_v9  ;;  %v2815_v47 = vld [vmem:[#allocation4 + $0xbb8] sm:$0xff]  ;;  %v2808_v20 = vld [vmem:[#allocation4 + $0xb80] sm:$0xff] }
 0x2c9   :  { %5999 = vmatpush1.bf16.msra.mxu0 %v5998_v12  ;;  %6255 = vmatpush1.bf16.msra.mxu1 %v6254_v2  ;;  %v4233_v54 = vsel %vm3262_vm4, %v4232_v52, %v4228_v1  ;;  %v2804_v2 = vld [vmem:[#allocation4 + $0xb60] sm:$0xff]  ;;  %v6266_v52 = vpack.c.bf16 %v2806_v39, %v2802_v19  ;;  %v2821_v11 = vld [vmem:[#allocation4 + $0xbe8] sm:$0xff]  ;;  %v2819_v13 = vld [vmem:[#allocation4 + $0xbd8] sm:$0xff] }
 0x2ca   :  { %v9651_v5 = vsel %vm10226_vm6, %v4316_v48, %v4312_v33  ;;  %2414 = vmax.xlane.f32.xlu1 %v2413_v61  ;;  %v1881_v40 = vpop.xlane.xlu0 %1880  ;;  %6001 = vmatprep.subr.bf16.mxu0 %v6000_v28  ;;  %v6260_v33 = vpack.c.bf16 %v2799_v62, %v2795_v22  ;;  %v1537_v61 = vld [vmem:[#allocation2 + $0x3c8] sm:$0xff]  ;;  %v6010_v48 = vpack.c.bf16 %v2804_v2, %v2800_v46  ;;  %v2822_v9 = vld [vmem:[#allocation4 + $0xbf0] sm:$0xff] }
 0x2cb   :  { %2363 = vmax.xlane.f32.xlu0 %v2362_v63  ;;  %v1932_v27 = vpop.xlane.xlu1 %1931  ;;  %6257 = vmatprep.subr.bf16.mxu1 %v6256_v29  ;;  %v3605_v6 = vrot.slane %v1881_v40, %v10224_v31  ;;  %v1520_v63 = vld [vmem:[#allocation2 + $0x340] sm:$0xff]  ;;  %v2813_v28 = vld [vmem:[#allocation4 + $0xba8] sm:$0xff]  ;;  %v2035_v50 = vsel %vm131_vm0, %v1537_v61, -inf }
 0x2cc   :  { %v3689_v1 = vrot.slane %v1932_v27, %v10227_v17  ;;  %v2811_v29 = vld [vmem:[#allocation4 + $0xb98] sm:$0xff]  ;;  %v2812_v62 = vld [vmem:[#allocation4 + $0xba0] sm:$0xff]  ;;  %v1984_v14 = vsel %vm131_vm0, %v1520_v63, -inf  ;;  %v1538_v39 = vld [vmem:[#allocation2 + $0x3d0] sm:$0xff] }
 0x2cd   :  { %6003 = vmatpush1.bf16.msra.mxu0 %v6002_v41  ;;  %6259 = vmatpush1.bf16.msra.mxu1 %v6258_v49  ;;  %v9662_v12 = vsel %vm10226_vm6, %v3605_v6, %v3601_v4  ;;  %v2809_v4 = vld [vmem:[#allocation4 + $0xb88] sm:$0xff]  ;;  %v2810_v41 = vld [vmem:[#allocation4 + $0xb90] sm:$0xff]  ;;  %v1648_v40 = vld [vmem:[#allocation2 + $0x740] sm:$0xff] }
 0x2ce   :  { %v9659_v7 = vsel %vm10228_vm5, %v3689_v1, %v3685_v57  ;;  %2033 = vmax.xlane.f32.xlu1 %v2032_v58  ;;  %v2265_v10 = vpop.xlane.xlu0 %2264  ;;  %6005 = vmatprep.subr.bf16.mxu0 %v6004_v18  ;;  %v6008_v57 = vpack.c.bf16 %v2805_v16, %v2801_v0  ;;  %vm10229_vm5 = vmmov %vm10226_vm6  ;;  %v2814_v49 = vld [vmem:[#allocation4 + $0xbb0] sm:$0xff]  ;;  %v1665_v27 = vld [vmem:[#allocation2 + $0x7c8] sm:$0xff]  ;;  %v6012_v58 = vpack.c.bf16 %v2813_v28, %v2809_v4  ;;  %v2368_v46 = vsel %vm131_vm0, %v1648_v40, -inf }
 0x2cf   :  { %1982 = vmax.xlane.f32.xlu0 %v1981_v53  ;;  %v9664_v26 = vpop.xlane.xlu1 %2315  ;;  %6261 = vmatprep.subr.bf16.mxu1 %v6260_v33  ;;  %v4237_v45 = vrot.slane %v2265_v10, %v10224_v31  ;;  %v2817_v53 = vld [vmem:[#allocation4 + $0xbc8] sm:$0xff]  ;;  %v2823_v18 = vld [vmem:[#allocation4 + $0xbf8] sm:$0xff]  ;;  %v6014_v33 = vpack.c.bf16 %v2812_v62, %v2808_v20  ;;  %v6270_v0 = vpack.c.bf16 %v2814_v49, %v2810_v41  ;;  %v2816_v1 = vld [vmem:[#allocation4 + $0xbc0] sm:$0xff]  ;;  %vm10230_vm6 = vcmask 458112  }
 0x2d0   :  { %v2820_v6 = vld [vmem:[#allocation4 + $0xbe0] sm:$0xff]  ;;  %v2818_v16 = vld [vmem:[#allocation4 + $0xbd0] sm:$0xff]  ;;  %v6016_v2 = vpack.c.bf16 %v2821_v11, %v2817_v53  ;;  %v6272_v19 = vpack.c.bf16 %v2823_v18, %v2819_v13  ;;  %v2825_v28 = vld [vmem:[#allocation4 + $0xc08] sm:$0xff] }
 0x2d1   :  { %6007 = vmatpush1.bf16.msra.mxu0 %v6006_v56  ;;  %6263 = vmatpush1.bf16.msra.mxu1 %v6262_v21  ;;  %v9670_v22 = vsel %vm10229_vm5, %v4237_v45, %v4233_v54  ;;  %v6268_v54 = vpack.c.bf16 %v2815_v47, %v2811_v29  ;;  %v2419_v21 = vsel %vm131_vm0, %v1665_v27, -inf  ;;  %v1521_v10 = vld [vmem:[#allocation2 + $0x348] sm:$0xff]  ;;  %v1666_v4 = vld [vmem:[#allocation2 + $0x7d0] sm:$0xff]  ;;  %v2827_v47 = vld [vmem:[#allocation4 + $0xc18] sm:$0xff] }
 0x2d2   :  { %2417 = vmax.xlane.f32.xlu1 %v2416_v3  ;;  %v9674_v37 = vpop.xlane.xlu0 %1883  ;;  %6009 = vmatprep.subr.bf16.mxu0 %v6008_v57  ;;  %v6018_v3 = vpack.c.bf16 %v2820_v6, %v2816_v1  ;;  %v2038_v57 = vsel %vm131_vm0, %v1538_v39, -inf  ;;  %v1649_v45 = vld [vmem:[#allocation2 + $0x748] sm:$0xff]  ;;  %v2422_v41 = vsel %vm131_vm0, %v1666_v4, -inf  ;;  %v1522_v27 = vld [vmem:[#allocation2 + $0x350] sm:$0xff]  ;;  %v1667_v11 = vld [vmem:[#allocation2 + $0x7d8] sm:$0xff] }
 0x2d3   :  { %2366 = vmax.xlane.f32.xlu0 %v2365_v55  ;;  %v9672_v60 = vpop.xlane.xlu1 %1934  ;;  %6265 = vmatprep.subr.bf16.mxu1 %v6264_v8  ;;  %v6274_v55 = vpack.c.bf16 %v2822_v9, %v2818_v16  ;;  %v1987_v8 = vsel %vm131_vm0, %v1521_v10, -inf  ;;  %v2829_v29 = vld [vmem:[#allocation4 + $0xc28] sm:$0xff]  ;;  %v2371_v49 = vsel %vm131_vm0, %v1649_v45, -inf  ;;  %v1990_v53 = vsel %vm131_vm0, %v1522_v27, -inf  ;;  %v1540_v6 = vld [vmem:[#allocation2 + $0x3e0] sm:$0xff]  ;;  %v1523_v16 = vld [vmem:[#allocation2 + $0x358] sm:$0xff] }
 0x2d4   :  { %v1650_v13 = vld [vmem:[#allocation2 + $0x750] sm:$0xff]  ;;  %v1651_v39 = vld [vmem:[#allocation2 + $0x758] sm:$0xff]  ;;  %v1524_v4 = vld [vmem:[#allocation2 + $0x360] sm:$0xff] }
 0x2d5   :  { %6011 = vmatpush1.bf16.msra.mxu0 %v6010_v48  ;;  %6267 = vmatpush1.bf16.msra.mxu1 %v6266_v52  ;;  %v6020_v48 = vpack.c.bf16 %v2829_v29, %v2825_v28  ;;  %v2831_v52 = vld [vmem:[#allocation4 + $0xc38] sm:$0xff]  ;;  %v2374_v1 = vsel %vm131_vm0, %v1650_v13, -inf  ;;  %v1542_v27 = vld [vmem:[#allocation2 + $0x3f0] sm:$0xff]  ;;  %vm10231_vm5 = vmmov %vm10230_vm6 }
 0x2d6   :  { %2036 = vmax.xlane.f32.xlu1 %v2035_v50  ;;  %v9680_v56 = vpop.xlane.xlu0 %2267  ;;  %6013 = vmatprep.subr.bf16.mxu0 %v6012_v58  ;;  %v6276_v50 = vpack.c.bf16 %v2831_v52, %v2827_v47  ;;  %v1996_v47 = vsel %vm131_vm0, %v1524_v4, -inf  ;;  %v1652_v52 = vld [vmem:[#allocation2 + $0x760] sm:$0xff]  ;;  %v2050_v13 = vsel %vm131_vm0, %v1542_v27, -inf }
 0x2d7   :  { %1985 = vmax.xlane.f32.xlu0 %v1984_v14  ;;  %v9678_v30 = vpop.xlane.xlu1 %2318  ;;  %6269 = vmatprep.subr.bf16.mxu1 %v6268_v54  ;;  %v1539_v14 = vld [vmem:[#allocation2 + $0x3d8] sm:$0xff] }
 0x2d8   :  { %v2041_v54 = vsel %vm131_vm0, %v1539_v14, -inf  ;;  %v2380_v14 = vsel %vm131_vm0, %v1652_v52, -inf  ;;  %v4321_v52 = vrot.slane %v9664_v26, %v10227_v17  ;;  %v4242_v26 = vrot.slane %v9680_v56, %v10227_v17 }
 0x2d9   :  { %6015 = vmatpush1.bf16.msra.mxu0 %v6014_v33  ;;  %6271 = vmatpush1.bf16.msra.mxu1 %v6270_v0  ;;  %v2425_v0 = vsel %vm131_vm0, %v1667_v11, -inf }
 0x2da   :  { %2420 = vmax.xlane.f32.xlu1 %v2419_v21  ;;  %v9686_v63 = vpop.xlane.xlu0 %1886  ;;  %6017 = vmatprep.subr.bf16.mxu0 %v6016_v2  ;;  %v1993_v2 = vsel %vm131_vm0, %v1523_v16, -inf }
 0x2db   :  { %2369 = vmax.xlane.f32.xlu0 %v2368_v46  ;;  %v9684_v61 = vpop.xlane.xlu1 %1937  ;;  %6273 = vmatprep.subr.bf16.mxu1 %v6272_v19  ;;  %v2044_v46 = vsel %vm131_vm0, %v1540_v6, -inf  ;;  %v1668_v19 = vld [vmem:[#allocation2 + $0x7e0] sm:$0xff]  ;;  %v1653_v6 = vld [vmem:[#allocation2 + $0x768] sm:$0xff] }
 0x2dd   :  { %6019 = vmatpush1.bf16.msra.mxu0 %v6018_v3  ;;  %6275 = vmatpush1.bf16.msra.mxu1 %v6274_v55  ;;  %v2428_v55 = vsel %vm131_vm0, %v1668_v19, -inf  ;;  %v2383_v19 = vsel %vm131_vm0, %v1653_v6, -inf  ;;  %v3610_v6 = vrot.slane %v9674_v37, %v10227_v17 }
 0x2de   :  { %2039 = vmax.xlane.f32.xlu1 %v2038_v57  ;;  %v9692_v62 = vpop.xlane.xlu0 %2270  ;;  %6021 = vmatprep.subr.bf16.mxu0 %v6020_v48  ;;  %v2377_v57 = vsel %vm131_vm0, %v1651_v39, -inf  ;;  %v1669_v48 = vld [vmem:[#allocation2 + $0x7e8] sm:$0xff]  ;;  %v1543_v39 = vld [vmem:[#allocation2 + $0x3f8] sm:$0xff] }
 0x2df   :  { %1988 = vmax.xlane.f32.xlu0 %v1987_v8  ;;  %v9690_v20 = vpop.xlane.xlu1 %2321  ;;  %6277 = vmatprep.subr.bf16.mxu1 %v6276_v50  ;;  %v1541_v8 = vld [vmem:[#allocation2 + $0x3e8] sm:$0xff]  ;;  %v2431_v50 = vsel %vm131_vm0, %v1669_v48, -inf  ;;  %v2053_v4 = vsel %vm131_vm0, %v1543_v39, -inf  ;;  %v1654_v48 = vld [vmem:[#allocation2 + $0x770] sm:$0xff] }
 0x2e0   :  { %v2047_v29 = vsel %vm131_vm0, %v1541_v8, -inf  ;;  %v4331_v56 = vrot.slane %v9690_v20, %v8458_v25 }
 0x2e2   :  { %2423 = vmax.xlane.f32.xlu1 %v2422_v41  ;;  %v9698_v58 = vpop.xlane.xlu0 %1889 }
 0x2e3   :  { %2372 = vmax.xlane.f32.xlu0 %v2371_v49  ;;  %v9696_v40 = vpop.xlane.xlu1 %1940 }
 0x2e6   :  { %2042 = vmax.xlane.f32.xlu1 %v2041_v54  ;;  %v1525_v54 = vld [vmem:[#allocation2 + $0x368] sm:$0xff] }
 0x2e7   :  { %1991 = vmax.xlane.f32.xlu0 %v1990_v53  ;;  %v9702_v18 = vpop.xlane.xlu1 %2324  ;;  %v9704_v33 = vpop.xlane.xlu0 %2273 }
 0x2ea   :  { %2426 = vmax.xlane.f32.xlu1 %v2425_v0  ;;  %v1999_v0 = vsel %vm131_vm0, %v1525_v54, -inf }
 0x2eb   :  { %2375 = vmax.xlane.f32.xlu0 %v2374_v1  ;;  %v9708_v9 = vpop.xlane.xlu1 %1943  ;;  %v1670_v1 = vld [vmem:[#allocation2 + $0x7f0] sm:$0xff] }
 0x2ec   :  { %v9710_v21 = vpop.xlane.xlu0 %1892 }
 0x2ee   :  { %2045 = vmax.xlane.f32.xlu1 %v2044_v46 }
 0x2ef   :  { %1994 = vmax.xlane.f32.xlu0 %v1993_v2  ;;  %v9714_v10 = vpop.xlane.xlu1 %2327  ;;  %v2434_v2 = vsel %vm131_vm0, %v1670_v1, -inf  ;;  %v1527_v1 = vld [vmem:[#allocation2 + $0x378] sm:$0xff] }
 0x2f0   :  { %v9716_v3 = vpop.xlane.xlu0 %2276  ;;  %v2005_v39 = vsel %vm131_vm0, %v1527_v1, -inf }
 0x2f2   :  { %2429 = vmax.xlane.f32.xlu1 %v2428_v55  ;;  %v1526_v55 = vld [vmem:[#allocation2 + $0x370] sm:$0xff] }
 0x2f3   :  { %2378 = vmax.xlane.f32.xlu0 %v2377_v57  ;;  %v9720_v45 = vpop.xlane.xlu1 %1946 }
 0x2f4   :  { %v9722_v28 = vpop.xlane.xlu0 %1895 }
 0x2f6   :  { %2048 = vmax.xlane.f32.xlu1 %v2047_v29  ;;  %v2002_v29 = vsel %vm131_vm0, %v1526_v55, -inf  ;;  %v4322_v55 = vsel %vm10230_vm6, %v4321_v52, %v9651_v5  ;;  %v4247_v5 = vrot.slane %v9692_v62, %v8452_v15  ;;  %vm10233_vm6 = vcmask 589312  }
 0x2f7   :  { %1997 = vmax.xlane.f32.xlu0 %v1996_v47  ;;  %v9726_v41 = vpop.xlane.xlu1 %2330  ;;  %v1671_v47 = vld [vmem:[#allocation2 + $0x7f8] sm:$0xff]  ;;  %v4336_v52 = vrot.slane %v9702_v18, %v8461_v35  ;;  %v3709_v62 = vrot.slane %v9708_v9, %v8464_v38  ;;  %v4257_v18 = vrot.slane %v9716_v3, %v8461_v35 }
 0x2f8   :  { %v9728_v49 = vpop.xlane.xlu0 %2279  ;;  %v2437_v54 = vsel %vm131_vm0, %v1671_v47, -inf  ;;  %v4346_v3 = vrot.slane %v9726_v41, %v8471_v42 }
 0x2fa   :  { %2432 = vmax.xlane.f32.xlu1 %v2431_v50  ;;  %v3694_v50 = vrot.slane %v9672_v60, %v8452_v15  ;;  %v3699_v60 = vrot.slane %v9684_v61, %v8458_v25 }
 0x2fb   :  { %2381 = vmax.xlane.f32.xlu0 %v2380_v14  ;;  %v9732_v53 = vpop.xlane.xlu1 %1949 }
 0x2fc   :  { %v9734_v11 = vpop.xlane.xlu0 %1898  ;;  %v3695_v37 = vsel %vm3283_vm7, %v3694_v50, %v9659_v7  ;;  %v3704_v7 = vrot.slane %v9696_v40, %v8461_v35  ;;  %v3625_v40 = vrot.slane %v9710_v21, %v8461_v35  ;;  %v3714_v21 = vrot.slane %v9720_v45, %v8471_v42 }
 0x2fd   :  { %v3700_v20 = vsel %vm10233_vm6, %v3699_v60, %v3695_v37  ;;  %v3719_v45 = vrot.slane %v9732_v53, %v8474_v43 }
 0x2fe   :  { %2051 = vmax.xlane.f32.xlu1 %v2050_v13  ;;  %v2386_v13 = vsel %vm131_vm0, %v1654_v48, -inf  ;;  %v3620_v48 = vrot.slane %v9698_v58, %v8458_v25  ;;  %v4341_v58 = vrot.slane %v9714_v10, %v8464_v38 }
 0x2ff   :  { %2000 = vmax.xlane.f32.xlu0 %v1999_v0  ;;  %v9738_v16 = vpop.xlane.xlu1 %2333  ;;  %v1655_v0 = vld [vmem:[#allocation2 + $0x778] sm:$0xff] }
 0x300   :  { %v9740_v46 = vpop.xlane.xlu0 %2282  ;;  %v4351_v41 = vrot.slane %v9738_v16, %v8474_v43 }
 0x302   :  { %2435 = vmax.xlane.f32.xlu1 %v2434_v2  ;;  %v4326_v2 = vrot.slane %v9678_v30, %v8452_v15  ;;  %v3615_v30 = vrot.slane %v9686_v63, %v8452_v15 }
 0x303   :  { %2384 = vmax.xlane.f32.xlu0 %v2383_v19  ;;  %v9744_v57 = vpop.xlane.xlu1 %1952  ;;  %v2389_v19 = vsel %vm131_vm0, %v1655_v0, -inf  ;;  %vm10232_vm0 = vmmov %vm10231_vm5  ;;  %v3630_v0 = vrot.slane %v9722_v28, %v8464_v38 }
 0x304   :  { %v9746_v8 = vpop.xlane.xlu0 %1901  ;;  %v4327_v47 = vsel %vm3283_vm7, %v4326_v2, %v4322_v55  ;;  %v4243_v63 = vsel %vm10232_vm0, %v4242_v26, %v9670_v22 }
 0x305   :  { %v4248_v9 = vsel %vm3283_vm7, %v4247_v5, %v4243_v63 }
 0x306   :  { %2054 = vmax.xlane.f32.xlu1 %v2053_v4 }
 0x307   :  { %2003 = vmax.xlane.f32.xlu0 %v2002_v29  ;;  %v9754_v14 = vpop.xlane.xlu1 %2336  ;;  %v3611_v29 = vsel %vm10231_vm5, %v3610_v6, %v9662_v12  ;;  %v4252_v12 = vrot.slane %v9704_v33, %v8458_v25  ;;  %vm10234_vm5 = vmmov %vm10233_vm6  ;;  %v4262_v6 = vrot.slane %v9728_v49, %v8464_v38 }
 0x308   :  { %v9756_v27 = vpop.xlane.xlu0 %2285  ;;  %v3616_v22 = vsel %vm3283_vm7, %v3615_v30, %v3611_v29  ;;  %v4332_v50 = vsel %vm10234_vm5, %v4331_v56, %v4327_v47  ;;  %vm10235_vm0 = vmmov %vm10234_vm5  ;;  %v3724_v56 = vrot.slane %v9744_v57, %v8477_v44  ;;  %v4356_v53 = vrot.slane %v9754_v14, %v8477_v44 }
 0x309   :  { %v3621_v1 = vsel %vm10235_vm0, %v3620_v48, %v3616_v22  ;;  %v4337_v10 = vsel %vm3297_vm9, %v4336_v52, %v4332_v50  ;;  %vm10236_vm6 = vmmov %vm10235_vm0  ;;  %v3640_v57 = vrot.slane %v9746_v8, %v8474_v43  ;;  %v4272_v48 = vrot.slane %v9756_v27, %v8474_v43 }
 0x30a   :  { %2438 = vmax.xlane.f32.xlu1 %v2437_v54  ;;  %v4253_v2 = vsel %vm10236_vm6, %v4252_v12, %v4248_v9  ;;  %v3626_v60 = vsel %vm3297_vm9, %v3625_v40, %v3621_v1  ;;  %v4342_v28 = vsel %vm3304_vm10, %v4341_v58, %v4337_v10  ;;  %v2833_v1 = vld [vmem:[#allocation4 + $0xc48] sm:$0xff] }
 0x30b   :  { %2387 = vmax.xlane.f32.xlu0 %v2386_v13  ;;  %v9778_v4 = vpop.xlane.xlu1 %1955  ;;  %v3705_v13 = vsel %vm3297_vm9, %v3704_v7, %v3700_v20  ;;  %v3631_v30 = vsel %vm3304_vm10, %v3630_v0, %v3626_v60  ;;  %v4347_v29 = vsel %vm3311_vm11, %v4346_v3, %v4342_v28  ;;  %v4267_v7 = vrot.slane %v9740_v46, %v8471_v42  ;;  %v2830_v0 = vld [vmem:[#allocation4 + $0xc30] sm:$0xff]  ;;  %v2837_v60 = vld [vmem:[#allocation4 + $0xc68] sm:$0xff]  ;;  %v2839_v28 = vld [vmem:[#allocation4 + $0xc78] sm:$0xff] }
 0x30c   :  { %v9780_v61 = vpop.xlane.xlu0 %1904  ;;  %v3710_v26 = vsel %vm3304_vm10, %v3709_v62, %v3705_v13  ;;  %v4352_v20 = vsel %vm3318_vm12, %v4351_v41, %v4347_v29 }
 0x30d   :  { %v3715_v37 = vsel %vm3311_vm11, %v3714_v21, %v3710_v26  ;;  %v4357_v46 = vsel %vm3325_vm13, %v4356_v53, %v4352_v20  ;;  %v2826_v21 = vld [vmem:[#allocation4 + $0xc10] sm:$0xff]  ;;  %v2836_v53 = vld [vmem:[#allocation4 + $0xc60] sm:$0xff] }
 0x30e   :  { %2390 = vmax.xlane.f32.xlu1 %v2389_v19  ;;  %v4258_v19 = vsel %vm3297_vm9, %v4257_v18, %v4253_v2  ;;  %v3720_v5 = vsel %vm3318_vm12, %v3719_v45, %v3715_v37  ;;  %v2828_v18 = vld [vmem:[#allocation4 + $0xc20] sm:$0xff]  ;;  %v2835_v45 = vld [vmem:[#allocation4 + $0xc58] sm:$0xff] }
 0x30f   :  { %2006 = vmax.xlane.f32.xlu0 %v2005_v39  ;;  %v2340_v54 = vpop.xlane.xlu1 %2339  ;;  %v3635_v39 = vrot.slane %v9734_v11, %v8471_v42  ;;  %v4263_v47 = vsel %vm3304_vm10, %v4262_v6, %v4258_v19  ;;  %v3729_v11 = vrot.slane %v9778_v4, %v8492_v59  ;;  %v3645_v4 = vrot.slane %v9780_v61, %v8477_v44  ;;  %v2824_v61 = vld [vmem:[#allocation4 + $0xc00] sm:$0xff] }
 0x310   :  { %v9808_v33 = vpop.xlane.xlu0 %2288  ;;  %v4361_v16 = vrot.slane %v2340_v54, %v8492_v59  ;;  %v3725_v62 = vsel %vm3325_vm13, %v3724_v56, %v3720_v5  ;;  %v4268_v54 = vsel %vm3311_vm11, %v4267_v7, %v4263_v47  ;;  %v6022_v37 = vpack.c.bf16 %v2828_v18, %v2824_v61  ;;  %v2832_v56 = vld [vmem:[#allocation4 + $0xc40] sm:$0xff]  ;;  %v2834_v5 = vld [vmem:[#allocation4 + $0xc50] sm:$0xff] }
 0x311   :  { %v3636_v14 = vsel %vm3311_vm11, %v3635_v39, %v3631_v30  ;;  %v4277_v8 = vrot.slane %v9808_v33, %v8477_v44  ;;  %v3730_v22 = vsel %vm3332_vm14, %v3729_v11, %v3725_v62  ;;  %v4273_v10 = vsel %vm3318_vm12, %v4272_v48, %v4268_v54  ;;  %v2838_v7 = vld [vmem:[#allocation4 + $0xc70] sm:$0xff]  ;;  %v2845_v48 = vld [vmem:[#allocation4 + $0xca8] sm:$0xff] }
 0x312   :  { %v4362_v50 = vsel %vm3332_vm14, %v4361_v16, %v4357_v46  ;;  %v3641_v9 = vsel %vm3318_vm12, %v3640_v57, %v3636_v14  ;;  %v6278_v30 = vpack.c.bf16 %v2830_v0, %v2826_v21  ;;  %v6024_v11 = vpack.c.bf16 %v2837_v60, %v2833_v1  ;;  %v2841_v57 = vld [vmem:[#allocation4 + $0xc88] sm:$0xff]  ;;  %v2842_v61 = vld [vmem:[#allocation4 + $0xc90] sm:$0xff]  ;;  %v2851_v21 = vld [vmem:[#allocation4 + $0xcd8] sm:$0xff] }
 0x313   :  { %v1959_v49 = vpop.xlane.xlu1 %1958  ;;  %v3646_v3 = vsel %vm3325_vm13, %v3645_v4, %v3641_v9  ;;  %v4278_v19 = vsel %vm3325_vm13, %v4277_v8, %v4273_v10  ;;  %v6280_v16 = vpack.c.bf16 %v2839_v28, %v2835_v45  ;;  %v2843_v4 = vld [vmem:[#allocation4 + $0xc98] sm:$0xff]  ;;  %v6026_v46 = vpack.c.bf16 %v2836_v53, %v2832_v56  ;;  %v2846_v18 = vld [vmem:[#allocation4 + $0xcb0] sm:$0xff]  ;;  %v2849_v54 = vld [vmem:[#allocation4 + $0xcc8] sm:$0xff] }
 0x314   :  { %v1908_v55 = vpop.xlane.xlu0 %1907  ;;  %v3734_v63 = vrot.slane %v1959_v49, %v8495_v24  ;;  %v6282_v8 = vpack.c.bf16 %v2838_v7, %v2834_v5  ;;  %v2855_v0 = vld [vmem:[#allocation4 + $0xcf8] sm:$0xff]  ;;  %v2860_v5 = vld [vmem:[#allocation4 + $0xd20] sm:$0xff] }
 0x315   :  { %v3650_v27 = vrot.slane %v1908_v55, %v8492_v59  ;;  %v6288_v28 = vpack.c.bf16 %v2855_v0, %v2851_v21  ;;  %v2863_v56 = vld [vmem:[#allocation4 + $0xd38] sm:$0xff]  ;;  %v2877_v21 = vld [vmem:[#allocation4 + $0xda8] sm:$0xff] }
 0x316   :  { %v3735_v13 = vsel %vm3339_vm15, %v3734_v63, %v3730_v22  ;;  %v2844_v22 = vld [vmem:[#allocation4 + $0xca0] sm:$0xff] }
 0x317   :  { %v2343_v52 = vpop.xlane.xlu1 %2342  ;;  %v3651_v49 = vsel %vm3332_vm14, %v3650_v27, %v3646_v3  ;;  %v6028_v27 = vpack.c.bf16 %v2845_v48, %v2841_v57  ;;  %v2865_v48 = vld [vmem:[#allocation4 + $0xd48] sm:$0xff] }
 0x318   :  { %v2292_v12 = vpop.xlane.xlu0 %2291  ;;  %v4366_v40 = vrot.slane %v2343_v52, %v8495_v24  ;;  %v2847_v52 = vld [vmem:[#allocation4 + $0xcb8] sm:$0xff] }
 0x319   :  { %v4282_v58 = vrot.slane %v2292_v12, %v8492_v59 }
 0x31a   :  { %v4367_v33 = vsel %vm3339_vm15, %v4366_v40, %v4362_v50  ;;  %v2840_v40 = vld [vmem:[#allocation4 + $0xc80] sm:$0xff] }
 0x31b   :  { %v2295_v6 = vpop.xlane.xlu1 %2294  ;;  %v4532_v26 = vsel %vm4526_vm8, %v4367_v33, %v3735_v13  ;;  %v4283_v55 = vsel %vm3332_vm14, %v4282_v58, %v4278_v19  ;;  %v6284_v58 = vpack.c.bf16 %v2847_v52, %v2843_v4  ;;  %v2853_v33 = vld [vmem:[#allocation4 + $0xce8] sm:$0xff]  ;;  %v6030_v3 = vpack.c.bf16 %v2844_v22, %v2840_v40  ;;  %v2850_v19 = vld [vmem:[#allocation4 + $0xcd0] sm:$0xff] }
 0x31c   :  { %v1911_v2 = vpop.xlane.xlu0 %1910  ;;  %v4287_v39 = vrot.slane %v2295_v6, %v8495_v24  ;;  %4749 = vmatprep.mubr.f32.mxu0 %v4532_v26  ;;  %5033 = vmatprep.mubr.f32.mxu1 %v4532_v26  ;;  %v6286_v6 = vpack.c.bf16 %v2846_v18, %v2842_v61  ;;  %v2852_v26 = vld [vmem:[#allocation4 + $0xce0] sm:$0xff]  ;;  %v6032_v45 = vpack.c.bf16 %v2853_v33, %v2849_v54  ;;  %v2866_v61 = vld [vmem:[#allocation4 + $0xd50] sm:$0xff]  ;;  %v2873_v33 = vld [vmem:[#allocation4 + $0xd88] sm:$0xff] }
 0x31d   :  { %v3655_v41 = vrot.slane %v1911_v2, %v8495_v24  ;;  %v2848_v2 = vld [vmem:[#allocation4 + $0xcc0] sm:$0xff] }
 0x31e   :  { %v4288_v29 = vsel %vm3339_vm15, %v4287_v39, %v4283_v55  ;;  %v2854_v39 = vld [vmem:[#allocation4 + $0xcf0] sm:$0xff] }
 0x31f   :  { %v3656_v47 = vsel %vm3339_vm15, %v3655_v41, %v3651_v49  ;;  %v2013_v63 = vpop.xlane.xlu1 %2012  ;;  %v2857_v41 = vld [vmem:[#allocation4 + $0xd08] sm:$0xff] }
 0x320   :  { %v2010_v14 = vpop.xlane.xlu0 %2009  ;;  %v4531_v20 = vsel %vm4526_vm8, %v4288_v29, %v3656_v47  ;;  %v3822_v12 = vrot.slane %v2013_v63, %v8008_v32  ;;  %v6034_v47 = vpack.c.bf16 %v2852_v26, %v2848_v2 }
 0x321   :  { %v3818_v62 = vrot.slane %v2010_v14, %v8003_v23  ;;  %4750 = vmatmul.mubr.f32.vlgmr.msra.gmra.mrb[0].mxu0 %v4531_v20  ;;  %5034 = vmatmul.mubr.f32.vlgmr.msra.gmra.mrb[0].mxu1 %v4531_v20  ;;  %v2858_v14 = vld [vmem:[#allocation4 + $0xd10] sm:$0xff] }
 0x322   :  { %6023 = vmatpush1.bf16.msra.mxu0 %v6022_v37  ;;  %6279 = vmatpush1.bf16.msra.mxu1 %v6278_v30  ;;  %v2861_v37 = vld [vmem:[#allocation4 + $0xd28] sm:$0xff]  ;;  %v2859_v30 = vld [vmem:[#allocation4 + $0xd18] sm:$0xff]  ;;  %v2862_v20 = vld [vmem:[#allocation4 + $0xd30] sm:$0xff] }
 0x323   :  { %v9883_v50 = vsel %vm3241_vm1, %v3822_v12, %v3818_v62  ;;  %6025 = vmatprep.subr.bf16.mxu0 %v6024_v11  ;;  %6281 = vmatprep.subr.bf16.mxu1 %v6280_v16  ;;  %v2397_v9 = vpop.xlane.xlu1 %2396  ;;  %v6290_v11 = vpack.c.bf16 %v2854_v39, %v2850_v19  ;;  %v2856_v16 = vld [vmem:[#allocation4 + $0xd00] sm:$0xff]  ;;  %v6036_v57 = vpack.c.bf16 %v2861_v37, %v2857_v41  ;;  %v2869_v12 = vld [vmem:[#allocation4 + $0xd68] sm:$0xff]  ;;  %v2867_v62 = vld [vmem:[#allocation4 + $0xd58] sm:$0xff] }
 0x324   :  { %v2394_v13 = vpop.xlane.xlu0 %2393  ;;  %v4454_v1 = vrot.slane %v2397_v9, %v8008_v32  ;;  %v6292_v63 = vpack.c.bf16 %v2863_v56, %v2859_v30  ;;  %v6038_v40 = vpack.c.bf16 %v2860_v5, %v2856_v16  ;;  %v6294_v22 = vpack.c.bf16 %v2862_v20, %v2858_v14  ;;  %v2872_v19 = vld [vmem:[#allocation4 + $0xd80] sm:$0xff]  ;;  %v2874_v41 = vld [vmem:[#allocation4 + $0xd90] sm:$0xff]  ;;  %v2881_v30 = vld [vmem:[#allocation4 + $0xdc8] sm:$0xff] }
 0x325   :  { %v4450_v10 = vrot.slane %v2394_v13, %v8003_v23  ;;  %v6040_v54 = vpack.c.bf16 %v2869_v12, %v2865_v48  ;;  %v2870_v13 = vld [vmem:[#allocation4 + $0xd70] sm:$0xff]  ;;  %v2876_v39 = vld [vmem:[#allocation4 + $0xda0] sm:$0xff]  ;;  %v2885_v56 = vld [vmem:[#allocation4 + $0xde8] sm:$0xff] }
 0x326   :  { %6027 = vmatpush1.bf16.msra.mxu0 %v6026_v46  ;;  %6283 = vmatpush1.bf16.msra.mxu1 %v6282_v8  ;;  %v2871_v46 = vld [vmem:[#allocation4 + $0xd78] sm:$0xff]  ;;  %v2878_v37 = vld [vmem:[#allocation4 + $0xdb0] sm:$0xff]  ;;  %v6046_v5 = vpack.c.bf16 %v2876_v39, %v2872_v19  ;;  %v2884_v14 = vld [vmem:[#allocation4 + $0xde0] sm:$0xff] }
 0x327   :  { %v9888_v60 = vsel %vm3241_vm1, %v4454_v1, %v4450_v10  ;;  %6029 = vmatprep.subr.bf16.mxu0 %v6028_v27  ;;  %6285 = vmatprep.subr.bf16.mxu1 %v6284_v58  ;;  %v1965_v49 = vpop.xlane.xlu1 %1964  ;;  %v2864_v27 = vld [vmem:[#allocation4 + $0xd40] sm:$0xff]  ;;  %v6296_v9 = vpack.c.bf16 %v2871_v46, %v2867_v62  ;;  %v2875_v10 = vld [vmem:[#allocation4 + $0xd98] sm:$0xff]  ;;  %v2882_v20 = vld [vmem:[#allocation4 + $0xdd0] sm:$0xff] }
 0x328   :  { %v1962_v55 = vpop.xlane.xlu0 %1961  ;;  %v3743_v53 = vrot.slane %v1965_v49, %v8008_v32  ;;  %v2868_v58 = vld [vmem:[#allocation4 + $0xd60] sm:$0xff]  ;;  %v2886_v12 = vld [vmem:[#allocation4 + $0xdf0] sm:$0xff]  ;;  %v2889_v62 = vld [vmem:[#allocation4 + $0xe08] sm:$0xff] }
 0x329   :  { %v3739_v29 = vrot.slane %v1962_v55, %v8003_v23  ;;  %v2893_v46 = vld [vmem:[#allocation4 + $0xe28] sm:$0xff] }
 0x32a   :  { %6031 = vmatpush1.bf16.msra.mxu0 %v6030_v3  ;;  %6287 = vmatpush1.bf16.msra.mxu1 %v6286_v6  ;;  %v2879_v3 = vld [vmem:[#allocation4 + $0xdb8] sm:$0xff] }
 0x32b   :  { %v9893_v7 = vsel %vm3241_vm1, %v3743_v53, %v3739_v29  ;;  %6033 = vmatprep.subr.bf16.mxu0 %v6032_v45  ;;  %6289 = vmatprep.subr.bf16.mxu1 %v6288_v28  ;;  %v2346_v4 = vpop.xlane.xlu1 %2345  ;;  %v6298_v45 = vpack.c.bf16 %v2870_v13, %v2866_v61  ;;  %v6044_v28 = vpack.c.bf16 %v2877_v21, %v2873_v33  ;;  %v2883_v29 = vld [vmem:[#allocation4 + $0xdd8] sm:$0xff]  ;;  %v2892_v13 = vld [vmem:[#allocation4 + $0xe20] sm:$0xff]  ;;  %v2890_v33 = vld [vmem:[#allocation4 + $0xe10] sm:$0xff] }
 0x32c   :  { %v2016_v52 = vpop.xlane.xlu0 %2015  ;;  %v4371_v6 = vrot.slane %v2346_v4, %v8003_v23  ;;  %v6300_v23 = vpack.c.bf16 %v2879_v3, %v2875_v10  ;;  %v2894_v10 = vld [vmem:[#allocation4 + $0xe30] sm:$0xff]  ;;  %v2897_v3 = vld [vmem:[#allocation4 + $0xe48] sm:$0xff] }
 0x32d   :  { %v3827_v8 = vrot.slane %v2016_v52, %v10215_v51  ;;  %v6310_v39 = vpack.c.bf16 %v2894_v10, %v2890_v33  ;;  %v2912_v33 = vld [vmem:[#allocation4 + $0xec0] sm:$0xff] }
 0x32e   :  { %6035 = vmatpush1.bf16.msra.mxu0 %v6034_v47  ;;  %6291 = vmatpush1.bf16.msra.mxu1 %v6290_v11  ;;  %v2887_v47 = vld [vmem:[#allocation4 + $0xdf8] sm:$0xff] }
 0x32f   :  { %v3828_v18 = vsel %vm3248_vm2, %v3827_v8, %v9883_v50  ;;  %6037 = vmatprep.subr.bf16.mxu0 %v6036_v57  ;;  %6293 = vmatprep.subr.bf16.mxu1 %v6292_v63  ;;  %v2400_v0 = vpop.xlane.xlu1 %2399  ;;  %v6042_v50 = vpack.c.bf16 %v2868_v58, %v2864_v27  ;;  %v6048_v57 = vpack.c.bf16 %v2885_v56, %v2881_v30  ;;  %v2880_v63 = vld [vmem:[#allocation4 + $0xdc0] sm:$0xff]  ;;  %v2895_v27 = vld [vmem:[#allocation4 + $0xe38] sm:$0xff] }
 0x330   :  { %v2349_v1 = vpop.xlane.xlu0 %2348  ;;  %v4459_v2 = vrot.slane %v2400_v0, %v10215_v51  ;;  %v6304_v52 = vpack.c.bf16 %v2887_v47, %v2883_v29  ;;  %v2909_v29 = vld [vmem:[#allocation4 + $0xea8] sm:$0xff] }
 0x331   :  { %v4375_v26 = vrot.slane %v2349_v1, %v8008_v32 }
 0x332   :  { %6039 = vmatpush1.bf16.msra.mxu0 %v6038_v40  ;;  %6295 = vmatpush1.bf16.msra.mxu1 %v6294_v22  ;;  %v4460_v49 = vsel %vm3248_vm2, %v4459_v2, %v9888_v60  ;;  %v6302_v60 = vpack.c.bf16 %v2878_v37, %v2874_v41  ;;  %v2891_v22 = vld [vmem:[#allocation4 + $0xe18] sm:$0xff] }
 0x333   :  { %v4376_v55 = vsel %vm3241_vm1, %v4375_v26, %v4371_v6  ;;  %6041 = vmatprep.subr.bf16.mxu0 %v6040_v54  ;;  %6297 = vmatprep.subr.bf16.mxu1 %v6296_v9  ;;  %v2019_v32 = vpop.xlane.xlu1 %2018  ;;  %v6306_v54 = vpack.c.bf16 %v2886_v12, %v2882_v20  ;;  %v6052_v9 = vpack.c.bf16 %v2893_v46, %v2889_v62  ;;  %v2901_v6 = vld [vmem:[#allocation4 + $0xe68] sm:$0xff]  ;;  %v2899_v26 = vld [vmem:[#allocation4 + $0xe58] sm:$0xff]  ;;  %vm10237_vm1 = vcmask 392512  }
 0x334   :  { %v1968_v53 = vpop.xlane.xlu0 %1967  ;;  %v3832_v11 = vrot.slane %v2019_v32, %v10222_v36  ;;  %v6308_v1 = vpack.c.bf16 %v2895_v27, %v2891_v22  ;;  %v6056_v41 = vpack.c.bf16 %v2901_v6, %v2897_v3  ;;  %v2902_v32 = vld [vmem:[#allocation4 + $0xe70] sm:$0xff]  ;;  %v2917_v22 = vld [vmem:[#allocation4 + $0xee8] sm:$0xff]  ;;  %vm10241_vm5 = vmmov %vm10237_vm1 }
 0x335   :  { %v3748_v16 = vrot.slane %v1968_v53, %v10215_v51  ;;  %v2905_v53 = vld [vmem:[#allocation4 + $0xe88] sm:$0xff]  ;;  %v2918_v6 = vld [vmem:[#allocation4 + $0xef0] sm:$0xff] }
 0x336   :  { %6043 = vmatpush1.bf16.msra.mxu0 %v6042_v50  ;;  %6299 = vmatpush1.bf16.msra.mxu1 %v6298_v45  ;;  %v3833_v48 = vsel %vm3255_vm3, %v3832_v11, %v3828_v18  ;;  %v6050_v18 = vpack.c.bf16 %v2884_v14, %v2880_v63  ;;  %v2903_v50 = vld [vmem:[#allocation4 + $0xe78] sm:$0xff]  ;;  %v6060_v20 = vpack.c.bf16 %v2909_v29, %v2905_v53  ;;  %v2926_v29 = vld [vmem:[#allocation4 + $0xf30] sm:$0xff] }
 0x337   :  { %v3749_v4 = vsel %vm3248_vm2, %v3748_v16, %v9893_v7  ;;  %6045 = vmatprep.subr.bf16.mxu0 %v6044_v28  ;;  %6301 = vmatprep.subr.bf16.mxu1 %v6300_v23  ;;  %v2403_v8 = vpop.xlane.xlu1 %2402  ;;  %v2888_v7 = vld [vmem:[#allocation4 + $0xe00] sm:$0xff]  ;;  %v2898_v23 = vld [vmem:[#allocation4 + $0xe50] sm:$0xff]  ;;  %v6312_v56 = vpack.c.bf16 %v2903_v50, %v2899_v26  ;;  %v2907_v16 = vld [vmem:[#allocation4 + $0xe98] sm:$0xff] }
 0x338   :  { %v2352_v40 = vpop.xlane.xlu0 %2351  ;;  %v4464_v58 = vrot.slane %v2403_v8, %v10222_v36  ;;  %v6054_v19 = vpack.c.bf16 %v2892_v13, %v2888_v7  ;;  %v6314_v14 = vpack.c.bf16 %v2902_v32, %v2898_v23  ;;  %v2910_v8 = vld [vmem:[#allocation4 + $0xeb0] sm:$0xff]  ;;  %v2920_v23 = vld [vmem:[#allocation4 + $0xf00] sm:$0xff] }
 0x339   :  { %v4380_v61 = vrot.slane %v2352_v40, %v10215_v51  ;;  %v2913_v40 = vld [vmem:[#allocation4 + $0xec8] sm:$0xff] }
 0x33a   :  { %6047 = vmatpush1.bf16.msra.mxu0 %v6046_v5  ;;  %6303 = vmatpush1.bf16.msra.mxu1 %v6302_v60  ;;  %v4465_v21 = vsel %vm3255_vm3, %v4464_v58, %v4460_v49  ;;  %v2896_v49 = vld [vmem:[#allocation4 + $0xe40] sm:$0xff]  ;;  %v2911_v5 = vld [vmem:[#allocation4 + $0xeb8] sm:$0xff]  ;;  %v6064_v13 = vpack.c.bf16 %v2917_v22, %v2913_v40  ;;  %v2934_v40 = vld [vmem:[#allocation4 + $0xf70] sm:$0xff] }
 0x33b   :  { %v4381_v0 = vsel %vm3248_vm2, %v4380_v61, %v4376_v55  ;;  %6049 = vmatprep.subr.bf16.mxu0 %v6048_v57  ;;  %6305 = vmatprep.subr.bf16.mxu1 %v6304_v52  ;;  %v2022_v2 = vpop.xlane.xlu1 %2021  ;;  %v2900_v55 = vld [vmem:[#allocation4 + $0xe60] sm:$0xff]  ;;  %v2906_v52 = vld [vmem:[#allocation4 + $0xe90] sm:$0xff]  ;;  %v6316_v46 = vpack.c.bf16 %v2911_v5, %v2907_v16  ;;  %v2915_v58 = vld [vmem:[#allocation4 + $0xed8] sm:$0xff] }
 0x33c   :  { %v1971_v51 = vpop.xlane.xlu0 %1970  ;;  %v3837_v45 = vrot.slane %v2022_v2, %v10223_v34  ;;  %v6058_v63 = vpack.c.bf16 %v2900_v55, %v2896_v49  ;;  %v2919_v61 = vld [vmem:[#allocation4 + $0xef8] sm:$0xff]  ;;  %v6318_v7 = vpack.c.bf16 %v2910_v8, %v2906_v52  ;;  %v2921_v2 = vld [vmem:[#allocation4 + $0xf08] sm:$0xff]  ;;  %vm10238_vm2 = vmmov %vm10237_vm1 }
 0x33d   :  { %v3753_v28 = vrot.slane %v1971_v51, %v10222_v36  ;;  %v6320_v3 = vpack.c.bf16 %v2919_v61, %v2915_v58  ;;  %v2925_v51 = vld [vmem:[#allocation4 + $0xf28] sm:$0xff]  ;;  %v2931_v5 = vld [vmem:[#allocation4 + $0xf58] sm:$0xff]  ;;  %v2932_v52 = vld [vmem:[#allocation4 + $0xf60] sm:$0xff] }
 0x33e   :  { %6051 = vmatpush1.bf16.msra.mxu0 %v6050_v18  ;;  %6307 = vmatpush1.bf16.msra.mxu1 %v6306_v54  ;;  %v3838_v37 = vsel %vm3262_vm4, %v3837_v45, %v3833_v48  ;;  %v2904_v48 = vld [vmem:[#allocation4 + $0xe80] sm:$0xff]  ;;  %v2923_v45 = vld [vmem:[#allocation4 + $0xf18] sm:$0xff]  ;;  %v6068_v55 = vpack.c.bf16 %v2925_v51, %v2921_v2  ;;  %v2930_v8 = vld [vmem:[#allocation4 + $0xf50] sm:$0xff] }
 0x33f   :  { %v3754_v30 = vsel %vm3255_vm3, %v3753_v28, %v3749_v4  ;;  %6053 = vmatprep.subr.bf16.mxu0 %v6052_v9  ;;  %6309 = vmatprep.subr.bf16.mxu1 %v6308_v1  ;;  %v2406_v47 = vpop.xlane.xlu1 %2405  ;;  %v2908_v4 = vld [vmem:[#allocation4 + $0xea0] sm:$0xff]  ;;  %v2927_v28 = vld [vmem:[#allocation4 + $0xf38] sm:$0xff]  ;;  %v2937_v22 = vld [vmem:[#allocation4 + $0xf88] sm:$0xff] }
 0x340   :  { %v2355_v11 = vpop.xlane.xlu0 %2354  ;;  %v4469_v60 = vrot.slane %v2406_v47, %v10223_v34  ;;  %v6062_v9 = vpack.c.bf16 %v2908_v4, %v2904_v48  ;;  %v6324_v53 = vpack.c.bf16 %v2927_v28, %v2923_v45  ;;  %v2929_v47 = vld [vmem:[#allocation4 + $0xf48] sm:$0xff]  ;;  %v2928_v4 = vld [vmem:[#allocation4 + $0xf40] sm:$0xff]  ;;  %v2939_v61 = vld [vmem:[#allocation4 + $0xf98] sm:$0xff] }
 0x341   :  { %v4385_v57 = vrot.slane %v2355_v11, %v10222_v36  ;;  %v2933_v11 = vld [vmem:[#allocation4 + $0xf68] sm:$0xff] }
 0x342   :  { %6055 = vmatpush1.bf16.msra.mxu0 %v6054_v19  ;;  %6311 = vmatpush1.bf16.msra.mxu1 %v6310_v39  ;;  %v4470_v12 = vsel %vm3262_vm4, %v4469_v60, %v4465_v21  ;;  %v2916_v21 = vld [vmem:[#allocation4 + $0xee0] sm:$0xff]  ;;  %v2935_v60 = vld [vmem:[#allocation4 + $0xf78] sm:$0xff]  ;;  %v6072_v48 = vpack.c.bf16 %v2933_v11, %v2929_v47  ;;  %v2941_v58 = vld [vmem:[#allocation4 + $0xfa8] sm:$0xff] }
 0x343   :  { %v4386_v62 = vsel %vm3255_vm3, %v4385_v57, %v4381_v0  ;;  %6057 = vmatprep.subr.bf16.mxu0 %v6056_v41  ;;  %6313 = vmatprep.subr.bf16.mxu1 %v6312_v56  ;;  %v2025_v27 = vpop.xlane.xlu1 %2024  ;;  %v2914_v0 = vld [vmem:[#allocation4 + $0xed0] sm:$0xff]  ;;  %v6066_v41 = vpack.c.bf16 %v2916_v21, %v2912_v33  ;;  %vm10239_vm3 = vcmask 458112   ;;  %v2940_v33 = vld [vmem:[#allocation4 + $0xfa0] sm:$0xff] }
 0x344   :  { %v1974_v36 = vpop.xlane.xlu0 %1973  ;;  %v3842_v18 = vrot.slane %v2025_v27, %v10224_v31  ;;  %v6322_v49 = vpack.c.bf16 %v2918_v6, %v2914_v0  ;;  %v6076_v0 = vpack.c.bf16 %v2941_v58, %v2937_v22  ;;  %v2945_v6 = vld [vmem:[#allocation4 + $0xfc8] sm:$0xff]  ;;  %vm10242_vm0 = vmmov %vm10239_vm3 }
 0x345   :  { %v3758_v54 = vrot.slane %v1974_v36, %v10223_v34  ;;  %vm10243_vm6 = vmmov %vm10242_vm0 }
 0x346   :  { %6059 = vmatpush1.bf16.msra.mxu0 %v6058_v63  ;;  %6315 = vmatpush1.bf16.msra.mxu1 %v6314_v14  ;;  %v3843_v1 = vsel %vm10237_vm1, %v3842_v18, %v3838_v37  ;;  %v2924_v37 = vld [vmem:[#allocation4 + $0xf20] sm:$0xff]  ;;  %v2943_v18 = vld [vmem:[#allocation4 + $0xfb8] sm:$0xff] }
 0x347   :  { %v3759_v10 = vsel %vm3262_vm4, %v3758_v54, %v3754_v30  ;;  %6061 = vmatprep.subr.bf16.mxu0 %v6060_v20  ;;  %6317 = vmatprep.subr.bf16.mxu1 %v6316_v46  ;;  %v2409_v26 = vpop.xlane.xlu1 %2408  ;;  %v2922_v30 = vld [vmem:[#allocation4 + $0xf10] sm:$0xff]  ;;  %v6070_v14 = vpack.c.bf16 %v2924_v37, %v2920_v23  ;;  %v6328_v46 = vpack.c.bf16 %v2935_v60, %v2931_v5 }
 0x348   :  { %v2358_v50 = vpop.xlane.xlu0 %2357  ;;  %v4474_v19 = vrot.slane %v2409_v26, %v10224_v31  ;;  %v6326_v20 = vpack.c.bf16 %v2926_v29, %v2922_v30  ;;  %v2947_v26 = vld [vmem:[#allocation4 + $0xfd8] sm:$0xff]  ;;  %v2950_v23 = vld [vmem:[#allocation4 + $0xff0] sm:$0xff] }
 0x349   :  { %v4390_v39 = vrot.slane %v2358_v50, %v10223_v34  ;;  %v2951_v50 = vld [vmem:[#allocation4 + $0xff8] sm:$0xff] }
 0x34a   :  { %6063 = vmatpush1.bf16.msra.mxu0 %v6062_v9  ;;  %6319 = vmatpush1.bf16.msra.mxu1 %v6318_v7  ;;  %v9928_v56 = vsel %vm10238_vm2, %v4474_v19, %v4470_v12  ;;  %v6074_v9 = vpack.c.bf16 %v2932_v52, %v2928_v4  ;;  %v6330_v7 = vpack.c.bf16 %v2934_v40, %v2930_v8  ;;  %v2944_v19 = vld [vmem:[#allocation4 + $0xfc0] sm:$0xff]  ;;  %vm10245_vm2 = vcmask 589312  }
 0x34b   :  { %v4391_v32 = vsel %vm3262_vm4, %v4390_v39, %v4386_v62  ;;  %6065 = vmatprep.subr.bf16.mxu0 %v6064_v13  ;;  %6321 = vmatprep.subr.bf16.mxu1 %v6320_v3  ;;  %v2028_v34 = vpop.xlane.xlu1 %2027  ;;  %vm10240_vm4 = vmmov %vm10237_vm1  ;;  %v2936_v13 = vld [vmem:[#allocation4 + $0xf80] sm:$0xff]  ;;  %v2942_v3 = vld [vmem:[#allocation4 + $0xfb0] sm:$0xff] }
 0x34c   :  { %v1977_v16 = vpop.xlane.xlu0 %1976  ;;  %v3847_v57 = vrot.slane %v2028_v34, %v10227_v17  ;;  %v6078_v45 = vpack.c.bf16 %v2940_v33, %v2936_v13  ;;  %vm10244_vm1 = vmmov %vm10242_vm0 }
 0x34d   :  { %v3763_v63 = vrot.slane %v1977_v16, %v10224_v31 }
 0x34e   :  { %6067 = vmatpush1.bf16.msra.mxu0 %v6066_v41  ;;  %6323 = vmatpush1.bf16.msra.mxu1 %v6322_v49  ;;  %v9934_v12 = vsel %vm10239_vm3, %v3847_v57, %v3843_v1  ;;  %v6332_v1 = vpack.c.bf16 %v2943_v18, %v2939_v61  ;;  %v6336_v41 = vpack.c.bf16 %v2951_v50, %v2947_v26  ;;  %v2948_v49 = vld [vmem:[#allocation4 + $0xfe0] sm:$0xff]  ;;  %vm10246_vm3 = vmmov %vm10245_vm2 }
 0x34f   :  { %v9937_v62 = vsel %vm10240_vm4, %v3763_v63, %v3759_v10  ;;  %6069 = vmatprep.subr.bf16.mxu0 %v6068_v55  ;;  %6325 = vmatprep.subr.bf16.mxu1 %v6324_v53  ;;  %v9939_v27 = vpop.xlane.xlu1 %2411  ;;  %v2938_v10 = vld [vmem:[#allocation4 + $0xf90] sm:$0xff]  ;;  %v5118_v53 = vld [vmem:[#allocation8 + $0x18] sm:$0xff]  ;;  %v6082_v29 = vpack.c.bf16 %v2948_v49, %v2944_v19  ;;  %vm10247_vm4 = vmmov %vm10245_vm2 }
 0x350   :  { %v2361_v36 = vpop.xlane.xlu0 %2360  ;;  %v6334_v28 = vpack.c.bf16 %v2942_v3, %v2938_v10  ;;  %v2946_v55 = vld [vmem:[#allocation4 + $0xfd0] sm:$0xff]  ;;  %v4479_v13 = vrot.slane %v9939_v27, %v10227_v17 }
 0x351   :  { %v4395_v54 = vrot.slane %v2361_v36, %v10224_v31  ;;  %v2949_v31 = vld [vmem:[#allocation4 + $0xfe8] sm:$0xff]  ;;  %v6338_v47 = vpack.c.bf16 %v2950_v23, %v2946_v55 }
 0x352   :  { %6071 = vmatpush1.bf16.msra.mxu0 %v6070_v14  ;;  %6327 = vmatpush1.bf16.msra.mxu1 %v6326_v20  ;;  %v6080_v39 = vpack.c.bf16 %v2949_v31, %v2945_v6  ;;  %v4480_v26 = vsel %vm10242_vm0, %v4479_v13, %v9928_v56 }
 0x353   :  { %v9943_v21 = vsel %vm10241_vm5, %v4395_v54, %v4391_v32  ;;  %6073 = vmatprep.subr.bf16.mxu0 %v6072_v48  ;;  %6329 = vmatprep.subr.bf16.mxu1 %v6328_v46  ;;  %v9945_v2 = vpop.xlane.xlu1 %2030  ;;  %v5116_v32 = vld [vmem:[#allocation8 + $0x8] sm:$0xff]  ;;  %vm10248_vm5 = vmmov %vm10245_vm2 }
 0x354   :  { %v9947_v51 = vpop.xlane.xlu0 %1979  ;;  %v6340_v11 = vpack.c.bf16 %v5118_v53, %v5116_v32 }
 0x355   :  { %v3768_v10 = vrot.slane %v9947_v51, %v10227_v17 }
 0x356   :  { %6075 = vmatpush1.bf16.msra.mxu0 %v6074_v9  ;;  %6331 = vmatpush1.bf16.msra.mxu1 %v6330_v7 }
 0x357   :  { %6077 = vmatprep.subr.bf16.mxu0 %v6076_v0  ;;  %6333 = vmatprep.subr.bf16.mxu1 %v6332_v1  ;;  %v2415_v37 = vpop.xlane.xlu1 %2414  ;;  %v3852_v1 = vrot.slane %v9945_v2, %v8452_v15  ;;  %v3769_v51 = vsel %vm10243_vm6, %v3768_v10, %v9937_v62 }
 0x358   :  { %v2364_v30 = vpop.xlane.xlu0 %2363  ;;  %v4484_v3 = vrot.slane %v2415_v37, %v8452_v15 }
 0x359   :  { %v4400_v6 = vrot.slane %v2364_v30, %v10227_v17  ;;  %v3853_v2 = vsel %vm3283_vm7, %v3852_v1, %v9934_v12 }
 0x35a   :  { %6079 = vmatpush1.bf16.msra.mxu0 %v6078_v45  ;;  %6335 = vmatpush1.bf16.msra.mxu1 %v6334_v28 }
 0x35b   :  { %6081 = vmatprep.subr.bf16.mxu0 %v6080_v39  ;;  %6337 = vmatprep.subr.bf16.mxu1 %v6336_v41  ;;  %v2034_v34 = vpop.xlane.xlu1 %2033  ;;  %v4485_v39 = vsel %vm3283_vm7, %v4484_v3, %v4480_v26  ;;  %v4401_v56 = vsel %vm10244_vm1, %v4400_v6, %v9943_v21 }
 0x35c   :  { %v1983_v16 = vpop.xlane.xlu0 %1982  ;;  %v3857_v31 = vrot.slane %v2034_v34, %v8458_v25 }
 0x35d   :  { %v3773_v27 = vrot.slane %v1983_v16, %v8452_v15 }
 0x35e   :  { %6083 = vmatpush1.bf16.msra.mxu0 %v6082_v29  ;;  %6339 = vmatpush1.bf16.msra.mxu1 %v6338_v47  ;;  %v3858_v55 = vsel %vm10245_vm2, %v3857_v31, %v3853_v2 }
 0x35f   :  { %6341 = vmatprep.subr.bf16.mxu0 %v6340_v11  ;;  %v2418_v5 = vpop.xlane.xlu1 %2417 }
 0x360   :  { %v2367_v60 = vpop.xlane.xlu0 %2366  ;;  %v4489_v50 = vrot.slane %v2418_v5, %v8458_v25 }
 0x361   :  { %v4405_v17 = vrot.slane %v2367_v60, %v8452_v15  ;;  %v3774_v15 = vsel %vm3283_vm7, %v3773_v27, %v3769_v51 }
 0x362   :  { %v4490_v37 = vsel %vm10246_vm3, %v4489_v50, %v4485_v39 }
 0x363   :  { %v2037_v57 = vpop.xlane.xlu1 %2036  ;;  %v4406_v29 = vsel %vm3283_vm7, %v4405_v17, %v4401_v56  ;;  %v5115_v56 = vld [vmem:[#allocation8] sm:$0xff]  ;;  %vm6754_vm7 = vmmov 0  }
 0x364   :  { %v1986_v63 = vpop.xlane.xlu0 %1985  ;;  %v3862_v19 = vrot.slane %v2037_v57, %v8461_v35 }
 0x365   :  { %v3778_v41 = vrot.slane %v1986_v63, %v8458_v25 }
 0x366   :  { %v3863_v47 = vsel %vm3297_vm9, %v3862_v19, %v3858_v55 }
 0x367   :  { %v2421_v14 = vpop.xlane.xlu1 %2420  ;;  %v3779_v34 = vsel %vm10247_vm4, %v3778_v41, %v3774_v15 }
 0x368   :  { %v2370_v20 = vpop.xlane.xlu0 %2369  ;;  %v4494_v49 = vrot.slane %v2421_v14, %v8461_v35 }
 0x369   :  { %v4410_v12 = vrot.slane %v2370_v20, %v8458_v25 }
 0x36a   :  { %v4495_v16 = vsel %vm3297_vm9, %v4494_v49, %v4490_v37 }
 0x36b   :  { %v2040_v48 = vpop.xlane.xlu1 %2039  ;;  %v4411_v60 = vsel %vm10248_vm5, %v4410_v12, %v4406_v29 }
 0x36c   :  { %v1989_v4 = vpop.xlane.xlu0 %1988  ;;  %v3867_v23 = vrot.slane %v2040_v48, %v8464_v38 }
 0x36d   :  { %v3783_v62 = vrot.slane %v1989_v4, %v8461_v35 }
 0x36e   :  { %v3868_v57 = vsel %vm3304_vm10, %v3867_v23, %v3863_v47 }
 0x36f   :  { %v2424_v52 = vpop.xlane.xlu1 %2423  ;;  %v3784_v63 = vsel %vm3297_vm9, %v3783_v62, %v3779_v34  ;;  %v5120_v62 = vld [vmem:[#allocation8 + $0x28] sm:$0xff]  ;;  %v5121_v34 = vld [vmem:[#allocation8 + $0x30] sm:$0xff] }
 0x370   :  { %v2373_v46 = vpop.xlane.xlu0 %2372  ;;  %v4499_v30 = vrot.slane %v2424_v52, %v8464_v38 }
 0x371   :  { %v4415_v21 = vrot.slane %v2373_v46, %v8461_v35 }
 0x372   :  { %v4500_v20 = vsel %vm3304_vm10, %v4499_v30, %v4495_v16 }
 0x373   :  { %v2043_v8 = vpop.xlane.xlu1 %2042  ;;  %v4416_v48 = vsel %vm3297_vm9, %v4415_v21, %v4411_v60  ;;  %vm5698_vm9 = vcmask 1024  }
 0x374   :  { %v1992_v40 = vpop.xlane.xlu0 %1991  ;;  %v3872_v25 = vrot.slane %v2043_v8, %v8471_v42 }
 0x375   :  { %v3788_v11 = vrot.slane %v1992_v40, %v8464_v38 }
 0x376   :  { %v3873_v8 = vsel %vm3311_vm11, %v3872_v25, %v3868_v57  ;;  %v5123_v57 = vld [vmem:[#allocation8 + $0x40] sm:$0xff] }
 0x377   :  { %v9949_v22 = vpop.xlane.xlu1 %2426  ;;  %v3789_v40 = vsel %vm3304_vm10, %v3788_v11, %v3784_v63  ;;  %v5119_v11 = vld [vmem:[#allocation8 + $0x20] sm:$0xff]  ;;  %v5125_v63 = vld [vmem:[#allocation8 + $0x50] sm:$0xff] }
 0x378   :  { %v9951_v36 = vpop.xlane.xlu0 %2375  ;;  %v4504_v5 = vrot.slane %v9949_v22, %v8471_v42 }
 0x379   :  { %v4420_v35 = vrot.slane %v9951_v36, %v8464_v38 }
 0x37b   :  { %v9953_v58 = vpop.xlane.xlu1 %2045  ;;  %v4421_v13 = vsel %vm3304_vm10, %v4420_v35, %v4416_v48  ;;  %v5126_v35 = vld [vmem:[#allocation8 + $0x58] sm:$0xff]  ;;  %v6350_v48 = vpack.c.bf16 %v5125_v63, %v5123_v57 }
 0x37c   :  { %v9955_v61 = vpop.xlane.xlu0 %1994  ;;  %v3877_v14 = vrot.slane %v9953_v58, %v8474_v43  ;;  %v4505_v58 = vsel %vm3311_vm11, %v4504_v5, %v4500_v20  ;;  %v5124_v5 = vld [vmem:[#allocation8 + $0x48] sm:$0xff]  ;;  %v5130_v20 = vld [vmem:[#allocation8 + $0x78] sm:$0xff] }
 0x37d   :  { %v3793_v4 = vrot.slane %v9955_v61, %v8471_v42  ;;  %v6348_v60 = vpack.c.bf16 %v5126_v35, %v5124_v5  ;;  %v5163_v5 = vld [vmem:[#allocation8 + $0x180] sm:$0xff]  ;;  %v5165_v35 = vld [vmem:[#allocation8 + $0x190] sm:$0xff] }
 0x37e   :  { %v3878_v1 = vsel %vm3318_vm12, %v3877_v14, %v3873_v8  ;;  %v5128_v14 = vld [vmem:[#allocation8 + $0x68] sm:$0xff]  ;;  %v5134_v8 = vld [vmem:[#allocation8 + $0x98] sm:$0xff]  ;;  %v6390_v57 = vpack.c.bf16 %v5165_v35, %v5163_v5 }
 0x37f   :  { %v9957_v18 = vpop.xlane.xlu1 %2429  ;;  %v10070_v35 = vld [vmem:[#allocation6] sm:$0xf] }
 0x380   :  { %v9959_v54 = vpop.xlane.xlu0 %2378  ;;  %v4509_v52 = vrot.slane %v9957_v18, %v8474_v43 }
 0x381   :  { %v4425_v10 = vrot.slane %v9959_v54, %v8471_v42 }
 0x382   :  { %v4510_v6 = vsel %vm3318_vm12, %v4509_v52, %v4505_v58  ;;  %v5127_v52 = vld [vmem:[#allocation8 + $0x60] sm:$0xff]  ;;  %v5133_v58 = vld [vmem:[#allocation8 + $0x90] sm:$0xff] }
 0x383   :  { %v9961_v9 = vpop.xlane.xlu1 %2048 }
 0x384   :  { %v9963_v7 = vpop.xlane.xlu0 %1997  ;;  %v3882_v22 = vrot.slane %v9961_v9, %v8477_v44 }
 0x385   :  { %v3798_v3 = vrot.slane %v9963_v7, %v8474_v43 }
 0x387   :  { %v9967_v33 = vpop.xlane.xlu1 %2432 }
 0x388   :  { %v9969_v0 = vpop.xlane.xlu0 %2381  ;;  %v4514_v36 = vrot.slane %v9967_v33, %v8477_v44  ;;  %v3794_v33 = vsel %vm3311_vm11, %v3793_v4, %v3789_v40  ;;  %v6352_v4 = vpack.c.bf16 %v5130_v20, %v5128_v14  ;;  %v5167_v14 = vld [vmem:[#allocation8 + $0x1a0] sm:$0xff]  ;;  %v5169_v20 = vld [vmem:[#allocation8 + $0x1b0] sm:$0xff] }
 0x389   :  { %v4430_v31 = vrot.slane %v9969_v0, %v8474_v43  ;;  %v4426_v0 = vsel %vm3311_vm11, %v4425_v10, %v4421_v13  ;;  %v5136_v13 = vld [vmem:[#allocation8 + $0xa8] sm:$0xff]  ;;  %v5135_v10 = vld [vmem:[#allocation8 + $0xa0] sm:$0xff] }
 0x38a   :  { %v4515_v42 = vsel %vm3325_vm13, %v4514_v36, %v4510_v6  ;;  %v5131_v36 = vld [vmem:[#allocation8 + $0x80] sm:$0xff] }
 0x38b   :  { %v2052_v45 = vpop.xlane.xlu1 %2051  ;;  %v4431_v41 = vsel %vm3318_vm12, %v4430_v31, %v4426_v0 }
 0x38c   :  { %v9982_v28 = vpop.xlane.xlu0 %2000  ;;  %v3887_v61 = vrot.slane %v2052_v45, %v8492_v59  ;;  %v3883_v45 = vsel %vm3325_vm13, %v3882_v22, %v3878_v1 }
 0x38d   :  { %v3803_v26 = vrot.slane %v9982_v28, %v8477_v44  ;;  %v3799_v28 = vsel %vm3318_vm12, %v3798_v3, %v3794_v33  ;;  %v5137_v3 = vld [vmem:[#allocation8 + $0xb0] sm:$0xff]  ;;  %v5142_v33 = vld [vmem:[#allocation8 + $0xd8] sm:$0xff] }
 0x38e   :  { %v3888_v2 = vsel %vm3332_vm14, %v3887_v61, %v3883_v45  ;;  %v5138_v61 = vld [vmem:[#allocation8 + $0xb8] sm:$0xff]  ;;  %v6362_v6 = vpack.c.bf16 %v5137_v3, %v5135_v10 }
 0x38f   :  { %v2436_v32 = vpop.xlane.xlu1 %2435  ;;  %v3804_v49 = vsel %vm3325_vm13, %v3803_v26, %v3799_v28  ;;  %v6360_v1 = vpack.c.bf16 %v5138_v61, %v5136_v13  ;;  %v5139_v26 = vld [vmem:[#allocation8 + $0xc0] sm:$0xff]  ;;  %v5146_v45 = vld [vmem:[#allocation8 + $0xf8] sm:$0xff]  ;;  %v5177_v61 = vld [vmem:[#allocation8 + $0x1f0] sm:$0xff] }
 0x390   :  { %v2385_v53 = vpop.xlane.xlu0 %2384  ;;  %v4519_v18 = vrot.slane %v2436_v32, %v8492_v59  ;;  %v5147_v28 = vld [vmem:[#allocation8 + $0x100] sm:$0xff]  ;;  %v5182_v10 = vld [vmem:[#allocation8 + $0x218] sm:$0xff] }
 0x391   :  { %v4435_v54 = vrot.slane %v2385_v53, %v8477_v44  ;;  %v5117_v44 = vld [vmem:[#allocation8 + $0x10] sm:$0xff]  ;;  %v5175_v13 = vld [vmem:[#allocation8 + $0x1e0] sm:$0xff] }
 0x392   :  { %v4520_v51 = vsel %vm3332_vm14, %v4519_v18, %v4515_v42  ;;  %v6342_v53 = vpack.c.bf16 %v5117_v44, %v5115_v56  ;;  %v6358_v18 = vpack.c.bf16 %v5133_v58, %v5131_v36  ;;  %v5154_v56 = vld [vmem:[#allocation8 + $0x138] sm:$0xff] }
 0x393   :  { %v2055_v38 = vpop.xlane.xlu1 %2054  ;;  %v4436_v15 = vsel %vm3325_vm13, %v4435_v54, %v4431_v41  ;;  %v5178_v36 = vld [vmem:[#allocation8 + $0x1f8] sm:$0xff] }
 0x394   :  { %v2004_v46 = vpop.xlane.xlu0 %2003  ;;  %v3892_v9 = vrot.slane %v2055_v38, %v8495_v24  ;;  %v5129_v38 = vld [vmem:[#allocation8 + $0x70] sm:$0xff] }
 0x395   :  { %v3808_v17 = vrot.slane %v2004_v46, %v8492_v59  ;;  %v5132_v46 = vld [vmem:[#allocation8 + $0x88] sm:$0xff]  ;;  %v6354_v40 = vpack.c.bf16 %v5129_v38, %v5127_v52  ;;  %v6394_v52 = vpack.c.bf16 %v5169_v20, %v5167_v14 }
 0x396   :  { %v3893_v19 = vsel %vm3339_vm15, %v3892_v9, %v3888_v2  ;;  %v6356_v22 = vpack.c.bf16 %v5134_v8, %v5132_v46  ;;  %v5140_v9 = vld [vmem:[#allocation8 + $0xc8] sm:$0xff]  ;;  %v5145_v2 = vld [vmem:[#allocation8 + $0xf0] sm:$0xff]  ;;  %v5171_v46 = vld [vmem:[#allocation8 + $0x1c0] sm:$0xff] }
 0x397   :  { %v2439_v27 = vpop.xlane.xlu1 %2438  ;;  %v3809_v21 = vsel %vm3332_vm14, %v3808_v17, %v3804_v49  ;;  %v6364_v31 = vpack.c.bf16 %v5142_v33, %v5140_v9  ;;  %v5150_v17 = vld [vmem:[#allocation8 + $0x118] sm:$0xff]  ;;  %v5151_v49 = vld [vmem:[#allocation8 + $0x120] sm:$0xff]  ;;  %v5173_v8 = vld [vmem:[#allocation8 + $0x1d0] sm:$0xff] }
 0x398   :  { %v2388_v50 = vpop.xlane.xlu0 %2387  ;;  %v4524_v7 = vrot.slane %v2439_v27, %v8495_v24  ;;  %v5141_v27 = vld [vmem:[#allocation8 + $0xd0] sm:$0xff]  ;;  %v5415_v9 = vld [vmem:[#allocation11 + $0x80] sm:$0xff] }
 0x399   :  { %v4440_v43 = vrot.slane %v2388_v50, %v8492_v59  ;;  %v5122_v59 = vld [vmem:[#allocation8 + $0x38] sm:$0xff]  ;;  %v5144_v50 = vld [vmem:[#allocation8 + $0xe8] sm:$0xff]  ;;  %v6366_v42 = vpack.c.bf16 %v5141_v27, %v5139_v26 }
 0x39a   :  { %v4525_v39 = vsel %vm3339_vm15, %v4524_v7, %v4520_v51  ;;  %v6344_v25 = vpack.c.bf16 %v5122_v59, %v5120_v62  ;;  %v6368_v54 = vpack.c.bf16 %v5146_v45, %v5144_v50  ;;  %v5143_v7 = vld [vmem:[#allocation8 + $0xe0] sm:$0xff]  ;;  %v5148_v51 = vld [vmem:[#allocation8 + $0x108] sm:$0xff]  ;;  %v5417_v27 = vld [vmem:[#allocation11 + $0x90] sm:$0xff] }
 0x39b   :  { %v2391_v55 = vpop.xlane.xlu1 %2390  ;;  %v4534_v23 = vsel %vm4526_vm8, %v4525_v39, %v3893_v19  ;;  %v4441_v32 = vsel %vm3332_vm14, %v4440_v43, %v4436_v15  ;;  %v6370_v43 = vpack.c.bf16 %v5145_v2, %v5143_v7  ;;  %v6372_v0 = vpack.c.bf16 %v5150_v17, %v5148_v51  ;;  %v5149_v19 = vld [vmem:[#allocation8 + $0x110] sm:$0xff]  ;;  %v5152_v39 = vld [vmem:[#allocation8 + $0x128] sm:$0xff]  ;;  %v5155_v15 = vld [vmem:[#allocation8 + $0x140] sm:$0xff] }
 0x39c   :  { %v2007_v12 = vpop.xlane.xlu0 %2006  ;;  %v4445_v37 = vrot.slane %v2391_v55, %v8495_v24  ;;  %4820 = vmatprep.mubr.f32.mxu0 %v4534_v23  ;;  %5104 = vmatprep.mubr.f32.mxu1 %v4534_v23  ;;  %v6374_v44 = vpack.c.bf16 %v5149_v19, %v5147_v28  ;;  %v6376_v41 = vpack.c.bf16 %v5154_v56, %v5152_v39  ;;  %v5153_v55 = vld [vmem:[#allocation8 + $0x130] sm:$0xff]  ;;  %v5158_v23 = vld [vmem:[#allocation8 + $0x158] sm:$0xff]  ;;  %v5419_v2 = vld [vmem:[#allocation11 + $0xa0] sm:$0xff] }
 0x39d   :  { %v3813_v30 = vrot.slane %v2007_v12, %v8495_v24  ;;  %v6346_v24 = vpack.c.bf16 %v5121_v34, %v5119_v11  ;;  %v5156_v12 = vld [vmem:[#allocation8 + $0x148] sm:$0xff]  ;;  %v6378_v62 = vpack.c.bf16 %v5153_v55, %v5151_v49  ;;  %v5166_v11 = vld [vmem:[#allocation8 + $0x198] sm:$0xff] }
 0x39e   :  { %v4446_v29 = vsel %vm3339_vm15, %v4445_v37, %v4441_v32  ;;  %v6380_v59 = vpack.c.bf16 %v5158_v23, %v5156_v12  ;;  %v5157_v37 = vld [vmem:[#allocation8 + $0x150] sm:$0xff]  ;;  %v5418_v50 = vld [vmem:[#allocation11 + $0x98] sm:$0xff]  ;;  %v5423_v55 = vld [vmem:[#allocation11 + $0xc0] sm:$0xff] }
 0x39f   :  { %v3814_v47 = vsel %vm3339_vm15, %v3813_v30, %v3809_v21  ;;  %v5160_v30 = vld [vmem:[#allocation8 + $0x168] sm:$0xff]  ;;  %v5162_v21 = vld [vmem:[#allocation8 + $0x178] sm:$0xff]  ;;  %v6382_v32 = vpack.c.bf16 %v5157_v37, %v5155_v15 }
 0x3a0   :  { %v4533_v16 = vsel %vm4526_vm8, %v4446_v29, %v3814_v47  ;;  %v5159_v29 = vld [vmem:[#allocation8 + $0x160] sm:$0xff]  ;;  %v5161_v47 = vld [vmem:[#allocation8 + $0x170] sm:$0xff]  ;;  %vm5618_vm8 = vcmask 523264  }
 0x3a1   :  { %4821 = vmatmul.mubr.f32.vlgmr.msra.gmra.mrb[0].mxu0 %v4533_v16  ;;  %5105 = vmatmul.mubr.f32.vlgmr.msra.gmra.mrb[0].mxu1 %v4533_v16  ;;  %v6386_v34 = vpack.c.bf16 %v5161_v47, %v5159_v29  ;;  %v5416_v33 = vld [vmem:[#allocation11 + $0x88] sm:$0xff]  ;;  %v5402_v7 = vld [vmem:[#allocation11 + $0x18] sm:$0xff]  ;;  %v5421_v19 = vld [vmem:[#allocation11 + $0xb0] sm:$0xff] }
 0x3a2   :  { %6343 = vmatpush1.bf16.msra.mxu0 %v6342_v53  ;;  %v6384_v53 = vpack.c.bf16 %v5162_v21, %v5160_v30  ;;  %v5400_v26 = vld [vmem:[#allocation11 + $0x8] sm:$0xff]  ;;  %v5422_v39 = vld [vmem:[#allocation11 + $0xb8] sm:$0xff]  ;;  %v5425_v37 = vld [vmem:[#allocation11 + $0xd0] sm:$0xff] }
 0x3a3   :  { %6345 = vmatprep.subr.bf16.mxu0 %v6344_v25  ;;  %v5164_v25 = vld [vmem:[#allocation8 + $0x188] sm:$0xff]  ;;  %v5406_v49 = vld [vmem:[#allocation11 + $0x38] sm:$0xff] }
 0x3a4   :  { %v6388_v16 = vpack.c.bf16 %v5166_v11, %v5164_v25  ;;  %v5420_v51 = vld [vmem:[#allocation11 + $0xa8] sm:$0xff]  ;;  %v5426_v30 = vld [vmem:[#allocation11 + $0xd8] sm:$0xff]  ;;  %v5427_v47 = vld [vmem:[#allocation11 + $0xe0] sm:$0xff] }
 0x3a5   :  { %v5404_v28 = vld [vmem:[#allocation11 + $0x28] sm:$0xff]  ;;  %v5410_v29 = vld [vmem:[#allocation11 + $0x58] sm:$0xff] }
 0x3a6   :  { %6347 = vmatpush1.bf16.msra.mxu0 %v6346_v24  ;;  %v5168_v24 = vld [vmem:[#allocation8 + $0x1a8] sm:$0xff] }
 0x3a7   :  { %6349 = vmatprep.subr.bf16.mxu0 %v6348_v60  ;;  %v5170_v60 = vld [vmem:[#allocation8 + $0x1b8] sm:$0xff]  ;;  %v5424_v12 = vld [vmem:[#allocation11 + $0xc8] sm:$0xff] }
 0x3a8   :  { %v6392_v63 = vpack.c.bf16 %v5170_v60, %v5168_v24  ;;  %v5408_v15 = vld [vmem:[#allocation11 + $0x48] sm:$0xff] }
 0x3a9   :  { %v5428_v25 = vld [vmem:[#allocation11 + $0xe8] sm:$0xff] }
 0x3aa   :  { %6351 = vmatpush1.bf16.msra.mxu0 %v6350_v48  ;;  %v5172_v48 = vld [vmem:[#allocation8 + $0x1c8] sm:$0xff] }
 0x3ab   :  { %6353 = vmatprep.subr.bf16.mxu0 %v6352_v4  ;;  %v5174_v4 = vld [vmem:[#allocation8 + $0x1d8] sm:$0xff] }
 0x3ac   :  { %v6396_v38 = vpack.c.bf16 %v5174_v4, %v5172_v48 }
 0x3ae   :  { %6355 = vmatpush1.bf16.msra.mxu0 %v6354_v40  ;;  %v6398_v40 = vpack.c.bf16 %v5173_v8, %v5171_v46  ;;  %v5179_v46 = vld [vmem:[#allocation8 + $0x200] sm:$0xff]  ;;  %v5181_v8 = vld [vmem:[#allocation8 + $0x210] sm:$0xff] }
 0x3af   :  { %6357 = vmatprep.subr.bf16.mxu0 %v6356_v22  ;;  %v5176_v22 = vld [vmem:[#allocation8 + $0x1e8] sm:$0xff] }
 0x3b0   :  { %v6400_v58 = vpack.c.bf16 %v5178_v36, %v5176_v22  ;;  %v5184_v36 = vld [vmem:[#allocation8 + $0x228] sm:$0xff] }
 0x3b2   :  { %6359 = vmatpush1.bf16.msra.mxu0 %v6358_v18  ;;  %v6402_v18 = vpack.c.bf16 %v5177_v61, %v5175_v13  ;;  %v6406_v61 = vpack.c.bf16 %v5181_v8, %v5179_v46  ;;  %v5215_v46 = vld [vmem:[#allocation8 + $0x320] sm:$0xff]  ;;  %v5217_v8 = vld [vmem:[#allocation8 + $0x330] sm:$0xff] }
 0x3b3   :  { %6361 = vmatprep.subr.bf16.mxu0 %v6360_v1  ;;  %v5180_v1 = vld [vmem:[#allocation8 + $0x208] sm:$0xff] }
 0x3b4   :  { %v6404_v3 = vpack.c.bf16 %v5182_v10, %v5180_v1  ;;  %v5183_v10 = vld [vmem:[#allocation8 + $0x220] sm:$0xff] }
 0x3b6   :  { %6363 = vmatpush1.bf16.msra.mxu0 %v6362_v6  ;;  %v5399_v6 = vld [vmem:[#allocation11] sm:$0xff] }
 0x3b7   :  { %6365 = vmatprep.subr.bf16.mxu0 %v6364_v31  ;;  %v6468_v31 = vpack.c.bf16 %v5416_v33, %v5415_v9  ;;  %v6470_v45 = vpack.c.bf16 %v5400_v26, %v5399_v6  ;;  %v5188_v33 = vld [vmem:[#allocation8 + $0x248] sm:$0xff]  ;;  %v5190_v6 = vld [vmem:[#allocation8 + $0x258] sm:$0xff] }
 0x3b8   :  { %v6412_v26 = vpack.c.bf16 %v5190_v6, %v5188_v33  ;;  %v5225_v33 = vld [vmem:[#allocation8 + $0x370] sm:$0xff]  ;;  %v5228_v6 = vld [vmem:[#allocation8 + $0x388] sm:$0xff] }
 0x3b9   :  { %6469 = vmatprep.subr.bf16.mxu1 %v6468_v31 }
 0x3ba   :  { %6367 = vmatpush1.bf16.msra.mxu0 %v6366_v42  ;;  %v6472_v42 = vpack.c.bf16 %v5418_v50, %v5417_v27  ;;  %6471 = vmatpush3.bf16.msra.mxu1 %v6470_v45  ;;  %v5187_v27 = vld [vmem:[#allocation8 + $0x240] sm:$0xff]  ;;  %v5189_v50 = vld [vmem:[#allocation8 + $0x250] sm:$0xff]  ;;  %v5192_v45 = vld [vmem:[#allocation8 + $0x268] sm:$0xff] }
 0x3bb   :  { %6369 = vmatprep.subr.bf16.mxu0 %v6368_v54  ;;  %v5401_v54 = vld [vmem:[#allocation11 + $0x10] sm:$0xff] }
 0x3bc   :  { %v6474_v17 = vpack.c.bf16 %v5402_v7, %v5401_v54  ;;  %6473 = vmatprep.subr.bf16.mxu1 %v6472_v42  ;;  %v5194_v42 = vld [vmem:[#allocation8 + $0x278] sm:$0xff]  ;;  %v6414_v54 = vpack.c.bf16 %v5189_v50, %v5187_v27  ;;  %v5227_v50 = vld [vmem:[#allocation8 + $0x380] sm:$0xff] }
 0x3bd   :  { %v6416_v7 = vpack.c.bf16 %v5194_v42, %v5192_v45  ;;  %v5229_v45 = vld [vmem:[#allocation8 + $0x390] sm:$0xff]  ;;  %v5232_v42 = vld [vmem:[#allocation8 + $0x3a8] sm:$0xff] }
 0x3be   :  { %6371 = vmatpush1.bf16.msra.mxu0 %v6370_v43  ;;  %v6476_v43 = vpack.c.bf16 %v5420_v51, %v5419_v2  ;;  %6475 = vmatpush3.bf16.msra.mxu1 %v6474_v17  ;;  %v5191_v2 = vld [vmem:[#allocation8 + $0x260] sm:$0xff]  ;;  %v5193_v51 = vld [vmem:[#allocation8 + $0x270] sm:$0xff]  ;;  %v5196_v17 = vld [vmem:[#allocation8 + $0x288] sm:$0xff] }
 0x3bf   :  { %6373 = vmatprep.subr.bf16.mxu0 %v6372_v0  ;;  %v5403_v0 = vld [vmem:[#allocation11 + $0x20] sm:$0xff] }
 0x3c0   :  { %v6478_v56 = vpack.c.bf16 %v5404_v28, %v5403_v0  ;;  %6477 = vmatprep.subr.bf16.mxu1 %v6476_v43  ;;  %v5198_v43 = vld [vmem:[#allocation8 + $0x298] sm:$0xff]  ;;  %v6418_v0 = vpack.c.bf16 %v5193_v51, %v5191_v2  ;;  %v5231_v51 = vld [vmem:[#allocation8 + $0x3a0] sm:$0xff] }
 0x3c1   :  { %v6420_v28 = vpack.c.bf16 %v5198_v43, %v5196_v17  ;;  %v5233_v17 = vld [vmem:[#allocation8 + $0x3b0] sm:$0xff]  ;;  %v5236_v43 = vld [vmem:[#allocation8 + $0x3c8] sm:$0xff] }
 0x3c2   :  { %6375 = vmatpush1.bf16.msra.mxu0 %v6374_v44  ;;  %v6480_v44 = vpack.c.bf16 %v5422_v39, %v5421_v19  ;;  %6479 = vmatpush3.bf16.msra.mxu1 %v6478_v56  ;;  %v5195_v19 = vld [vmem:[#allocation8 + $0x280] sm:$0xff]  ;;  %v5197_v39 = vld [vmem:[#allocation8 + $0x290] sm:$0xff]  ;;  %v5200_v56 = vld [vmem:[#allocation8 + $0x2a8] sm:$0xff] }
 0x3c3   :  { %6377 = vmatprep.subr.bf16.mxu0 %v6376_v41  ;;  %v5405_v41 = vld [vmem:[#allocation11 + $0x30] sm:$0xff] }
 0x3c4   :  { %v6482_v23 = vpack.c.bf16 %v5406_v49, %v5405_v41  ;;  %6481 = vmatprep.subr.bf16.mxu1 %v6480_v44  ;;  %v5202_v44 = vld [vmem:[#allocation8 + $0x2b8] sm:$0xff]  ;;  %v6422_v41 = vpack.c.bf16 %v5197_v39, %v5195_v19 }
 0x3c5   :  { %v6424_v49 = vpack.c.bf16 %v5202_v44, %v5200_v56  ;;  %v5235_v56 = vld [vmem:[#allocation8 + $0x3c0] sm:$0xff]  ;;  %v5237_v44 = vld [vmem:[#allocation8 + $0x3d0] sm:$0xff] }
 0x3c6   :  { %6379 = vmatpush1.bf16.msra.mxu0 %v6378_v62  ;;  %v6484_v62 = vpack.c.bf16 %v5424_v12, %v5423_v55  ;;  %6483 = vmatpush3.bf16.msra.mxu1 %v6482_v23  ;;  %v5199_v55 = vld [vmem:[#allocation8 + $0x2a0] sm:$0xff]  ;;  %v5201_v12 = vld [vmem:[#allocation8 + $0x2b0] sm:$0xff]  ;;  %v5204_v23 = vld [vmem:[#allocation8 + $0x2c8] sm:$0xff] }
 0x3c7   :  { %6381 = vmatprep.subr.bf16.mxu0 %v6380_v59  ;;  %v5407_v59 = vld [vmem:[#allocation11 + $0x40] sm:$0xff] }
 0x3c8   :  { %v6486_v21 = vpack.c.bf16 %v5408_v15, %v5407_v59  ;;  %6485 = vmatprep.subr.bf16.mxu1 %v6484_v62  ;;  %v5206_v62 = vld [vmem:[#allocation8 + $0x2d8] sm:$0xff]  ;;  %v6426_v59 = vpack.c.bf16 %v5201_v12, %v5199_v55  ;;  %v6462_v55 = vpack.c.bf16 %v5237_v44, %v5235_v56  ;;  %v5605_v44 = vld [vmem:[%s10188_s9 + $0x10] sm:$0xff] }
 0x3c9   :  { %v6428_v15 = vpack.c.bf16 %v5206_v62, %v5204_v23  ;;  %v5239_v62 = vld [vmem:[#allocation8 + $0x3e0] sm:$0xff] }
 0x3ca   :  { %6383 = vmatpush1.bf16.msra.mxu0 %v6382_v32  ;;  %v6488_v32 = vpack.c.bf16 %v5426_v30, %v5425_v37  ;;  %6487 = vmatpush3.bf16.msra.mxu1 %v6486_v21  ;;  %v5203_v37 = vld [vmem:[#allocation8 + $0x2c0] sm:$0xff]  ;;  %v5205_v30 = vld [vmem:[#allocation8 + $0x2d0] sm:$0xff]  ;;  %v5208_v21 = vld [vmem:[#allocation8 + $0x2e8] sm:$0xff] }
 0x3cb   :  { %6385 = vmatprep.subr.bf16.mxu0 %v6384_v53  ;;  %v5409_v53 = vld [vmem:[#allocation11 + $0x50] sm:$0xff] }
 0x3cc   :  { %v6490_v11 = vpack.c.bf16 %v5410_v29, %v5409_v53  ;;  %6489 = vmatprep.subr.bf16.mxu1 %v6488_v32  ;;  %v5210_v32 = vld [vmem:[#allocation8 + $0x2f8] sm:$0xff]  ;;  %v6430_v53 = vpack.c.bf16 %v5205_v30, %v5203_v37 }
 0x3cd   :  { %v6432_v29 = vpack.c.bf16 %v5210_v32, %v5208_v21  ;;  %v5411_v21 = vld [vmem:[#allocation11 + $0x60] sm:$0xff]  ;;  %v5412_v32 = vld [vmem:[#allocation11 + $0x68] sm:$0xff] }
 0x3ce   :  { %6387 = vmatpush1.bf16.msra.mxu0 %v6386_v34  ;;  %v6492_v34 = vpack.c.bf16 %v5428_v25, %v5427_v47  ;;  %6491 = vmatpush3.bf16.msra.mxu1 %v6490_v11  ;;  %v5207_v47 = vld [vmem:[#allocation8 + $0x2e0] sm:$0xff]  ;;  %v5209_v25 = vld [vmem:[#allocation8 + $0x2f0] sm:$0xff]  ;;  %v5212_v11 = vld [vmem:[#allocation8 + $0x308] sm:$0xff] }
 0x3cf   :  { %6389 = vmatprep.subr.bf16.mxu0 %v6388_v16  ;;  %v10249_v16 = vld [vmem:[#allocation19_spill] sm:$0xff] }
 0x3d0   :  { %6493 = vmatprep.subr.bf16.mxu1 %v6492_v34  ;;  %v2956_v5 = vsub.s32 0, %v10249_v16  ;;  %v2960_v24 = vsub.s32 1, %v10249_v16  ;;  %v2968_v60 = vsub.s32 3, %v10249_v16  ;;  %v5214_v34 = vld [vmem:[#allocation8 + $0x318] sm:$0xff]  ;;  %v2964_v19 = vsub.s32 2, %v10249_v16  ;;  %v5511_v16 = vld [vmem:[%s10186_s7 + $0x10] sm:$0xff] }
 0x3d2   :  { %6391 = vmatpush1.bf16.msra.mxu0 %v6390_v57  ;;  %v2957_v57 = vrot.slane %v10070_v35, %v2956_v5  ;;  %v2969_v14 = vrot.slane %v10070_v35, %v2968_v60  ;;  %v6434_v60 = vpack.c.bf16 %v5209_v25, %v5207_v47  ;;  %v2965_v12 = vrot.slane %v10070_v35, %v2964_v19  ;;  %v5430_v47 = vld [vmem:[#allocation11 + $0xf8] sm:$0xff] }
 0x3d3   :  { %6393 = vmatprep.subr.bf16.mxu0 %v6392_v63  ;;  %v2961_v63 = vrot.slane %v10070_v35, %v2960_v24  ;;  %v5413_v35 = vld [vmem:[#allocation11 + $0x70] sm:$0xff] }
 0x3d6   :  { %6395 = vmatpush1.bf16.msra.mxu0 %v6394_v52 }
 0x3d7   :  { %6397 = vmatprep.subr.bf16.mxu0 %v6396_v38 }
 0x3da   :  { %6399 = vmatpush1.bf16.msra.mxu0 %v6398_v40 }
 0x3db   :  { %6401 = vmatprep.subr.bf16.mxu0 %v6400_v58  ;;  %v5186_v58 = vld [vmem:[#allocation8 + $0x238] sm:$0xff] }
 0x3dc   :  { %v6408_v1 = vpack.c.bf16 %v5186_v58, %v5184_v36  ;;  %v6442_v36 = vpack.c.bf16 %v5217_v8, %v5215_v46 }
 0x3de   :  { %6403 = vmatpush1.bf16.msra.mxu0 %v6402_v18 }
 0x3df   :  { %6405 = vmatprep.subr.bf16.mxu0 %v6404_v3  ;;  %v5185_v3 = vld [vmem:[#allocation8 + $0x230] sm:$0xff] }
 0x3e0   :  { %v6410_v31 = vpack.c.bf16 %v5185_v3, %v5183_v10 }
 0x474   :  { %v4822_v20 = vpop.f32.mrb[0].mxu0  ;;  %v10081_v48 = vpop.f32.mrb[0].mxu1 }
 0x475   :  { %v6536_v4 = vadd.f32 %v4822_v20, %v2957_v57  ;;  %v4824_v52 = vpop.f32.mrb[1].mxu0  ;;  %v5108_v38 = vpop.f32.mrb[1].mxu1  ;;  %v6436_v57 = vpack.c.bf16 %v5214_v34, %v5212_v11  ;;  %v5216_v20 = vld [vmem:[#allocation8 + $0x328] sm:$0xff]  ;;  %v6538_v37 = vadd.f32 %v10081_v48, %v2965_v12  ;;  %v5414_v11 = vld [vmem:[#allocation11 + $0x78] sm:$0xff] }
 0x476   :  { %v6537_v40 = vadd.f32 %v4824_v52, %v2961_v63  ;;  %v6539_v22 = vadd.f32 %v5108_v38, %v2969_v14  ;;  %v5211_v63 = vld [vmem:[#allocation8 + $0x300] sm:$0xff]  ;;  %v5213_v14 = vld [vmem:[#allocation8 + $0x310] sm:$0xff]  ;;  %v6498_v34 = vpack.c.bf16 %v5414_v11, %v5413_v35 }
 0x477   :  { %v5111_v18 = vmax.f32 %v6536_v4, 0.0  ;;  %v5218_v4 = vld [vmem:[#allocation8 + $0x338] sm:$0xff]  ;;  %v6438_v52 = vpack.c.bf16 %v5213_v14, %v5211_v63  ;;  %v5113_v30 = vmax.f32 %v6538_v37, 0.0  ;;  %v5243_v48 = vld [vmem:[#allocation9] sm:$0x3]  ;;  %v5608_v12 = vld [vmem:[%s10188_s9 + $0x28] sm:$0xff] }
 0x478   :  { %v5112_v13 = vmax.f32 %v6537_v40, 0.0  ;;  %v5114_v9 = vmax.f32 %v6539_v22, 0.0  ;;  %v6440_v38 = vpack.c.bf16 %v5218_v4, %v5216_v20  ;;  %v5220_v40 = vld [vmem:[#allocation8 + $0x348] sm:$0xff]  ;;  %v5222_v22 = vld [vmem:[#allocation8 + $0x358] sm:$0xff]  ;;  %v5252_v63 = vrot.slane %v5243_v48, %v2960_v24  ;;  %v5709_v37 = vld [vmem:[#allocation14] ss:$0 sm:$0xff] }
 0x479   :  { %v6444_v58 = vpack.c.bf16 %v5222_v22, %v5220_v40 }
 0x47a   :  { %5319 = vmatprep.mubr.f32.mxu0 %v5112_v13  ;;  %v5219_v13 = vld [vmem:[#allocation8 + $0x340] sm:$0xff] }
 0x47b   :  { %5320 = vmatmul.mubr.f32.vlgmr.msra.gmra.mrb[2].mxu0 %v5111_v18  ;;  %v5224_v18 = vld [vmem:[#allocation8 + $0x368] sm:$0xff] }
 0x47c   :  { %6407 = vmatpush1.bf16.msra.mxu0 %v6406_v61  ;;  %5390 = vmatprep.mubr.f32.mxu0 %v5114_v9  ;;  %v5221_v61 = vld [vmem:[#allocation8 + $0x350] sm:$0xff]  ;;  %v5223_v9 = vld [vmem:[#allocation8 + $0x360] sm:$0xff] }
 0x47d   :  { %6409 = vmatprep.subr.bf16.mxu0 %v6408_v1  ;;  %v5226_v1 = vld [vmem:[#allocation8 + $0x378] sm:$0xff]  ;;  %v6446_v10 = vpack.c.bf16 %v5221_v61, %v5219_v13  ;;  %v5515_v61 = vld [vmem:[%s10186_s7 + $0x30] sm:$0xff] }
 0x47e   :  { %v6448_v3 = vpack.c.bf16 %v5226_v1, %v5224_v18  ;;  %v5516_v18 = vld [vmem:[%s10186_s7 + $0x38] sm:$0xff] }
 0x47f   :  { %v6510_v1 = vpack.c.bf16 %v5516_v18, %v5515_v61 }
 0x480   :  { %6411 = vmatpush1.bf16.msra.mxu0 %v6410_v31  ;;  %v5230_v31 = vld [vmem:[#allocation8 + $0x398] sm:$0xff] }
 0x481   :  { %6413 = vmatprep.subr.bf16.mxu0 %v6412_v26  ;;  %v6450_v26 = vpack.c.bf16 %v5225_v33, %v5223_v9  ;;  %v6452_v27 = vpack.c.bf16 %v5230_v31, %v5228_v6  ;;  %v5519_v33 = vld [vmem:[%s10186_s7 + $0x50] sm:$0xff]  ;;  %v5520_v6 = vld [vmem:[%s10186_s7 + $0x58] sm:$0xff] }
 0x482   :  { %v6516_v31 = vpack.c.bf16 %v5520_v6, %v5519_v33 }
 0x484   :  { %6415 = vmatpush1.bf16.msra.mxu0 %v6414_v54  ;;  %v5234_v54 = vld [vmem:[#allocation8 + $0x3b8] sm:$0xff] }
 0x485   :  { %6417 = vmatprep.subr.bf16.mxu0 %v6416_v7  ;;  %v6454_v7 = vpack.c.bf16 %v5229_v45, %v5227_v50  ;;  %v6456_v2 = vpack.c.bf16 %v5234_v54, %v5232_v42  ;;  %v5523_v45 = vld [vmem:[%s10186_s7 + $0x70] sm:$0xff]  ;;  %v5524_v42 = vld [vmem:[%s10186_s7 + $0x78] sm:$0xff] }
 0x486   :  { %v6522_v54 = vpack.c.bf16 %v5524_v42, %v5523_v45 }
 0x488   :  { %6419 = vmatpush1.bf16.msra.mxu0 %v6418_v0  ;;  %v5238_v0 = vld [vmem:[#allocation8 + $0x3d8] sm:$0xff] }
 0x489   :  { %6421 = vmatprep.subr.bf16.mxu0 %v6420_v28  ;;  %v6458_v28 = vpack.c.bf16 %v5233_v17, %v5231_v51  ;;  %v6460_v39 = vpack.c.bf16 %v5238_v0, %v5236_v43  ;;  %v5708_v51 = vld [vmem:[#allocation12] ss:$0 sm:$0xff] }
 0x48a   :  { %v5603_v0 = vld [vmem:[%s10188_s9] sm:$0xff] }
 0x48c   :  { %6423 = vmatpush1.bf16.msra.mxu0 %v6422_v41  ;;  %v5240_v41 = vld [vmem:[#allocation8 + $0x3e8] sm:$0xff] }
 0x48d   :  { %6425 = vmatprep.subr.bf16.mxu0 %v6424_v49  ;;  %v5242_v49 = vld [vmem:[#allocation8 + $0x3f8] sm:$0xff] }
 0x48e   :  { %v6464_v23 = vpack.c.bf16 %v5242_v49, %v5240_v41  ;;  %v5606_v41 = vld [vmem:[%s10188_s9 + $0x18] sm:$0xff] }
 0x48f   :  { %v6528_v49 = vpack.c.bf16 %v5606_v41, %v5605_v44 }
 0x490   :  { %6427 = vmatpush1.bf16.msra.mxu0 %v6426_v59  ;;  %v5241_v59 = vld [vmem:[#allocation8 + $0x3f0] sm:$0xff] }
 0x491   :  { %6429 = vmatprep.subr.bf16.mxu0 %v6428_v15  ;;  %v6466_v15 = vpack.c.bf16 %v5241_v59, %v5239_v62  ;;  %v5609_v62 = vld [vmem:[%s10188_s9 + $0x30] sm:$0xff]  ;;  %v5610_v59 = vld [vmem:[%s10188_s9 + $0x38] sm:$0xff] }
 0x494   :  { %6431 = vmatpush1.bf16.msra.mxu0 %v6430_v53  ;;  %v6494_v53 = vpack.c.bf16 %v5412_v32, %v5411_v21 }
 0x495   :  { %6433 = vmatprep.subr.bf16.mxu0 %v6432_v29  ;;  %v5429_v29 = vld [vmem:[#allocation11 + $0xf0] sm:$0xff] }
 0x496   :  { %6495 = vmatpush3.bf16.msra.mxu1 %v6494_v53  ;;  %v6496_v25 = vpack.c.bf16 %v5430_v47, %v5429_v29  ;;  %v5710_v29 = vld [vmem:[#allocation3] ss:$0 sm:$0xff] }
 0x498   :  { %6435 = vmatpush1.bf16.msra.mxu0 %v6434_v60  ;;  %6497 = vmatprep.subr.bf16.mxu1 %v6496_v25  ;;  %v6753_v60 = vmov 0.0|0.0  }
 0x499   :  { %6437 = vmatprep.subr.bf16.mxu0 %v6436_v57  ;;  %v5248_v57 = vrot.slane %v5243_v48, %v2956_v5  ;;  %v5512_v5 = vld [vmem:[%s10186_s7 + $0x18] sm:$0xff] }
 0x49a   :  { %6499 = vmatpush3.bf16.msra.mxu1 %v6498_v34  ;;  %v6504_v24 = vpack.c.bf16 %v5512_v5, %v5511_v16 }
 0x49b   :  { %6500 = vmatprep.subr.bf16.mxu1 %v6753_v60 }
 0x49c   :  { %6439 = vmatpush1.bf16.msra.mxu0 %v6438_v52  ;;  %v5509_v52 = vld [vmem:[%s10186_s7] sm:$0xff] }
 0x49d   :  { %6441 = vmatprep.subr.bf16.mxu0 %v6440_v38  ;;  %v5510_v38 = vld [vmem:[%s10186_s7 + $0x8] sm:$0xff] }
 0x49e   :  { %v6501_v40 = vpack.c.bf16 %v5510_v38, %v5509_v52 }
 0x4a0   :  { %6443 = vmatpush1.bf16.msra.mxu0 %v6442_v36  ;;  %v5513_v36 = vld [vmem:[%s10186_s7 + $0x20] sm:$0xff] }
 0x4a1   :  { %6445 = vmatprep.subr.bf16.mxu0 %v6444_v58  ;;  %v5514_v58 = vld [vmem:[%s10186_s7 + $0x28] sm:$0xff] }
 0x4a2   :  { %v6507_v13 = vpack.c.bf16 %v5514_v58, %v5513_v36 }
 0x4a4   :  { %6447 = vmatpush1.bf16.msra.mxu0 %v6446_v10  ;;  %v5517_v10 = vld [vmem:[%s10186_s7 + $0x40] sm:$0xff] }
 0x4a5   :  { %6449 = vmatprep.subr.bf16.mxu0 %v6448_v3  ;;  %v5518_v3 = vld [vmem:[%s10186_s7 + $0x48] sm:$0xff] }
 0x4a6   :  { %v6513_v9 = vpack.c.bf16 %v5518_v3, %v5517_v10 }
 0x4a8   :  { %6451 = vmatpush1.bf16.msra.mxu0 %v6450_v26  ;;  %v5521_v26 = vld [vmem:[%s10186_s7 + $0x60] sm:$0xff] }
 0x4a9   :  { %6453 = vmatprep.subr.bf16.mxu0 %v6452_v27  ;;  %v5522_v27 = vld [vmem:[%s10186_s7 + $0x68] sm:$0xff] }
 0x4aa   :  { %v6519_v50 = vpack.c.bf16 %v5522_v27, %v5521_v26 }
 0x4ac   :  { %6455 = vmatpush1.bf16.msra.mxu0 %v6454_v7  ;;  %v6755_v7 = vmov 0.0  }
 0x4ad   :  { %6457 = vmatprep.subr.bf16.mxu0 %v6456_v2 }
 0x4b0   :  { %6459 = vmatpush1.bf16.msra.mxu0 %v6458_v28  ;;  %v5604_v28 = vld [vmem:[%s10188_s9 + $0x8] sm:$0xff] }
 0x4b1   :  { %6461 = vmatprep.subr.bf16.mxu0 %v6460_v39  ;;  %v6525_v39 = vpack.c.bf16 %v5604_v28, %v5603_v0 }
 0x4b4   :  { %6463 = vmatpush1.bf16.msra.mxu0 %v6462_v55  ;;  %v5607_v55 = vld [vmem:[%s10188_s9 + $0x20] sm:$0xff] }
 0x4b5   :  { %6465 = vmatprep.subr.bf16.mxu0 %v6464_v23  ;;  %v6531_v23 = vpack.c.bf16 %v5608_v12, %v5607_v55 }
 0x4b8   :  { %6467 = vmatpush1.bf16.msra.mxu0 %v6466_v15  ;;  %v6534_v15 = vpack.c.bf16 %v5610_v59, %v5609_v62 }
 0x4bb   :  { %5391 = vmatmul.mubr.f32.vlgmr.msra.gmra.mrb[2].mxu0 %v5113_v30 }
 0x58e   :  { %v5392_v14 = vpop.f32.mrb[2].mxu0 }
 0x58f   :  { %v6540_v20 = vadd.f32 %v5392_v14, %v5248_v57  ;;  %v5394_v4 = vpop.f32.mrb[3].mxu0 }
 0x590   :  { %v6541_v46 = vadd.f32 %v5394_v4, %v5252_v63 }
 0x591   :  { %v5397_v22 = vmax.f32 %v6540_v20, 0.0 }
 0x592   :  { %v5398_v8 = vmax.f32 %v6541_v46, 0.0 }
 0x594   :  { %5502 = vmatprep.mubr.f32.mxu1 %v5398_v8 }
 0x595   :  { %5503 = vmatmul.mubr.f32.vlgmr.msra.gmra.mrb[2].mxu1 %v5397_v22 }
 0x596   :  { %6502 = vmatpush3.bf16.msra.mxu1 %v6501_v40  ;;  %5806 = vmatprep.mubr.msk.f32.mxu1 %vm6754_vm7, %v6755_v7 }
 0x597   :  { %6503 = vmatprep.subr.bf16.mxu1 %v6753_v60 }
 0x59a   :  { %6505 = vmatpush3.bf16.msra.mxu1 %v6504_v24 }
 0x59b   :  { %6506 = vmatprep.subr.bf16.mxu1 %v6753_v60 }
 0x59e   :  { %6508 = vmatpush3.bf16.msra.mxu1 %v6507_v13 }
 0x59f   :  { %6509 = vmatprep.subr.bf16.mxu1 %v6753_v60 }
 0x5a2   :  { %6511 = vmatpush3.bf16.msra.mxu1 %v6510_v1 }
 0x5a3   :  { %6512 = vmatprep.subr.bf16.mxu1 %v6753_v60 }
 0x5a6   :  { %6514 = vmatpush3.bf16.msra.mxu1 %v6513_v9 }
 0x5a7   :  { %6515 = vmatprep.subr.bf16.mxu1 %v6753_v60 }
 0x5aa   :  { %6517 = vmatpush3.bf16.msra.mxu1 %v6516_v31 }
 0x5ab   :  { %6518 = vmatprep.subr.bf16.mxu1 %v6753_v60 }
 0x5ae   :  { %6520 = vmatpush3.bf16.msra.mxu1 %v6519_v50 }
 0x5af   :  { %6521 = vmatprep.subr.bf16.mxu1 %v6753_v60 }
 0x5b2   :  { %6523 = vmatpush3.bf16.msra.mxu1 %v6522_v54 }
 0x5b3   :  { %6524 = vmatprep.subr.bf16.mxu1 %v6753_v60 }
 0x668   :  { %v5745_v2 = vpop.f32.mrb[2].mxu1 }
 0x669   :  { %v5746_v17 = vpop.f32.mrb[3].mxu1 }
 0x66a   :  { %v5747_v43 = vadd.f32 %v5746_v17, %v5745_v2 }
 0x66c   :  { %v5505_v19 = vadd.f32 %v5747_v43, %v5708_v51 }
 0x66e   :  { %v5508_v56 = vmax.f32 %v5505_v19, 0.0 }
 0x670   :  { %5807 = vmatmul.mubr.f32.vlgmr.msra.gmra.mrb[4].mxu1 %v5508_v56 }
 0x671   :  { %6526 = vmatpush3.bf16.msra.mxu1 %v6525_v39  ;;  %5825 = vmatprep.mubr.msk.f32.mxu1 %vm6754_vm7, %v6755_v7 }
 0x672   :  { %6527 = vmatprep.subr.bf16.mxu1 %v6753_v60 }
 0x675   :  { %6529 = vmatpush3.bf16.msra.mxu1 %v6528_v49 }
 0x676   :  { %6530 = vmatprep.subr.bf16.mxu1 %v6753_v60 }
 0x679   :  { %6532 = vmatpush3.bf16.msra.mxu1 %v6531_v23 }
 0x67a   :  { %6533 = vmatprep.subr.bf16.mxu1 %v6753_v60 }
 0x67d   :  { %6535 = vmatpush3.bf16.msra.mxu1 %v6534_v15 }
 0x743   :  { %v5598_v30 = vpop.f32.mrb[4].mxu1 }
 0x744   :  { %v5599_v21 = vadd.f32 %v5709_v37, %v5598_v30  ;;  %v5808_v32 = vpop.f32.mrb[5].mxu1 }
 0x746   :  { %v5602_v53 = vmax.f32 %v5599_v21, 0.0 }
 0x748   :  { %5826 = vmatmul.mubr.msk.f32.vlgmr.msra.gmra.mrb[6].mxu1 %vm5618_vm8, %v5602_v53 }
 0x81b   :  { %v5688_v47 = vpop.f32.mrb[6].mxu1 }
 0x81c   :  { %v5689_v25 = vadd.f32 %v5710_v29, %v5688_v47  ;;  %v5827_v35 = vpop.f32.mrb[7].mxu1 }
 0x81e   :  { %v5712_v11 = vmul.f32 -1.442695, %v5689_v25 }
 0x820   :  { %6573 = vpow2.f32 %v5712_v11 }
 0x82a   :  { %v6574_v34 = vpop.eup %6573 }
 0x82b   :  { %v5695_v60 = vadd.f32 1.0, %v6574_v34 }
 0x82d   :  { %6575 = vrcp.f32 %v5695_v60 }
 0x837   :  { %v6576_v48 = vpop.eup %6575 }
 0x838   :  { %5699 = vst.msk [vmem:[%s10190_s11] sm:$0x3] %vm5698_vm9, %v6576_v48 }
 0x839   :  { %5704 = vsyncpa [#allocation5], 1 }
 0x83a   :  { %5705 = vsyncpa [#allocation7], 1 }
 0x83b   :  { %5706 = vsyncpa [#allocation10], 1 }
 0x83c   :  { %5707 = vsyncpa [#allocation13], 1 }

</bundles_post_ra>
